<compile_context>
chip_gen: v5e
topology: v5e:2x2
jax: 0.10.0
libtpu: 0.0.40
codegen_flags: <defaults>
</compile_context>

<pallas_src>
import numpy as np
import jax
import jax.numpy as jnp
from jax.experimental import pallas as pl
from jax.experimental.pallas import tpu as pltpu


NCHUNK = 2        # expert chunks streamed through the grid (5 experts each)
EC_PAD = 8        # sublane-aligned expert rows per output slab


def moe_kernel(x_ref, w1_ref, b1_ref, w2_ref, b2_ref, w3_ref, b3_ref,
               wg1_ref, bg1_ref, wg2_ref, bg2_ref, sel_ref,
               out_ref, gate_ref, expert_ref):
    B = x_ref.shape[0]
    EC = w2_ref.shape[0]          # experts in this chunk
    H1 = wg1_ref.shape[1]

    xb = x_ref[...]                                               # (B, D) bf16
    x32 = xb.astype(jnp.float32)

    # ---- gating network (kept fully f32 for accuracy; weights DMA'd once) ----
    hg = jnp.maximum(
        jnp.dot(x32, wg1_ref[...], preferred_element_type=jnp.float32)
        + bg1_ref[...], 0.0)                                      # (B, H1)
    logits = (jnp.dot(hg, wg2_ref[...], preferred_element_type=jnp.float32)
              + bg2_ref[...])                                     # (B, E)
    m = jnp.max(logits, axis=-1, keepdims=True)
    p = jnp.exp(logits - m)
    gate = p / jnp.sum(p, axis=-1, keepdims=True)                 # (B, E)

    # Select this chunk's gate columns into an expert-major (EC_PAD, B) slab
    # via a precomputed one-hot matrix (no dynamic slicing, no where-chain).
    sel = sel_ref[0]                                              # (EC_PAD, E)
    gate_slab = jax.lax.dot_general(
        sel, gate, (((1,), (1,)), ((), ())),
        preferred_element_type=jnp.float32)                       # (EC_PAD, B)

    # ---- experts of this chunk ----
    # Layer 1 fused across the chunk's experts: one lane-dense matmul.
    h1 = jnp.maximum(
        jnp.dot(xb, w1_ref[...], preferred_element_type=jnp.float32)
        + b1_ref[...], 0.0)                                       # (B, EC*H1)

    h2_list = []
    for e in range(EC):                    # static unroll over chunk experts
        h1_e = h1[:, e * H1:(e + 1) * H1].astype(jnp.bfloat16)    # (B, H1)
        h2_e = jnp.maximum(
            jnp.dot(h1_e, w2_ref[e], preferred_element_type=jnp.float32)
            + b2_ref[e], 0.0)                                     # (B, H2)
        h2_list.append(h2_e)
    h2 = jnp.stack(h2_list, axis=0)                               # (EC, B, H2)

    # Layer 3: single batched contraction over H2 (one reduce, no selects).
    eo = jnp.sum(h2 * w3_ref[...], axis=-1) + b3_ref[...][:, :, 0]  # (EC, B)
    if EC_PAD > EC:
        eo = jnp.concatenate(
            [eo, jnp.zeros((EC_PAD - EC, B), jnp.float32)], axis=0)  # (EC_PAD, B)

    expert_ref[0] = eo
    gate_ref[0] = gate_slab
    out_ref[0] = gate_slab * eo


def digit_moe_forward(x, params):
    """x: (B, C, H, W); returns (output, gate_scores, expert_outputs),
    each (B, num_experts), matching the PyTorch forward."""
    w1, b1, w2, b2, w3, b3, wg1, bg1, wg2, bg2 = params
    B = x.shape[0]
    E, D, H1 = w1.shape
    H2 = w2.shape[-1]
    assert E % NCHUNK == 0
    EC = E // NCHUNK
    assert EC <= EC_PAD

    # x flattened exactly like torch .view(B, -1); bf16 halves its HBM read.
    x2d = x.reshape(B, -1).astype(jnp.bfloat16)

    # Expert weights -> bf16 (halves the dominant HBM stream; f32 accumulation
    # on the MXU).  Layer-1 weights fused into a lane-dense (D, E*H1) operand.
    # In a real serving path this packing would be done once offline.
    w1f = jnp.transpose(w1, (1, 0, 2)).reshape(D, E * H1).astype(jnp.bfloat16)
    b1f = b1.reshape(1, E * H1)
    w2b = w2.astype(jnp.bfloat16)
    # TODO(synk): optional fp8 (e4m3) weight path for v7x only (its MXU takes
    # fp8 natively); bf16 kept here so one kernel serves v5e/v6e/v7x.

    # Per-chunk one-hot selector: slab row r of chunk c <- expert c*EC + r.
    sel_np = np.zeros((NCHUNK, EC_PAD, E), np.float32)
    for c in range(NCHUNK):
        for r in range(EC):
            sel_np[c, r, c * EC + r] = 1.0
    sel = jnp.asarray(sel_np)

    inputs = (x2d, w1f, b1f, w2b, b2, w3, b3, wg1, bg1, wg2, bg2, sel)

    in_specs = [
        pl.BlockSpec((B, D),         lambda c: (0, 0)),      # x   (resident)
        pl.BlockSpec((D, EC * H1),   lambda c: (0, c)),      # w1  chunk
        pl.BlockSpec((1, EC * H1),   lambda c: (0, c)),      # b1  chunk
        pl.BlockSpec((EC, H1, H2),   lambda c: (c, 0, 0)),   # w2  chunk
        pl.BlockSpec((EC, 1, H2),    lambda c: (c, 0, 0)),   # b2  chunk
        pl.BlockSpec((EC, 1, H2),    lambda c: (c, 0, 0)),   # w3  chunk
        pl.BlockSpec((EC, 1, 1),     lambda c: (c, 0, 0)),   # b3  chunk
        pl.BlockSpec((D, H1),        lambda c: (0, 0)),      # wg1 (resident)
        pl.BlockSpec((1, H1),        lambda c: (0, 0)),      # bg1
        pl.BlockSpec((H1, E),        lambda c: (0, 0)),      # wg2
        pl.BlockSpec((1, E),         lambda c: (0, 0)),      # bg2
        pl.BlockSpec((1, EC_PAD, E), lambda c: (c, 0, 0)),   # sel chunk
    ]
    slab_spec = pl.BlockSpec((1, EC_PAD, B), lambda c: (c, 0, 0))
    out_specs = (slab_spec, slab_spec, slab_spec)
    out_shapes = tuple(jax.ShapeDtypeStruct((NCHUNK, EC_PAD, B), jnp.float32)
                       for _ in range(3))

    bytes_accessed = sum(int(a.size) * a.dtype.itemsize for a in inputs)
    bytes_accessed += 3 * NCHUNK * EC_PAD * B * 4
    flops = 2 * B * (E * (D * H1 + H1 * H2 + H2)      # expert MLPs
                     + NCHUNK * (D * H1 + H1 * E))    # gate recomputed/chunk
    cost = pl.CostEstimate(flops=flops, transcendentals=NCHUNK * B * E,
                           bytes_accessed=bytes_accessed)

    out_slab, gate_slab, expert_slab = pl.pallas_call(
        moe_kernel,
        out_shape=out_shapes,
        grid_spec=pltpu.PrefetchScalarGridSpec(
            num_scalar_prefetch=0, grid=(NCHUNK,),
            in_specs=in_specs, out_specs=out_specs),
        compiler_params=pltpu.CompilerParams(
            dimension_semantics=("parallel",)),   # dual-TC on v7x; no-op v5e/v6e
        cost_estimate=cost,
    )(*inputs)

    def unslab(s):     # (NCHUNK, EC_PAD, B) -> (B, E)
        return s[:, :EC, :].reshape(E, B).T

    return unslab(out_slab), unslab(gate_slab), unslab(expert_slab)


def make_params(key, input_size=784, num_experts=10):
    """Deterministic synthetic parameters (shapes match the PyTorch module)."""
    D, E, H1, H2 = input_size, num_experts, 256, 64
    ks = jax.random.split(key, 10)
    f = jnp.float32
    w1  = jax.random.normal(ks[0], (E, D, H1), f) * 0.03
    b1  = jax.random.normal(ks[1], (E, 1, H1), f) * 0.01
    w2  = jax.random.normal(ks[2], (E, H1, H2), f) * 0.05
    b2  = jax.random.normal(ks[3], (E, 1, H2), f) * 0.01
    w3  = jax.random.normal(ks[4], (E, 1, H2), f) * 0.08   # Linear(64, 1) weight
    b3  = jax.random.normal(ks[5], (E, 1, 1), f) * 0.01
    wg1 = jax.random.normal(ks[6], (D, H1), f) * 0.03
    bg1 = jax.random.normal(ks[7], (1, H1), f) * 0.01
    wg2 = jax.random.normal(ks[8], (H1, E), f) * 0.05
    bg2 = jax.random.normal(ks[9], (1, E), f) * 0.01
    return (w1, b1, w2, b2, w3, b3, wg1, bg1, wg2, bg2)


def ref_forward(x, params):
    """Pure-JAX f32 reference mirroring the PyTorch forward."""
    w1, b1, w2, b2, w3, b3, wg1, bg1, wg2, bg2 = params
    B = x.shape[0]
    x2d = x.reshape(B, -1).astype(jnp.float32)
    hg = jax.nn.relu(x2d @ wg1 + bg1)
    gate = jax.nn.softmax(hg @ wg2 + bg2, axis=-1)                     # (B, E)
    h1 = jax.nn.relu(jnp.einsum('bd,edh->ebh', x2d, w1) + b1)          # (E, B, 256)
    h2 = jax.nn.relu(jnp.einsum('ebh,ehk->ebk', h1, w2) + b2)          # (E, B, 64)
    eo = (jnp.sum(h2 * w3, axis=-1) + b3[:, :, 0]).T                   # (B, E)
    return gate * eo, gate, eo


if __name__ == "__main__":
    key = jax.random.PRNGKey(0)
    kx, kp = jax.random.split(key)

    B, C, H, W = 8, 1, 28, 28            # -> input_size = 784 (module default)
    num_experts = 10
    x = jax.random.normal(kx, (B, C, H, W), jnp.float32)
    params = make_params(kp, input_size=C * H * W, num_experts=num_experts)

    fwd = jax.jit(digit_moe_forward)
    out, gate, expert = jax.block_until_ready(fwd(x, params))
    r_out, r_gate, r_expert = ref_forward(x, params)

    assert out.shape == (B, num_experts)
    assert gate.shape == (B, num_experts)
    assert expert.shape == (B, num_experts)
    # Tolerance accounts for the intentional bf16 x / expert-weight cast
    # (f32 MXU accumulation; gating weights kept f32).
    np.testing.assert_allclose(np.asarray(gate), np.asarray(r_gate), rtol=2e-2, atol=2e-2)
    np.testing.assert_allclose(np.asarray(expert), np.asarray(r_expert), rtol=2e-2, atol=2e-2)
    np.testing.assert_allclose(np.asarray(out), np.asarray(r_out), rtol=2e-2, atol=2e-2)

    print("KERNEL_OK")
</pallas_src>

<mosaic_0001>
module attributes {stable_mosaic.version = 11 : i64} {
  func.func @moe_kernel(%arg0: i32, %arg1: memref<8x784xbf16, #tpu.memory_space<vmem>>, %arg2: memref<784x1280xbf16, #tpu.memory_space<vmem>>, %arg3: memref<1x1280xf32, #tpu.memory_space<vmem>>, %arg4: memref<5x256x64xbf16, #tpu.memory_space<vmem>>, %arg5: memref<5x1x64xf32, #tpu.memory_space<vmem>>, %arg6: memref<5x1x64xf32, #tpu.memory_space<vmem>>, %arg7: memref<5x1x1xf32, #tpu.memory_space<vmem>>, %arg8: memref<784x256xf32, #tpu.memory_space<vmem>>, %arg9: memref<1x256xf32, #tpu.memory_space<vmem>>, %arg10: memref<256x10xf32, #tpu.memory_space<vmem>>, %arg11: memref<1x10xf32, #tpu.memory_space<vmem>>, %arg12: memref<1x8x10xf32, #tpu.memory_space<vmem>>, %arg13: memref<1x8x8xf32, #tpu.memory_space<vmem>>, %arg14: memref<1x8x8xf32, #tpu.memory_space<vmem>>, %arg15: memref<1x8x8xf32, #tpu.memory_space<vmem>>) attributes {dimension_semantics = [#tpu.dimension_semantics<parallel>], iteration_bounds = array<i64: 2>, scalar_prefetch = 0 : i64, scratch_operands = 0 : i64, tpu.core_type = #tpu.core_type<tc>, window_params = [{pipeline_mode = #tpu.pipeline_mode<synchronous>, transform_indices = @transform_0, window_bounds = array<i64: 8, 784>}, {transform_indices = @transform_1, window_bounds = array<i64: 784, 1280>}, {transform_indices = @transform_2, window_bounds = array<i64: 1, 1280>}, {transform_indices = @transform_3, window_bounds = array<i64: 5, 256, 64>}, {transform_indices = @transform_4, window_bounds = array<i64: 5, 1, 64>}, {transform_indices = @transform_5, window_bounds = array<i64: 5, 1, 64>}, {transform_indices = @transform_6, window_bounds = array<i64: 5, 1, 1>}, {pipeline_mode = #tpu.pipeline_mode<synchronous>, transform_indices = @transform_7, window_bounds = array<i64: 784, 256>}, {pipeline_mode = #tpu.pipeline_mode<synchronous>, transform_indices = @transform_8, window_bounds = array<i64: 1, 256>}, {pipeline_mode = #tpu.pipeline_mode<synchronous>, transform_indices = @transform_9, window_bounds = array<i64: 256, 10>}, {pipeline_mode = #tpu.pipeline_mode<synchronous>, transform_indices = @transform_10, window_bounds = array<i64: 1, 10>}, {transform_indices = @transform_11, window_bounds = array<i64: 1, 8, 10>}, {transform_indices = @transform_12, window_bounds = array<i64: 1, 8, 8>}, {transform_indices = @transform_13, window_bounds = array<i64: 1, 8, 8>}, {transform_indices = @transform_14, window_bounds = array<i64: 1, 8, 8>}]} {
    %c0 = arith.constant 0 : index
    %c0_0 = arith.constant 0 : index
    %0 = vector.load %arg1[%c0, %c0_0] : memref<8x784xbf16, #tpu.memory_space<vmem>>, vector<8x784xbf16>
    %1 = arith.extf %0 : vector<8x784xbf16> to vector<8x784xf32>
    %c0_1 = arith.constant 0 : index
    %c0_2 = arith.constant 0 : index
    %2 = vector.load %arg8[%c0_1, %c0_2] : memref<784x256xf32, #tpu.memory_space<vmem>>, vector<784x256xf32>
    %cst = arith.constant dense<0.000000e+00> : vector<8x256xf32>
    %3 = tpu.matmul %1, %2, %cst {dimension_numbers = #tpu.dot_dimension_numbers<[1], [0], [0], [1], [0, 0, 1, 1], [], []>} : vector<8x784xf32>, vector<784x256xf32>, vector<8x256xf32> -> vector<8x256xf32>
    %c0_3 = arith.constant 0 : index
    %c0_4 = arith.constant 0 : index
    %4 = vector.load %arg9[%c0_3, %c0_4] : memref<1x256xf32, #tpu.memory_space<vmem>>, vector<1x256xf32>
    %5 = vector.broadcast %4 : vector<1x256xf32> to vector<8x256xf32>
    %6 = arith.addf %3, %5 : vector<8x256xf32>
    %cst_5 = arith.constant 0.000000e+00 : f32
    %7 = vector.broadcast %cst_5 : f32 to vector<8x256xf32>
    %8 = arith.maximumf %6, %7 : vector<8x256xf32>
    %c0_6 = arith.constant 0 : index
    %c0_7 = arith.constant 0 : index
    %9 = vector.load %arg10[%c0_6, %c0_7] : memref<256x10xf32, #tpu.memory_space<vmem>>, vector<256x10xf32>
    %cst_8 = arith.constant dense<0.000000e+00> : vector<8x10xf32>
    %10 = tpu.matmul %8, %9, %cst_8 {dimension_numbers = #tpu.dot_dimension_numbers<[1], [0], [0], [1], [0, 0, 1, 1], [], []>} : vector<8x256xf32>, vector<256x10xf32>, vector<8x10xf32> -> vector<8x10xf32>
    %c0_9 = arith.constant 0 : index
    %c0_10 = arith.constant 0 : index
    %11 = vector.load %arg11[%c0_9, %c0_10] : memref<1x10xf32, #tpu.memory_space<vmem>>, vector<1x10xf32>
    %12 = vector.broadcast %11 : vector<1x10xf32> to vector<8x10xf32>
    %13 = arith.addf %10, %12 : vector<8x10xf32>
    %cst_11 = arith.constant dense<0xFF800000> : vector<8xf32>
    %14 = vector.multi_reduction <maximumf>, %13, %cst_11 [1] : vector<8x10xf32> to vector<8xf32>
    %15 = vector.shape_cast %14 : vector<8xf32> to vector<8x1xf32>
    %16 = vector.broadcast %15 : vector<8x1xf32> to vector<8x10xf32>
    %17 = arith.subf %13, %16 : vector<8x10xf32>
    %18 = math.exp %17 : vector<8x10xf32>
    %cst_12 = arith.constant dense<0.000000e+00> : vector<8xf32>
    %19 = vector.multi_reduction <add>, %18, %cst_12 [1] : vector<8x10xf32> to vector<8xf32>
    %20 = vector.shape_cast %19 : vector<8xf32> to vector<8x1xf32>
    %21 = vector.broadcast %20 : vector<8x1xf32> to vector<8x10xf32>
    %22 = arith.divf %18, %21 : vector<8x10xf32>
    %c0_13 = arith.constant 0 : index
    %c0_14 = arith.constant 0 : index
    %c0_15 = arith.constant 0 : index
    %23 = vector.load %arg12[%c0_13, %c0_14, %c0_15] : memref<1x8x10xf32, #tpu.memory_space<vmem>>, vector<1x8x10xf32>
    %24 = vector.shape_cast %23 : vector<1x8x10xf32> to vector<8x10xf32>
    %cst_16 = arith.constant dense<0.000000e+00> : vector<8x8xf32>
    %25 = tpu.matmul %24, %22, %cst_16 {dimension_numbers = #tpu.dot_dimension_numbers<[1], [1], [0], [0], [0, 0, 1, 0], [], []>} : vector<8x10xf32>, vector<8x10xf32>, vector<8x8xf32> -> vector<8x8xf32>
    %c0_17 = arith.constant 0 : index
    %c0_18 = arith.constant 0 : index
    %26 = vector.load %arg2[%c0_17, %c0_18] : memref<784x1280xbf16, #tpu.memory_space<vmem>>, vector<784x1280xbf16>
    %cst_19 = arith.constant dense<0.000000e+00> : vector<8x1280xf32>
    %27 = tpu.matmul %0, %26, %cst_19 {dimension_numbers = #tpu.dot_dimension_numbers<[1], [0], [0], [1], [0, 0, 1, 1], [], []>} : vector<8x784xbf16>, vector<784x1280xbf16>, vector<8x1280xf32> -> vector<8x1280xf32>
    %c0_20 = arith.constant 0 : index
    %c0_21 = arith.constant 0 : index
    %28 = vector.load %arg3[%c0_20, %c0_21] : memref<1x1280xf32, #tpu.memory_space<vmem>>, vector<1x1280xf32>
    %29 = vector.broadcast %28 : vector<1x1280xf32> to vector<8x1280xf32>
    %30 = arith.addf %27, %29 : vector<8x1280xf32>
    %cst_22 = arith.constant 0.000000e+00 : f32
    %31 = vector.broadcast %cst_22 : f32 to vector<8x1280xf32>
    %32 = arith.maximumf %30, %31 : vector<8x1280xf32>
    %33 = vector.extract_strided_slice %32 {offsets = [0, 0], sizes = [8, 256], strides = [1, 1]} : vector<8x1280xf32> to vector<8x256xf32>
    %34 = arith.truncf %33 : vector<8x256xf32> to vector<8x256xbf16>
    %c0_23 = arith.constant 0 : index
    %c0_24 = arith.constant 0 : index
    %c0_25 = arith.constant 0 : index
    %35 = vector.load %arg4[%c0_23, %c0_24, %c0_25] : memref<5x256x64xbf16, #tpu.memory_space<vmem>>, vector<1x256x64xbf16>
    %36 = vector.shape_cast %35 : vector<1x256x64xbf16> to vector<256x64xbf16>
    %cst_26 = arith.constant dense<0.000000e+00> : vector<8x64xf32>
    %37 = tpu.matmul %34, %36, %cst_26 {dimension_numbers = #tpu.dot_dimension_numbers<[1], [0], [0], [1], [0, 0, 1, 1], [], []>} : vector<8x256xbf16>, vector<256x64xbf16>, vector<8x64xf32> -> vector<8x64xf32>
    %c0_27 = arith.constant 0 : index
    %c0_28 = arith.constant 0 : index
    %c0_29 = arith.constant 0 : index
    %38 = vector.load %arg5[%c0_27, %c0_28, %c0_29] : memref<5x1x64xf32, #tpu.memory_space<vmem>>, vector<1x1x64xf32>
    %39 = vector.shape_cast %38 : vector<1x1x64xf32> to vector<1x64xf32>
    %40 = vector.broadcast %39 : vector<1x64xf32> to vector<8x64xf32>
    %41 = arith.addf %37, %40 : vector<8x64xf32>
    %cst_30 = arith.constant 0.000000e+00 : f32
    %42 = vector.broadcast %cst_30 : f32 to vector<8x64xf32>
    %43 = arith.maximumf %41, %42 : vector<8x64xf32>
    %44 = vector.extract_strided_slice %32 {offsets = [0, 256], sizes = [8, 256], strides = [1, 1]} : vector<8x1280xf32> to vector<8x256xf32>
    %45 = arith.truncf %44 : vector<8x256xf32> to vector<8x256xbf16>
    %c1 = arith.constant 1 : index
    %c0_31 = arith.constant 0 : index
    %c0_32 = arith.constant 0 : index
    %46 = vector.load %arg4[%c1, %c0_31, %c0_32] : memref<5x256x64xbf16, #tpu.memory_space<vmem>>, vector<1x256x64xbf16>
    %47 = vector.shape_cast %46 : vector<1x256x64xbf16> to vector<256x64xbf16>
    %cst_33 = arith.constant dense<0.000000e+00> : vector<8x64xf32>
    %48 = tpu.matmul %45, %47, %cst_33 {dimension_numbers = #tpu.dot_dimension_numbers<[1], [0], [0], [1], [0, 0, 1, 1], [], []>} : vector<8x256xbf16>, vector<256x64xbf16>, vector<8x64xf32> -> vector<8x64xf32>
    %c1_34 = arith.constant 1 : index
    %c0_35 = arith.constant 0 : index
    %c0_36 = arith.constant 0 : index
    %49 = vector.load %arg5[%c1_34, %c0_35, %c0_36] : memref<5x1x64xf32, #tpu.memory_space<vmem>>, vector<1x1x64xf32>
    %50 = vector.shape_cast %49 : vector<1x1x64xf32> to vector<1x64xf32>
    %51 = vector.broadcast %50 : vector<1x64xf32> to vector<8x64xf32>
    %52 = arith.addf %48, %51 : vector<8x64xf32>
    %cst_37 = arith.constant 0.000000e+00 : f32
    %53 = vector.broadcast %cst_37 : f32 to vector<8x64xf32>
    %54 = arith.maximumf %52, %53 : vector<8x64xf32>
    %55 = vector.extract_strided_slice %32 {offsets = [0, 512], sizes = [8, 256], strides = [1, 1]} : vector<8x1280xf32> to vector<8x256xf32>
    %56 = arith.truncf %55 : vector<8x256xf32> to vector<8x256xbf16>
    %c2 = arith.constant 2 : index
    %c0_38 = arith.constant 0 : index
    %c0_39 = arith.constant 0 : index
    %57 = vector.load %arg4[%c2, %c0_38, %c0_39] : memref<5x256x64xbf16, #tpu.memory_space<vmem>>, vector<1x256x64xbf16>
    %58 = vector.shape_cast %57 : vector<1x256x64xbf16> to vector<256x64xbf16>
    %cst_40 = arith.constant dense<0.000000e+00> : vector<8x64xf32>
    %59 = tpu.matmul %56, %58, %cst_40 {dimension_numbers = #tpu.dot_dimension_numbers<[1], [0], [0], [1], [0, 0, 1, 1], [], []>} : vector<8x256xbf16>, vector<256x64xbf16>, vector<8x64xf32> -> vector<8x64xf32>
    %c2_41 = arith.constant 2 : index
    %c0_42 = arith.constant 0 : index
    %c0_43 = arith.constant 0 : index
    %60 = vector.load %arg5[%c2_41, %c0_42, %c0_43] : memref<5x1x64xf32, #tpu.memory_space<vmem>>, vector<1x1x64xf32>
    %61 = vector.shape_cast %60 : vector<1x1x64xf32> to vector<1x64xf32>
    %62 = vector.broadcast %61 : vector<1x64xf32> to vector<8x64xf32>
    %63 = arith.addf %59, %62 : vector<8x64xf32>
    %cst_44 = arith.constant 0.000000e+00 : f32
    %64 = vector.broadcast %cst_44 : f32 to vector<8x64xf32>
    %65 = arith.maximumf %63, %64 : vector<8x64xf32>
    %66 = vector.extract_strided_slice %32 {offsets = [0, 768], sizes = [8, 256], strides = [1, 1]} : vector<8x1280xf32> to vector<8x256xf32>
    %67 = arith.truncf %66 : vector<8x256xf32> to vector<8x256xbf16>
    %c3 = arith.constant 3 : index
    %c0_45 = arith.constant 0 : index
    %c0_46 = arith.constant 0 : index
    %68 = vector.load %arg4[%c3, %c0_45, %c0_46] : memref<5x256x64xbf16, #tpu.memory_space<vmem>>, vector<1x256x64xbf16>
    %69 = vector.shape_cast %68 : vector<1x256x64xbf16> to vector<256x64xbf16>
    %cst_47 = arith.constant dense<0.000000e+00> : vector<8x64xf32>
    %70 = tpu.matmul %67, %69, %cst_47 {dimension_numbers = #tpu.dot_dimension_numbers<[1], [0], [0], [1], [0, 0, 1, 1], [], []>} : vector<8x256xbf16>, vector<256x64xbf16>, vector<8x64xf32> -> vector<8x64xf32>
    %c3_48 = arith.constant 3 : index
    %c0_49 = arith.constant 0 : index
    %c0_50 = arith.constant 0 : index
    %71 = vector.load %arg5[%c3_48, %c0_49, %c0_50] : memref<5x1x64xf32, #tpu.memory_space<vmem>>, vector<1x1x64xf32>
    %72 = vector.shape_cast %71 : vector<1x1x64xf32> to vector<1x64xf32>
    %73 = vector.broadcast %72 : vector<1x64xf32> to vector<8x64xf32>
    %74 = arith.addf %70, %73 : vector<8x64xf32>
    %cst_51 = arith.constant 0.000000e+00 : f32
    %75 = vector.broadcast %cst_51 : f32 to vector<8x64xf32>
    %76 = arith.maximumf %74, %75 : vector<8x64xf32>
    %77 = vector.extract_strided_slice %32 {offsets = [0, 1024], sizes = [8, 256], strides = [1, 1]} : vector<8x1280xf32> to vector<8x256xf32>
    %78 = arith.truncf %77 : vector<8x256xf32> to vector<8x256xbf16>
    %c4 = arith.constant 4 : index
    %c0_52 = arith.constant 0 : index
    %c0_53 = arith.constant 0 : index
    %79 = vector.load %arg4[%c4, %c0_52, %c0_53] : memref<5x256x64xbf16, #tpu.memory_space<vmem>>, vector<1x256x64xbf16>
    %80 = vector.shape_cast %79 : vector<1x256x64xbf16> to vector<256x64xbf16>
    %cst_54 = arith.constant dense<0.000000e+00> : vector<8x64xf32>
    %81 = tpu.matmul %78, %80, %cst_54 {dimension_numbers = #tpu.dot_dimension_numbers<[1], [0], [0], [1], [0, 0, 1, 1], [], []>} : vector<8x256xbf16>, vector<256x64xbf16>, vector<8x64xf32> -> vector<8x64xf32>
    %c4_55 = arith.constant 4 : index
    %c0_56 = arith.constant 0 : index
    %c0_57 = arith.constant 0 : index
    %82 = vector.load %arg5[%c4_55, %c0_56, %c0_57] : memref<5x1x64xf32, #tpu.memory_space<vmem>>, vector<1x1x64xf32>
    %83 = vector.shape_cast %82 : vector<1x1x64xf32> to vector<1x64xf32>
    %84 = vector.broadcast %83 : vector<1x64xf32> to vector<8x64xf32>
    %85 = arith.addf %81, %84 : vector<8x64xf32>
    %cst_58 = arith.constant 0.000000e+00 : f32
    %86 = vector.broadcast %cst_58 : f32 to vector<8x64xf32>
    %87 = arith.maximumf %85, %86 : vector<8x64xf32>
    %88 = vector.shape_cast %43 : vector<8x64xf32> to vector<1x8x64xf32>
    %89 = vector.shape_cast %54 : vector<8x64xf32> to vector<1x8x64xf32>
    %90 = vector.shape_cast %65 : vector<8x64xf32> to vector<1x8x64xf32>
    %91 = vector.shape_cast %76 : vector<8x64xf32> to vector<1x8x64xf32>
    %92 = vector.shape_cast %87 : vector<8x64xf32> to vector<1x8x64xf32>
    %93 = tpu.concatenate %88, %89, %90, %91, %92 in 0 : vector<1x8x64xf32>, vector<1x8x64xf32>, vector<1x8x64xf32>, vector<1x8x64xf32>, vector<1x8x64xf32> -> vector<5x8x64xf32>
    %c0_59 = arith.constant 0 : index
    %c0_60 = arith.constant 0 : index
    %c0_61 = arith.constant 0 : index
    %94 = vector.load %arg6[%c0_59, %c0_60, %c0_61] : memref<5x1x64xf32, #tpu.memory_space<vmem>>, vector<5x1x64xf32>
    %95 = vector.broadcast %94 : vector<5x1x64xf32> to vector<5x8x64xf32>
    %96 = arith.mulf %93, %95 : vector<5x8x64xf32>
    %cst_62 = arith.constant dense<0.000000e+00> : vector<5x8xf32>
    %97 = vector.multi_reduction <add>, %96, %cst_62 [2] : vector<5x8x64xf32> to vector<5x8xf32>
    %c0_63 = arith.constant 0 : index
    %c0_64 = arith.constant 0 : index
    %c0_65 = arith.constant 0 : index
    %98 = vector.load %arg7[%c0_63, %c0_64, %c0_65] : memref<5x1x1xf32, #tpu.memory_space<vmem>>, vector<5x1x1xf32>
    %99 = vector.shape_cast %98 : vector<5x1x1xf32> to vector<5x1xf32>
    %100 = vector.broadcast %99 : vector<5x1xf32> to vector<5x8xf32>
    %101 = arith.addf %97, %100 : vector<5x8xf32>
    %cst_66 = arith.constant 0.000000e+00 : f32
    %102 = vector.broadcast %cst_66 : f32 to vector<3x8xf32>
    %103 = tpu.concatenate %101, %102 in 0 : vector<5x8xf32>, vector<3x8xf32> -> vector<8x8xf32>
    %c0_67 = arith.constant 0 : index
    %c0_68 = arith.constant 0 : index
    %c0_69 = arith.constant 0 : index
    %104 = vector.load %arg15[%c0_67, %c0_68, %c0_69] : memref<1x8x8xf32, #tpu.memory_space<vmem>>, vector<1x8x8xf32>
    %105 = vector.shape_cast %104 : vector<1x8x8xf32> to vector<8x8xf32>
    %106 = vector.shape_cast %103 : vector<8x8xf32> to vector<1x8x8xf32>
    tpu.vector_store %arg15[%c0_67, %c0_68, %c0_69], %106 {strides = array<i32>} : memref<1x8x8xf32, #tpu.memory_space<vmem>>, vector<1x8x8xf32>,
    %c0_70 = arith.constant 0 : index
    %c0_71 = arith.constant 0 : index
    %c0_72 = arith.constant 0 : index
    %107 = vector.load %arg14[%c0_70, %c0_71, %c0_72] : memref<1x8x8xf32, #tpu.memory_space<vmem>>, vector<1x8x8xf32>
    %108 = vector.shape_cast %107 : vector<1x8x8xf32> to vector<8x8xf32>
    %109 = vector.shape_cast %25 : vector<8x8xf32> to vector<1x8x8xf32>
    tpu.vector_store %arg14[%c0_70, %c0_71, %c0_72], %109 {strides = array<i32>} : memref<1x8x8xf32, #tpu.memory_space<vmem>>, vector<1x8x8xf32>,
    %110 = arith.mulf %25, %103 : vector<8x8xf32>
    %c0_73 = arith.constant 0 : index
    %c0_74 = arith.constant 0 : index
    %c0_75 = arith.constant 0 : index
    %111 = vector.load %arg13[%c0_73, %c0_74, %c0_75] : memref<1x8x8xf32, #tpu.memory_space<vmem>>, vector<1x8x8xf32>
    %112 = vector.shape_cast %111 : vector<1x8x8xf32> to vector<8x8xf32>
    %113 = vector.shape_cast %110 : vector<8x8xf32> to vector<1x8x8xf32>
    tpu.vector_store %arg13[%c0_73, %c0_74, %c0_75], %113 {strides = array<i32>} : memref<1x8x8xf32, #tpu.memory_space<vmem>>, vector<1x8x8xf32>,
    return
  }
  func.func @transform_0(%arg0: i32) -> (i32, i32) {
    %c0_i32 = arith.constant 0 : i32
    %c0_i32_0 = arith.constant 0 : i32
    %c0_i32_1 = arith.constant 0 : i32
    return %c0_i32, %c0_i32_0 : i32, i32
  }
  func.func @transform_1(%arg0: i32) -> (i32, i32) {
    %c0_i32 = arith.constant 0 : i32
    %c0_i32_0 = arith.constant 0 : i32
    return %c0_i32, %arg0 : i32, i32
  }
  func.func @transform_2(%arg0: i32) -> (i32, i32) {
    %c0_i32 = arith.constant 0 : i32
    %c0_i32_0 = arith.constant 0 : i32
    return %c0_i32, %arg0 : i32, i32
  }
  func.func @transform_3(%arg0: i32) -> (i32, i32, i32) {
    %c0_i32 = arith.constant 0 : i32
    %c0_i32_0 = arith.constant 0 : i32
    %c0_i32_1 = arith.constant 0 : i32
    return %arg0, %c0_i32, %c0_i32_0 : i32, i32, i32
  }
  func.func @transform_4(%arg0: i32) -> (i32, i32, i32) {
    %c0_i32 = arith.constant 0 : i32
    %c0_i32_0 = arith.constant 0 : i32
    %c0_i32_1 = arith.constant 0 : i32
    return %arg0, %c0_i32, %c0_i32_0 : i32, i32, i32
  }
  func.func @transform_5(%arg0: i32) -> (i32, i32, i32) {
    %c0_i32 = arith.constant 0 : i32
    %c0_i32_0 = arith.constant 0 : i32
    %c0_i32_1 = arith.constant 0 : i32
    return %arg0, %c0_i32, %c0_i32_0 : i32, i32, i32
  }
  func.func @transform_6(%arg0: i32) -> (i32, i32, i32) {
    %c0_i32 = arith.constant 0 : i32
    %c0_i32_0 = arith.constant 0 : i32
    %c0_i32_1 = arith.constant 0 : i32
    return %arg0, %c0_i32, %c0_i32_0 : i32, i32, i32
  }
  func.func @transform_7(%arg0: i32) -> (i32, i32) {
    %c0_i32 = arith.constant 0 : i32
    %c0_i32_0 = arith.constant 0 : i32
    %c0_i32_1 = arith.constant 0 : i32
    return %c0_i32, %c0_i32_0 : i32, i32
  }
  func.func @transform_8(%arg0: i32) -> (i32, i32) {
    %c0_i32 = arith.constant 0 : i32
    %c0_i32_0 = arith.constant 0 : i32
    %c0_i32_1 = arith.constant 0 : i32
    return %c0_i32, %c0_i32_0 : i32, i32
  }
  func.func @transform_9(%arg0: i32) -> (i32, i32) {
    %c0_i32 = arith.constant 0 : i32
    %c0_i32_0 = arith.constant 0 : i32
    %c0_i32_1 = arith.constant 0 : i32
    return %c0_i32, %c0_i32_0 : i32, i32
  }
  func.func @transform_10(%arg0: i32) -> (i32, i32) {
    %c0_i32 = arith.constant 0 : i32
    %c0_i32_0 = arith.constant 0 : i32
    %c0_i32_1 = arith.constant 0 : i32
    return %c0_i32, %c0_i32_0 : i32, i32
  }
  func.func @transform_11(%arg0: i32) -> (i32, i32, i32) {
    %c0_i32 = arith.constant 0 : i32
    %c0_i32_0 = arith.constant 0 : i32
    %c0_i32_1 = arith.constant 0 : i32
    return %arg0, %c0_i32, %c0_i32_0 : i32, i32, i32
  }
  func.func @transform_12(%arg0: i32) -> (i32, i32, i32) {
    %c0_i32 = arith.constant 0 : i32
    %c0_i32_0 = arith.constant 0 : i32
    %c0_i32_1 = arith.constant 0 : i32
    return %arg0, %c0_i32, %c0_i32_0 : i32, i32, i32
  }
  func.func @transform_13(%arg0: i32) -> (i32, i32, i32) {
    %c0_i32 = arith.constant 0 : i32
    %c0_i32_0 = arith.constant 0 : i32
    %c0_i32_1 = arith.constant 0 : i32
    return %arg0, %c0_i32, %c0_i32_0 : i32, i32, i32
  }
  func.func @transform_14(%arg0: i32) -> (i32, i32, i32) {
    %c0_i32 = arith.constant 0 : i32
    %c0_i32_0 = arith.constant 0 : i32
    %c0_i32_1 = arith.constant 0 : i32
    return %arg0, %c0_i32, %c0_i32_0 : i32, i32, i32
  }
}

</mosaic_0001>

<bundles_post_ra>
// kernel: digit_moe_forward.1
= control target key start
LH: loop header
LB: loop body
LE: loop exit
PB: predicated region body
PF: predicated region fallthrough
CT: control target
= control target key end

     0   :  { %s10483_s29 = smov 0   ;;  %s10485_s30 = smov 0   ;;  %s13765_s0 = inlined_call_operand.vmem [shape: bf16[8,784], index: 0, kind: input, shape index: {}]   ;;  %s13766_s1 = inlined_call_operand.vmem [shape: bf16[784,2560], index: 1, kind: input, shape index: {}]   ;;  %s13767_s2 = inlined_call_operand.vmem [shape: f32[1,2560], index: 2, kind: input, shape index: {}]   ;;  %s13768_s3 = inlined_call_operand.vmem [shape: bf16[10,256,64], index: 3, kind: input, shape index: {}]   ;;  %s13769_s4 = inlined_call_operand.vmem [shape: f32[10,1,64], index: 4, kind: input, shape index: {}]   ;;  %s13770_s5 = inlined_call_operand.vmem [shape: f32[10,1,64], index: 5, kind: input, shape index: {}]   ;;  %s13771_s6 = inlined_call_operand.vmem [shape: f32[10,1,1], index: 6, kind: input, shape index: {}]   ;;  %s13772_s7 = inlined_call_operand.vmem [shape: f32[784,256], index: 7, kind: input, shape index: {}]   ;;  %s13773_s8 = inlined_call_operand.vmem [shape: f32[1,256], index: 8, kind: input, shape index: {}]   ;;  %s13774_s9 = inlined_call_operand.vmem [shape: f32[256,10], index: 9, kind: input, shape index: {}]   ;;  %s13775_s10 = inlined_call_operand.vmem [shape: f32[1,10], index: 10, kind: input, shape index: {}]   ;;  %s13776_s11 = inlined_call_operand.vmem [shape: f32[2,8,10], index: 11, kind: input, shape index: {}]   ;;  %s13777_s12 = inlined_call_operand.vmem [shape: f32[2,8,8], index: 12, kind: output, shape index: {0}]   ;;  %s13778_s13 = inlined_call_operand.vmem [shape: f32[2,8,8], index: 13, kind: output, shape index: {1}]   ;;  %s13779_s14 = inlined_call_operand.vmem [shape: f32[2,8,8], index: 14, kind: output, shape index: {2}]  }
   0x1   :  { %s10487_s15 = smov 0  }
   0x2 LB: > { %s10499_s16 = sadd.s32 4294967295, %s10405_s15   ;;  %s10502_s17 = sadd.s32 1, %s10405_s15   ;;  %s10405_s15 = sphi %s10487_s15, %s13784_s15   ;;  %s10401_s30 = sphi %s10485_s30, %s13783_s30   ;;  %s10397_s29 = sphi %s10483_s29, %s13782_s29  }
   0x3   : > { %s50_s18 = ssub.s32 %s10405_s15, %s10502_s17  ;;  %s53_s19 = sadd.s32 1, %s10401_s30 }
   0x4   : > { %p51_p0 = scmp.eq.s32.totalorder %s50_s18, 0  ;;  %p60_p1 = scmp.ne.s32.totalorder %s10401_s30, %s10397_s29 }
   0x5   : > { %p61_p2 = scmp.eq.s32.totalorder %s10405_s15, 0  ;;  %p7319_p4 = scmp.ge.s32.totalorder %s10405_s15, 2 }
   0x6   : > { %s10511_s20 = scalar_select %p51_p0, %s10401_s30, %s53_s19  }
   0x7   : > { %p62_p3 = por %p61_p2, %p60_p1  ;;  %419 = sbr.rel (%p7319_p4) target bundleno = 507 (0x1fb), region = 36 }
   0xc   : > { %422 = sbr.rel (!%p62_p3) target bundleno = 507 (0x1fb), region = 40  ;;  %s424_s21 = sand.u32 (%p62_p3), 1, %s10401_s30  }
   0xd   : > { %s9756_s22 = smul.u32 (%p62_p3), 40, %s10405_s15 }
   0xe   : > { %s10328_s23 = smul.u32 (%p62_p3), 3920, %s424_s21 }
   0xf   : > { %s10519_s26 = scalar_lea.vmem (%p62_p3), %s13766_s1, %s9756_s22 }
  0x10   : > { %v442_v0 = vld [vmem:[%s10519_s26] sm:$0xff] (%p62_p3)  ;;  %v444_v1 = vld [vmem:[%s10519_s26 + $0x8] sm:$0xff] (%p62_p3)  ;;  %v446_v2 = vld [vmem:[%s10519_s26 + $0x10] sm:$0xff] (%p62_p3)  ;;  %s10524_s27 = scalar_lea.vmem (%p62_p3), [#allocation2], %s10328_s23 }
  0x11   : > { %443 = vst [vmem:[%s10524_s27] sm:$0xff] %v442_v0  ;;  %v448_v3 = vld [vmem:[%s10519_s26 + $0x18] sm:$0xff]  ;;  %v450_v4 = vld [vmem:[%s10519_s26 + $0x20] sm:$0xff]  ;;  %v452_v5 = vld [vmem:[%s10519_s26 + $0x50] sm:$0xff] }
  0x12   : > { %445 = vst [vmem:[%s10524_s27 + $0x8] sm:$0xff] %v444_v1  ;;  %v454_v6 = vld [vmem:[%s10519_s26 + $0x58] sm:$0xff]  ;;  %v456_v7 = vld [vmem:[%s10519_s26 + $0x60] sm:$0xff]  ;;  %v458_v8 = vld [vmem:[%s10519_s26 + $0x68] sm:$0xff] }
  0x13   : > { %447 = vst [vmem:[%s10524_s27 + $0x10] sm:$0xff] %v446_v2  ;;  %v460_v9 = vld [vmem:[%s10519_s26 + $0x70] sm:$0xff]  ;;  %v462_v10 = vld [vmem:[%s10519_s26 + $0xa0] sm:$0xff]  ;;  %v464_v11 = vld [vmem:[%s10519_s26 + $0xa8] sm:$0xff] }
  0x14   : > { %449 = vst [vmem:[%s10524_s27 + $0x18] sm:$0xff] %v448_v3  ;;  %v466_v12 = vld [vmem:[%s10519_s26 + $0xb0] sm:$0xff]  ;;  %v468_v13 = vld [vmem:[%s10519_s26 + $0xb8] sm:$0xff]  ;;  %v470_v14 = vld [vmem:[%s10519_s26 + $0xc0] sm:$0xff] }
  0x15   : > { %451 = vst [vmem:[%s10524_s27 + $0x20] sm:$0xff] %v450_v4  ;;  %v472_v15 = vld [vmem:[%s10519_s26 + $0xf0] sm:$0xff]  ;;  %v474_v16 = vld [vmem:[%s10519_s26 + $0xf8] sm:$0xff]  ;;  %v476_v17 = vld [vmem:[%s10519_s26 + $0x100] sm:$0xff] }
  0x16   : > { %453 = vst [vmem:[%s10524_s27 + $0x28] sm:$0xff] %v452_v5  ;;  %v478_v18 = vld [vmem:[%s10519_s26 + $0x108] sm:$0xff]  ;;  %v480_v19 = vld [vmem:[%s10519_s26 + $0x110] sm:$0xff]  ;;  %v482_v20 = vld [vmem:[%s10519_s26 + $0x140] sm:$0xff] }
  0x17   : > { %455 = vst [vmem:[%s10524_s27 + $0x30] sm:$0xff] %v454_v6  ;;  %v484_v21 = vld [vmem:[%s10519_s26 + $0x148] sm:$0xff]  ;;  %v486_v22 = vld [vmem:[%s10519_s26 + $0x150] sm:$0xff]  ;;  %v488_v23 = vld [vmem:[%s10519_s26 + $0x158] sm:$0xff] }
  0x18   : > { %457 = vst [vmem:[%s10524_s27 + $0x38] sm:$0xff] %v456_v7  ;;  %v490_v24 = vld [vmem:[%s10519_s26 + $0x160] sm:$0xff]  ;;  %v492_v25 = vld [vmem:[%s10519_s26 + $0x190] sm:$0xff]  ;;  %v494_v26 = vld [vmem:[%s10519_s26 + $0x198] sm:$0xff] }
  0x19   : > { %459 = vst [vmem:[%s10524_s27 + $0x40] sm:$0xff] %v458_v8  ;;  %v496_v27 = vld [vmem:[%s10519_s26 + $0x1a0] sm:$0xff]  ;;  %v498_v28 = vld [vmem:[%s10519_s26 + $0x1a8] sm:$0xff]  ;;  %v500_v29 = vld [vmem:[%s10519_s26 + $0x1b0] sm:$0xff] }
  0x1a   : > { %461 = vst [vmem:[%s10524_s27 + $0x48] sm:$0xff] %v460_v9  ;;  %v502_v30 = vld [vmem:[%s10519_s26 + $0x1e0] sm:$0xff]  ;;  %v504_v31 = vld [vmem:[%s10519_s26 + $0x1e8] sm:$0xff]  ;;  %v506_v32 = vld [vmem:[%s10519_s26 + $0x1f0] sm:$0xff] }
  0x1b   : > { %463 = vst [vmem:[%s10524_s27 + $0x50] sm:$0xff] %v462_v10  ;;  %v508_v33 = vld [vmem:[%s10519_s26 + $0x1f8] sm:$0xff]  ;;  %v510_v34 = vld [vmem:[%s10519_s26 + $0x200] sm:$0xff]  ;;  %v512_v35 = vld [vmem:[%s10519_s26 + $0x230] sm:$0xff] }
  0x1c   : > { %465 = vst [vmem:[%s10524_s27 + $0x58] sm:$0xff] %v464_v11  ;;  %v514_v36 = vld [vmem:[%s10519_s26 + $0x238] sm:$0xff]  ;;  %v516_v37 = vld [vmem:[%s10519_s26 + $0x240] sm:$0xff]  ;;  %v518_v38 = vld [vmem:[%s10519_s26 + $0x248] sm:$0xff] }
  0x1d   : > { %467 = vst [vmem:[%s10524_s27 + $0x60] sm:$0xff] %v466_v12  ;;  %v520_v39 = vld [vmem:[%s10519_s26 + $0x250] sm:$0xff]  ;;  %v522_v40 = vld [vmem:[%s10519_s26 + $0x280] sm:$0xff]  ;;  %v524_v41 = vld [vmem:[%s10519_s26 + $0x288] sm:$0xff] }
  0x1e   : > { %469 = vst [vmem:[%s10524_s27 + $0x68] sm:$0xff] %v468_v13  ;;  %v526_v42 = vld [vmem:[%s10519_s26 + $0x290] sm:$0xff]  ;;  %v528_v43 = vld [vmem:[%s10519_s26 + $0x298] sm:$0xff]  ;;  %v530_v44 = vld [vmem:[%s10519_s26 + $0x2a0] sm:$0xff] }
  0x1f   : > { %471 = vst [vmem:[%s10524_s27 + $0x70] sm:$0xff] %v470_v14  ;;  %v532_v45 = vld [vmem:[%s10519_s26 + $0x2d0] sm:$0xff]  ;;  %v534_v46 = vld [vmem:[%s10519_s26 + $0x2d8] sm:$0xff]  ;;  %v536_v47 = vld [vmem:[%s10519_s26 + $0x2e0] sm:$0xff] }
  0x20   : > { %473 = vst [vmem:[%s10524_s27 + $0x78] sm:$0xff] %v472_v15  ;;  %v538_v48 = vld [vmem:[%s10519_s26 + $0x2e8] sm:$0xff]  ;;  %v540_v49 = vld [vmem:[%s10519_s26 + $0x2f0] sm:$0xff]  ;;  %v542_v50 = vld [vmem:[%s10519_s26 + $0x320] sm:$0xff] }
  0x21   : > { %475 = vst [vmem:[%s10524_s27 + $0x80] sm:$0xff] %v474_v16  ;;  %v544_v51 = vld [vmem:[%s10519_s26 + $0x328] sm:$0xff]  ;;  %v546_v52 = vld [vmem:[%s10519_s26 + $0x330] sm:$0xff]  ;;  %v548_v53 = vld [vmem:[%s10519_s26 + $0x338] sm:$0xff] }
  0x22   : > { %477 = vst [vmem:[%s10524_s27 + $0x88] sm:$0xff] %v476_v17  ;;  %v550_v54 = vld [vmem:[%s10519_s26 + $0x340] sm:$0xff]  ;;  %v552_v55 = vld [vmem:[%s10519_s26 + $0x370] sm:$0xff]  ;;  %v554_v56 = vld [vmem:[%s10519_s26 + $0x378] sm:$0xff] }
  0x23   : > { %479 = vst [vmem:[%s10524_s27 + $0x90] sm:$0xff] %v478_v18  ;;  %v556_v57 = vld [vmem:[%s10519_s26 + $0x380] sm:$0xff]  ;;  %v558_v58 = vld [vmem:[%s10519_s26 + $0x388] sm:$0xff]  ;;  %v560_v59 = vld [vmem:[%s10519_s26 + $0x390] sm:$0xff] }
  0x24   : > { %481 = vst [vmem:[%s10524_s27 + $0x98] sm:$0xff] %v480_v19  ;;  %v562_v60 = vld [vmem:[%s10519_s26 + $0x3c0] sm:$0xff]  ;;  %v564_v61 = vld [vmem:[%s10519_s26 + $0x3c8] sm:$0xff]  ;;  %v566_v62 = vld [vmem:[%s10519_s26 + $0x3d0] sm:$0xff] }
  0x25   : > { %483 = vst [vmem:[%s10524_s27 + $0xa0] sm:$0xff] %v482_v20  ;;  %v568_v63 = vld [vmem:[%s10519_s26 + $0x3d8] sm:$0xff]  ;;  %v570_v0 = vld [vmem:[%s10519_s26 + $0x3e0] sm:$0xff]  ;;  %v572_v1 = vld [vmem:[%s10519_s26 + $0x410] sm:$0xff] }
  0x26   : > { %485 = vst [vmem:[%s10524_s27 + $0xa8] sm:$0xff] %v484_v21  ;;  %v574_v2 = vld [vmem:[%s10519_s26 + $0x418] sm:$0xff]  ;;  %v576_v3 = vld [vmem:[%s10519_s26 + $0x420] sm:$0xff]  ;;  %v578_v4 = vld [vmem:[%s10519_s26 + $0x428] sm:$0xff] }
  0x27   : > { %487 = vst [vmem:[%s10524_s27 + $0xb0] sm:$0xff] %v486_v22  ;;  %v580_v5 = vld [vmem:[%s10519_s26 + $0x430] sm:$0xff]  ;;  %v582_v6 = vld [vmem:[%s10519_s26 + $0x460] sm:$0xff]  ;;  %v584_v7 = vld [vmem:[%s10519_s26 + $0x468] sm:$0xff] }
  0x28   : > { %489 = vst [vmem:[%s10524_s27 + $0xb8] sm:$0xff] %v488_v23  ;;  %v586_v8 = vld [vmem:[%s10519_s26 + $0x470] sm:$0xff]  ;;  %v588_v9 = vld [vmem:[%s10519_s26 + $0x478] sm:$0xff]  ;;  %v590_v10 = vld [vmem:[%s10519_s26 + $0x480] sm:$0xff] }
  0x29   : > { %491 = vst [vmem:[%s10524_s27 + $0xc0] sm:$0xff] %v490_v24  ;;  %v592_v11 = vld [vmem:[%s10519_s26 + $0x4b0] sm:$0xff]  ;;  %v594_v12 = vld [vmem:[%s10519_s26 + $0x4b8] sm:$0xff]  ;;  %v596_v13 = vld [vmem:[%s10519_s26 + $0x4c0] sm:$0xff] }
  0x2a   : > { %493 = vst [vmem:[%s10524_s27 + $0xc8] sm:$0xff] %v492_v25  ;;  %v598_v14 = vld [vmem:[%s10519_s26 + $0x4c8] sm:$0xff]  ;;  %v600_v15 = vld [vmem:[%s10519_s26 + $0x4d0] sm:$0xff]  ;;  %v602_v16 = vld [vmem:[%s10519_s26 + $0x500] sm:$0xff] }
  0x2b   : > { %495 = vst [vmem:[%s10524_s27 + $0xd0] sm:$0xff] %v494_v26  ;;  %v604_v17 = vld [vmem:[%s10519_s26 + $0x508] sm:$0xff]  ;;  %v606_v18 = vld [vmem:[%s10519_s26 + $0x510] sm:$0xff]  ;;  %v608_v19 = vld [vmem:[%s10519_s26 + $0x518] sm:$0xff] }
  0x2c   : > { %497 = vst [vmem:[%s10524_s27 + $0xd8] sm:$0xff] %v496_v27  ;;  %v610_v20 = vld [vmem:[%s10519_s26 + $0x520] sm:$0xff]  ;;  %v612_v21 = vld [vmem:[%s10519_s26 + $0x550] sm:$0xff]  ;;  %v614_v22 = vld [vmem:[%s10519_s26 + $0x558] sm:$0xff] }
  0x2d   : > { %499 = vst [vmem:[%s10524_s27 + $0xe0] sm:$0xff] %v498_v28  ;;  %v616_v23 = vld [vmem:[%s10519_s26 + $0x560] sm:$0xff]  ;;  %v618_v24 = vld [vmem:[%s10519_s26 + $0x568] sm:$0xff]  ;;  %v620_v25 = vld [vmem:[%s10519_s26 + $0x570] sm:$0xff] }
  0x2e   : > { %501 = vst [vmem:[%s10524_s27 + $0xe8] sm:$0xff] %v500_v29  ;;  %v622_v26 = vld [vmem:[%s10519_s26 + $0x5a0] sm:$0xff]  ;;  %v624_v27 = vld [vmem:[%s10519_s26 + $0x5a8] sm:$0xff]  ;;  %v626_v28 = vld [vmem:[%s10519_s26 + $0x5b0] sm:$0xff] }
  0x2f   : > { %503 = vst [vmem:[%s10524_s27 + $0xf0] sm:$0xff] %v502_v30  ;;  %v628_v29 = vld [vmem:[%s10519_s26 + $0x5b8] sm:$0xff]  ;;  %v630_v30 = vld [vmem:[%s10519_s26 + $0x5c0] sm:$0xff] }
  0x30   : > { %505 = vst [vmem:[%s10524_s27 + $0xf8] sm:$0xff] %v504_v31  ;;  %v632_v31 = vld [vmem:[%s10519_s26 + $0x5f0] sm:$0xff] }
  0x31   : > { %507 = vst [vmem:[%s10524_s27 + $0x100] sm:$0xff] %v506_v32  ;;  %v634_v32 = vld [vmem:[%s10519_s26 + $0x5f8] sm:$0xff] }
  0x32   : > { %509 = vst [vmem:[%s10524_s27 + $0x108] sm:$0xff] %v508_v33  ;;  %v636_v33 = vld [vmem:[%s10519_s26 + $0x600] sm:$0xff] }
  0x33   : > { %511 = vst [vmem:[%s10524_s27 + $0x110] sm:$0xff] %v510_v34  ;;  %v638_v34 = vld [vmem:[%s10519_s26 + $0x608] sm:$0xff] }
  0x34   : > { %513 = vst [vmem:[%s10524_s27 + $0x118] sm:$0xff] %v512_v35  ;;  %v640_v35 = vld [vmem:[%s10519_s26 + $0x610] sm:$0xff] }
  0x35   : > { %515 = vst [vmem:[%s10524_s27 + $0x120] sm:$0xff] %v514_v36  ;;  %v642_v36 = vld [vmem:[%s10519_s26 + $0x640] sm:$0xff] }
  0x36   : > { %517 = vst [vmem:[%s10524_s27 + $0x128] sm:$0xff] %v516_v37  ;;  %v644_v37 = vld [vmem:[%s10519_s26 + $0x648] sm:$0xff] }
  0x37   : > { %519 = vst [vmem:[%s10524_s27 + $0x130] sm:$0xff] %v518_v38  ;;  %v646_v38 = vld [vmem:[%s10519_s26 + $0x650] sm:$0xff] }
  0x38   : > { %521 = vst [vmem:[%s10524_s27 + $0x138] sm:$0xff] %v520_v39  ;;  %v648_v39 = vld [vmem:[%s10519_s26 + $0x658] sm:$0xff] }
  0x39   : > { %523 = vst [vmem:[%s10524_s27 + $0x140] sm:$0xff] %v522_v40  ;;  %v650_v40 = vld [vmem:[%s10519_s26 + $0x660] sm:$0xff] }
  0x3a   : > { %525 = vst [vmem:[%s10524_s27 + $0x148] sm:$0xff] %v524_v41  ;;  %v652_v41 = vld [vmem:[%s10519_s26 + $0x690] sm:$0xff] }
  0x3b   : > { %527 = vst [vmem:[%s10524_s27 + $0x150] sm:$0xff] %v526_v42  ;;  %v654_v42 = vld [vmem:[%s10519_s26 + $0x698] sm:$0xff] }
  0x3c   : > { %529 = vst [vmem:[%s10524_s27 + $0x158] sm:$0xff] %v528_v43  ;;  %v656_v43 = vld [vmem:[%s10519_s26 + $0x6a0] sm:$0xff] }
  0x3d   : > { %531 = vst [vmem:[%s10524_s27 + $0x160] sm:$0xff] %v530_v44  ;;  %v658_v44 = vld [vmem:[%s10519_s26 + $0x6a8] sm:$0xff] }
  0x3e   : > { %533 = vst [vmem:[%s10524_s27 + $0x168] sm:$0xff] %v532_v45  ;;  %v660_v45 = vld [vmem:[%s10519_s26 + $0x6b0] sm:$0xff] }
  0x3f   : > { %535 = vst [vmem:[%s10524_s27 + $0x170] sm:$0xff] %v534_v46  ;;  %v662_v46 = vld [vmem:[%s10519_s26 + $0x6e0] sm:$0xff] }
  0x40   : > { %537 = vst [vmem:[%s10524_s27 + $0x178] sm:$0xff] %v536_v47  ;;  %v664_v47 = vld [vmem:[%s10519_s26 + $0x6e8] sm:$0xff] }
  0x41   : > { %539 = vst [vmem:[%s10524_s27 + $0x180] sm:$0xff] %v538_v48  ;;  %v666_v48 = vld [vmem:[%s10519_s26 + $0x6f0] sm:$0xff] }
  0x42   : > { %541 = vst [vmem:[%s10524_s27 + $0x188] sm:$0xff] %v540_v49  ;;  %v668_v49 = vld [vmem:[%s10519_s26 + $0x6f8] sm:$0xff] }
  0x43   : > { %543 = vst [vmem:[%s10524_s27 + $0x190] sm:$0xff] %v542_v50  ;;  %v670_v50 = vld [vmem:[%s10519_s26 + $0x700] sm:$0xff] }
  0x44   : > { %545 = vst [vmem:[%s10524_s27 + $0x198] sm:$0xff] %v544_v51  ;;  %v672_v51 = vld [vmem:[%s10519_s26 + $0x730] sm:$0xff] }
  0x45   : > { %547 = vst [vmem:[%s10524_s27 + $0x1a0] sm:$0xff] %v546_v52  ;;  %v674_v52 = vld [vmem:[%s10519_s26 + $0x738] sm:$0xff] }
  0x46   : > { %549 = vst [vmem:[%s10524_s27 + $0x1a8] sm:$0xff] %v548_v53  ;;  %v676_v53 = vld [vmem:[%s10519_s26 + $0x740] sm:$0xff] }
  0x47   : > { %551 = vst [vmem:[%s10524_s27 + $0x1b0] sm:$0xff] %v550_v54  ;;  %v678_v54 = vld [vmem:[%s10519_s26 + $0x748] sm:$0xff] }
  0x48   : > { %553 = vst [vmem:[%s10524_s27 + $0x1b8] sm:$0xff] %v552_v55  ;;  %v680_v55 = vld [vmem:[%s10519_s26 + $0x750] sm:$0xff] }
  0x49   : > { %555 = vst [vmem:[%s10524_s27 + $0x1c0] sm:$0xff] %v554_v56  ;;  %v682_v56 = vld [vmem:[%s10519_s26 + $0x780] sm:$0xff] }
  0x4a   : > { %557 = vst [vmem:[%s10524_s27 + $0x1c8] sm:$0xff] %v556_v57  ;;  %v684_v57 = vld [vmem:[%s10519_s26 + $0x788] sm:$0xff] }
  0x4b   : > { %559 = vst [vmem:[%s10524_s27 + $0x1d0] sm:$0xff] %v558_v58  ;;  %v686_v58 = vld [vmem:[%s10519_s26 + $0x790] sm:$0xff] }
  0x4c   : > { %561 = vst [vmem:[%s10524_s27 + $0x1d8] sm:$0xff] %v560_v59  ;;  %v688_v59 = vld [vmem:[%s10519_s26 + $0x798] sm:$0xff] }
  0x4d   : > { %563 = vst [vmem:[%s10524_s27 + $0x1e0] sm:$0xff] %v562_v60  ;;  %v690_v60 = vld [vmem:[%s10519_s26 + $0x7a0] sm:$0xff] }
  0x4e   : > { %565 = vst [vmem:[%s10524_s27 + $0x1e8] sm:$0xff] %v564_v61  ;;  %v692_v61 = vld [vmem:[%s10519_s26 + $0x7d0] sm:$0xff] }
  0x4f   : > { %567 = vst [vmem:[%s10524_s27 + $0x1f0] sm:$0xff] %v566_v62  ;;  %v694_v62 = vld [vmem:[%s10519_s26 + $0x7d8] sm:$0xff] }
  0x50   : > { %569 = vst [vmem:[%s10524_s27 + $0x1f8] sm:$0xff] %v568_v63  ;;  %v696_v63 = vld [vmem:[%s10519_s26 + $0x7e0] sm:$0xff] }
  0x51   : > { %571 = vst [vmem:[%s10524_s27 + $0x200] sm:$0xff] %v570_v0  ;;  %v698_v0 = vld [vmem:[%s10519_s26 + $0x7e8] sm:$0xff] }
  0x52   : > { %573 = vst [vmem:[%s10524_s27 + $0x208] sm:$0xff] %v572_v1  ;;  %v700_v1 = vld [vmem:[%s10519_s26 + $0x7f0] sm:$0xff] }
  0x53   : > { %575 = vst [vmem:[%s10524_s27 + $0x210] sm:$0xff] %v574_v2  ;;  %v702_v2 = vld [vmem:[%s10519_s26 + $0x820] sm:$0xff] }
  0x54   : > { %577 = vst [vmem:[%s10524_s27 + $0x218] sm:$0xff] %v576_v3  ;;  %v704_v3 = vld [vmem:[%s10519_s26 + $0x828] sm:$0xff] }
  0x55   : > { %579 = vst [vmem:[%s10524_s27 + $0x220] sm:$0xff] %v578_v4  ;;  %v706_v4 = vld [vmem:[%s10519_s26 + $0x830] sm:$0xff] }
  0x56   : > { %581 = vst [vmem:[%s10524_s27 + $0x228] sm:$0xff] %v580_v5  ;;  %v708_v5 = vld [vmem:[%s10519_s26 + $0x838] sm:$0xff] }
  0x57   : > { %583 = vst [vmem:[%s10524_s27 + $0x230] sm:$0xff] %v582_v6  ;;  %v710_v6 = vld [vmem:[%s10519_s26 + $0x840] sm:$0xff] }
  0x58   : > { %585 = vst [vmem:[%s10524_s27 + $0x238] sm:$0xff] %v584_v7  ;;  %v712_v7 = vld [vmem:[%s10519_s26 + $0x870] sm:$0xff] }
  0x59   : > { %587 = vst [vmem:[%s10524_s27 + $0x240] sm:$0xff] %v586_v8  ;;  %v714_v8 = vld [vmem:[%s10519_s26 + $0x878] sm:$0xff] }
  0x5a   : > { %589 = vst [vmem:[%s10524_s27 + $0x248] sm:$0xff] %v588_v9  ;;  %v716_v9 = vld [vmem:[%s10519_s26 + $0x880] sm:$0xff] }
  0x5b   : > { %591 = vst [vmem:[%s10524_s27 + $0x250] sm:$0xff] %v590_v10  ;;  %v718_v10 = vld [vmem:[%s10519_s26 + $0x888] sm:$0xff] }
  0x5c   : > { %593 = vst [vmem:[%s10524_s27 + $0x258] sm:$0xff] %v592_v11  ;;  %v720_v11 = vld [vmem:[%s10519_s26 + $0x890] sm:$0xff] }
  0x5d   : > { %595 = vst [vmem:[%s10524_s27 + $0x260] sm:$0xff] %v594_v12  ;;  %v722_v12 = vld [vmem:[%s10519_s26 + $0x8c0] sm:$0xff] }
  0x5e   : > { %597 = vst [vmem:[%s10524_s27 + $0x268] sm:$0xff] %v596_v13  ;;  %v724_v13 = vld [vmem:[%s10519_s26 + $0x8c8] sm:$0xff] }
  0x5f   : > { %599 = vst [vmem:[%s10524_s27 + $0x270] sm:$0xff] %v598_v14  ;;  %v726_v14 = vld [vmem:[%s10519_s26 + $0x8d0] sm:$0xff] }
  0x60   : > { %601 = vst [vmem:[%s10524_s27 + $0x278] sm:$0xff] %v600_v15  ;;  %v728_v15 = vld [vmem:[%s10519_s26 + $0x8d8] sm:$0xff] }
  0x61   : > { %603 = vst [vmem:[%s10524_s27 + $0x280] sm:$0xff] %v602_v16  ;;  %v730_v16 = vld [vmem:[%s10519_s26 + $0x8e0] sm:$0xff] }
  0x62   : > { %605 = vst [vmem:[%s10524_s27 + $0x288] sm:$0xff] %v604_v17  ;;  %v732_v17 = vld [vmem:[%s10519_s26 + $0x910] sm:$0xff] }
  0x63   : > { %607 = vst [vmem:[%s10524_s27 + $0x290] sm:$0xff] %v606_v18  ;;  %v734_v18 = vld [vmem:[%s10519_s26 + $0x918] sm:$0xff] }
  0x64   : > { %609 = vst [vmem:[%s10524_s27 + $0x298] sm:$0xff] %v608_v19  ;;  %v736_v19 = vld [vmem:[%s10519_s26 + $0x920] sm:$0xff] }
  0x65   : > { %611 = vst [vmem:[%s10524_s27 + $0x2a0] sm:$0xff] %v610_v20  ;;  %v738_v20 = vld [vmem:[%s10519_s26 + $0x928] sm:$0xff] }
  0x66   : > { %613 = vst [vmem:[%s10524_s27 + $0x2a8] sm:$0xff] %v612_v21  ;;  %v740_v21 = vld [vmem:[%s10519_s26 + $0x930] sm:$0xff] }
  0x67   : > { %615 = vst [vmem:[%s10524_s27 + $0x2b0] sm:$0xff] %v614_v22  ;;  %v742_v22 = vld [vmem:[%s10519_s26 + $0x960] sm:$0xff] }
  0x68   : > { %617 = vst [vmem:[%s10524_s27 + $0x2b8] sm:$0xff] %v616_v23  ;;  %v744_v23 = vld [vmem:[%s10519_s26 + $0x968] sm:$0xff] }
  0x69   : > { %619 = vst [vmem:[%s10524_s27 + $0x2c0] sm:$0xff] %v618_v24  ;;  %v746_v24 = vld [vmem:[%s10519_s26 + $0x970] sm:$0xff] }
  0x6a   : > { %621 = vst [vmem:[%s10524_s27 + $0x2c8] sm:$0xff] %v620_v25  ;;  %v748_v25 = vld [vmem:[%s10519_s26 + $0x978] sm:$0xff] }
  0x6b   : > { %623 = vst [vmem:[%s10524_s27 + $0x2d0] sm:$0xff] %v622_v26  ;;  %v750_v26 = vld [vmem:[%s10519_s26 + $0x980] sm:$0xff] }
  0x6c   : > { %625 = vst [vmem:[%s10524_s27 + $0x2d8] sm:$0xff] %v624_v27  ;;  %v752_v27 = vld [vmem:[%s10519_s26 + $0x9b0] sm:$0xff] }
  0x6d   : > { %627 = vst [vmem:[%s10524_s27 + $0x2e0] sm:$0xff] %v626_v28  ;;  %v754_v28 = vld [vmem:[%s10519_s26 + $0x9b8] sm:$0xff] }
  0x6e   : > { %629 = vst [vmem:[%s10524_s27 + $0x2e8] sm:$0xff] %v628_v29  ;;  %v756_v29 = vld [vmem:[%s10519_s26 + $0x9c0] sm:$0xff] }
  0x6f   : > { %631 = vst [vmem:[%s10524_s27 + $0x2f0] sm:$0xff] %v630_v30  ;;  %v758_v30 = vld [vmem:[%s10519_s26 + $0x9c8] sm:$0xff] }
  0x70   : > { %633 = vst [vmem:[%s10524_s27 + $0x2f8] sm:$0xff] %v632_v31  ;;  %v760_v31 = vld [vmem:[%s10519_s26 + $0x9d0] sm:$0xff] }
  0x71   : > { %635 = vst [vmem:[%s10524_s27 + $0x300] sm:$0xff] %v634_v32  ;;  %v762_v32 = vld [vmem:[%s10519_s26 + $0xa00] sm:$0xff] }
  0x72   : > { %637 = vst [vmem:[%s10524_s27 + $0x308] sm:$0xff] %v636_v33  ;;  %v764_v33 = vld [vmem:[%s10519_s26 + $0xa08] sm:$0xff] }
  0x73   : > { %639 = vst [vmem:[%s10524_s27 + $0x310] sm:$0xff] %v638_v34  ;;  %v766_v34 = vld [vmem:[%s10519_s26 + $0xa10] sm:$0xff] }
  0x74   : > { %641 = vst [vmem:[%s10524_s27 + $0x318] sm:$0xff] %v640_v35  ;;  %v768_v35 = vld [vmem:[%s10519_s26 + $0xa18] sm:$0xff] }
  0x75   : > { %643 = vst [vmem:[%s10524_s27 + $0x320] sm:$0xff] %v642_v36  ;;  %v770_v36 = vld [vmem:[%s10519_s26 + $0xa20] sm:$0xff] }
  0x76   : > { %645 = vst [vmem:[%s10524_s27 + $0x328] sm:$0xff] %v644_v37  ;;  %v772_v37 = vld [vmem:[%s10519_s26 + $0xa50] sm:$0xff] }
  0x77   : > { %647 = vst [vmem:[%s10524_s27 + $0x330] sm:$0xff] %v646_v38  ;;  %v774_v38 = vld [vmem:[%s10519_s26 + $0xa58] sm:$0xff] }
  0x78   : > { %649 = vst [vmem:[%s10524_s27 + $0x338] sm:$0xff] %v648_v39  ;;  %v776_v39 = vld [vmem:[%s10519_s26 + $0xa60] sm:$0xff] }
  0x79   : > { %651 = vst [vmem:[%s10524_s27 + $0x340] sm:$0xff] %v650_v40  ;;  %v778_v40 = vld [vmem:[%s10519_s26 + $0xa68] sm:$0xff] }
  0x7a   : > { %653 = vst [vmem:[%s10524_s27 + $0x348] sm:$0xff] %v652_v41  ;;  %v780_v41 = vld [vmem:[%s10519_s26 + $0xa70] sm:$0xff] }
  0x7b   : > { %655 = vst [vmem:[%s10524_s27 + $0x350] sm:$0xff] %v654_v42  ;;  %v782_v42 = vld [vmem:[%s10519_s26 + $0xaa0] sm:$0xff] }
  0x7c   : > { %657 = vst [vmem:[%s10524_s27 + $0x358] sm:$0xff] %v656_v43  ;;  %v784_v43 = vld [vmem:[%s10519_s26 + $0xaa8] sm:$0xff] }
  0x7d   : > { %659 = vst [vmem:[%s10524_s27 + $0x360] sm:$0xff] %v658_v44  ;;  %v786_v44 = vld [vmem:[%s10519_s26 + $0xab0] sm:$0xff] }
  0x7e   : > { %661 = vst [vmem:[%s10524_s27 + $0x368] sm:$0xff] %v660_v45  ;;  %v788_v45 = vld [vmem:[%s10519_s26 + $0xab8] sm:$0xff] }
  0x7f   : > { %663 = vst [vmem:[%s10524_s27 + $0x370] sm:$0xff] %v662_v46  ;;  %v790_v46 = vld [vmem:[%s10519_s26 + $0xac0] sm:$0xff] }
  0x80   : > { %665 = vst [vmem:[%s10524_s27 + $0x378] sm:$0xff] %v664_v47  ;;  %v792_v47 = vld [vmem:[%s10519_s26 + $0xaf0] sm:$0xff] }
  0x81   : > { %667 = vst [vmem:[%s10524_s27 + $0x380] sm:$0xff] %v666_v48  ;;  %v794_v48 = vld [vmem:[%s10519_s26 + $0xaf8] sm:$0xff] }
  0x82   : > { %669 = vst [vmem:[%s10524_s27 + $0x388] sm:$0xff] %v668_v49  ;;  %v796_v49 = vld [vmem:[%s10519_s26 + $0xb00] sm:$0xff] }
  0x83   : > { %671 = vst [vmem:[%s10524_s27 + $0x390] sm:$0xff] %v670_v50  ;;  %v798_v50 = vld [vmem:[%s10519_s26 + $0xb08] sm:$0xff] }
  0x84   : > { %673 = vst [vmem:[%s10524_s27 + $0x398] sm:$0xff] %v672_v51  ;;  %v800_v51 = vld [vmem:[%s10519_s26 + $0xb10] sm:$0xff] }
  0x85   : > { %675 = vst [vmem:[%s10524_s27 + $0x3a0] sm:$0xff] %v674_v52  ;;  %v802_v52 = vld [vmem:[%s10519_s26 + $0xb40] sm:$0xff] }
  0x86   : > { %677 = vst [vmem:[%s10524_s27 + $0x3a8] sm:$0xff] %v676_v53  ;;  %v804_v53 = vld [vmem:[%s10519_s26 + $0xb48] sm:$0xff] }
  0x87   : > { %679 = vst [vmem:[%s10524_s27 + $0x3b0] sm:$0xff] %v678_v54  ;;  %v806_v54 = vld [vmem:[%s10519_s26 + $0xb50] sm:$0xff] }
  0x88   : > { %681 = vst [vmem:[%s10524_s27 + $0x3b8] sm:$0xff] %v680_v55  ;;  %v808_v55 = vld [vmem:[%s10519_s26 + $0xb58] sm:$0xff] }
  0x89   : > { %683 = vst [vmem:[%s10524_s27 + $0x3c0] sm:$0xff] %v682_v56  ;;  %v810_v56 = vld [vmem:[%s10519_s26 + $0xb60] sm:$0xff] }
  0x8a   : > { %685 = vst [vmem:[%s10524_s27 + $0x3c8] sm:$0xff] %v684_v57  ;;  %v812_v57 = vld [vmem:[%s10519_s26 + $0xb90] sm:$0xff] }
  0x8b   : > { %687 = vst [vmem:[%s10524_s27 + $0x3d0] sm:$0xff] %v686_v58  ;;  %v814_v58 = vld [vmem:[%s10519_s26 + $0xb98] sm:$0xff] }
  0x8c   : > { %689 = vst [vmem:[%s10524_s27 + $0x3d8] sm:$0xff] %v688_v59  ;;  %v816_v59 = vld [vmem:[%s10519_s26 + $0xba0] sm:$0xff] }
  0x8d   : > { %691 = vst [vmem:[%s10524_s27 + $0x3e0] sm:$0xff] %v690_v60  ;;  %v818_v60 = vld [vmem:[%s10519_s26 + $0xba8] sm:$0xff] }
  0x8e   : > { %693 = vst [vmem:[%s10524_s27 + $0x3e8] sm:$0xff] %v692_v61  ;;  %v820_v61 = vld [vmem:[%s10519_s26 + $0xbb0] sm:$0xff] }
  0x8f   : > { %695 = vst [vmem:[%s10524_s27 + $0x3f0] sm:$0xff] %v694_v62  ;;  %v822_v62 = vld [vmem:[%s10519_s26 + $0xbe0] sm:$0xff] }
  0x90   : > { %697 = vst [vmem:[%s10524_s27 + $0x3f8] sm:$0xff] %v696_v63  ;;  %v824_v63 = vld [vmem:[%s10519_s26 + $0xbe8] sm:$0xff] }
  0x91   : > { %699 = vst [vmem:[%s10524_s27 + $0x400] sm:$0xff] %v698_v0  ;;  %v826_v0 = vld [vmem:[%s10519_s26 + $0xbf0] sm:$0xff] }
  0x92   : > { %701 = vst [vmem:[%s10524_s27 + $0x408] sm:$0xff] %v700_v1  ;;  %v828_v1 = vld [vmem:[%s10519_s26 + $0xbf8] sm:$0xff] }
  0x93   : > { %703 = vst [vmem:[%s10524_s27 + $0x410] sm:$0xff] %v702_v2  ;;  %v830_v2 = vld [vmem:[%s10519_s26 + $0xc00] sm:$0xff] }
  0x94   : > { %705 = vst [vmem:[%s10524_s27 + $0x418] sm:$0xff] %v704_v3  ;;  %v832_v3 = vld [vmem:[%s10519_s26 + $0xc30] sm:$0xff] }
  0x95   : > { %707 = vst [vmem:[%s10524_s27 + $0x420] sm:$0xff] %v706_v4  ;;  %v834_v4 = vld [vmem:[%s10519_s26 + $0xc38] sm:$0xff] }
  0x96   : > { %709 = vst [vmem:[%s10524_s27 + $0x428] sm:$0xff] %v708_v5  ;;  %v836_v5 = vld [vmem:[%s10519_s26 + $0xc40] sm:$0xff] }
  0x97   : > { %711 = vst [vmem:[%s10524_s27 + $0x430] sm:$0xff] %v710_v6  ;;  %v838_v6 = vld [vmem:[%s10519_s26 + $0xc48] sm:$0xff] }
  0x98   : > { %713 = vst [vmem:[%s10524_s27 + $0x438] sm:$0xff] %v712_v7  ;;  %v840_v7 = vld [vmem:[%s10519_s26 + $0xc50] sm:$0xff] }
  0x99   : > { %715 = vst [vmem:[%s10524_s27 + $0x440] sm:$0xff] %v714_v8  ;;  %v842_v8 = vld [vmem:[%s10519_s26 + $0xc80] sm:$0xff] }
  0x9a   : > { %717 = vst [vmem:[%s10524_s27 + $0x448] sm:$0xff] %v716_v9  ;;  %v844_v9 = vld [vmem:[%s10519_s26 + $0xc88] sm:$0xff] }
  0x9b   : > { %719 = vst [vmem:[%s10524_s27 + $0x450] sm:$0xff] %v718_v10  ;;  %v846_v10 = vld [vmem:[%s10519_s26 + $0xc90] sm:$0xff] }
  0x9c   : > { %721 = vst [vmem:[%s10524_s27 + $0x458] sm:$0xff] %v720_v11  ;;  %v848_v11 = vld [vmem:[%s10519_s26 + $0xc98] sm:$0xff] }
  0x9d   : > { %723 = vst [vmem:[%s10524_s27 + $0x460] sm:$0xff] %v722_v12  ;;  %v850_v12 = vld [vmem:[%s10519_s26 + $0xca0] sm:$0xff] }
  0x9e   : > { %725 = vst [vmem:[%s10524_s27 + $0x468] sm:$0xff] %v724_v13  ;;  %v852_v13 = vld [vmem:[%s10519_s26 + $0xcd0] sm:$0xff] }
  0x9f   : > { %727 = vst [vmem:[%s10524_s27 + $0x470] sm:$0xff] %v726_v14  ;;  %v854_v14 = vld [vmem:[%s10519_s26 + $0xcd8] sm:$0xff] }
  0xa0   : > { %729 = vst [vmem:[%s10524_s27 + $0x478] sm:$0xff] %v728_v15  ;;  %v856_v15 = vld [vmem:[%s10519_s26 + $0xce0] sm:$0xff] }
  0xa1   : > { %731 = vst [vmem:[%s10524_s27 + $0x480] sm:$0xff] %v730_v16  ;;  %v858_v16 = vld [vmem:[%s10519_s26 + $0xce8] sm:$0xff] }
  0xa2   : > { %733 = vst [vmem:[%s10524_s27 + $0x488] sm:$0xff] %v732_v17  ;;  %v860_v17 = vld [vmem:[%s10519_s26 + $0xcf0] sm:$0xff] }
  0xa3   : > { %735 = vst [vmem:[%s10524_s27 + $0x490] sm:$0xff] %v734_v18  ;;  %v862_v18 = vld [vmem:[%s10519_s26 + $0xd20] sm:$0xff] }
  0xa4   : > { %737 = vst [vmem:[%s10524_s27 + $0x498] sm:$0xff] %v736_v19  ;;  %v864_v19 = vld [vmem:[%s10519_s26 + $0xd28] sm:$0xff] }
  0xa5   : > { %739 = vst [vmem:[%s10524_s27 + $0x4a0] sm:$0xff] %v738_v20  ;;  %v866_v20 = vld [vmem:[%s10519_s26 + $0xd30] sm:$0xff] }
  0xa6   : > { %741 = vst [vmem:[%s10524_s27 + $0x4a8] sm:$0xff] %v740_v21  ;;  %v868_v21 = vld [vmem:[%s10519_s26 + $0xd38] sm:$0xff] }
  0xa7   : > { %743 = vst [vmem:[%s10524_s27 + $0x4b0] sm:$0xff] %v742_v22  ;;  %v870_v22 = vld [vmem:[%s10519_s26 + $0xd40] sm:$0xff] }
  0xa8   : > { %745 = vst [vmem:[%s10524_s27 + $0x4b8] sm:$0xff] %v744_v23  ;;  %v872_v23 = vld [vmem:[%s10519_s26 + $0xd70] sm:$0xff] }
  0xa9   : > { %747 = vst [vmem:[%s10524_s27 + $0x4c0] sm:$0xff] %v746_v24  ;;  %v874_v24 = vld [vmem:[%s10519_s26 + $0xd78] sm:$0xff] }
  0xaa   : > { %749 = vst [vmem:[%s10524_s27 + $0x4c8] sm:$0xff] %v748_v25  ;;  %v876_v25 = vld [vmem:[%s10519_s26 + $0xd80] sm:$0xff] }
  0xab   : > { %751 = vst [vmem:[%s10524_s27 + $0x4d0] sm:$0xff] %v750_v26  ;;  %v878_v26 = vld [vmem:[%s10519_s26 + $0xd88] sm:$0xff] }
  0xac   : > { %753 = vst [vmem:[%s10524_s27 + $0x4d8] sm:$0xff] %v752_v27  ;;  %v880_v27 = vld [vmem:[%s10519_s26 + $0xd90] sm:$0xff] }
  0xad   : > { %755 = vst [vmem:[%s10524_s27 + $0x4e0] sm:$0xff] %v754_v28  ;;  %v882_v28 = vld [vmem:[%s10519_s26 + $0xdc0] sm:$0xff] }
  0xae   : > { %757 = vst [vmem:[%s10524_s27 + $0x4e8] sm:$0xff] %v756_v29  ;;  %v884_v29 = vld [vmem:[%s10519_s26 + $0xdc8] sm:$0xff] }
  0xaf   : > { %759 = vst [vmem:[%s10524_s27 + $0x4f0] sm:$0xff] %v758_v30  ;;  %v886_v30 = vld [vmem:[%s10519_s26 + $0xdd0] sm:$0xff] }
  0xb0   : > { %761 = vst [vmem:[%s10524_s27 + $0x4f8] sm:$0xff] %v760_v31  ;;  %v888_v31 = vld [vmem:[%s10519_s26 + $0xdd8] sm:$0xff] }
  0xb1   : > { %763 = vst [vmem:[%s10524_s27 + $0x500] sm:$0xff] %v762_v32  ;;  %v890_v32 = vld [vmem:[%s10519_s26 + $0xde0] sm:$0xff] }
  0xb2   : > { %765 = vst [vmem:[%s10524_s27 + $0x508] sm:$0xff] %v764_v33  ;;  %v892_v33 = vld [vmem:[%s10519_s26 + $0xe10] sm:$0xff] }
  0xb3   : > { %767 = vst [vmem:[%s10524_s27 + $0x510] sm:$0xff] %v766_v34  ;;  %v894_v34 = vld [vmem:[%s10519_s26 + $0xe18] sm:$0xff] }
  0xb4   : > { %769 = vst [vmem:[%s10524_s27 + $0x518] sm:$0xff] %v768_v35  ;;  %v896_v35 = vld [vmem:[%s10519_s26 + $0xe20] sm:$0xff] }
  0xb5   : > { %771 = vst [vmem:[%s10524_s27 + $0x520] sm:$0xff] %v770_v36  ;;  %v898_v36 = vld [vmem:[%s10519_s26 + $0xe28] sm:$0xff] }
  0xb6   : > { %773 = vst [vmem:[%s10524_s27 + $0x528] sm:$0xff] %v772_v37  ;;  %v900_v37 = vld [vmem:[%s10519_s26 + $0xe30] sm:$0xff] }
  0xb7   : > { %775 = vst [vmem:[%s10524_s27 + $0x530] sm:$0xff] %v774_v38  ;;  %v902_v38 = vld [vmem:[%s10519_s26 + $0xe60] sm:$0xff] }
  0xb8   : > { %777 = vst [vmem:[%s10524_s27 + $0x538] sm:$0xff] %v776_v39  ;;  %v904_v39 = vld [vmem:[%s10519_s26 + $0xe68] sm:$0xff] }
  0xb9   : > { %779 = vst [vmem:[%s10524_s27 + $0x540] sm:$0xff] %v778_v40  ;;  %v906_v40 = vld [vmem:[%s10519_s26 + $0xe70] sm:$0xff] }
  0xba   : > { %781 = vst [vmem:[%s10524_s27 + $0x548] sm:$0xff] %v780_v41  ;;  %v908_v41 = vld [vmem:[%s10519_s26 + $0xe78] sm:$0xff] }
  0xbb   : > { %783 = vst [vmem:[%s10524_s27 + $0x550] sm:$0xff] %v782_v42  ;;  %v910_v42 = vld [vmem:[%s10519_s26 + $0xe80] sm:$0xff] }
  0xbc   : > { %785 = vst [vmem:[%s10524_s27 + $0x558] sm:$0xff] %v784_v43  ;;  %v912_v43 = vld [vmem:[%s10519_s26 + $0xeb0] sm:$0xff] }
  0xbd   : > { %787 = vst [vmem:[%s10524_s27 + $0x560] sm:$0xff] %v786_v44  ;;  %v914_v44 = vld [vmem:[%s10519_s26 + $0xeb8] sm:$0xff] }
  0xbe   : > { %789 = vst [vmem:[%s10524_s27 + $0x568] sm:$0xff] %v788_v45  ;;  %v916_v45 = vld [vmem:[%s10519_s26 + $0xec0] sm:$0xff] }
  0xbf   : > { %791 = vst [vmem:[%s10524_s27 + $0x570] sm:$0xff] %v790_v46  ;;  %v918_v46 = vld [vmem:[%s10519_s26 + $0xec8] sm:$0xff] }
  0xc0   : > { %793 = vst [vmem:[%s10524_s27 + $0x578] sm:$0xff] %v792_v47  ;;  %v920_v47 = vld [vmem:[%s10519_s26 + $0xed0] sm:$0xff] }
  0xc1   : > { %795 = vst [vmem:[%s10524_s27 + $0x580] sm:$0xff] %v794_v48  ;;  %v922_v48 = vld [vmem:[%s10519_s26 + $0xf00] sm:$0xff] }
  0xc2   : > { %797 = vst [vmem:[%s10524_s27 + $0x588] sm:$0xff] %v796_v49  ;;  %v924_v49 = vld [vmem:[%s10519_s26 + $0xf08] sm:$0xff] }
  0xc3   : > { %799 = vst [vmem:[%s10524_s27 + $0x590] sm:$0xff] %v798_v50  ;;  %v926_v50 = vld [vmem:[%s10519_s26 + $0xf10] sm:$0xff] }
  0xc4   : > { %801 = vst [vmem:[%s10524_s27 + $0x598] sm:$0xff] %v800_v51  ;;  %v928_v51 = vld [vmem:[%s10519_s26 + $0xf18] sm:$0xff] }
  0xc5   : > { %803 = vst [vmem:[%s10524_s27 + $0x5a0] sm:$0xff] %v802_v52  ;;  %v930_v52 = vld [vmem:[%s10519_s26 + $0xf20] sm:$0xff] }
  0xc6   : > { %805 = vst [vmem:[%s10524_s27 + $0x5a8] sm:$0xff] %v804_v53  ;;  %v932_v53 = vld [vmem:[%s10519_s26 + $0xf50] sm:$0xff] }
  0xc7   : > { %807 = vst [vmem:[%s10524_s27 + $0x5b0] sm:$0xff] %v806_v54  ;;  %v934_v54 = vld [vmem:[%s10519_s26 + $0xf58] sm:$0xff] }
  0xc8   : > { %809 = vst [vmem:[%s10524_s27 + $0x5b8] sm:$0xff] %v808_v55  ;;  %v936_v55 = vld [vmem:[%s10519_s26 + $0xf60] sm:$0xff] }
  0xc9   : > { %811 = vst [vmem:[%s10524_s27 + $0x5c0] sm:$0xff] %v810_v56  ;;  %v938_v56 = vld [vmem:[%s10519_s26 + $0xf68] sm:$0xff] }
  0xca   : > { %813 = vst [vmem:[%s10524_s27 + $0x5c8] sm:$0xff] %v812_v57  ;;  %v940_v57 = vld [vmem:[%s10519_s26 + $0xf70] sm:$0xff] }
  0xcb   : > { %815 = vst [vmem:[%s10524_s27 + $0x5d0] sm:$0xff] %v814_v58  ;;  %v942_v58 = vld [vmem:[%s10519_s26 + $0xfa0] sm:$0xff] }
  0xcc   : > { %817 = vst [vmem:[%s10524_s27 + $0x5d8] sm:$0xff] %v816_v59  ;;  %v944_v59 = vld [vmem:[%s10519_s26 + $0xfa8] sm:$0xff] }
  0xcd   : > { %819 = vst [vmem:[%s10524_s27 + $0x5e0] sm:$0xff] %v818_v60  ;;  %v946_v60 = vld [vmem:[%s10519_s26 + $0xfb0] sm:$0xff] }
  0xce   : > { %821 = vst [vmem:[%s10524_s27 + $0x5e8] sm:$0xff] %v820_v61  ;;  %v948_v61 = vld [vmem:[%s10519_s26 + $0xfb8] sm:$0xff] }
  0xcf   : > { %823 = vst [vmem:[%s10524_s27 + $0x5f0] sm:$0xff] %v822_v62  ;;  %v950_v62 = vld [vmem:[%s10519_s26 + $0xfc0] sm:$0xff] }
  0xd0   : > { %825 = vst [vmem:[%s10524_s27 + $0x5f8] sm:$0xff] %v824_v63  ;;  %v952_v63 = vld [vmem:[%s10519_s26 + $0xff0] sm:$0xff] }
  0xd1   : > { %827 = vst [vmem:[%s10524_s27 + $0x600] sm:$0xff] %v826_v0  ;;  %v954_v0 = vld [vmem:[%s10519_s26 + $0xff8] sm:$0xff] }
  0xd2   : > { %829 = vst [vmem:[%s10524_s27 + $0x608] sm:$0xff] %v828_v1  ;;  %v956_v1 = vld [vmem:[%s10519_s26 + $0x1000] sm:$0xff] }
  0xd3   : > { %831 = vst [vmem:[%s10524_s27 + $0x610] sm:$0xff] %v830_v2  ;;  %v958_v2 = vld [vmem:[%s10519_s26 + $0x1008] sm:$0xff] }
  0xd4   : > { %833 = vst [vmem:[%s10524_s27 + $0x618] sm:$0xff] %v832_v3  ;;  %v960_v3 = vld [vmem:[%s10519_s26 + $0x1010] sm:$0xff] }
  0xd5   : > { %835 = vst [vmem:[%s10524_s27 + $0x620] sm:$0xff] %v834_v4  ;;  %v962_v4 = vld [vmem:[%s10519_s26 + $0x1040] sm:$0xff] }
  0xd6   : > { %837 = vst [vmem:[%s10524_s27 + $0x628] sm:$0xff] %v836_v5  ;;  %v964_v5 = vld [vmem:[%s10519_s26 + $0x1048] sm:$0xff] }
  0xd7   : > { %839 = vst [vmem:[%s10524_s27 + $0x630] sm:$0xff] %v838_v6  ;;  %v966_v6 = vld [vmem:[%s10519_s26 + $0x1050] sm:$0xff] }
  0xd8   : > { %841 = vst [vmem:[%s10524_s27 + $0x638] sm:$0xff] %v840_v7  ;;  %v968_v7 = vld [vmem:[%s10519_s26 + $0x1058] sm:$0xff] }
  0xd9   : > { %843 = vst [vmem:[%s10524_s27 + $0x640] sm:$0xff] %v842_v8  ;;  %v970_v8 = vld [vmem:[%s10519_s26 + $0x1060] sm:$0xff] }
  0xda   : > { %845 = vst [vmem:[%s10524_s27 + $0x648] sm:$0xff] %v844_v9  ;;  %v972_v9 = vld [vmem:[%s10519_s26 + $0x1090] sm:$0xff] }
  0xdb   : > { %847 = vst [vmem:[%s10524_s27 + $0x650] sm:$0xff] %v846_v10  ;;  %v974_v10 = vld [vmem:[%s10519_s26 + $0x1098] sm:$0xff] }
  0xdc   : > { %849 = vst [vmem:[%s10524_s27 + $0x658] sm:$0xff] %v848_v11  ;;  %v976_v11 = vld [vmem:[%s10519_s26 + $0x10a0] sm:$0xff] }
  0xdd   : > { %851 = vst [vmem:[%s10524_s27 + $0x660] sm:$0xff] %v850_v12  ;;  %v978_v12 = vld [vmem:[%s10519_s26 + $0x10a8] sm:$0xff] }
  0xde   : > { %853 = vst [vmem:[%s10524_s27 + $0x668] sm:$0xff] %v852_v13  ;;  %v980_v13 = vld [vmem:[%s10519_s26 + $0x10b0] sm:$0xff] }
  0xdf   : > { %855 = vst [vmem:[%s10524_s27 + $0x670] sm:$0xff] %v854_v14  ;;  %v982_v14 = vld [vmem:[%s10519_s26 + $0x10e0] sm:$0xff] }
  0xe0   : > { %857 = vst [vmem:[%s10524_s27 + $0x678] sm:$0xff] %v856_v15  ;;  %v984_v15 = vld [vmem:[%s10519_s26 + $0x10e8] sm:$0xff] }
  0xe1   : > { %859 = vst [vmem:[%s10524_s27 + $0x680] sm:$0xff] %v858_v16  ;;  %v986_v16 = vld [vmem:[%s10519_s26 + $0x10f0] sm:$0xff] }
  0xe2   : > { %861 = vst [vmem:[%s10524_s27 + $0x688] sm:$0xff] %v860_v17  ;;  %v988_v17 = vld [vmem:[%s10519_s26 + $0x10f8] sm:$0xff] }
  0xe3   : > { %863 = vst [vmem:[%s10524_s27 + $0x690] sm:$0xff] %v862_v18  ;;  %v990_v18 = vld [vmem:[%s10519_s26 + $0x1100] sm:$0xff] }
  0xe4   : > { %865 = vst [vmem:[%s10524_s27 + $0x698] sm:$0xff] %v864_v19  ;;  %v992_v19 = vld [vmem:[%s10519_s26 + $0x1130] sm:$0xff] }
  0xe5   : > { %867 = vst [vmem:[%s10524_s27 + $0x6a0] sm:$0xff] %v866_v20  ;;  %v994_v20 = vld [vmem:[%s10519_s26 + $0x1138] sm:$0xff] }
  0xe6   : > { %869 = vst [vmem:[%s10524_s27 + $0x6a8] sm:$0xff] %v868_v21  ;;  %v996_v21 = vld [vmem:[%s10519_s26 + $0x1140] sm:$0xff] }
  0xe7   : > { %871 = vst [vmem:[%s10524_s27 + $0x6b0] sm:$0xff] %v870_v22  ;;  %v998_v22 = vld [vmem:[%s10519_s26 + $0x1148] sm:$0xff] }
  0xe8   : > { %873 = vst [vmem:[%s10524_s27 + $0x6b8] sm:$0xff] %v872_v23  ;;  %v1000_v23 = vld [vmem:[%s10519_s26 + $0x1150] sm:$0xff] }
  0xe9   : > { %875 = vst [vmem:[%s10524_s27 + $0x6c0] sm:$0xff] %v874_v24  ;;  %v1002_v24 = vld [vmem:[%s10519_s26 + $0x1180] sm:$0xff] }
  0xea   : > { %877 = vst [vmem:[%s10524_s27 + $0x6c8] sm:$0xff] %v876_v25  ;;  %v1004_v25 = vld [vmem:[%s10519_s26 + $0x1188] sm:$0xff] }
  0xeb   : > { %879 = vst [vmem:[%s10524_s27 + $0x6d0] sm:$0xff] %v878_v26  ;;  %v1006_v26 = vld [vmem:[%s10519_s26 + $0x1190] sm:$0xff] }
  0xec   : > { %881 = vst [vmem:[%s10524_s27 + $0x6d8] sm:$0xff] %v880_v27  ;;  %v1008_v27 = vld [vmem:[%s10519_s26 + $0x1198] sm:$0xff] }
  0xed   : > { %883 = vst [vmem:[%s10524_s27 + $0x6e0] sm:$0xff] %v882_v28  ;;  %v1010_v28 = vld [vmem:[%s10519_s26 + $0x11a0] sm:$0xff] }
  0xee   : > { %885 = vst [vmem:[%s10524_s27 + $0x6e8] sm:$0xff] %v884_v29  ;;  %v1012_v29 = vld [vmem:[%s10519_s26 + $0x11d0] sm:$0xff] }
  0xef   : > { %887 = vst [vmem:[%s10524_s27 + $0x6f0] sm:$0xff] %v886_v30  ;;  %v1014_v30 = vld [vmem:[%s10519_s26 + $0x11d8] sm:$0xff] }
  0xf0   : > { %889 = vst [vmem:[%s10524_s27 + $0x6f8] sm:$0xff] %v888_v31  ;;  %v1016_v31 = vld [vmem:[%s10519_s26 + $0x11e0] sm:$0xff] }
  0xf1   : > { %891 = vst [vmem:[%s10524_s27 + $0x700] sm:$0xff] %v890_v32  ;;  %v1018_v32 = vld [vmem:[%s10519_s26 + $0x11e8] sm:$0xff] }
  0xf2   : > { %893 = vst [vmem:[%s10524_s27 + $0x708] sm:$0xff] %v892_v33  ;;  %v1020_v33 = vld [vmem:[%s10519_s26 + $0x11f0] sm:$0xff] }
  0xf3   : > { %895 = vst [vmem:[%s10524_s27 + $0x710] sm:$0xff] %v894_v34  ;;  %v1022_v34 = vld [vmem:[%s10519_s26 + $0x1220] sm:$0xff] }
  0xf4   : > { %897 = vst [vmem:[%s10524_s27 + $0x718] sm:$0xff] %v896_v35  ;;  %v1024_v35 = vld [vmem:[%s10519_s26 + $0x1228] sm:$0xff] }
  0xf5   : > { %899 = vst [vmem:[%s10524_s27 + $0x720] sm:$0xff] %v898_v36  ;;  %v1026_v36 = vld [vmem:[%s10519_s26 + $0x1230] sm:$0xff] }
  0xf6   : > { %901 = vst [vmem:[%s10524_s27 + $0x728] sm:$0xff] %v900_v37  ;;  %v1028_v37 = vld [vmem:[%s10519_s26 + $0x1238] sm:$0xff] }
  0xf7   : > { %903 = vst [vmem:[%s10524_s27 + $0x730] sm:$0xff] %v902_v38  ;;  %v1030_v38 = vld [vmem:[%s10519_s26 + $0x1240] sm:$0xff] }
  0xf8   : > { %905 = vst [vmem:[%s10524_s27 + $0x738] sm:$0xff] %v904_v39  ;;  %v1032_v39 = vld [vmem:[%s10519_s26 + $0x1270] sm:$0xff] }
  0xf9   : > { %907 = vst [vmem:[%s10524_s27 + $0x740] sm:$0xff] %v906_v40  ;;  %v1034_v40 = vld [vmem:[%s10519_s26 + $0x1278] sm:$0xff] }
  0xfa   : > { %909 = vst [vmem:[%s10524_s27 + $0x748] sm:$0xff] %v908_v41  ;;  %v1036_v41 = vld [vmem:[%s10519_s26 + $0x1280] sm:$0xff] }
  0xfb   : > { %911 = vst [vmem:[%s10524_s27 + $0x750] sm:$0xff] %v910_v42  ;;  %v1038_v42 = vld [vmem:[%s10519_s26 + $0x1288] sm:$0xff] }
  0xfc   : > { %913 = vst [vmem:[%s10524_s27 + $0x758] sm:$0xff] %v912_v43  ;;  %v1040_v43 = vld [vmem:[%s10519_s26 + $0x1290] sm:$0xff] }
  0xfd   : > { %915 = vst [vmem:[%s10524_s27 + $0x760] sm:$0xff] %v914_v44  ;;  %v1042_v44 = vld [vmem:[%s10519_s26 + $0x12c0] sm:$0xff] }
  0xfe   : > { %917 = vst [vmem:[%s10524_s27 + $0x768] sm:$0xff] %v916_v45  ;;  %v1044_v45 = vld [vmem:[%s10519_s26 + $0x12c8] sm:$0xff] }
  0xff   : > { %919 = vst [vmem:[%s10524_s27 + $0x770] sm:$0xff] %v918_v46  ;;  %v1046_v46 = vld [vmem:[%s10519_s26 + $0x12d0] sm:$0xff] }
 0x100   : > { %921 = vst [vmem:[%s10524_s27 + $0x778] sm:$0xff] %v920_v47  ;;  %v1048_v47 = vld [vmem:[%s10519_s26 + $0x12d8] sm:$0xff] }
 0x101   : > { %923 = vst [vmem:[%s10524_s27 + $0x780] sm:$0xff] %v922_v48  ;;  %v1050_v48 = vld [vmem:[%s10519_s26 + $0x12e0] sm:$0xff] }
 0x102   : > { %925 = vst [vmem:[%s10524_s27 + $0x788] sm:$0xff] %v924_v49  ;;  %v1052_v49 = vld [vmem:[%s10519_s26 + $0x1310] sm:$0xff] }
 0x103   : > { %927 = vst [vmem:[%s10524_s27 + $0x790] sm:$0xff] %v926_v50  ;;  %v1054_v50 = vld [vmem:[%s10519_s26 + $0x1318] sm:$0xff] }
 0x104   : > { %929 = vst [vmem:[%s10524_s27 + $0x798] sm:$0xff] %v928_v51  ;;  %v1056_v51 = vld [vmem:[%s10519_s26 + $0x1320] sm:$0xff] }
 0x105   : > { %931 = vst [vmem:[%s10524_s27 + $0x7a0] sm:$0xff] %v930_v52  ;;  %v1058_v52 = vld [vmem:[%s10519_s26 + $0x1328] sm:$0xff] }
 0x106   : > { %933 = vst [vmem:[%s10524_s27 + $0x7a8] sm:$0xff] %v932_v53  ;;  %v1060_v53 = vld [vmem:[%s10519_s26 + $0x1330] sm:$0xff] }
 0x107   : > { %935 = vst [vmem:[%s10524_s27 + $0x7b0] sm:$0xff] %v934_v54  ;;  %v1062_v54 = vld [vmem:[%s10519_s26 + $0x1360] sm:$0xff] }
 0x108   : > { %937 = vst [vmem:[%s10524_s27 + $0x7b8] sm:$0xff] %v936_v55  ;;  %v1064_v55 = vld [vmem:[%s10519_s26 + $0x1368] sm:$0xff] }
 0x109   : > { %939 = vst [vmem:[%s10524_s27 + $0x7c0] sm:$0xff] %v938_v56  ;;  %v1066_v56 = vld [vmem:[%s10519_s26 + $0x1370] sm:$0xff] }
 0x10a   : > { %941 = vst [vmem:[%s10524_s27 + $0x7c8] sm:$0xff] %v940_v57  ;;  %v1068_v57 = vld [vmem:[%s10519_s26 + $0x1378] sm:$0xff] }
 0x10b   : > { %943 = vst [vmem:[%s10524_s27 + $0x7d0] sm:$0xff] %v942_v58  ;;  %v1070_v58 = vld [vmem:[%s10519_s26 + $0x1380] sm:$0xff] }
 0x10c   : > { %945 = vst [vmem:[%s10524_s27 + $0x7d8] sm:$0xff] %v944_v59  ;;  %v1072_v59 = vld [vmem:[%s10519_s26 + $0x13b0] sm:$0xff] }
 0x10d   : > { %947 = vst [vmem:[%s10524_s27 + $0x7e0] sm:$0xff] %v946_v60  ;;  %v1074_v60 = vld [vmem:[%s10519_s26 + $0x13b8] sm:$0xff] }
 0x10e   : > { %949 = vst [vmem:[%s10524_s27 + $0x7e8] sm:$0xff] %v948_v61  ;;  %v1076_v61 = vld [vmem:[%s10519_s26 + $0x13c0] sm:$0xff] }
 0x10f   : > { %951 = vst [vmem:[%s10524_s27 + $0x7f0] sm:$0xff] %v950_v62  ;;  %v1078_v62 = vld [vmem:[%s10519_s26 + $0x13c8] sm:$0xff] }
 0x110   : > { %953 = vst [vmem:[%s10524_s27 + $0x7f8] sm:$0xff] %v952_v63  ;;  %v1080_v63 = vld [vmem:[%s10519_s26 + $0x13d0] sm:$0xff] }
 0x111   : > { %955 = vst [vmem:[%s10524_s27 + $0x800] sm:$0xff] %v954_v0  ;;  %v1082_v0 = vld [vmem:[%s10519_s26 + $0x1400] sm:$0xff] }
 0x112   : > { %957 = vst [vmem:[%s10524_s27 + $0x808] sm:$0xff] %v956_v1  ;;  %v1084_v1 = vld [vmem:[%s10519_s26 + $0x1408] sm:$0xff] }
 0x113   : > { %959 = vst [vmem:[%s10524_s27 + $0x810] sm:$0xff] %v958_v2  ;;  %v1086_v2 = vld [vmem:[%s10519_s26 + $0x1410] sm:$0xff] }
 0x114   : > { %961 = vst [vmem:[%s10524_s27 + $0x818] sm:$0xff] %v960_v3  ;;  %v1088_v3 = vld [vmem:[%s10519_s26 + $0x1418] sm:$0xff] }
 0x115   : > { %963 = vst [vmem:[%s10524_s27 + $0x820] sm:$0xff] %v962_v4  ;;  %v1090_v4 = vld [vmem:[%s10519_s26 + $0x1420] sm:$0xff] }
 0x116   : > { %965 = vst [vmem:[%s10524_s27 + $0x828] sm:$0xff] %v964_v5  ;;  %v1092_v5 = vld [vmem:[%s10519_s26 + $0x1450] sm:$0xff] }
 0x117   : > { %967 = vst [vmem:[%s10524_s27 + $0x830] sm:$0xff] %v966_v6  ;;  %v1094_v6 = vld [vmem:[%s10519_s26 + $0x1458] sm:$0xff] }
 0x118   : > { %969 = vst [vmem:[%s10524_s27 + $0x838] sm:$0xff] %v968_v7  ;;  %v1096_v7 = vld [vmem:[%s10519_s26 + $0x1460] sm:$0xff] }
 0x119   : > { %971 = vst [vmem:[%s10524_s27 + $0x840] sm:$0xff] %v970_v8  ;;  %v1098_v8 = vld [vmem:[%s10519_s26 + $0x1468] sm:$0xff] }
 0x11a   : > { %973 = vst [vmem:[%s10524_s27 + $0x848] sm:$0xff] %v972_v9  ;;  %v1100_v9 = vld [vmem:[%s10519_s26 + $0x1470] sm:$0xff] }
 0x11b   : > { %975 = vst [vmem:[%s10524_s27 + $0x850] sm:$0xff] %v974_v10  ;;  %v1102_v10 = vld [vmem:[%s10519_s26 + $0x14a0] sm:$0xff] }
 0x11c   : > { %977 = vst [vmem:[%s10524_s27 + $0x858] sm:$0xff] %v976_v11  ;;  %v1104_v11 = vld [vmem:[%s10519_s26 + $0x14a8] sm:$0xff] }
 0x11d   : > { %979 = vst [vmem:[%s10524_s27 + $0x860] sm:$0xff] %v978_v12  ;;  %v1106_v12 = vld [vmem:[%s10519_s26 + $0x14b0] sm:$0xff] }
 0x11e   : > { %981 = vst [vmem:[%s10524_s27 + $0x868] sm:$0xff] %v980_v13  ;;  %v1108_v13 = vld [vmem:[%s10519_s26 + $0x14b8] sm:$0xff] }
 0x11f   : > { %983 = vst [vmem:[%s10524_s27 + $0x870] sm:$0xff] %v982_v14  ;;  %v1110_v14 = vld [vmem:[%s10519_s26 + $0x14c0] sm:$0xff] }
 0x120   : > { %985 = vst [vmem:[%s10524_s27 + $0x878] sm:$0xff] %v984_v15  ;;  %v1112_v15 = vld [vmem:[%s10519_s26 + $0x14f0] sm:$0xff] }
 0x121   : > { %987 = vst [vmem:[%s10524_s27 + $0x880] sm:$0xff] %v986_v16  ;;  %v1114_v16 = vld [vmem:[%s10519_s26 + $0x14f8] sm:$0xff] }
 0x122   : > { %989 = vst [vmem:[%s10524_s27 + $0x888] sm:$0xff] %v988_v17  ;;  %v1116_v17 = vld [vmem:[%s10519_s26 + $0x1500] sm:$0xff] }
 0x123   : > { %991 = vst [vmem:[%s10524_s27 + $0x890] sm:$0xff] %v990_v18  ;;  %v1118_v18 = vld [vmem:[%s10519_s26 + $0x1508] sm:$0xff] }
 0x124   : > { %993 = vst [vmem:[%s10524_s27 + $0x898] sm:$0xff] %v992_v19  ;;  %v1120_v19 = vld [vmem:[%s10519_s26 + $0x1510] sm:$0xff] }
 0x125   : > { %995 = vst [vmem:[%s10524_s27 + $0x8a0] sm:$0xff] %v994_v20  ;;  %v1122_v20 = vld [vmem:[%s10519_s26 + $0x1540] sm:$0xff] }
 0x126   : > { %997 = vst [vmem:[%s10524_s27 + $0x8a8] sm:$0xff] %v996_v21  ;;  %v1124_v21 = vld [vmem:[%s10519_s26 + $0x1548] sm:$0xff] }
 0x127   : > { %999 = vst [vmem:[%s10524_s27 + $0x8b0] sm:$0xff] %v998_v22  ;;  %v1126_v22 = vld [vmem:[%s10519_s26 + $0x1550] sm:$0xff] }
 0x128   : > { %1001 = vst [vmem:[%s10524_s27 + $0x8b8] sm:$0xff] %v1000_v23  ;;  %v1128_v23 = vld [vmem:[%s10519_s26 + $0x1558] sm:$0xff] }
 0x129   : > { %1003 = vst [vmem:[%s10524_s27 + $0x8c0] sm:$0xff] %v1002_v24  ;;  %v1130_v24 = vld [vmem:[%s10519_s26 + $0x1560] sm:$0xff] }
 0x12a   : > { %1005 = vst [vmem:[%s10524_s27 + $0x8c8] sm:$0xff] %v1004_v25  ;;  %v1132_v25 = vld [vmem:[%s10519_s26 + $0x1590] sm:$0xff] }
 0x12b   : > { %1007 = vst [vmem:[%s10524_s27 + $0x8d0] sm:$0xff] %v1006_v26  ;;  %v1134_v26 = vld [vmem:[%s10519_s26 + $0x1598] sm:$0xff] }
 0x12c   : > { %1009 = vst [vmem:[%s10524_s27 + $0x8d8] sm:$0xff] %v1008_v27  ;;  %v1136_v27 = vld [vmem:[%s10519_s26 + $0x15a0] sm:$0xff] }
 0x12d   : > { %1011 = vst [vmem:[%s10524_s27 + $0x8e0] sm:$0xff] %v1010_v28  ;;  %v1138_v28 = vld [vmem:[%s10519_s26 + $0x15a8] sm:$0xff] }
 0x12e   : > { %1013 = vst [vmem:[%s10524_s27 + $0x8e8] sm:$0xff] %v1012_v29  ;;  %v1140_v29 = vld [vmem:[%s10519_s26 + $0x15b0] sm:$0xff] }
 0x12f   : > { %1015 = vst [vmem:[%s10524_s27 + $0x8f0] sm:$0xff] %v1014_v30  ;;  %v1142_v30 = vld [vmem:[%s10519_s26 + $0x15e0] sm:$0xff] }
 0x130   : > { %1017 = vst [vmem:[%s10524_s27 + $0x8f8] sm:$0xff] %v1016_v31  ;;  %v1144_v31 = vld [vmem:[%s10519_s26 + $0x15e8] sm:$0xff] }
 0x131   : > { %1019 = vst [vmem:[%s10524_s27 + $0x900] sm:$0xff] %v1018_v32  ;;  %v1146_v32 = vld [vmem:[%s10519_s26 + $0x15f0] sm:$0xff] }
 0x132   : > { %1021 = vst [vmem:[%s10524_s27 + $0x908] sm:$0xff] %v1020_v33  ;;  %v1148_v33 = vld [vmem:[%s10519_s26 + $0x15f8] sm:$0xff] }
 0x133   : > { %1023 = vst [vmem:[%s10524_s27 + $0x910] sm:$0xff] %v1022_v34  ;;  %v1150_v34 = vld [vmem:[%s10519_s26 + $0x1600] sm:$0xff] }
 0x134   : > { %1025 = vst [vmem:[%s10524_s27 + $0x918] sm:$0xff] %v1024_v35  ;;  %v1152_v35 = vld [vmem:[%s10519_s26 + $0x1630] sm:$0xff] }
 0x135   : > { %1027 = vst [vmem:[%s10524_s27 + $0x920] sm:$0xff] %v1026_v36  ;;  %v1154_v36 = vld [vmem:[%s10519_s26 + $0x1638] sm:$0xff] }
 0x136   : > { %1029 = vst [vmem:[%s10524_s27 + $0x928] sm:$0xff] %v1028_v37  ;;  %v1156_v37 = vld [vmem:[%s10519_s26 + $0x1640] sm:$0xff] }
 0x137   : > { %1031 = vst [vmem:[%s10524_s27 + $0x930] sm:$0xff] %v1030_v38  ;;  %v1158_v38 = vld [vmem:[%s10519_s26 + $0x1648] sm:$0xff] }
 0x138   : > { %1033 = vst [vmem:[%s10524_s27 + $0x938] sm:$0xff] %v1032_v39  ;;  %v1160_v39 = vld [vmem:[%s10519_s26 + $0x1650] sm:$0xff] }
 0x139   : > { %1035 = vst [vmem:[%s10524_s27 + $0x940] sm:$0xff] %v1034_v40  ;;  %v1162_v40 = vld [vmem:[%s10519_s26 + $0x1680] sm:$0xff] }
 0x13a   : > { %1037 = vst [vmem:[%s10524_s27 + $0x948] sm:$0xff] %v1036_v41  ;;  %v1164_v41 = vld [vmem:[%s10519_s26 + $0x1688] sm:$0xff] }
 0x13b   : > { %1039 = vst [vmem:[%s10524_s27 + $0x950] sm:$0xff] %v1038_v42  ;;  %v1166_v42 = vld [vmem:[%s10519_s26 + $0x1690] sm:$0xff] }
 0x13c   : > { %1041 = vst [vmem:[%s10524_s27 + $0x958] sm:$0xff] %v1040_v43  ;;  %v1168_v43 = vld [vmem:[%s10519_s26 + $0x1698] sm:$0xff] }
 0x13d   : > { %1043 = vst [vmem:[%s10524_s27 + $0x960] sm:$0xff] %v1042_v44  ;;  %v1170_v44 = vld [vmem:[%s10519_s26 + $0x16a0] sm:$0xff] }
 0x13e   : > { %1045 = vst [vmem:[%s10524_s27 + $0x968] sm:$0xff] %v1044_v45  ;;  %v1172_v45 = vld [vmem:[%s10519_s26 + $0x16d0] sm:$0xff] }
 0x13f   : > { %1047 = vst [vmem:[%s10524_s27 + $0x970] sm:$0xff] %v1046_v46  ;;  %v1174_v46 = vld [vmem:[%s10519_s26 + $0x16d8] sm:$0xff] }
 0x140   : > { %1049 = vst [vmem:[%s10524_s27 + $0x978] sm:$0xff] %v1048_v47  ;;  %v1176_v47 = vld [vmem:[%s10519_s26 + $0x16e0] sm:$0xff] }
 0x141   : > { %1051 = vst [vmem:[%s10524_s27 + $0x980] sm:$0xff] %v1050_v48  ;;  %v1178_v48 = vld [vmem:[%s10519_s26 + $0x16e8] sm:$0xff] }
 0x142   : > { %1053 = vst [vmem:[%s10524_s27 + $0x988] sm:$0xff] %v1052_v49  ;;  %v1180_v49 = vld [vmem:[%s10519_s26 + $0x16f0] sm:$0xff] }
 0x143   : > { %1055 = vst [vmem:[%s10524_s27 + $0x990] sm:$0xff] %v1054_v50  ;;  %v1182_v50 = vld [vmem:[%s10519_s26 + $0x1720] sm:$0xff] }
 0x144   : > { %1057 = vst [vmem:[%s10524_s27 + $0x998] sm:$0xff] %v1056_v51  ;;  %v1184_v51 = vld [vmem:[%s10519_s26 + $0x1728] sm:$0xff] }
 0x145   : > { %1059 = vst [vmem:[%s10524_s27 + $0x9a0] sm:$0xff] %v1058_v52  ;;  %v1186_v52 = vld [vmem:[%s10519_s26 + $0x1730] sm:$0xff] }
 0x146   : > { %1061 = vst [vmem:[%s10524_s27 + $0x9a8] sm:$0xff] %v1060_v53  ;;  %v1188_v53 = vld [vmem:[%s10519_s26 + $0x1738] sm:$0xff] }
 0x147   : > { %1063 = vst [vmem:[%s10524_s27 + $0x9b0] sm:$0xff] %v1062_v54  ;;  %v1190_v54 = vld [vmem:[%s10519_s26 + $0x1740] sm:$0xff] }
 0x148   : > { %1065 = vst [vmem:[%s10524_s27 + $0x9b8] sm:$0xff] %v1064_v55  ;;  %v1192_v55 = vld [vmem:[%s10519_s26 + $0x1770] sm:$0xff] }
 0x149   : > { %1067 = vst [vmem:[%s10524_s27 + $0x9c0] sm:$0xff] %v1066_v56  ;;  %v1194_v56 = vld [vmem:[%s10519_s26 + $0x1778] sm:$0xff] }
 0x14a   : > { %1069 = vst [vmem:[%s10524_s27 + $0x9c8] sm:$0xff] %v1068_v57  ;;  %v1196_v57 = vld [vmem:[%s10519_s26 + $0x1780] sm:$0xff] }
 0x14b   : > { %1071 = vst [vmem:[%s10524_s27 + $0x9d0] sm:$0xff] %v1070_v58  ;;  %v1198_v58 = vld [vmem:[%s10519_s26 + $0x1788] sm:$0xff] }
 0x14c   : > { %1073 = vst [vmem:[%s10524_s27 + $0x9d8] sm:$0xff] %v1072_v59  ;;  %v1200_v59 = vld [vmem:[%s10519_s26 + $0x1790] sm:$0xff] }
 0x14d   : > { %1075 = vst [vmem:[%s10524_s27 + $0x9e0] sm:$0xff] %v1074_v60  ;;  %v1202_v60 = vld [vmem:[%s10519_s26 + $0x17c0] sm:$0xff] }
 0x14e   : > { %1077 = vst [vmem:[%s10524_s27 + $0x9e8] sm:$0xff] %v1076_v61  ;;  %v1204_v61 = vld [vmem:[%s10519_s26 + $0x17c8] sm:$0xff] }
 0x14f   : > { %1079 = vst [vmem:[%s10524_s27 + $0x9f0] sm:$0xff] %v1078_v62  ;;  %v1206_v62 = vld [vmem:[%s10519_s26 + $0x17d0] sm:$0xff] }
 0x150   : > { %1081 = vst [vmem:[%s10524_s27 + $0x9f8] sm:$0xff] %v1080_v63  ;;  %v1208_v63 = vld [vmem:[%s10519_s26 + $0x17d8] sm:$0xff] }
 0x151   : > { %1083 = vst [vmem:[%s10524_s27 + $0xa00] sm:$0xff] %v1082_v0  ;;  %v1210_v0 = vld [vmem:[%s10519_s26 + $0x17e0] sm:$0xff] }
 0x152   : > { %1085 = vst [vmem:[%s10524_s27 + $0xa08] sm:$0xff] %v1084_v1  ;;  %v1212_v1 = vld [vmem:[%s10519_s26 + $0x1810] sm:$0xff] }
 0x153   : > { %1087 = vst [vmem:[%s10524_s27 + $0xa10] sm:$0xff] %v1086_v2  ;;  %v1214_v2 = vld [vmem:[%s10519_s26 + $0x1818] sm:$0xff] }
 0x154   : > { %1089 = vst [vmem:[%s10524_s27 + $0xa18] sm:$0xff] %v1088_v3  ;;  %v1216_v3 = vld [vmem:[%s10519_s26 + $0x1820] sm:$0xff] }
 0x155   : > { %1091 = vst [vmem:[%s10524_s27 + $0xa20] sm:$0xff] %v1090_v4  ;;  %v1218_v4 = vld [vmem:[%s10519_s26 + $0x1828] sm:$0xff] }
 0x156   : > { %1093 = vst [vmem:[%s10524_s27 + $0xa28] sm:$0xff] %v1092_v5  ;;  %v1220_v5 = vld [vmem:[%s10519_s26 + $0x1830] sm:$0xff] }
 0x157   : > { %1095 = vst [vmem:[%s10524_s27 + $0xa30] sm:$0xff] %v1094_v6  ;;  %v1222_v6 = vld [vmem:[%s10519_s26 + $0x1860] sm:$0xff] }
 0x158   : > { %1097 = vst [vmem:[%s10524_s27 + $0xa38] sm:$0xff] %v1096_v7  ;;  %v1224_v7 = vld [vmem:[%s10519_s26 + $0x1868] sm:$0xff] }
 0x159   : > { %1099 = vst [vmem:[%s10524_s27 + $0xa40] sm:$0xff] %v1098_v8  ;;  %v1226_v8 = vld [vmem:[%s10519_s26 + $0x1870] sm:$0xff] }
 0x15a   : > { %1101 = vst [vmem:[%s10524_s27 + $0xa48] sm:$0xff] %v1100_v9  ;;  %v1228_v9 = vld [vmem:[%s10519_s26 + $0x1878] sm:$0xff] }
 0x15b   : > { %1103 = vst [vmem:[%s10524_s27 + $0xa50] sm:$0xff] %v1102_v10  ;;  %v1230_v10 = vld [vmem:[%s10519_s26 + $0x1880] sm:$0xff] }
 0x15c   : > { %1105 = vst [vmem:[%s10524_s27 + $0xa58] sm:$0xff] %v1104_v11  ;;  %v1232_v11 = vld [vmem:[%s10519_s26 + $0x18b0] sm:$0xff] }
 0x15d   : > { %1107 = vst [vmem:[%s10524_s27 + $0xa60] sm:$0xff] %v1106_v12  ;;  %v1234_v12 = vld [vmem:[%s10519_s26 + $0x18b8] sm:$0xff] }
 0x15e   : > { %1109 = vst [vmem:[%s10524_s27 + $0xa68] sm:$0xff] %v1108_v13  ;;  %v1236_v13 = vld [vmem:[%s10519_s26 + $0x18c0] sm:$0xff] }
 0x15f   : > { %1111 = vst [vmem:[%s10524_s27 + $0xa70] sm:$0xff] %v1110_v14  ;;  %v1238_v14 = vld [vmem:[%s10519_s26 + $0x18c8] sm:$0xff] }
 0x160   : > { %1113 = vst [vmem:[%s10524_s27 + $0xa78] sm:$0xff] %v1112_v15  ;;  %v1240_v15 = vld [vmem:[%s10519_s26 + $0x18d0] sm:$0xff] }
 0x161   : > { %1115 = vst [vmem:[%s10524_s27 + $0xa80] sm:$0xff] %v1114_v16  ;;  %v1242_v16 = vld [vmem:[%s10519_s26 + $0x1900] sm:$0xff] }
 0x162   : > { %1117 = vst [vmem:[%s10524_s27 + $0xa88] sm:$0xff] %v1116_v17  ;;  %v1244_v17 = vld [vmem:[%s10519_s26 + $0x1908] sm:$0xff] }
 0x163   : > { %1119 = vst [vmem:[%s10524_s27 + $0xa90] sm:$0xff] %v1118_v18  ;;  %v1246_v18 = vld [vmem:[%s10519_s26 + $0x1910] sm:$0xff] }
 0x164   : > { %1121 = vst [vmem:[%s10524_s27 + $0xa98] sm:$0xff] %v1120_v19  ;;  %v1248_v19 = vld [vmem:[%s10519_s26 + $0x1918] sm:$0xff] }
 0x165   : > { %1123 = vst [vmem:[%s10524_s27 + $0xaa0] sm:$0xff] %v1122_v20  ;;  %v1250_v20 = vld [vmem:[%s10519_s26 + $0x1920] sm:$0xff] }
 0x166   : > { %1125 = vst [vmem:[%s10524_s27 + $0xaa8] sm:$0xff] %v1124_v21  ;;  %v1252_v21 = vld [vmem:[%s10519_s26 + $0x1950] sm:$0xff] }
 0x167   : > { %1127 = vst [vmem:[%s10524_s27 + $0xab0] sm:$0xff] %v1126_v22  ;;  %v1254_v22 = vld [vmem:[%s10519_s26 + $0x1958] sm:$0xff] }
 0x168   : > { %1129 = vst [vmem:[%s10524_s27 + $0xab8] sm:$0xff] %v1128_v23  ;;  %v1256_v23 = vld [vmem:[%s10519_s26 + $0x1960] sm:$0xff] }
 0x169   : > { %1131 = vst [vmem:[%s10524_s27 + $0xac0] sm:$0xff] %v1130_v24  ;;  %v1258_v24 = vld [vmem:[%s10519_s26 + $0x1968] sm:$0xff] }
 0x16a   : > { %1133 = vst [vmem:[%s10524_s27 + $0xac8] sm:$0xff] %v1132_v25  ;;  %v1260_v25 = vld [vmem:[%s10519_s26 + $0x1970] sm:$0xff] }
 0x16b   : > { %1135 = vst [vmem:[%s10524_s27 + $0xad0] sm:$0xff] %v1134_v26  ;;  %v1262_v26 = vld [vmem:[%s10519_s26 + $0x19a0] sm:$0xff] }
 0x16c   : > { %1137 = vst [vmem:[%s10524_s27 + $0xad8] sm:$0xff] %v1136_v27  ;;  %v1264_v27 = vld [vmem:[%s10519_s26 + $0x19a8] sm:$0xff] }
 0x16d   : > { %1139 = vst [vmem:[%s10524_s27 + $0xae0] sm:$0xff] %v1138_v28  ;;  %v1266_v28 = vld [vmem:[%s10519_s26 + $0x19b0] sm:$0xff] }
 0x16e   : > { %1141 = vst [vmem:[%s10524_s27 + $0xae8] sm:$0xff] %v1140_v29  ;;  %v1268_v29 = vld [vmem:[%s10519_s26 + $0x19b8] sm:$0xff] }
 0x16f   : > { %1143 = vst [vmem:[%s10524_s27 + $0xaf0] sm:$0xff] %v1142_v30  ;;  %v1270_v30 = vld [vmem:[%s10519_s26 + $0x19c0] sm:$0xff] }
 0x170   : > { %1145 = vst [vmem:[%s10524_s27 + $0xaf8] sm:$0xff] %v1144_v31  ;;  %v1272_v31 = vld [vmem:[%s10519_s26 + $0x19f0] sm:$0xff] }
 0x171   : > { %1147 = vst [vmem:[%s10524_s27 + $0xb00] sm:$0xff] %v1146_v32  ;;  %v1274_v32 = vld [vmem:[%s10519_s26 + $0x19f8] sm:$0xff] }
 0x172   : > { %1149 = vst [vmem:[%s10524_s27 + $0xb08] sm:$0xff] %v1148_v33  ;;  %v1276_v33 = vld [vmem:[%s10519_s26 + $0x1a00] sm:$0xff] }
 0x173   : > { %1151 = vst [vmem:[%s10524_s27 + $0xb10] sm:$0xff] %v1150_v34  ;;  %v1278_v34 = vld [vmem:[%s10519_s26 + $0x1a08] sm:$0xff] }
 0x174   : > { %1153 = vst [vmem:[%s10524_s27 + $0xb18] sm:$0xff] %v1152_v35  ;;  %v1280_v35 = vld [vmem:[%s10519_s26 + $0x1a10] sm:$0xff] }
 0x175   : > { %1155 = vst [vmem:[%s10524_s27 + $0xb20] sm:$0xff] %v1154_v36  ;;  %v1282_v36 = vld [vmem:[%s10519_s26 + $0x1a40] sm:$0xff] }
 0x176   : > { %1157 = vst [vmem:[%s10524_s27 + $0xb28] sm:$0xff] %v1156_v37  ;;  %v1284_v37 = vld [vmem:[%s10519_s26 + $0x1a48] sm:$0xff] }
 0x177   : > { %1159 = vst [vmem:[%s10524_s27 + $0xb30] sm:$0xff] %v1158_v38  ;;  %v1286_v38 = vld [vmem:[%s10519_s26 + $0x1a50] sm:$0xff] }
 0x178   : > { %1161 = vst [vmem:[%s10524_s27 + $0xb38] sm:$0xff] %v1160_v39  ;;  %v1288_v39 = vld [vmem:[%s10519_s26 + $0x1a58] sm:$0xff] }
 0x179   : > { %1163 = vst [vmem:[%s10524_s27 + $0xb40] sm:$0xff] %v1162_v40  ;;  %v1290_v40 = vld [vmem:[%s10519_s26 + $0x1a60] sm:$0xff] }
 0x17a   : > { %1165 = vst [vmem:[%s10524_s27 + $0xb48] sm:$0xff] %v1164_v41  ;;  %v1292_v41 = vld [vmem:[%s10519_s26 + $0x1a90] sm:$0xff] }
 0x17b   : > { %1167 = vst [vmem:[%s10524_s27 + $0xb50] sm:$0xff] %v1166_v42  ;;  %v1294_v42 = vld [vmem:[%s10519_s26 + $0x1a98] sm:$0xff] }
 0x17c   : > { %1169 = vst [vmem:[%s10524_s27 + $0xb58] sm:$0xff] %v1168_v43  ;;  %v1296_v43 = vld [vmem:[%s10519_s26 + $0x1aa0] sm:$0xff] }
 0x17d   : > { %1171 = vst [vmem:[%s10524_s27 + $0xb60] sm:$0xff] %v1170_v44  ;;  %v1298_v44 = vld [vmem:[%s10519_s26 + $0x1aa8] sm:$0xff] }
 0x17e   : > { %1173 = vst [vmem:[%s10524_s27 + $0xb68] sm:$0xff] %v1172_v45  ;;  %v1300_v45 = vld [vmem:[%s10519_s26 + $0x1ab0] sm:$0xff] }
 0x17f   : > { %1175 = vst [vmem:[%s10524_s27 + $0xb70] sm:$0xff] %v1174_v46  ;;  %v1302_v46 = vld [vmem:[%s10519_s26 + $0x1ae0] sm:$0xff] }
 0x180   : > { %1177 = vst [vmem:[%s10524_s27 + $0xb78] sm:$0xff] %v1176_v47  ;;  %v1304_v47 = vld [vmem:[%s10519_s26 + $0x1ae8] sm:$0xff] }
 0x181   : > { %1179 = vst [vmem:[%s10524_s27 + $0xb80] sm:$0xff] %v1178_v48  ;;  %v1306_v48 = vld [vmem:[%s10519_s26 + $0x1af0] sm:$0xff] }
 0x182   : > { %1181 = vst [vmem:[%s10524_s27 + $0xb88] sm:$0xff] %v1180_v49  ;;  %v1308_v49 = vld [vmem:[%s10519_s26 + $0x1af8] sm:$0xff] }
 0x183   : > { %1183 = vst [vmem:[%s10524_s27 + $0xb90] sm:$0xff] %v1182_v50  ;;  %v1310_v50 = vld [vmem:[%s10519_s26 + $0x1b00] sm:$0xff] }
 0x184   : > { %1185 = vst [vmem:[%s10524_s27 + $0xb98] sm:$0xff] %v1184_v51  ;;  %v1312_v51 = vld [vmem:[%s10519_s26 + $0x1b30] sm:$0xff] }
 0x185   : > { %1187 = vst [vmem:[%s10524_s27 + $0xba0] sm:$0xff] %v1186_v52  ;;  %v1314_v52 = vld [vmem:[%s10519_s26 + $0x1b38] sm:$0xff] }
 0x186   : > { %1189 = vst [vmem:[%s10524_s27 + $0xba8] sm:$0xff] %v1188_v53  ;;  %v1316_v53 = vld [vmem:[%s10519_s26 + $0x1b40] sm:$0xff] }
 0x187   : > { %1191 = vst [vmem:[%s10524_s27 + $0xbb0] sm:$0xff] %v1190_v54  ;;  %v1318_v54 = vld [vmem:[%s10519_s26 + $0x1b48] sm:$0xff] }
 0x188   : > { %1193 = vst [vmem:[%s10524_s27 + $0xbb8] sm:$0xff] %v1192_v55  ;;  %v1320_v55 = vld [vmem:[%s10519_s26 + $0x1b50] sm:$0xff] }
 0x189   : > { %1195 = vst [vmem:[%s10524_s27 + $0xbc0] sm:$0xff] %v1194_v56  ;;  %v1322_v56 = vld [vmem:[%s10519_s26 + $0x1b80] sm:$0xff] }
 0x18a   : > { %1197 = vst [vmem:[%s10524_s27 + $0xbc8] sm:$0xff] %v1196_v57  ;;  %v1324_v57 = vld [vmem:[%s10519_s26 + $0x1b88] sm:$0xff] }
 0x18b   : > { %1199 = vst [vmem:[%s10524_s27 + $0xbd0] sm:$0xff] %v1198_v58  ;;  %v1326_v58 = vld [vmem:[%s10519_s26 + $0x1b90] sm:$0xff] }
 0x18c   : > { %1201 = vst [vmem:[%s10524_s27 + $0xbd8] sm:$0xff] %v1200_v59  ;;  %v1328_v59 = vld [vmem:[%s10519_s26 + $0x1b98] sm:$0xff] }
 0x18d   : > { %1203 = vst [vmem:[%s10524_s27 + $0xbe0] sm:$0xff] %v1202_v60  ;;  %v1330_v60 = vld [vmem:[%s10519_s26 + $0x1ba0] sm:$0xff] }
 0x18e   : > { %1205 = vst [vmem:[%s10524_s27 + $0xbe8] sm:$0xff] %v1204_v61  ;;  %v1332_v61 = vld [vmem:[%s10519_s26 + $0x1bd0] sm:$0xff] }
 0x18f   : > { %1207 = vst [vmem:[%s10524_s27 + $0xbf0] sm:$0xff] %v1206_v62  ;;  %v1334_v62 = vld [vmem:[%s10519_s26 + $0x1bd8] sm:$0xff] }
 0x190   : > { %1209 = vst [vmem:[%s10524_s27 + $0xbf8] sm:$0xff] %v1208_v63  ;;  %v1336_v63 = vld [vmem:[%s10519_s26 + $0x1be0] sm:$0xff] }
 0x191   : > { %1211 = vst [vmem:[%s10524_s27 + $0xc00] sm:$0xff] %v1210_v0  ;;  %v1338_v0 = vld [vmem:[%s10519_s26 + $0x1be8] sm:$0xff] }
 0x192   : > { %1213 = vst [vmem:[%s10524_s27 + $0xc08] sm:$0xff] %v1212_v1  ;;  %v1340_v1 = vld [vmem:[%s10519_s26 + $0x1bf0] sm:$0xff] }
 0x193   : > { %1215 = vst [vmem:[%s10524_s27 + $0xc10] sm:$0xff] %v1214_v2  ;;  %v1342_v2 = vld [vmem:[%s10519_s26 + $0x1c20] sm:$0xff] }
 0x194   : > { %1217 = vst [vmem:[%s10524_s27 + $0xc18] sm:$0xff] %v1216_v3  ;;  %v1344_v3 = vld [vmem:[%s10519_s26 + $0x1c28] sm:$0xff] }
 0x195   : > { %1219 = vst [vmem:[%s10524_s27 + $0xc20] sm:$0xff] %v1218_v4  ;;  %v1346_v4 = vld [vmem:[%s10519_s26 + $0x1c30] sm:$0xff] }
 0x196   : > { %1221 = vst [vmem:[%s10524_s27 + $0xc28] sm:$0xff] %v1220_v5  ;;  %v1348_v5 = vld [vmem:[%s10519_s26 + $0x1c38] sm:$0xff] }
 0x197   : > { %1223 = vst [vmem:[%s10524_s27 + $0xc30] sm:$0xff] %v1222_v6  ;;  %v1350_v6 = vld [vmem:[%s10519_s26 + $0x1c40] sm:$0xff] }
 0x198   : > { %1225 = vst [vmem:[%s10524_s27 + $0xc38] sm:$0xff] %v1224_v7  ;;  %v1352_v7 = vld [vmem:[%s10519_s26 + $0x1c70] sm:$0xff] }
 0x199   : > { %1227 = vst [vmem:[%s10524_s27 + $0xc40] sm:$0xff] %v1226_v8  ;;  %v1354_v8 = vld [vmem:[%s10519_s26 + $0x1c78] sm:$0xff] }
 0x19a   : > { %1229 = vst [vmem:[%s10524_s27 + $0xc48] sm:$0xff] %v1228_v9  ;;  %v1356_v9 = vld [vmem:[%s10519_s26 + $0x1c80] sm:$0xff] }
 0x19b   : > { %1231 = vst [vmem:[%s10524_s27 + $0xc50] sm:$0xff] %v1230_v10  ;;  %v1358_v10 = vld [vmem:[%s10519_s26 + $0x1c88] sm:$0xff] }
 0x19c   : > { %1233 = vst [vmem:[%s10524_s27 + $0xc58] sm:$0xff] %v1232_v11  ;;  %v1360_v11 = vld [vmem:[%s10519_s26 + $0x1c90] sm:$0xff] }
 0x19d   : > { %1235 = vst [vmem:[%s10524_s27 + $0xc60] sm:$0xff] %v1234_v12  ;;  %v1362_v12 = vld [vmem:[%s10519_s26 + $0x1cc0] sm:$0xff] }
 0x19e   : > { %1237 = vst [vmem:[%s10524_s27 + $0xc68] sm:$0xff] %v1236_v13  ;;  %v1364_v13 = vld [vmem:[%s10519_s26 + $0x1cc8] sm:$0xff] }
 0x19f   : > { %1239 = vst [vmem:[%s10524_s27 + $0xc70] sm:$0xff] %v1238_v14  ;;  %v1366_v14 = vld [vmem:[%s10519_s26 + $0x1cd0] sm:$0xff] }
 0x1a0   : > { %1241 = vst [vmem:[%s10524_s27 + $0xc78] sm:$0xff] %v1240_v15  ;;  %v1368_v15 = vld [vmem:[%s10519_s26 + $0x1cd8] sm:$0xff] }
 0x1a1   : > { %1243 = vst [vmem:[%s10524_s27 + $0xc80] sm:$0xff] %v1242_v16  ;;  %v1370_v16 = vld [vmem:[%s10519_s26 + $0x1ce0] sm:$0xff] }
 0x1a2   : > { %1245 = vst [vmem:[%s10524_s27 + $0xc88] sm:$0xff] %v1244_v17  ;;  %v1372_v17 = vld [vmem:[%s10519_s26 + $0x1d10] sm:$0xff] }
 0x1a3   : > { %1247 = vst [vmem:[%s10524_s27 + $0xc90] sm:$0xff] %v1246_v18  ;;  %v1374_v18 = vld [vmem:[%s10519_s26 + $0x1d18] sm:$0xff] }
 0x1a4   : > { %1249 = vst [vmem:[%s10524_s27 + $0xc98] sm:$0xff] %v1248_v19  ;;  %v1376_v19 = vld [vmem:[%s10519_s26 + $0x1d20] sm:$0xff] }
 0x1a5   : > { %1251 = vst [vmem:[%s10524_s27 + $0xca0] sm:$0xff] %v1250_v20  ;;  %v1378_v20 = vld [vmem:[%s10519_s26 + $0x1d28] sm:$0xff] }
 0x1a6   : > { %1253 = vst [vmem:[%s10524_s27 + $0xca8] sm:$0xff] %v1252_v21  ;;  %v1380_v21 = vld [vmem:[%s10519_s26 + $0x1d30] sm:$0xff] }
 0x1a7   : > { %1255 = vst [vmem:[%s10524_s27 + $0xcb0] sm:$0xff] %v1254_v22  ;;  %v1382_v22 = vld [vmem:[%s10519_s26 + $0x1d60] sm:$0xff] }
 0x1a8   : > { %1257 = vst [vmem:[%s10524_s27 + $0xcb8] sm:$0xff] %v1256_v23  ;;  %v1384_v23 = vld [vmem:[%s10519_s26 + $0x1d68] sm:$0xff] }
 0x1a9   : > { %1259 = vst [vmem:[%s10524_s27 + $0xcc0] sm:$0xff] %v1258_v24  ;;  %v1386_v24 = vld [vmem:[%s10519_s26 + $0x1d70] sm:$0xff] }
 0x1aa   : > { %1261 = vst [vmem:[%s10524_s27 + $0xcc8] sm:$0xff] %v1260_v25  ;;  %v1388_v25 = vld [vmem:[%s10519_s26 + $0x1d78] sm:$0xff] }
 0x1ab   : > { %1263 = vst [vmem:[%s10524_s27 + $0xcd0] sm:$0xff] %v1262_v26  ;;  %v1390_v26 = vld [vmem:[%s10519_s26 + $0x1d80] sm:$0xff] }
 0x1ac   : > { %1265 = vst [vmem:[%s10524_s27 + $0xcd8] sm:$0xff] %v1264_v27  ;;  %v1392_v27 = vld [vmem:[%s10519_s26 + $0x1db0] sm:$0xff] }
 0x1ad   : > { %1267 = vst [vmem:[%s10524_s27 + $0xce0] sm:$0xff] %v1266_v28  ;;  %v1394_v28 = vld [vmem:[%s10519_s26 + $0x1db8] sm:$0xff] }
 0x1ae   : > { %1269 = vst [vmem:[%s10524_s27 + $0xce8] sm:$0xff] %v1268_v29  ;;  %v1396_v29 = vld [vmem:[%s10519_s26 + $0x1dc0] sm:$0xff] }
 0x1af   : > { %1271 = vst [vmem:[%s10524_s27 + $0xcf0] sm:$0xff] %v1270_v30  ;;  %v1398_v30 = vld [vmem:[%s10519_s26 + $0x1dc8] sm:$0xff] }
 0x1b0   : > { %1273 = vst [vmem:[%s10524_s27 + $0xcf8] sm:$0xff] %v1272_v31  ;;  %v1400_v31 = vld [vmem:[%s10519_s26 + $0x1dd0] sm:$0xff] }
 0x1b1   : > { %1275 = vst [vmem:[%s10524_s27 + $0xd00] sm:$0xff] %v1274_v32  ;;  %v1402_v32 = vld [vmem:[%s10519_s26 + $0x1e00] sm:$0xff] }
 0x1b2   : > { %1277 = vst [vmem:[%s10524_s27 + $0xd08] sm:$0xff] %v1276_v33  ;;  %v1404_v33 = vld [vmem:[%s10519_s26 + $0x1e08] sm:$0xff] }
 0x1b3   : > { %1279 = vst [vmem:[%s10524_s27 + $0xd10] sm:$0xff] %v1278_v34  ;;  %v1406_v34 = vld [vmem:[%s10519_s26 + $0x1e10] sm:$0xff] }
 0x1b4   : > { %1281 = vst [vmem:[%s10524_s27 + $0xd18] sm:$0xff] %v1280_v35  ;;  %v1408_v35 = vld [vmem:[%s10519_s26 + $0x1e18] sm:$0xff] }
 0x1b5   : > { %1283 = vst [vmem:[%s10524_s27 + $0xd20] sm:$0xff] %v1282_v36  ;;  %v1410_v36 = vld [vmem:[%s10519_s26 + $0x1e20] sm:$0xff] }
 0x1b6   : > { %1285 = vst [vmem:[%s10524_s27 + $0xd28] sm:$0xff] %v1284_v37  ;;  %v1412_v37 = vld [vmem:[%s10519_s26 + $0x1e50] sm:$0xff] }
 0x1b7   : > { %1287 = vst [vmem:[%s10524_s27 + $0xd30] sm:$0xff] %v1286_v38  ;;  %v1414_v38 = vld [vmem:[%s10519_s26 + $0x1e58] sm:$0xff] }
 0x1b8   : > { %1289 = vst [vmem:[%s10524_s27 + $0xd38] sm:$0xff] %v1288_v39  ;;  %v1416_v39 = vld [vmem:[%s10519_s26 + $0x1e60] sm:$0xff] }
 0x1b9   : > { %1291 = vst [vmem:[%s10524_s27 + $0xd40] sm:$0xff] %v1290_v40  ;;  %v1418_v40 = vld [vmem:[%s10519_s26 + $0x1e68] sm:$0xff] }
 0x1ba   : > { %1293 = vst [vmem:[%s10524_s27 + $0xd48] sm:$0xff] %v1292_v41  ;;  %v1420_v41 = vld [vmem:[%s10519_s26 + $0x1e70] sm:$0xff] }
 0x1bb   : > { %1295 = vst [vmem:[%s10524_s27 + $0xd50] sm:$0xff] %v1294_v42 }
 0x1bc   : > { %1297 = vst [vmem:[%s10524_s27 + $0xd58] sm:$0xff] %v1296_v43 }
 0x1bd   : > { %1299 = vst [vmem:[%s10524_s27 + $0xd60] sm:$0xff] %v1298_v44 }
 0x1be   : > { %1301 = vst [vmem:[%s10524_s27 + $0xd68] sm:$0xff] %v1300_v45 }
 0x1bf   : > { %1303 = vst [vmem:[%s10524_s27 + $0xd70] sm:$0xff] %v1302_v46 }
 0x1c0   : > { %1305 = vst [vmem:[%s10524_s27 + $0xd78] sm:$0xff] %v1304_v47 }
 0x1c1   : > { %1307 = vst [vmem:[%s10524_s27 + $0xd80] sm:$0xff] %v1306_v48 }
 0x1c2   : > { %1309 = vst [vmem:[%s10524_s27 + $0xd88] sm:$0xff] %v1308_v49 }
 0x1c3   : > { %1311 = vst [vmem:[%s10524_s27 + $0xd90] sm:$0xff] %v1310_v50 }
 0x1c4   : > { %1313 = vst [vmem:[%s10524_s27 + $0xd98] sm:$0xff] %v1312_v51 }
 0x1c5   : > { %1315 = vst [vmem:[%s10524_s27 + $0xda0] sm:$0xff] %v1314_v52 }
 0x1c6   : > { %1317 = vst [vmem:[%s10524_s27 + $0xda8] sm:$0xff] %v1316_v53 }
 0x1c7   : > { %1319 = vst [vmem:[%s10524_s27 + $0xdb0] sm:$0xff] %v1318_v54 }
 0x1c8   : > { %1321 = vst [vmem:[%s10524_s27 + $0xdb8] sm:$0xff] %v1320_v55 }
 0x1c9   : > { %1323 = vst [vmem:[%s10524_s27 + $0xdc0] sm:$0xff] %v1322_v56 }
 0x1ca   : > { %1325 = vst [vmem:[%s10524_s27 + $0xdc8] sm:$0xff] %v1324_v57 }
 0x1cb   : > { %1327 = vst [vmem:[%s10524_s27 + $0xdd0] sm:$0xff] %v1326_v58 }
 0x1cc   : > { %1329 = vst [vmem:[%s10524_s27 + $0xdd8] sm:$0xff] %v1328_v59 }
 0x1cd   : > { %1331 = vst [vmem:[%s10524_s27 + $0xde0] sm:$0xff] %v1330_v60 }
 0x1ce   : > { %1333 = vst [vmem:[%s10524_s27 + $0xde8] sm:$0xff] %v1332_v61 }
 0x1cf   : > { %1335 = vst [vmem:[%s10524_s27 + $0xdf0] sm:$0xff] %v1334_v62 }
 0x1d0   : > { %1337 = vst [vmem:[%s10524_s27 + $0xdf8] sm:$0xff] %v1336_v63 }
 0x1d1   : > { %1339 = vst [vmem:[%s10524_s27 + $0xe00] sm:$0xff] %v1338_v0 }
 0x1d2   : > { %1341 = vst [vmem:[%s10524_s27 + $0xe08] sm:$0xff] %v1340_v1 }
 0x1d3   : > { %1343 = vst [vmem:[%s10524_s27 + $0xe10] sm:$0xff] %v1342_v2 }
 0x1d4   : > { %1345 = vst [vmem:[%s10524_s27 + $0xe18] sm:$0xff] %v1344_v3 }
 0x1d5   : > { %1347 = vst [vmem:[%s10524_s27 + $0xe20] sm:$0xff] %v1346_v4 }
 0x1d6   : > { %1349 = vst [vmem:[%s10524_s27 + $0xe28] sm:$0xff] %v1348_v5 }
 0x1d7   : > { %1351 = vst [vmem:[%s10524_s27 + $0xe30] sm:$0xff] %v1350_v6 }
 0x1d8   : > { %1353 = vst [vmem:[%s10524_s27 + $0xe38] sm:$0xff] %v1352_v7 }
 0x1d9   : > { %1355 = vst [vmem:[%s10524_s27 + $0xe40] sm:$0xff] %v1354_v8 }
 0x1da   : > { %1357 = vst [vmem:[%s10524_s27 + $0xe48] sm:$0xff] %v1356_v9 }
 0x1db   : > { %1359 = vst [vmem:[%s10524_s27 + $0xe50] sm:$0xff] %v1358_v10 }
 0x1dc   : > { %1361 = vst [vmem:[%s10524_s27 + $0xe58] sm:$0xff] %v1360_v11 }
 0x1dd   : > { %1363 = vst [vmem:[%s10524_s27 + $0xe60] sm:$0xff] %v1362_v12 }
 0x1de   : > { %1365 = vst [vmem:[%s10524_s27 + $0xe68] sm:$0xff] %v1364_v13 }
 0x1df   : > { %1367 = vst [vmem:[%s10524_s27 + $0xe70] sm:$0xff] %v1366_v14 }
 0x1e0   : > { %1369 = vst [vmem:[%s10524_s27 + $0xe78] sm:$0xff] %v1368_v15 }
 0x1e1   : > { %1371 = vst [vmem:[%s10524_s27 + $0xe80] sm:$0xff] %v1370_v16 }
 0x1e2   : > { %1373 = vst [vmem:[%s10524_s27 + $0xe88] sm:$0xff] %v1372_v17 }
 0x1e3   : > { %1375 = vst [vmem:[%s10524_s27 + $0xe90] sm:$0xff] %v1374_v18 }
 0x1e4   : > { %1377 = vst [vmem:[%s10524_s27 + $0xe98] sm:$0xff] %v1376_v19 }
 0x1e5   : > { %1379 = vst [vmem:[%s10524_s27 + $0xea0] sm:$0xff] %v1378_v20 }
 0x1e6   : > { %1381 = vst [vmem:[%s10524_s27 + $0xea8] sm:$0xff] %v1380_v21 }
 0x1e7   : > { %1383 = vst [vmem:[%s10524_s27 + $0xeb0] sm:$0xff] %v1382_v22 }
 0x1e8   : > { %1385 = vst [vmem:[%s10524_s27 + $0xeb8] sm:$0xff] %v1384_v23 }
 0x1e9   : > { %1387 = vst [vmem:[%s10524_s27 + $0xec0] sm:$0xff] %v1386_v24 }
 0x1ea   : > { %1389 = vst [vmem:[%s10524_s27 + $0xec8] sm:$0xff] %v1388_v25 }
 0x1eb   : > { %1391 = vst [vmem:[%s10524_s27 + $0xed0] sm:$0xff] %v1390_v26 }
 0x1ec   : > { %1393 = vst [vmem:[%s10524_s27 + $0xed8] sm:$0xff] %v1392_v27 }
 0x1ed   : > { %1395 = vst [vmem:[%s10524_s27 + $0xee0] sm:$0xff] %v1394_v28 }
 0x1ee   : > { %1397 = vst [vmem:[%s10524_s27 + $0xee8] sm:$0xff] %v1396_v29 }
 0x1ef   : > { %1399 = vst [vmem:[%s10524_s27 + $0xef0] sm:$0xff] %v1398_v30 }
 0x1f0   : > { %1401 = vst [vmem:[%s10524_s27 + $0xef8] sm:$0xff] %v1400_v31 }
 0x1f1   : > { %1403 = vst [vmem:[%s10524_s27 + $0xf00] sm:$0xff] %v1402_v32 }
 0x1f2   : > { %1405 = vst [vmem:[%s10524_s27 + $0xf08] sm:$0xff] %v1404_v33 }
 0x1f3   : > { %1407 = vst [vmem:[%s10524_s27 + $0xf10] sm:$0xff] %v1406_v34 }
 0x1f4   : > { %1409 = vst [vmem:[%s10524_s27 + $0xf18] sm:$0xff] %v1408_v35 }
 0x1f5   : > { %1411 = vst [vmem:[%s10524_s27 + $0xf20] sm:$0xff] %v1410_v36 }
 0x1f6   : > { %1413 = vst [vmem:[%s10524_s27 + $0xf28] sm:$0xff] %v1412_v37 }
 0x1f7   : > { %1415 = vst [vmem:[%s10524_s27 + $0xf30] sm:$0xff] %v1414_v38 }
 0x1f8   : > { %1417 = vst [vmem:[%s10524_s27 + $0xf38] sm:$0xff] %v1416_v39 }
 0x1f9   : > { %1419 = vst [vmem:[%s10524_s27 + $0xf40] sm:$0xff] %v1418_v40 }
 0x1fa   : > { %1421 = vst [vmem:[%s10524_s27 + $0xf48] sm:$0xff] %v1420_v41 }
 0x1fb PF: > { %p7321_p5 = scmp.ge.s32.totalorder %s10405_s15, 1  ;;  %p1475_p6 = scmp.lt.s32.totalorder %s10405_s15, 3 }
 0x1fd   : > { %p1476_p7 = pnand %p7321_p5, %p1475_p6 }
 0x1fe   : > { %s1482_s22 = sand.u32 (!%p1476_p7), 1, %s10397_s29   ;;  %p1588_p8 = scmp.lt.s32.totalorder (!%p1476_p7), %s10499_s16, 1 }
 0x1ff   : > { %1479 = sbr.rel (%p1476_p7) target bundleno = 2140 (0x85c), region = 87 }
 0x200   : > { %s10329_s23 = smul.u32 (!%p1476_p7), 3920, %s1482_s22 }
 0x201   : > { %s1566_s15 = smul.u32 (!%p1476_p7), 5, %s10499_s16 }
 0x202   : > { %s12250_s24 = scalar_lea.vmem (!%p1476_p7), [#allocation2], %s10329_s23 }
 0x203   : > { %p13067_p9 = scmp.lt.s32.totalorder (!%p1476_p7), %s1566_s15, 9 }
 0x204   : > { %v1646_v42 = vld [vmem:[%s13772_s7 + $0xf0] sm:$0xff]  ;;  %v1644_v45 = vld [vmem:[%s13772_s7 + $0xe0] sm:$0xff]  ;;  %vm1818_vm0 = vcmask 130048   ;;  %vm2180_vm1 = vcmask 80896   ;;  %s1589_s21 = scalar_select %p1588_p8, %s10499_s16, 1  ;;  %vm7130_vm6 = vcmask 64512  }
 0x205   : > { %v1710_v43 = vld [vmem:[%s13772_s7 + $0x2f0] sm:$0xff]  ;;  %1822 = vmatpush.msra.mxu0 %v1646_v42  ;;  %v1708_v47 = vld [vmem:[%s13772_s7 + $0x2e0] sm:$0xff]  ;;  %v11700_v42 = vld [vmem:[%s13765_s0 + $0x8] sm:$0xff]  ;;  %s13786_s15 = smov (!%p13067_p9, %s1566_s15), 9  ;;  %vm6981_vm7 = vcmask 523264   ;;  %vm7119_vm8 = vcmask 1041409  }
 0x206   : > { %v1742_v44 = vld [vmem:[%s13772_s7 + $0x3f0] sm:$0xff]  ;;  %1862 = vmatpush.msra.mxu2 %v1710_v43  ;;  %v1740_v48 = vld [vmem:[%s13772_s7 + $0x3e0] sm:$0xff]  ;;  %s12729_s22 = sshll.u32 %s1589_s21, 3  ;;  %s9757_s19 = sshll.u32 %s13786_s15, 7  ;;  %vm7121_vm9 = vcmask 1042434   ;;  %vm7123_vm10 = vcmask 1043459  }
 0x207   : > { %v1678_v46 = vld [vmem:[%s13772_s7 + $0x1f0] sm:$0xff]  ;;  %1882 = vmatpush.msra.mxu3 %v1742_v44  ;;  %v1676_v50 = vld [vmem:[%s13772_s7 + $0x1e0] sm:$0xff]  ;;  %1823 = vmatpush.msra.mxu0 %v1644_v45  ;;  %v1647_v45 = vld [vmem:[%s13772_s7 + $0xf8] sm:$0xff]  ;;  %s1591_s25 = scalar_lea.vmem %s13776_s11, %s12729_s22  ;;  %s1599_s18 = scalar_lea.vmem %s13778_s13, %s12729_s22  ;;  %vm7125_vm11 = vcmask 1044484   ;;  %vm7128_vm12 = vcmask 1044480  }
 0x208   : > { %1842 = vmatpush.msra.mxu1 %v1678_v46  ;;  %v1642_v49 = vld [vmem:[%s13772_s7 + $0xd0] sm:$0xff]  ;;  %1863 = vmatpush.msra.mxu2 %v1708_v47  ;;  %v1640_v53 = vld [vmem:[%s13772_s7 + $0xc0] sm:$0xff]  ;;  %s13115_s29 = scalar_lea.vmem %s13768_s3, %s9757_s19  ;;  %s13298_s21 = scalar_lea.vmem %s13769_s4, %s13786_s15 }
 0x209   : > { %v1706_v51 = vld [vmem:[%s13772_s7 + $0x2d0] sm:$0xff]  ;;  %1883 = vmatpush.msra.mxu3 %v1740_v48  ;;  %v1704_v55 = vld [vmem:[%s13772_s7 + $0x2c0] sm:$0xff]  ;;  %1824 = vmatpush.msra.mxu0 %v1642_v49  ;;  %s13392_s26 = scalar_lea.vmem %s13771_s6, %s13786_s15 }
 0x20a   : > { %v1738_v52 = vld [vmem:[%s13772_s7 + $0x3d0] sm:$0xff]  ;;  %1843 = vmatpush.msra.mxu1 %v1676_v50  ;;  %1864 = vmatpush.msra.mxu2 %v1706_v51  ;;  %v1736_v56 = vld [vmem:[%s13772_s7 + $0x3c0] sm:$0xff]  ;;  %v1611_v50 = vunpack.c.l.bf16 %v11700_v42  ;;  %v1645_v51 = vld [vmem:[%s13772_s7 + $0xe8] sm:$0xff] }
 0x20b   : > { %v1674_v54 = vld [vmem:[%s13772_s7 + $0x1d0] sm:$0xff]  ;;  %v1672_v57 = vld [vmem:[%s13772_s7 + $0x1c0] sm:$0xff]  ;;  %1884 = vmatpush.msra.mxu3 %v1738_v52  ;;  %1825 = vmatpush.msra.mxu0 %v1640_v53  ;;  %v1679_v52 = vld [vmem:[%s13772_s7 + $0x1f8] sm:$0xff] }
 0x20c   : > { %1844 = vmatpush.msra.mxu1 %v1674_v54  ;;  %v1638_v58 = vld [vmem:[%s13772_s7 + $0xb0] sm:$0xff]  ;;  %1865 = vmatpush.msra.mxu2 %v1704_v55  ;;  %v1636_v62 = vld [vmem:[%s13772_s7 + $0xa0] sm:$0xff] }
 0x20d   : > { %v1702_v59 = vld [vmem:[%s13772_s7 + $0x2b0] sm:$0xff]  ;;  %1885 = vmatpush.msra.mxu3 %v1736_v56  ;;  %v1700_v63 = vld [vmem:[%s13772_s7 + $0x2a0] sm:$0xff]  ;;  %1826 = vmatpush.msra.mxu0 %v1638_v58  ;;  %v1612_v56 = vunpack.c.h.bf16 %v11700_v42  ;;  %v1643_v58 = vld [vmem:[%s13772_s7 + $0xd8] sm:$0xff] }
 0x20e   : > { %v1734_v60 = vld [vmem:[%s13772_s7 + $0x3b0] sm:$0xff]  ;;  %1845 = vmatpush.msra.mxu1 %v1672_v57  ;;  %1866 = vmatpush.msra.mxu2 %v1702_v59  ;;  %v1732_v0 = vld [vmem:[%s13772_s7 + $0x3a0] sm:$0xff]  ;;  %v1677_v57 = vld [vmem:[%s13772_s7 + $0x1e8] sm:$0xff] }
 0x20f   : > { %v1670_v61 = vld [vmem:[%s13772_s7 + $0x1b0] sm:$0xff]  ;;  %v1668_v1 = vld [vmem:[%s13772_s7 + $0x1a0] sm:$0xff]  ;;  %1886 = vmatpush.msra.mxu3 %v1734_v60  ;;  %1827 = vmatpush.msra.mxu0 %v1636_v62  ;;  %v1675_v62 = vld [vmem:[%s13772_s7 + $0x1d8] sm:$0xff] }
 0x210   : > { %1846 = vmatpush.msra.mxu1 %v1670_v61  ;;  %v1634_v2 = vld [vmem:[%s13772_s7 + $0x90] sm:$0xff]  ;;  %1867 = vmatpush.msra.mxu2 %v1700_v63  ;;  %v1632_v6 = vld [vmem:[%s13772_s7 + $0x80] sm:$0xff]  ;;  %v1641_v63 = vld [vmem:[%s13772_s7 + $0xc8] sm:$0xff] }
 0x211   : > { %v1698_v3 = vld [vmem:[%s13772_s7 + $0x290] sm:$0xff]  ;;  %1887 = vmatpush.msra.mxu3 %v1732_v0  ;;  %v1696_v7 = vld [vmem:[%s13772_s7 + $0x280] sm:$0xff]  ;;  %1828 = vmatpush.msra.mxu0 %v1634_v2  ;;  %v1639_v2 = vld [vmem:[%s13772_s7 + $0xb8] sm:$0xff] }
 0x212   : > { %v1730_v4 = vld [vmem:[%s13772_s7 + $0x390] sm:$0xff]  ;;  %1847 = vmatpush.msra.mxu1 %v1668_v1  ;;  %1868 = vmatpush.msra.mxu2 %v1698_v3  ;;  %v1728_v8 = vld [vmem:[%s13772_s7 + $0x380] sm:$0xff]  ;;  %v1673_v3 = vld [vmem:[%s13772_s7 + $0x1c8] sm:$0xff] }
 0x213   : > { %v1666_v5 = vld [vmem:[%s13772_s7 + $0x190] sm:$0xff]  ;;  %v1664_v9 = vld [vmem:[%s13772_s7 + $0x180] sm:$0xff]  ;;  %1888 = vmatpush.msra.mxu3 %v1730_v4  ;;  %1829 = vmatpush.msra.mxu0 %v1632_v6  ;;  %v1637_v6 = vld [vmem:[%s13772_s7 + $0xa8] sm:$0xff] }
 0x214   : > { %1848 = vmatpush.msra.mxu1 %v1666_v5  ;;  %v1630_v10 = vld [vmem:[%s13772_s7 + $0x70] sm:$0xff]  ;;  %1869 = vmatpush.msra.mxu2 %v1696_v7  ;;  %v1628_v14 = vld [vmem:[%s13772_s7 + $0x60] sm:$0xff]  ;;  %v1671_v7 = vld [vmem:[%s13772_s7 + $0x1b8] sm:$0xff] }
 0x215   : > { %v1694_v11 = vld [vmem:[%s13772_s7 + $0x270] sm:$0xff]  ;;  %1889 = vmatpush.msra.mxu3 %v1728_v8  ;;  %v1692_v15 = vld [vmem:[%s13772_s7 + $0x260] sm:$0xff]  ;;  %1830 = vmatpush.msra.mxu0 %v1630_v10  ;;  %v1635_v10 = vld [vmem:[%s13772_s7 + $0x98] sm:$0xff] }
 0x216   : > { %v1726_v12 = vld [vmem:[%s13772_s7 + $0x370] sm:$0xff]  ;;  %1849 = vmatpush.msra.mxu1 %v1664_v9  ;;  %1870 = vmatpush.msra.mxu2 %v1694_v11  ;;  %v1724_v16 = vld [vmem:[%s13772_s7 + $0x360] sm:$0xff]  ;;  %v1669_v11 = vld [vmem:[%s13772_s7 + $0x1a8] sm:$0xff] }
 0x217   : > { %v1662_v13 = vld [vmem:[%s13772_s7 + $0x170] sm:$0xff]  ;;  %v1660_v17 = vld [vmem:[%s13772_s7 + $0x160] sm:$0xff]  ;;  %1890 = vmatpush.msra.mxu3 %v1726_v12  ;;  %1831 = vmatpush.msra.mxu0 %v1628_v14  ;;  %v1633_v14 = vld [vmem:[%s13772_s7 + $0x88] sm:$0xff] }
 0x218   : > { %1850 = vmatpush.msra.mxu1 %v1662_v13  ;;  %v1626_v18 = vld [vmem:[%s13772_s7 + $0x50] sm:$0xff]  ;;  %1871 = vmatpush.msra.mxu2 %v1692_v15  ;;  %v1624_v22 = vld [vmem:[%s13772_s7 + $0x40] sm:$0xff]  ;;  %v1667_v15 = vld [vmem:[%s13772_s7 + $0x198] sm:$0xff] }
 0x219   : > { %v1690_v19 = vld [vmem:[%s13772_s7 + $0x250] sm:$0xff]  ;;  %1891 = vmatpush.msra.mxu3 %v1724_v16  ;;  %v1688_v23 = vld [vmem:[%s13772_s7 + $0x240] sm:$0xff]  ;;  %1832 = vmatpush.msra.mxu0 %v1626_v18  ;;  %v1631_v18 = vld [vmem:[%s13772_s7 + $0x78] sm:$0xff] }
 0x21a   : > { %v1722_v20 = vld [vmem:[%s13772_s7 + $0x350] sm:$0xff]  ;;  %1851 = vmatpush.msra.mxu1 %v1660_v17  ;;  %1872 = vmatpush.msra.mxu2 %v1690_v19  ;;  %v1720_v24 = vld [vmem:[%s13772_s7 + $0x340] sm:$0xff]  ;;  %v1665_v19 = vld [vmem:[%s13772_s7 + $0x188] sm:$0xff] }
 0x21b   : > { %v1658_v21 = vld [vmem:[%s13772_s7 + $0x150] sm:$0xff]  ;;  %v1656_v25 = vld [vmem:[%s13772_s7 + $0x140] sm:$0xff]  ;;  %1892 = vmatpush.msra.mxu3 %v1722_v20  ;;  %1833 = vmatpush.msra.mxu0 %v1624_v22  ;;  %v1629_v22 = vld [vmem:[%s13772_s7 + $0x68] sm:$0xff] }
 0x21c   : > { %1852 = vmatpush.msra.mxu1 %v1658_v21  ;;  %v1622_v26 = vld [vmem:[%s13772_s7 + $0x30] sm:$0xff]  ;;  %1873 = vmatpush.msra.mxu2 %v1688_v23  ;;  %v1620_v30 = vld [vmem:[%s13772_s7 + $0x20] sm:$0xff]  ;;  %v1663_v23 = vld [vmem:[%s13772_s7 + $0x178] sm:$0xff] }
 0x21d   : > { %v1686_v27 = vld [vmem:[%s13772_s7 + $0x230] sm:$0xff]  ;;  %1893 = vmatpush.msra.mxu3 %v1720_v24  ;;  %v1684_v31 = vld [vmem:[%s13772_s7 + $0x220] sm:$0xff]  ;;  %1834 = vmatpush.msra.mxu0 %v1622_v26  ;;  %v1627_v26 = vld [vmem:[%s13772_s7 + $0x58] sm:$0xff] }
 0x21e   : > { %v1718_v28 = vld [vmem:[%s13772_s7 + $0x330] sm:$0xff]  ;;  %1853 = vmatpush.msra.mxu1 %v1656_v25  ;;  %1874 = vmatpush.msra.mxu2 %v1686_v27  ;;  %v1716_v32 = vld [vmem:[%s13772_s7 + $0x320] sm:$0xff]  ;;  %v1661_v27 = vld [vmem:[%s13772_s7 + $0x168] sm:$0xff] }
 0x21f   : > { %v1654_v29 = vld [vmem:[%s13772_s7 + $0x130] sm:$0xff]  ;;  %v1652_v33 = vld [vmem:[%s13772_s7 + $0x120] sm:$0xff]  ;;  %1894 = vmatpush.msra.mxu3 %v1718_v28  ;;  %1835 = vmatpush.msra.mxu0 %v1620_v30  ;;  %v1625_v30 = vld [vmem:[%s13772_s7 + $0x48] sm:$0xff] }
 0x220   : > { %1854 = vmatpush.msra.mxu1 %v1654_v29  ;;  %v1618_v34 = vld [vmem:[%s13772_s7 + $0x10] sm:$0xff]  ;;  %1875 = vmatpush.msra.mxu2 %v1684_v31  ;;  %v1616_v38 = vld [vmem:[%s13772_s7] sm:$0xff]  ;;  %v1659_v31 = vld [vmem:[%s13772_s7 + $0x158] sm:$0xff] }
 0x221   : > { %v1682_v35 = vld [vmem:[%s13772_s7 + $0x210] sm:$0xff]  ;;  %1895 = vmatpush.msra.mxu3 %v1716_v32  ;;  %v1680_v39 = vld [vmem:[%s13772_s7 + $0x200] sm:$0xff]  ;;  %1836 = vmatpush.msra.mxu0 %v1618_v34  ;;  %v1623_v34 = vld [vmem:[%s13772_s7 + $0x38] sm:$0xff] }
 0x222   : > { %v1714_v36 = vld [vmem:[%s13772_s7 + $0x310] sm:$0xff]  ;;  %1855 = vmatpush.msra.mxu1 %v1652_v33  ;;  %1876 = vmatpush.msra.mxu2 %v1682_v35  ;;  %v1712_v40 = vld [vmem:[%s13772_s7 + $0x300] sm:$0xff]  ;;  %v1657_v35 = vld [vmem:[%s13772_s7 + $0x148] sm:$0xff] }
 0x223   : > { %v1650_v37 = vld [vmem:[%s13772_s7 + $0x110] sm:$0xff]  ;;  %1896 = vmatpush.msra.mxu3 %v1714_v36  ;;  %v1648_v44 = vld [vmem:[%s13772_s7 + $0x100] sm:$0xff]  ;;  %1837 = vmatpush.msra.mxu0 %v1616_v38  ;;  %v11878_v36 = vld [vmem:[%s13765_s0 + $0x18] sm:$0xf] }
 0x224   : > { %v1774_v41 = vld [vmem:[%s13772_s7 + $0x4f0] sm:$0xff]  ;;  %1856 = vmatpush.msra.mxu1 %v1650_v37  ;;  %1877 = vmatpush.msra.mxu2 %v1680_v39  ;;  %v1772_v46 = vld [vmem:[%s13772_s7 + $0x4e0] sm:$0xff]  ;;  %v1621_v39 = vld [vmem:[%s13772_s7 + $0x28] sm:$0xff] }
 0x225   : > { %v1810_v43 = vld [vmem:[%s13772_s7 + $0x610] sm:$0xff]  ;;  %v11717_v47 = vld [vmem:[%s13765_s0] sm:$0xff]  ;;  %1897 = vmatpush.msra.mxu3 %v1712_v40  ;;  %1902 = vmatpush.msrb.mxu0 %v1774_v41  ;;  %v1655_v40 = vld [vmem:[%s13772_s7 + $0x138] sm:$0xff] }
 0x226   : > { %v1806_v48 = vld [vmem:[%s13772_s7 + $0x5f0] sm:$0xff]  ;;  %v1808_v49 = vld [vmem:[%s13772_s7 + $0x600] sm:$0xff]  ;;  %1956 = vmatpush.msrb.mxu2 %v1810_v43  ;;  %1857 = vmatpush.msra.mxu1 %v1648_v44  ;;  %v1609_v54 = vunpack.c.l.bf16 %v11717_v47  ;;  %v1610_v61 = vunpack.c.h.bf16 %v11717_v47  ;;  %v1683_v47 = vld [vmem:[%s13772_s7 + $0x218] sm:$0xff] }
 0x227   : > { %1962 = vmatpush.msrb.mxu3 %v1647_v45  ;;  %1903 = vmatpush.msrb.mxu0 %v1772_v46  ;;  %v1770_v53 = vld [vmem:[%s13772_s7 + $0x4d0] sm:$0xff]  ;;  %v1804_v55 = vld [vmem:[%s13772_s7 + $0x5e0] sm:$0xff]  ;;  %v1615_v45 = vunpack.c.l.bf16 %v11878_v36  ;;  %v1619_v46 = vld [vmem:[%s13772_s7 + $0x18] sm:$0xff] }
 0x228   : > { %1922 = vmatpush.msrb.mxu1 %v1806_v48  ;;  %1957 = vmatpush.msrb.mxu2 %v1808_v49  ;;  %v1768_v59 = vld [vmem:[%s13772_s7 + $0x4c0] sm:$0xff]  ;;  %v1802_v60 = vld [vmem:[%s13772_s7 + $0x5d0] sm:$0xff]  ;;  %v1653_v48 = vld [vmem:[%s13772_s7 + $0x128] sm:$0xff] }
 0x229   : > { %1878 = vmatmul.f32.vlgmr.msra.gmra.mxu2 %v1611_v50  ;;  %1963 = vmatpush.msrb.mxu3 %v1645_v51  ;;  %v1766_v0 = vld [vmem:[%s13772_s7 + $0x4b0] sm:$0xff]  ;;  %v1800_v1 = vld [vmem:[%s13772_s7 + $0x5c0] sm:$0xff] }
 0x22a   : > { %1982 = vmatpush.msra.mxu2 %v1679_v52  ;;  %1904 = vmatpush.msrb.mxu0 %v1770_v53  ;;  %v1764_v4 = vld [vmem:[%s13772_s7 + $0x4a0] sm:$0xff]  ;;  %v1798_v5 = vld [vmem:[%s13772_s7 + $0x5b0] sm:$0xff]  ;;  %v1617_v53 = vld [vmem:[%s13772_s7 + $0x8] sm:$0xff] }
 0x22b   : > { %1923 = vmatpush.msrb.mxu1 %v1804_v55  ;;  %1838 = vmatmul.f32.vlgmr.msra.gmra.mxu0 %v1609_v54  ;;  %v1762_v8 = vld [vmem:[%s13772_s7 + $0x490] sm:$0xff]  ;;  %v1796_v9 = vld [vmem:[%s13772_s7 + $0x5a0] sm:$0xff]  ;;  %v1651_v55 = vld [vmem:[%s13772_s7 + $0x118] sm:$0xff] }
 0x22c   : > { %1898 = vmatmul.f32.vlgmr.msra.gmra.mxu3 %v1612_v56  ;;  %1983 = vmatpush.msra.mxu2 %v1677_v57  ;;  %v1760_v12 = vld [vmem:[%s13772_s7 + $0x480] sm:$0xff]  ;;  %v1794_v13 = vld [vmem:[%s13772_s7 + $0x590] sm:$0xff] }
 0x22d   : > { %1964 = vmatpush.msrb.mxu3 %v1643_v58  ;;  %1905 = vmatpush.msrb.mxu0 %v1768_v59  ;;  %v1758_v16 = vld [vmem:[%s13772_s7 + $0x470] sm:$0xff]  ;;  %v1792_v17 = vld [vmem:[%s13772_s7 + $0x580] sm:$0xff]  ;;  %v1775_v58 = vld [vmem:[%s13772_s7 + $0x4f8] sm:$0xff] }
 0x22e   : > { %1924 = vmatpush.msrb.mxu1 %v1802_v60  ;;  %1984 = vmatpush.msra.mxu2 %v1675_v62  ;;  %v1756_v20 = vld [vmem:[%s13772_s7 + $0x460] sm:$0xff]  ;;  %v1790_v21 = vld [vmem:[%s13772_s7 + $0x570] sm:$0xff]  ;;  %v1649_v60 = vld [vmem:[%s13772_s7 + $0x108] sm:$0xff] }
 0x22f   : > { %1858 = vmatmul.f32.vlgmr.msra.gmra.mxu1 %v1610_v61  ;;  %1965 = vmatpush.msrb.mxu3 %v1641_v63  ;;  %v1754_v24 = vld [vmem:[%s13772_s7 + $0x450] sm:$0xff]  ;;  %v1788_v25 = vld [vmem:[%s13772_s7 + $0x560] sm:$0xff]  ;;  %v1711_v62 = vld [vmem:[%s13772_s7 + $0x2f8] sm:$0xff] }
 0x230   : > { %1906 = vmatpush.msrb.mxu0 %v1766_v0  ;;  %1925 = vmatpush.msrb.mxu1 %v1800_v1  ;;  %v1752_v28 = vld [vmem:[%s13772_s7 + $0x440] sm:$0xff]  ;;  %v1786_v29 = vld [vmem:[%s13772_s7 + $0x550] sm:$0xff]  ;;  %v1773_v63 = vld [vmem:[%s13772_s7 + $0x4e8] sm:$0xff] }
 0x231   : > { %1966 = vmatpush.msrb.mxu3 %v1639_v2  ;;  %1985 = vmatpush.msra.mxu2 %v1673_v3  ;;  %v1750_v32 = vld [vmem:[%s13772_s7 + $0x430] sm:$0xff]  ;;  %v1784_v33 = vld [vmem:[%s13772_s7 + $0x540] sm:$0xff]  ;;  %v1807_v0 = vld [vmem:[%s13772_s7 + $0x5f8] sm:$0xff] }
 0x232   : > { %1907 = vmatpush.msrb.mxu0 %v1764_v4  ;;  %1926 = vmatpush.msrb.mxu1 %v1798_v5  ;;  %v1748_v37 = vld [vmem:[%s13772_s7 + $0x420] sm:$0xff]  ;;  %v1782_v38 = vld [vmem:[%s13772_s7 + $0x530] sm:$0xff]  ;;  %v1743_v1 = vld [vmem:[%s13772_s7 + $0x3f8] sm:$0xff] }
 0x233   : > { %1967 = vmatpush.msrb.mxu3 %v1637_v6  ;;  %1986 = vmatpush.msra.mxu2 %v1671_v7  ;;  %v11895_v41 = vld [vmem:[%s13765_s0 + $0x10] sm:$0xff]  ;;  %v1780_v44 = vld [vmem:[%s13772_s7 + $0x520] sm:$0xff]  ;;  %v1709_v2 = vld [vmem:[%s13772_s7 + $0x2e8] sm:$0xff] }
 0x234   : > { %1908 = vmatpush.msrb.mxu0 %v1762_v8  ;;  %1927 = vmatpush.msrb.mxu1 %v1796_v9  ;;  %v1746_v43 = vld [vmem:[%s13772_s7 + $0x410] sm:$0xff]  ;;  %v1744_v49 = vld [vmem:[%s13772_s7 + $0x400] sm:$0xff]  ;;  %v1613_v51 = vunpack.c.l.bf16 %v11895_v41  ;;  %v1614_v59 = vunpack.c.h.bf16 %v11895_v41  ;;  %v1771_v3 = vld [vmem:[%s13772_s7 + $0x4d8] sm:$0xff] }
 0x235   : > { %1968 = vmatpush.msrb.mxu3 %v1635_v10  ;;  %1987 = vmatpush.msra.mxu2 %v1669_v11  ;;  %v1778_v52 = vld [vmem:[%s13772_s7 + $0x510] sm:$0xff]  ;;  %v1776_v57 = vld [vmem:[%s13772_s7 + $0x500] sm:$0xff]  ;;  %v1805_v4 = vld [vmem:[%s13772_s7 + $0x5e8] sm:$0xff] }
 0x236   : > { %1909 = vmatpush.msrb.mxu0 %v1760_v12  ;;  %1928 = vmatpush.msrb.mxu1 %v1794_v13  ;;  %v1741_v5 = vld [vmem:[%s13772_s7 + $0x3e8] sm:$0xff]  ;;  %v1707_v6 = vld [vmem:[%s13772_s7 + $0x2d8] sm:$0xff] }
 0x237   : > { %1969 = vmatpush.msrb.mxu3 %v1633_v14  ;;  %1988 = vmatpush.msra.mxu2 %v1667_v15  ;;  %v1769_v7 = vld [vmem:[%s13772_s7 + $0x4c8] sm:$0xff]  ;;  %v1803_v8 = vld [vmem:[%s13772_s7 + $0x5d8] sm:$0xff] }
 0x238   : > { %1910 = vmatpush.msrb.mxu0 %v1758_v16  ;;  %1929 = vmatpush.msrb.mxu1 %v1792_v17  ;;  %v1739_v9 = vld [vmem:[%s13772_s7 + $0x3d8] sm:$0xff]  ;;  %v1705_v10 = vld [vmem:[%s13772_s7 + $0x2c8] sm:$0xff] }
 0x239   : > { %1970 = vmatpush.msrb.mxu3 %v1631_v18  ;;  %1989 = vmatpush.msra.mxu2 %v1665_v19  ;;  %v1767_v11 = vld [vmem:[%s13772_s7 + $0x4b8] sm:$0xff]  ;;  %v1801_v12 = vld [vmem:[%s13772_s7 + $0x5c8] sm:$0xff] }
 0x23a   : > { %1911 = vmatpush.msrb.mxu0 %v1756_v20  ;;  %1930 = vmatpush.msrb.mxu1 %v1790_v21  ;;  %v1737_v13 = vld [vmem:[%s13772_s7 + $0x3c8] sm:$0xff]  ;;  %v1703_v14 = vld [vmem:[%s13772_s7 + $0x2b8] sm:$0xff] }
 0x23b   : > { %1971 = vmatpush.msrb.mxu3 %v1629_v22  ;;  %1990 = vmatpush.msra.mxu2 %v1663_v23  ;;  %v1765_v15 = vld [vmem:[%s13772_s7 + $0x4a8] sm:$0xff]  ;;  %v1799_v16 = vld [vmem:[%s13772_s7 + $0x5b8] sm:$0xff] }
 0x23c   : > { %1912 = vmatpush.msrb.mxu0 %v1754_v24  ;;  %1931 = vmatpush.msrb.mxu1 %v1788_v25  ;;  %v1735_v17 = vld [vmem:[%s13772_s7 + $0x3b8] sm:$0xff]  ;;  %v1701_v18 = vld [vmem:[%s13772_s7 + $0x2a8] sm:$0xff] }
 0x23d   : > { %1972 = vmatpush.msrb.mxu3 %v1627_v26  ;;  %1991 = vmatpush.msra.mxu2 %v1661_v27  ;;  %v1763_v19 = vld [vmem:[%s13772_s7 + $0x498] sm:$0xff]  ;;  %v1797_v20 = vld [vmem:[%s13772_s7 + $0x5a8] sm:$0xff] }
 0x23e   : > { %1913 = vmatpush.msrb.mxu0 %v1752_v28  ;;  %1932 = vmatpush.msrb.mxu1 %v1786_v29  ;;  %v1733_v21 = vld [vmem:[%s13772_s7 + $0x3a8] sm:$0xff]  ;;  %v1699_v22 = vld [vmem:[%s13772_s7 + $0x298] sm:$0xff] }
 0x23f   : > { %1973 = vmatpush.msrb.mxu3 %v1625_v30  ;;  %1992 = vmatpush.msra.mxu2 %v1659_v31  ;;  %v1761_v23 = vld [vmem:[%s13772_s7 + $0x488] sm:$0xff]  ;;  %v1795_v24 = vld [vmem:[%s13772_s7 + $0x598] sm:$0xff] }
 0x240   : > { %1914 = vmatpush.msrb.mxu0 %v1750_v32  ;;  %1933 = vmatpush.msrb.mxu1 %v1784_v33  ;;  %v1731_v25 = vld [vmem:[%s13772_s7 + $0x398] sm:$0xff]  ;;  %v1697_v26 = vld [vmem:[%s13772_s7 + $0x288] sm:$0xff] }
 0x241   : > { %1974 = vmatpush.msrb.mxu3 %v1623_v34  ;;  %1993 = vmatpush.msra.mxu2 %v1657_v35  ;;  %v1759_v27 = vld [vmem:[%s13772_s7 + $0x478] sm:$0xff]  ;;  %v1793_v28 = vld [vmem:[%s13772_s7 + $0x588] sm:$0xff] }
 0x242   : > { %1915 = vmatpush.msrb.mxu0 %v1748_v37  ;;  %1934 = vmatpush.msrb.mxu1 %v1782_v38  ;;  %v1729_v29 = vld [vmem:[%s13772_s7 + $0x388] sm:$0xff]  ;;  %v1695_v30 = vld [vmem:[%s13772_s7 + $0x278] sm:$0xff] }
 0x243   : > { %1975 = vmatpush.msrb.mxu3 %v1621_v39  ;;  %1994 = vmatpush.msra.mxu2 %v1655_v40  ;;  %v1757_v31 = vld [vmem:[%s13772_s7 + $0x468] sm:$0xff]  ;;  %v1791_v32 = vld [vmem:[%s13772_s7 + $0x578] sm:$0xff] }
 0x244   : > { %1916 = vmatpush.msrb.mxu0 %v1746_v43  ;;  %1935 = vmatpush.msrb.mxu1 %v1780_v44  ;;  %v1727_v33 = vld [vmem:[%s13772_s7 + $0x378] sm:$0xff]  ;;  %v1693_v34 = vld [vmem:[%s13772_s7 + $0x268] sm:$0xff] }
 0x245   : > { %7328 = vmatmul.msk.f32.vlgmr.msrb.gmra.mxu2 %vm1818_vm0, %v1615_v45  ;;  %1976 = vmatpush.msrb.mxu3 %v1619_v46  ;;  %v1755_v35 = vld [vmem:[%s13772_s7 + $0x458] sm:$0xff]  ;;  %v1789_v37 = vld [vmem:[%s13772_s7 + $0x568] sm:$0xff] }
 0x246   : > { %1995 = vmatpush.msra.mxu2 %v1653_v48  ;;  %1917 = vmatpush.msrb.mxu0 %v1744_v49  ;;  %v1725_v38 = vld [vmem:[%s13772_s7 + $0x368] sm:$0xff]  ;;  %v1691_v39 = vld [vmem:[%s13772_s7 + $0x258] sm:$0xff] }
 0x247   : > { %1936 = vmatpush.msrb.mxu1 %v1778_v52  ;;  %1918 = vmatmul.f32.vlgmr.msrb.gmra.mxu0 %v1613_v51  ;;  %v1753_v40 = vld [vmem:[%s13772_s7 + $0x448] sm:$0xff]  ;;  %v1787_v43 = vld [vmem:[%s13772_s7 + $0x558] sm:$0xff] }
 0x248   : > { %1977 = vmatpush.msrb.mxu3 %v1617_v53  ;;  %1996 = vmatpush.msra.mxu2 %v1651_v55  ;;  %v1689_v44 = vld [vmem:[%s13772_s7 + $0x248] sm:$0xff]  ;;  %v1723_v46 = vld [vmem:[%s13772_s7 + $0x358] sm:$0xff] }
 0x249   : > { %1937 = vmatpush.msrb.mxu1 %v1776_v57  ;;  %2002 = vmatpush.msra.mxu0 %v1711_v62  ;;  %v1751_v48 = vld [vmem:[%s13772_s7 + $0x438] sm:$0xff]  ;;  %v1785_v49 = vld [vmem:[%s13772_s7 + $0x548] sm:$0xff] }
 0x24a   : > { %2042 = vmatpush.msra.mxu3 %v1775_v58  ;;  %1938 = vmatmul.f32.vlgmr.msrb.gmra.mxu1 %v1614_v59  ;;  %v1687_v52 = vld [vmem:[%s13772_s7 + $0x238] sm:$0xff]  ;;  %v1721_v53 = vld [vmem:[%s13772_s7 + $0x348] sm:$0xff] }
 0x24b   : > { %1997 = vmatpush.msra.mxu2 %v1649_v60  ;;  %2022 = vmatpush.msra.mxu1 %v1743_v1  ;;  %v1749_v55 = vld [vmem:[%s13772_s7 + $0x428] sm:$0xff]  ;;  %v1719_v58 = vld [vmem:[%s13772_s7 + $0x338] sm:$0xff] }
 0x24c   : > { %2043 = vmatpush.msra.mxu3 %v1773_v63  ;;  %2003 = vmatpush.msra.mxu0 %v1709_v2  ;;  %v1685_v57 = vld [vmem:[%s13772_s7 + $0x228] sm:$0xff]  ;;  %v1747_v60 = vld [vmem:[%s13772_s7 + $0x418] sm:$0xff] }
 0x24d   : > { %2062 = vmatpush.msrb.mxu2 %v1807_v0  ;;  %2023 = vmatpush.msra.mxu1 %v1741_v5  ;;  %v1781_v62 = vld [vmem:[%s13772_s7 + $0x528] sm:$0xff]  ;;  %v1779_v0 = vld [vmem:[%s13772_s7 + $0x518] sm:$0xff] }
 0x24e   : > { %2044 = vmatpush.msra.mxu3 %v1771_v3  ;;  %2004 = vmatpush.msra.mxu0 %v1707_v6  ;;  %v1745_v63 = vld [vmem:[%s13772_s7 + $0x408] sm:$0xff]  ;;  %v1715_v2 = vld [vmem:[%s13772_s7 + $0x318] sm:$0xff] }
 0x24f   : > { %2063 = vmatpush.msrb.mxu2 %v1805_v4  ;;  %2024 = vmatpush.msra.mxu1 %v1739_v9  ;;  %v1681_v1 = vld [vmem:[%s13772_s7 + $0x208] sm:$0xff]  ;;  %v1811_v5 = vld [vmem:[%s13772_s7 + $0x618] sm:$0xff]  ;;  %v2112_v9 = vld [vmem:[%s13774_s9 + $0x40] sm:$0xff] }
 0x250   : > { %2045 = vmatpush.msra.mxu3 %v1769_v7  ;;  %2005 = vmatpush.msra.mxu0 %v1705_v10  ;;  %v1777_v3 = vld [vmem:[%s13772_s7 + $0x508] sm:$0xff]  ;;  %v2114_v7 = vld [vmem:[%s13774_s9 + $0x50] sm:$0xff]  ;;  %v2111_v10 = vld [vmem:[%s13774_s9 + $0x38] sm:$0xff] }
 0x251   : > { %2064 = vmatpush.msrb.mxu2 %v1803_v8  ;;  %2025 = vmatpush.msra.mxu1 %v1737_v13  ;;  %v1713_v4 = vld [vmem:[%s13772_s7 + $0x308] sm:$0xff]  ;;  %v2108_v13 = vld [vmem:[%s13774_s9 + $0x20] sm:$0xff] }
 0x252   : > { %2046 = vmatpush.msra.mxu3 %v1767_v11  ;;  %2006 = vmatpush.msra.mxu0 %v1703_v14  ;;  %v2117_v6 = vld [vmem:[%s13774_s9 + $0x68] sm:$0xff]  ;;  %v2110_v11 = vld [vmem:[%s13774_s9 + $0x30] sm:$0xff]  ;;  %v2107_v14 = vld [vmem:[%s13774_s9 + $0x18] sm:$0xff] }
 0x253   : > { %2065 = vmatpush.msrb.mxu2 %v1801_v12  ;;  %2026 = vmatpush.msra.mxu1 %v1735_v17  ;;  %v2113_v8 = vld [vmem:[%s13774_s9 + $0x48] sm:$0xff]  ;;  %v2104_v17 = vld [vmem:[%s13774_s9] sm:$0xff] }
 0x254   : > { %2047 = vmatpush.msra.mxu3 %v1765_v15  ;;  %2007 = vmatpush.msra.mxu0 %v1701_v18  ;;  %v2109_v12 = vld [vmem:[%s13774_s9 + $0x28] sm:$0xff]  ;;  %v2106_v15 = vld [vmem:[%s13774_s9 + $0x10] sm:$0xff]  ;;  %v2135_v18 = vld [vmem:[%s13774_s9 + $0xf8] sm:$0xff] }
 0x255   : > { %2066 = vmatpush.msrb.mxu2 %v1799_v16  ;;  %2027 = vmatpush.msra.mxu1 %v1733_v21  ;;  %v2105_v16 = vld [vmem:[%s13774_s9 + $0x8] sm:$0xff] }
 0x256   : > { %2048 = vmatpush.msra.mxu3 %v1763_v19  ;;  %2008 = vmatpush.msra.mxu0 %v1699_v22  ;;  %v2134_v19 = vld [vmem:[%s13774_s9 + $0xf0] sm:$0xff]  ;;  %v2133_v21 = vld [vmem:[%s13774_s9 + $0xe8] sm:$0xff]  ;;  %v2132_v22 = vld [vmem:[%s13774_s9 + $0xe0] sm:$0xff] }
 0x257   : > { %2067 = vmatpush.msrb.mxu2 %v1797_v20  ;;  %2028 = vmatpush.msra.mxu1 %v1731_v25  ;;  %v1812_v20 = vld [vmem:[%s13773_s8] sm:$0x3]  ;;  %v2131_v25 = vld [vmem:[%s13774_s9 + $0xd8] sm:$0xff] }
 0x258   : > { %2049 = vmatpush.msra.mxu3 %v1761_v23  ;;  %2009 = vmatpush.msra.mxu0 %v1697_v26  ;;  %v1814_v23 = vperm.slane %v1812_v20, 0  ;;  %v2130_v26 = vld [vmem:[%s13774_s9 + $0xd0] sm:$0xff] }
 0x259   : > { %2068 = vmatpush.msrb.mxu2 %v1795_v24  ;;  %2029 = vmatpush.msra.mxu1 %v1729_v29  ;;  %v2129_v29 = vld [vmem:[%s13774_s9 + $0xc8] sm:$0xff] }
 0x25a   : > { %2050 = vmatpush.msra.mxu3 %v1759_v27  ;;  %2010 = vmatpush.msra.mxu0 %v1695_v30 }
 0x25b   : > { %2069 = vmatpush.msrb.mxu2 %v1793_v28  ;;  %2030 = vmatpush.msra.mxu1 %v1727_v33 }
 0x25c   : > { %2051 = vmatpush.msra.mxu3 %v1757_v31  ;;  %2011 = vmatpush.msra.mxu0 %v1693_v34 }
 0x25d   : > { %2070 = vmatpush.msrb.mxu2 %v1791_v32  ;;  %2031 = vmatpush.msra.mxu1 %v1725_v38 }
 0x25e   : > { %2052 = vmatpush.msra.mxu3 %v1755_v35  ;;  %2012 = vmatpush.msra.mxu0 %v1691_v39  ;;  %v2127_v39 = vld [vmem:[%s13774_s9 + $0xb8] sm:$0xff] }
 0x25f   : > { %2071 = vmatpush.msrb.mxu2 %v1789_v37  ;;  %1978 = vmatmul.f32.vlgmr.msrb.gmra.mxu3 %v1609_v54  ;;  %v1783_v54 = vld [vmem:[%s13772_s7 + $0x538] sm:$0xff]  ;;  %v2128_v37 = vld [vmem:[%s13774_s9 + $0xc0] sm:$0xff] }
 0x260   : > { %2053 = vmatpush.msra.mxu3 %v1753_v40  ;;  %2013 = vmatpush.msra.mxu0 %v1689_v44 }
 0x261   : > { %2072 = vmatpush.msrb.mxu2 %v1787_v43  ;;  %2032 = vmatpush.msra.mxu1 %v1723_v46  ;;  %v2126_v46 = vld [vmem:[%s13774_s9 + $0xb0] sm:$0xff] }
 0x262   : > { %2054 = vmatpush.msra.mxu3 %v1751_v48  ;;  %1998 = vmatmul.f32.vlgmr.msra.gmra.mxu2 %v1610_v61  ;;  %v1717_v61 = vld [vmem:[%s13772_s7 + $0x328] sm:$0xff] }
 0x263   : > { %2073 = vmatpush.msrb.mxu2 %v1785_v49  ;;  %2014 = vmatpush.msra.mxu0 %v1687_v52  ;;  %v2125_v49 = vld [vmem:[%s13774_s9 + $0xa8] sm:$0xff] }
 0x264   : > { %2033 = vmatpush.msra.mxu1 %v1721_v53  ;;  %2055 = vmatpush.msra.mxu3 %v1749_v55  ;;  %v2124_v53 = vld [vmem:[%s13774_s9 + $0xa0] sm:$0xff]  ;;  %v2123_v55 = vld [vmem:[%s13774_s9 + $0x98] sm:$0xff] }
 0x265   : > { %2074 = vmatpush.msrb.mxu2 %v1783_v54  ;;  %2015 = vmatpush.msra.mxu0 %v1685_v57  ;;  %v2122_v54 = vld [vmem:[%s13774_s9 + $0x90] sm:$0xff]  ;;  %v2121_v57 = vld [vmem:[%s13774_s9 + $0x88] sm:$0xff] }
 0x266   : > { %2034 = vmatpush.msra.mxu1 %v1719_v58  ;;  %2056 = vmatpush.msra.mxu3 %v1747_v60  ;;  %v2120_v58 = vld [vmem:[%s13774_s9 + $0x80] sm:$0xff]  ;;  %v1815_v60 = vperm.slane %v1812_v20, 1 }
 0x267   : > { %2075 = vmatpush.msrb.mxu2 %v1781_v62  ;;  %2016 = vmatpush.msra.mxu0 %v1683_v47 }
 0x268   : > { %2035 = vmatpush.msra.mxu1 %v1717_v61  ;;  %2057 = vmatpush.msra.mxu3 %v1745_v63 }
 0x269   : > { %2076 = vmatpush.msrb.mxu2 %v1779_v0  ;;  %2058 = vmatmul.f32.vlgmr.msra.gmra.mxu3 %v1613_v51  ;;  %v1809_v51 = vld [vmem:[%s13772_s7 + $0x608] sm:$0xff] }
 0x26a   : > { %2017 = vmatpush.msra.mxu0 %v1681_v1  ;;  %2036 = vmatpush.msra.mxu1 %v1715_v2 }
 0x26b   : > { %2077 = vmatpush.msrb.mxu2 %v1777_v3  ;;  %2018 = vmatmul.f32.vlgmr.msra.gmra.mxu0 %v1611_v50  ;;  %v2119_v50 = vld [vmem:[%s13774_s9 + $0x78] sm:$0xff] }
 0x26c   : > { %2078 = vmatmul.f32.vlgmr.msrb.gmra.mxu2 %v1614_v59  ;;  %2037 = vmatpush.msra.mxu1 %v1713_v4  ;;  %v2118_v59 = vld [vmem:[%s13774_s9 + $0x70] sm:$0xff] }
 0x26d   : > { %2038 = vmatmul.f32.vlgmr.msra.gmra.mxu1 %v1612_v56  ;;  %2096 = vmatpush.msrb.mxu0 %v1811_v5  ;;  %v2116_v56 = vld [vmem:[%s13774_s9 + $0x60] sm:$0xff] }
 0x26e   : > { %2140 = vmatpush.msrb.mxu1 %v2119_v50  ;;  %2160 = vmatpush.msrb.mxu3 %v2135_v18  ;;  %v8414_v18 = vld [vmem:[%s12250_s24 + $0x870] sm:$0xf] }
 0x26f   : > { %2097 = vmatpush.msrb.mxu0 %v1809_v51 }
 0x270   : > { %2141 = vmatpush.msrb.mxu1 %v2118_v59  ;;  %2161 = vmatpush.msrb.mxu3 %v2134_v19  ;;  %v10033_v19 = vld [vmem:[%s12250_s24 + $0x894] sm:$0xf0] }
 0x271   : > { %v8415_v20 = vor.u32 %v10033_v19, %v8414_v18  ;;  %v9803_v18 = vld [vmem:[%s12250_s24 + $0x164] sm:$0xf0]  ;;  %v8054_v19 = vld [vmem:[%s12250_s24 + $0x5a0] sm:$0xf] }
 0x272   : > { %2142 = vmatpush.msrb.mxu1 %v2117_v6  ;;  %2162 = vmatpush.msrb.mxu3 %v2133_v21  ;;  %v8374_v21 = vld [vmem:[%s12250_s24 + $0x820] sm:$0xf] }
 0x273   : > { %7329 = vmatmul.msk.f32.vlgmr.msrb.gmra.mxu0 %vm1818_vm0, %v1615_v45  ;;  %v2115_v45 = vld [vmem:[%s13774_s9 + $0x58] sm:$0xff] }
 0x274   : > { %2143 = vmatpush.msrb.mxu1 %v2116_v56  ;;  %2163 = vmatpush.msrb.mxu3 %v2132_v22  ;;  %v10023_v22 = vld [vmem:[%s12250_s24 + $0x844] sm:$0xf0] }
 0x276   : > { %2144 = vmatpush.msrb.mxu1 %v2115_v45  ;;  %2164 = vmatpush.msrb.mxu3 %v2131_v25  ;;  %v8574_v45 = vld [vmem:[%s12250_s24 + $0x9b0] sm:$0xf]  ;;  %v10013_v25 = vld [vmem:[%s12250_s24 + $0x7f4] sm:$0xf0] }
 0x278   : > { %2145 = vmatpush.msrb.mxu1 %v2114_v7  ;;  %2165 = vmatpush.msrb.mxu3 %v2130_v26  ;;  %v10073_v7 = vld [vmem:[%s12250_s24 + $0x9d4] sm:$0xf0] }
 0x279   : > { %v10364_v26 = vld [vmem:[%s13775_s10] ss:$0 sm:$0xff] }
 0x27a   : > { %2146 = vmatpush.msrb.mxu1 %v2113_v8  ;;  %2166 = vmatpush.msrb.mxu3 %v2129_v29  ;;  %v8534_v8 = vld [vmem:[%s12250_s24 + $0x960] sm:$0xf] }
 0x27b   : > { %v8294_v29 = vld [vmem:[%s12250_s24 + $0x780] sm:$0xf] }
 0x27c   : > { %2147 = vmatpush.msrb.mxu1 %v2112_v9  ;;  %2167 = vmatpush.msrb.mxu3 %v2128_v37  ;;  %v8575_v9 = vor.u32 %v10073_v7, %v8574_v45  ;;  %v9788_v45 = vld [vmem:[%s12250_s24 + $0xf4] sm:$0xf]  ;;  %v7456_v7 = vld [vmem:[%s12250_s24 + $0x118] sm:$0xf0] }
 0x27e   : > { %2148 = vmatpush.msrb.mxu1 %v2111_v10  ;;  %2168 = vmatpush.msrb.mxu3 %v2127_v39  ;;  %v10063_v10 = vld [vmem:[%s12250_s24 + $0x984] sm:$0xf0]  ;;  %v9818_v39 = vld [vmem:[%s12250_s24 + $0x1e4] sm:$0xf] }
 0x280   : > { %2149 = vmatpush.msrb.mxu1 %v2110_v11  ;;  %2169 = vmatpush.msrb.mxu3 %v2126_v46  ;;  %v8535_v11 = vor.u32 %v10063_v10, %v8534_v8  ;;  %v7576_v46 = vld [vmem:[%s12250_s24 + $0x208] sm:$0xf0]  ;;  %v7534_v8 = vld [vmem:[%s12250_s24 + $0x190] sm:$0xf] }
 0x281   : > { %v8094_v10 = vld [vmem:[%s12250_s24 + $0x5f0] sm:$0xf] }
 0x282   : > { %2150 = vmatpush.msrb.mxu1 %v2109_v12  ;;  %2170 = vmatpush.msrb.mxu3 %v2125_v49  ;;  %v8494_v12 = vld [vmem:[%s12250_s24 + $0x910] sm:$0xf]  ;;  %v8214_v49 = vld [vmem:[%s12250_s24 + $0x6e0] sm:$0xf] }
 0x284   : > { %2151 = vmatpush.msrb.mxu1 %v2108_v13  ;;  %2171 = vmatpush.msrb.mxu3 %v2124_v53  ;;  %v10053_v13 = vld [vmem:[%s12250_s24 + $0x934] sm:$0xf0] }
 0x286   : > { %2152 = vmatpush.msrb.mxu1 %v2107_v14  ;;  %2172 = vmatpush.msrb.mxu3 %v2123_v55  ;;  %v8495_v14 = vor.u32 %v10053_v13, %v8494_v12  ;;  %v9953_v12 = vld [vmem:[%s12250_s24 + $0x614] sm:$0xf0] }
 0x287   : > { %v8095_v13 = vor.u32 %v9953_v12, %v8094_v10  ;;  %v10058_v10 = vld [vmem:[%s12250_s24 + $0x964] sm:$0xf] }
 0x288   : > { %2153 = vmatpush.msrb.mxu1 %v2106_v15  ;;  %2173 = vmatpush.msrb.mxu3 %v2122_v54  ;;  %v8454_v15 = vld [vmem:[%s12250_s24 + $0x8c0] sm:$0xf]  ;;  %v7579_v54 = vor.u32 %v9818_v39, %v7576_v46  ;;  %v10148_v39 = vld [vmem:[%s12250_s24 + $0xc34] sm:$0xf]  ;;  %v9923_v46 = vld [vmem:[%s12250_s24 + $0x524] sm:$0xf0] }
 0x28a   : > { %2154 = vmatpush.msrb.mxu1 %v2105_v16  ;;  %2174 = vmatpush.msrb.mxu3 %v2121_v57  ;;  %v10043_v16 = vld [vmem:[%s12250_s24 + $0x8e4] sm:$0xf0]  ;;  %v9808_v57 = vld [vmem:[%s12250_s24 + $0x194] sm:$0xf] }
 0x28c   : > { %2155 = vmatpush.msrb.mxu1 %v2104_v17  ;;  %2175 = vmatpush.msrb.mxu3 %v2120_v58  ;;  %v8455_v17 = vor.u32 %v10043_v16, %v8454_v15  ;;  %v7536_v58 = vld [vmem:[%s12250_s24 + $0x1b8] sm:$0xf0]  ;;  %v9778_v15 = vld [vmem:[%s12250_s24 + $0xa4] sm:$0xf]  ;;  %v7416_v16 = vld [vmem:[%s12250_s24 + $0xc8] sm:$0xf0] }
 0x28e   : > { %5262 = vmatpush.bf16.msra.mxu3 %v8575_v9  ;;  %v9813_v9 = vld [vmem:[%s12250_s24 + $0x1b4] sm:$0xf0] }
 0x292   : > { %5263 = vmatpush.bf16.msra.mxu3 %v8535_v11  ;;  %v7535_v11 = vor.u32 %v9813_v9, %v7534_v8  ;;  %v10153_v9 = vld [vmem:[%s12250_s24 + $0xc54] sm:$0xf0] }
 0x296   : > { %5264 = vmatpush.bf16.msra.mxu3 %v8495_v14  ;;  %v7459_v14 = vor.u32 %v9788_v45, %v7456_v7  ;;  %v9763_v45 = vld [vmem:[%s12250_s24 + $0x24] sm:$0xf0]  ;;  %v8894_v7 = vld [vmem:[%s12250_s24 + $0xc30] sm:$0xf] }
 0x297   : > { %v8895_v12 = vor.u32 %v10153_v9, %v8894_v7  ;;  %v8062_v7 = vld [vmem:[%s12250_s24 + $0x5a8] sm:$0xf] }
 0x29a   : > { %5265 = vmatpush.bf16.msra.mxu3 %v8455_v17  ;;  %v7494_v17 = vld [vmem:[%s12250_s24 + $0x140] sm:$0xf] }
 0x29e   : > { %5266 = vmatpush.bf16.msra.mxu3 %v8415_v20  ;;  %v7495_v20 = vor.u32 %v9803_v18, %v7494_v17  ;;  %v8854_v17 = vld [vmem:[%s12250_s24 + $0xbe0] sm:$0xf]  ;;  %v10143_v18 = vld [vmem:[%s12250_s24 + $0xc04] sm:$0xf0] }
 0x2a8   : > { %v1839_v24 = vpop.f32.mrf.mxu0 }
 0x2a9   : > { %v1840_v27 = vadd.f32 %v1839_v24, %v1814_v23  ;;  %v8375_v23 = vor.u32 %v10023_v22, %v8374_v21  ;;  %v8334_v24 = vld [vmem:[%s12250_s24 + $0x7d0] sm:$0xf]  ;;  %v9943_v21 = vld [vmem:[%s12250_s24 + $0x5c4] sm:$0xf0] }
 0x2aa   : > { %v8055_v22 = vor.u32 %v9943_v21, %v8054_v19  ;;  %v10048_v19 = vld [vmem:[%s12250_s24 + $0x914] sm:$0xf]  ;;  %v8496_v21 = vld [vmem:[%s12250_s24 + $0x938] sm:$0xf0] }
 0x2ab   : > { %5267 = vmatpush.bf16.msra.mxu3 %v8375_v23  ;;  %v7419_v23 = vor.u32 %v9778_v15, %v7416_v16  ;;  %v10118_v15 = vld [vmem:[%s12250_s24 + $0xb44] sm:$0xf]  ;;  %v8776_v16 = vld [vmem:[%s12250_s24 + $0xb68] sm:$0xf0] }
 0x2ac   : > { %v1859_v28 = vpop.f32.mrf.mxu1  ;;  %v1879_v31 = vpop.f32.mrf.mxu2 }
 0x2ad   : > { %v1860_v30 = vadd.f32 %v1859_v28, %v1840_v27  ;;  %v8335_v27 = vor.u32 %v10013_v25, %v8334_v24  ;;  %v9768_v24 = vld [vmem:[%s12250_s24 + $0x54] sm:$0xf]  ;;  %v7376_v25 = vld [vmem:[%s12250_s24 + $0x78] sm:$0xf0] }
 0x2af   : > { %v1880_v32 = vadd.f32 %v1879_v31, %v1860_v30  ;;  %v1899_v33 = vpop.f32.mrf.mxu3  ;;  %v10003_v30 = vld [vmem:[%s12250_s24 + $0x7a4] sm:$0xf0]  ;;  %v9828_v31 = vld [vmem:[%s12250_s24 + $0x234] sm:$0xf]  ;;  %5268 = vmatpush.bf16.msra.mxu3 %v8335_v27  ;;  %v9793_v27 = vld [vmem:[%s12250_s24 + $0x114] sm:$0xf0] }
 0x2b1   : > { %v1900_v34 = vadd.f32 %v1899_v33, %v1880_v32  ;;  %v7616_v32 = vld [vmem:[%s12250_s24 + $0x258] sm:$0xf0]  ;;  %v2753_v33 = vunpack.c.h.b16 %v11700_v42  ;;  %v9983_v42 = vld [vmem:[%s12250_s24 + $0x704] sm:$0xf0] }
 0x2b2   : > { %v8215_v55 = vor.u32 %v9983_v42, %v8214_v49  ;;  %v12331_v42 = vld [vmem:[%s13765_s0] sm:$0xff] }
 0x2c4   : > { %v1919_v35 = vpop.f32.mrf.mxu0 }
 0x2c5   : > { %v1920_v38 = vadd.f32 %v1919_v35, %v1900_v34  ;;  %v8295_v35 = vor.u32 %v10003_v30, %v8294_v29  ;;  %v9933_v30 = vld [vmem:[%s12250_s24 + $0x574] sm:$0xf0] }
 0x2c7   : > { %v1939_v40 = vpop.f32.mrf.mxu1  ;;  %5269 = vmatpush.bf16.msra.mxu3 %v8295_v35  ;;  %v7414_v35 = vld [vmem:[%s12250_s24 + $0xa0] sm:$0xf] }
 0x2c8   : > { %v1940_v43 = vadd.f32 %v1939_v40, %v1920_v38  ;;  %v1959_v44 = vpop.f32.mrf.mxu2  ;;  %v7619_v38 = vor.u32 %v9828_v31, %v7616_v32  ;;  %v8254_v40 = vld [vmem:[%s12250_s24 + $0x730] sm:$0xf]  ;;  %v7379_v32 = vor.u32 %v9768_v24, %v7376_v25  ;;  %v10108_v24 = vld [vmem:[%s12250_s24 + $0xaf4] sm:$0xf]  ;;  %v8736_v25 = vld [vmem:[%s12250_s24 + $0xb18] sm:$0xf0] }
 0x2ca   : > { %v1960_v48 = vadd.f32 %v1959_v44, %v1940_v43  ;;  %v9993_v43 = vld [vmem:[%s12250_s24 + $0x754] sm:$0xf0] }
 0x2cc   : > { %v2102_v52 = vmax.f32 %v1960_v48, 0.0  ;;  %v8255_v48 = vor.u32 %v9993_v43, %v8254_v40  ;;  %v8896_v40 = vld [vmem:[%s12250_s24 + $0xc58] sm:$0xf0] }
 0x2ce   : > { %2156 = vmatmul.f32.vlgmr.msrb.gmra.mxu1 %v2102_v52  ;;  %v12282_v52 = vpack.c.b16 %v2753_v33, %v2753_v33  ;;  %v9758_v33 = vld [vmem:[%s12250_s24 + $0x4] sm:$0xf] }
 0x2cf   : > { %5249 = vmatpush.bf16.msra.mxu1 %v8255_v48  ;;  %v10379_v48 = vld [vmem:[%s13765_s0 + $0x8] sm:$0xff] }
 0x2d0   : > { %v2752_v49 = vunpack.c.l.b16 %v10379_v48  ;;  %v8262_v48 = vld [vmem:[%s12250_s24 + $0x738] sm:$0xf] }
 0x2d3   : > { %5250 = vmatpush.bf16.msra.mxu1 %v8215_v55 }
 0x2e2   : > { %v1979_v62 = vpop.f32.mrf.mxu3 }
 0x2e3   : > { %v1980_v47 = vadd.f32 %v1979_v62, %v1815_v60  ;;  %v7614_v60 = vld [vmem:[%s12250_s24 + $0x230] sm:$0xf]  ;;  %v9833_v62 = vld [vmem:[%s12250_s24 + $0x254] sm:$0xf0] }
 0x2e5   : > { %v1999_v61 = vpop.f32.mrf.mxu2 }
 0x2e6   : > { %v2000_v63 = vadd.f32 %v1999_v61, %v1980_v47  ;;  %v8174_v47 = vld [vmem:[%s12250_s24 + $0x690] sm:$0xf]  ;;  %v7615_v61 = vor.u32 %v9833_v62, %v7614_v60  ;;  %v8856_v60 = vld [vmem:[%s12250_s24 + $0xc08] sm:$0xf0] }
 0x2e7   : > { %v7374_v62 = vld [vmem:[%s12250_s24 + $0x50] sm:$0xf] }
 0x2e8   : > { %v2019_v0 = vpop.f32.mrf.mxu0  ;;  %5223 = vmatpush.bf16.msra.mxu2 %v7615_v61  ;;  %v9254_v61 = vld [vmem:[%s12250_s24 + $0xf00] sm:$0xf] }
 0x2e9   : > { %v2020_v1 = vadd.f32 %v2019_v0, %v2000_v63  ;;  %v9973_v63 = vld [vmem:[%s12250_s24 + $0x6b4] sm:$0xf0] }
 0x2ea   : > { %v2039_v2 = vpop.f32.mrf.mxu1  ;;  %v8175_v0 = vor.u32 %v9973_v63, %v8174_v47  ;;  %v9773_v47 = vld [vmem:[%s12250_s24 + $0x74] sm:$0xf0]  ;;  %v12339_v63 = vpack.c.b16 %v2752_v49, %v2752_v49  ;;  %v9994_v49 = vld [vmem:[%s12250_s24 + $0x75c] sm:$0xf0] }
 0x2eb   : > { %v2040_v3 = vadd.f32 %v2039_v2, %v2020_v1  ;;  %v7539_v1 = vor.u32 %v9808_v57, %v7536_v58  ;;  %v9798_v2 = vld [vmem:[%s12250_s24 + $0x144] sm:$0xf]  ;;  %v8899_v57 = vor.u32 %v10148_v39, %v8896_v40  ;;  %v8656_v39 = vld [vmem:[%s12250_s24 + $0xa78] sm:$0xf0] }
 0x2ec   : > { %v2059_v4 = vpop.f32.mrf.mxu3  ;;  %5251 = vmatpush.bf16.msra.mxu1 %v8175_v0  ;;  %v10138_v58 = vld [vmem:[%s12250_s24 + $0xbe4] sm:$0xf] }
 0x2ed   : > { %v2060_v5 = vadd.f32 %v2059_v4, %v2040_v3  ;;  %v7496_v3 = vld [vmem:[%s12250_s24 + $0x168] sm:$0xf0]  ;;  %v7574_v4 = vld [vmem:[%s12250_s24 + $0x1e0] sm:$0xf] }
 0x2ef   : > { %v2079_v51 = vpop.f32.mrf.mxu2 }
 0x2f0   : > { %v2080_v50 = vadd.f32 %v2079_v51, %v2060_v5  ;;  %v2099_v59 = vpop.f32.mrf.mxu0  ;;  %v9823_v5 = vld [vmem:[%s12250_s24 + $0x204] sm:$0xf0]  ;;  %v8134_v51 = vld [vmem:[%s12250_s24 + $0x640] sm:$0xf] }
 0x2f2   : > { %v2100_v6 = vadd.f32 %v2099_v59, %v2080_v50  ;;  %v7575_v50 = vor.u32 %v9823_v5, %v7574_v4  ;;  %v9963_v59 = vld [vmem:[%s12250_s24 + $0x664] sm:$0xf0]  ;;  %v8576_v4 = vld [vmem:[%s12250_s24 + $0x9d8] sm:$0xf0] }
 0x2f4   : > { %v2103_v56 = vmax.f32 %v2100_v6, 0.0  ;;  %v8135_v6 = vor.u32 %v9963_v59, %v8134_v51  ;;  %5224 = vmatpush.bf16.msra.mxu2 %v7575_v50  ;;  %v8859_v50 = vor.u32 %v10138_v58, %v8856_v60  ;;  %v10128_v59 = vld [vmem:[%s12250_s24 + $0xb94] sm:$0xf]  ;;  %v9984_v58 = vld [vmem:[%s12250_s24 + $0x70c] sm:$0xf0] }
 0x2f6   : > { %2176 = vmatmul.f32.vlgmr.msrb.gmra.mxu3 %v2103_v56  ;;  %v7499_v56 = vor.u32 %v9798_v2, %v7496_v3  ;;  %5252 = vmatpush.bf16.msra.mxu1 %v8135_v6  ;;  %v10243_v2 = vld [vmem:[%s12250_s24 + $0xf24] sm:$0xf0]  ;;  %v10068_v3 = vld [vmem:[%s12250_s24 + $0x9b4] sm:$0xf]  ;;  %v8816_v6 = vld [vmem:[%s12250_s24 + $0xbb8] sm:$0xf0] }
 0x2f7   : > { %5314 = vmatpush.bf16.msrb.mxu3 %v7619_v38  ;;  %v7974_v38 = vld [vmem:[%s12250_s24 + $0x500] sm:$0xf]  ;;  %v9255_v5 = vor.u32 %v10243_v2, %v9254_v61  ;;  %v8579_v51 = vor.u32 %v10068_v3, %v8576_v4  ;;  %v9964_v2 = vld [vmem:[%s12250_s24 + $0x66c] sm:$0xf0]  ;;  %v8102_v4 = vld [vmem:[%s12250_s24 + $0x5f8] sm:$0xf] }
 0x2f8   : > { %5225 = vmatpush.bf16.msra.mxu2 %v7535_v11  ;;  %v7975_v55 = vor.u32 %v9923_v46, %v7974_v38  ;;  %v8536_v11 = vld [vmem:[%s12250_s24 + $0x988] sm:$0xf0]  ;;  %v10088_v38 = vld [vmem:[%s12250_s24 + $0xa54] sm:$0xf]  ;;  %v9974_v61 = vld [vmem:[%s12250_s24 + $0x6bc] sm:$0xf0] }
 0x2f9   : > { %v8659_v40 = vor.u32 %v10088_v38, %v8656_v39  ;;  %v8616_v46 = vld [vmem:[%s12250_s24 + $0xa28] sm:$0xf0]  ;;  %v9989_v39 = vld [vmem:[%s12250_s24 + $0x73c] sm:$0xf] }
 0x2fa   : > { %5253 = vmatpush.bf16.msra.mxu1 %v8095_v13  ;;  %v8539_v13 = vor.u32 %v10058_v10, %v8536_v11  ;;  %v8734_v11 = vld [vmem:[%s12250_s24 + $0xaf0] sm:$0xf] }
 0x2fb   : > { %5315 = vmatpush.bf16.msrb.mxu3 %v7579_v54 }
 0x2fc   : > { %5226 = vmatpush.bf16.msra.mxu2 %v7495_v20  ;;  %v8855_v20 = vor.u32 %v10143_v18, %v8854_v17  ;;  %v9934_v17 = vld [vmem:[%s12250_s24 + $0x57c] sm:$0xf0] }
 0x2fe   : > { %5270 = vmatmul.bf16.vlgmr.msra.gmra.mxu3 %v12282_v52  ;;  %5254 = vmatpush.bf16.msra.mxu1 %v8055_v22  ;;  %v8499_v22 = vor.u32 %v10048_v19, %v8496_v21  ;;  %v10103_v21 = vld [vmem:[%s12250_s24 + $0xac4] sm:$0xf0] }
 0x2ff   : > { %5316 = vmatpush.bf16.msrb.mxu3 %v7539_v1  ;;  %v7375_v1 = vor.u32 %v9773_v47, %v7374_v62  ;;  %v8182_v47 = vld [vmem:[%s12250_s24 + $0x698] sm:$0xf] }
 0x303   : > { %5317 = vmatpush.bf16.msrb.mxu3 %v7499_v56  ;;  %v7334_v56 = vld [vmem:[%s12250_s24] sm:$0xf] }
 0x304   : > { %v7335_v8 = vor.u32 %v9763_v45, %v7334_v56  ;;  %v8416_v45 = vld [vmem:[%s12250_s24 + $0x898] sm:$0xf0] }
 0x307   : > { %5318 = vmatpush.bf16.msrb.mxu3 %v7459_v14  ;;  %v8819_v14 = vor.u32 %v10128_v59, %v8816_v6  ;;  %v10123_v59 = vld [vmem:[%s12250_s24 + $0xb64] sm:$0xf0]  ;;  %v10028_v6 = vld [vmem:[%s12250_s24 + $0x874] sm:$0xf] }
 0x308   : > { %v8419_v9 = vor.u32 %v10028_v6, %v8416_v45  ;;  %v8184_v6 = vld [vmem:[%s12250_s24 + $0x6c0] sm:$0xf0] }
 0x30b   : > { %5319 = vmatpush.bf16.msrb.mxu3 %v7419_v23  ;;  %v8779_v23 = vor.u32 %v10118_v15, %v8776_v16  ;;  %v8376_v15 = vld [vmem:[%s12250_s24 + $0x848] sm:$0xf0]  ;;  %v8022_v16 = vld [vmem:[%s12250_s24 + $0x558] sm:$0xf] }
 0x30c   : > { %v8023_v19 = vor.u32 %v9934_v17, %v8022_v16  ;;  %v7502_v16 = vld [vmem:[%s12250_s24 + $0x148] sm:$0xf] }
 0x30f   : > { %5320 = vmatpush.bf16.msrb.mxu3 %v7379_v32 }
 0x34b   : > { %v2157_v28 = vpop.f32.mrf.mxu1 }
 0x34c   : > { %v2158_v34 = vadd.f32 %v10364_v26, %v2157_v28  ;;  %v7454_v26 = vld [vmem:[%s12250_s24 + $0xf0] sm:$0xf] }
 0x34d   : > { %v8014_v28 = vld [vmem:[%s12250_s24 + $0x550] sm:$0xf]  ;;  %v7455_v29 = vor.u32 %v9793_v27, %v7454_v26  ;;  %v10133_v27 = vld [vmem:[%s12250_s24 + $0xbb4] sm:$0xf0] }
 0x34e   : > { %v8015_v31 = vor.u32 %v9933_v30, %v8014_v28  ;;  %v8814_v26 = vld [vmem:[%s12250_s24 + $0xb90] sm:$0xf]  ;;  %v10038_v28 = vld [vmem:[%s12250_s24 + $0x8c4] sm:$0xf] }
 0x34f   : > { %5227 = vmatpush.bf16.msra.mxu2 %v7455_v29  ;;  %v2756_v29 = vunpack.c.l.b16 %v11878_v36  ;;  %v8815_v30 = vor.u32 %v10133_v27, %v8814_v26  ;;  %v9924_v26 = vld [vmem:[%s12250_s24 + $0x52c] sm:$0xf0] }
 0x350   : > { %5255 = vmatpush.bf16.msra.mxu1 %v8015_v31  ;;  %v8456_v31 = vld [vmem:[%s12250_s24 + $0x8e8] sm:$0xf0] }
 0x351   : > { %v8459_v32 = vor.u32 %v10038_v28, %v8456_v31  ;;  %v9998_v31 = vld [vmem:[%s12250_s24 + $0x784] sm:$0xf] }
 0x354   : > { %5256 = vmatpush.bf16.msra.mxu1 %v7975_v55 }
 0x357   : > { %5257 = vmatmul.bf16.vlgmr.msra.gmra.mxu1 %v12339_v63 }
 0x358   : > { %5308 = vmatpush.bf16.msrb.mxu1 %v9255_v5  ;;  %v9954_v5 = vld [vmem:[%s12250_s24 + $0x61c] sm:$0xf0] }
 0x35c   : > { %5353 = vmatpush.bf16.msra.mxu1 %v8579_v51  ;;  %v8103_v51 = vor.u32 %v9954_v5, %v8102_v4  ;;  %v7582_v4 = vld [vmem:[%s12250_s24 + $0x1e8] sm:$0xf]  ;;  %v9824_v5 = vld [vmem:[%s12250_s24 + $0x20c] sm:$0xf0] }
 0x360   : > { %5354 = vmatpush.bf16.msra.mxu1 %v8539_v13  ;;  %v10018_v13 = vld [vmem:[%s12250_s24 + $0x824] sm:$0xf] }
 0x361   : > { %v8379_v18 = vor.u32 %v10018_v13, %v8376_v15  ;;  %v8144_v13 = vld [vmem:[%s12250_s24 + $0x670] sm:$0xf0] }
 0x364   : > { %5355 = vmatpush.bf16.msra.mxu1 %v8499_v22  ;;  %v10008_v22 = vld [vmem:[%s12250_s24 + $0x7d4] sm:$0xf] }
 0x368   : > { %5356 = vmatpush.bf16.msra.mxu1 %v8459_v32 }
 0x36c   : > { %5357 = vmatpush.bf16.msra.mxu1 %v8419_v9  ;;  %v9814_v9 = vld [vmem:[%s12250_s24 + $0x1bc] sm:$0xf0] }
 0x370   : > { %5358 = vmatpush.bf16.msra.mxu1 %v8379_v18  ;;  %v9804_v18 = vld [vmem:[%s12250_s24 + $0x16c] sm:$0xf0] }
 0x379   : > { %v2177_v37 = vpop.f32.mrf.mxu3 }
 0x37a   : > { %v12277_v44 = vadd.f32 %v2177_v37, %v2158_v34  ;;  %v7336_v34 = vld [vmem:[%s12250_s24 + $0x28] sm:$0xf0]  ;;  %v9783_v37 = vld [vmem:[%s12250_s24 + $0xc4] sm:$0xf0] }
 0x37b   : > { %v7415_v43 = vor.u32 %v9783_v37, %v7414_v35  ;;  %v7339_v54 = vor.u32 %v9758_v33, %v7336_v34  ;;  %v8739_v33 = vor.u32 %v10108_v24, %v8736_v25  ;;  %v10098_v34 = vld [vmem:[%s12250_s24 + $0xaa4] sm:$0xf]  ;;  %v8696_v35 = vld [vmem:[%s12250_s24 + $0xac8] sm:$0xf0]  ;;  %v12372_v37 = vpack.c.b16 %v2756_v29, %v2756_v29  ;;  %v8336_v24 = vld [vmem:[%s12250_s24 + $0x7f8] sm:$0xf0] }
 0x37c   : > { %v2181_v53 = vsel %vm2180_vm1, %v12277_v44, -inf  ;;  %v8699_v36 = vor.u32 %v10098_v34, %v8696_v35  ;;  %v7982_v25 = vld [vmem:[%s12250_s24 + $0x508] sm:$0xf]  ;;  %v8339_v27 = vor.u32 %v10008_v22, %v8336_v24  ;;  %v8654_v29 = vld [vmem:[%s12250_s24 + $0xa50] sm:$0xf] }
 0x37d   : > { %2182 = vmax.xlane.f32.xlu0 %v2181_v53  ;;  %v2750_v53 = vunpack.c.l.b16 %v12331_v42  ;;  %5228 = vmatpush.bf16.msra.mxu2 %v7415_v43  ;;  %v10078_v43 = vld [vmem:[%s12250_s24 + $0xa04] sm:$0xf]  ;;  %v7983_v28 = vor.u32 %v9924_v26, %v7982_v25  ;;  %v9262_v34 = vld [vmem:[%s12250_s24 + $0xf08] sm:$0xf]  ;;  %v10244_v35 = vld [vmem:[%s12250_s24 + $0xf2c] sm:$0xf0] }
 0x37e   : > { %5321 = vmatpush.bf16.msrb.mxu3 %v7339_v54  ;;  %9292 = vmatmul.msk.bf16.vlgmr.msrb.gmra.mxu1 %vm1818_vm0, %v12372_v37  ;;  %v8619_v55 = vor.u32 %v10078_v43, %v8616_v46  ;;  %v8263_v54 = vor.u32 %v9994_v49, %v8262_v48  ;;  %v9263_v38 = vor.u32 %v10244_v35, %v9262_v34  ;;  %v10238_v43 = vld [vmem:[%s12250_s24 + $0xf04] sm:$0xf]  ;;  %v9256_v48 = vld [vmem:[%s12250_s24 + $0xf28] sm:$0xf0]  ;;  %v8614_v49 = vld [vmem:[%s12250_s24 + $0xa00] sm:$0xf] }
 0x37f   : > { %v12341_v0 = vpack.c.b16 %v2750_v53, %v2750_v53  ;;  %v2754_v53 = vunpack.c.l.b16 %v11895_v41  ;;  %v8183_v41 = vor.u32 %v9974_v61, %v8182_v47  ;;  %5359 = vmatpush.bf16.msra.mxu1 %v8339_v27  ;;  %v7936_v61 = vld [vmem:[%s12250_s24 + $0x4d8] sm:$0xf0]  ;;  %v8104_v22 = vld [vmem:[%s12250_s24 + $0x620] sm:$0xf0]  ;;  %v7462_v25 = vld [vmem:[%s12250_s24 + $0xf8] sm:$0xf] }
 0x380   : > { %v9794_v27 = vld [vmem:[%s12250_s24 + $0x11c] sm:$0xf0]  ;;  %v7422_v35 = vld [vmem:[%s12250_s24 + $0xa8] sm:$0xf] }
 0x381   : > { %5229 = vmatpush.bf16.msra.mxu2 %v7375_v1  ;;  %5322 = vmatmul.bf16.vlgmr.msrb.gmra.mxu3 %v12341_v0  ;;  %v12385_v60 = vpack.c.b16 %v2754_v53, %v2754_v53  ;;  %v8142_v1 = vld [vmem:[%s12250_s24 + $0x648] sm:$0xf] }
 0x382   : > { %5366 = vmatpush.bf16.msra.mxu3 %v8899_v57  ;;  %v8222_v57 = vld [vmem:[%s12250_s24 + $0x6e8] sm:$0xf]  ;;  %v8143_v3 = vor.u32 %v9964_v2, %v8142_v1  ;;  %v8224_v1 = vld [vmem:[%s12250_s24 + $0x710] sm:$0xf0] }
 0x383   : > { %v8223_v62 = vor.u32 %v9984_v58, %v8222_v57  ;;  %v10083_v53 = vld [vmem:[%s12250_s24 + $0xa24] sm:$0xf0]  ;;  %v7622_v57 = vld [vmem:[%s12250_s24 + $0x238] sm:$0xf]  ;;  %v9834_v58 = vld [vmem:[%s12250_s24 + $0x25c] sm:$0xf0] }
 0x384   : > { %v7623_v47 = vor.u32 %v9834_v58, %v7622_v57  ;;  %v9774_v57 = vld [vmem:[%s12250_s24 + $0x7c] sm:$0xf0]  ;;  %v9848_v58 = vld [vmem:[%s12250_s24 + $0x2d4] sm:$0xf] }
 0x385   : > { %5230 = vmatpush.bf16.msra.mxu2 %v7335_v8  ;;  %v9944_v8 = vld [vmem:[%s12250_s24 + $0x5cc] sm:$0xf0] }
 0x386   : > { %5367 = vmatpush.bf16.msra.mxu3 %v8859_v50  ;;  %v8774_v50 = vld [vmem:[%s12250_s24 + $0xb40] sm:$0xf]  ;;  %v8063_v10 = vor.u32 %v9944_v8, %v8062_v7  ;;  %v7542_v7 = vld [vmem:[%s12250_s24 + $0x198] sm:$0xf] }
 0x387   : > { %v8775_v56 = vor.u32 %v10123_v59, %v8774_v50  ;;  %v7896_v50 = vld [vmem:[%s12250_s24 + $0x488] sm:$0xf0]  ;;  %v9969_v59 = vld [vmem:[%s12250_s24 + $0x69c] sm:$0xf] }
 0x388   : > { %5231 = vmatmul.bf16.vlgmr.msra.gmra.mxu2 %v12341_v0  ;;  %v8187_v8 = vor.u32 %v9969_v59, %v8184_v6  ;;  %v7656_v59 = vld [vmem:[%s12250_s24 + $0x2a8] sm:$0xf0] }
 0x389   : > { %5275 = vmatpush.bf16.msrb.mxu2 %v8895_v12  ;;  %v10113_v12 = vld [vmem:[%s12250_s24 + $0xb14] sm:$0xf0] }
 0x38a   : > { %5368 = vmatpush.bf16.msra.mxu3 %v8819_v14  ;;  %v8735_v14 = vor.u32 %v10113_v12, %v8734_v11  ;;  %v7856_v11 = vld [vmem:[%s12250_s24 + $0x438] sm:$0xf0]  ;;  %v9959_v12 = vld [vmem:[%s12250_s24 + $0x64c] sm:$0xf] }
 0x38b   : > { %v8147_v17 = vor.u32 %v9959_v12, %v8144_v13  ;;  %v9216_v12 = vld [vmem:[%s12250_s24 + $0xed8] sm:$0xf0] }
 0x38d   : > { %5276 = vmatpush.bf16.msrb.mxu2 %v8855_v20  ;;  %v8694_v20 = vld [vmem:[%s12250_s24 + $0xaa0] sm:$0xf] }
 0x38e   : > { %5369 = vmatpush.bf16.msra.mxu3 %v8779_v23  ;;  %v8695_v23 = vor.u32 %v10103_v21, %v8694_v20  ;;  %v7816_v20 = vld [vmem:[%s12250_s24 + $0x3e8] sm:$0xf0]  ;;  %v9949_v21 = vld [vmem:[%s12250_s24 + $0x5fc] sm:$0xf] }
 0x38f   : > { %v8107_v26 = vor.u32 %v9949_v21, %v8104_v22  ;;  %v9905_v22 = vld [vmem:[%s12250_s24 + $0x494] sm:$0xf0] }
 0x391   : > { %5277 = vmatpush.bf16.msrb.mxu2 %v8815_v30  ;;  %v10093_v30 = vld [vmem:[%s12250_s24 + $0xa74] sm:$0xf0] }
 0x392   : > { %5370 = vmatpush.bf16.msra.mxu3 %v8739_v33  ;;  %v8655_v32 = vor.u32 %v10093_v30, %v8654_v29  ;;  %v8296_v33 = vld [vmem:[%s12250_s24 + $0x7a8] sm:$0xf0]  ;;  %v7776_v29 = vld [vmem:[%s12250_s24 + $0x398] sm:$0xf0] }
 0x393   : > { %v9939_v30 = vld [vmem:[%s12250_s24 + $0x5ac] sm:$0xf] }
 0x395   : > { %5278 = vmatpush.bf16.msrb.mxu2 %v8775_v56  ;;  %v7583_v56 = vor.u32 %v9824_v5, %v7582_v4  ;;  %v7342_v4 = vld [vmem:[%s12250_s24 + $0x8] sm:$0xf] }
 0x396   : > { %5371 = vmatpush.bf16.msra.mxu3 %v8699_v36  ;;  %v8299_v36 = vor.u32 %v9998_v31, %v8296_v33  ;;  %v8064_v31 = vld [vmem:[%s12250_s24 + $0x5d0] sm:$0xf0]  ;;  %v7463_v33 = vor.u32 %v9794_v27, %v7462_v25 }
 0x398   : > { %5360 = vmatpush.bf16.msra.mxu1 %v8299_v36 }
 0x399   : > { %5279 = vmatpush.bf16.msrb.mxu2 %v8735_v14  ;;  %v7543_v14 = vor.u32 %v9814_v9, %v7542_v7  ;;  %v7950_v7 = vld [vmem:[%s12250_s24 + $0x4c0] sm:$0xf]  ;;  %v2751_v9 = vunpack.c.h.b16 %v12331_v42 }
 0x39a   : > { %5372 = vmatpush.bf16.msra.mxu3 %v8659_v40  ;;  %v8264_v40 = vld [vmem:[%s12250_s24 + $0x760] sm:$0xf0] }
 0x39b   : > { %v8267_v46 = vor.u32 %v9989_v39, %v8264_v40  ;;  %5361 = vmatmul.bf16.vlgmr.msra.gmra.mxu1 %v12282_v52  ;;  %v9784_v39 = vld [vmem:[%s12250_s24 + $0xcc] sm:$0xf0]  ;;  %v9858_v40 = vld [vmem:[%s12250_s24 + $0x324] sm:$0xf]  ;;  %v12494_v21 = vpack.c.b16 %v2751_v9, %v2751_v9  ;;  %v7710_v9 = vld [vmem:[%s12250_s24 + $0x2e0] sm:$0xf] }
 0x39d   : > { %5280 = vmatpush.bf16.msrb.mxu2 %v8695_v23  ;;  %v7503_v23 = vor.u32 %v9804_v18, %v7502_v16  ;;  %v8862_v18 = vld [vmem:[%s12250_s24 + $0xbe8] sm:$0xf] }
 0x39e   : > { %5373 = vmatpush.bf16.msra.mxu3 %v8619_v55  ;;  %v9259_v55 = vor.u32 %v10238_v43, %v9256_v48  ;;  %v7736_v43 = vld [vmem:[%s12250_s24 + $0x348] sm:$0xf0]  ;;  %v8024_v48 = vld [vmem:[%s12250_s24 + $0x580] sm:$0xf0] }
 0x3a0   : > { %5399 = vmatpush.bf16.msrb.mxu1 %v9259_v55  ;;  %v7382_v55 = vld [vmem:[%s12250_s24 + $0x58] sm:$0xf] }
 0x3a1   : > { %5374 = vmatmul.bf16.vlgmr.msra.gmra.mxu3 %v12385_v60  ;;  %5281 = vmatpush.bf16.msrb.mxu2 %v8655_v32 }
 0x3a2   : > { %5431 = vmatpush.bf16.msrb.mxu3 %v8263_v54  ;;  %v8615_v54 = vor.u32 %v10083_v53, %v8614_v49  ;;  %v7739_v53 = vor.u32 %v9858_v40, %v7736_v43  ;;  %v7830_v40 = vld [vmem:[%s12250_s24 + $0x3d0] sm:$0xf]  ;;  %v9885_v43 = vld [vmem:[%s12250_s24 + $0x3f4] sm:$0xf0] }
 0x3a4   : > { %5405 = vmatpush.bf16.msra.mxu1 %v7623_v47  ;;  %v9919_v47 = vld [vmem:[%s12250_s24 + $0x50c] sm:$0xf] }
 0x3a5   : > { %5282 = vmatpush.bf16.msrb.mxu2 %v8615_v54 }
 0x3a6   : > { %5432 = vmatpush.bf16.msrb.mxu3 %v8223_v62  ;;  %v9908_v62 = vld [vmem:[%s12250_s24 + $0x4b4] sm:$0xf] }
 0x3a7   : > { %v7939_v2 = vor.u32 %v9908_v62, %v7936_v61  ;;  %v7696_v62 = vld [vmem:[%s12250_s24 + $0x2f8] sm:$0xf0]  ;;  %v7984_v61 = vld [vmem:[%s12250_s24 + $0x530] sm:$0xf0] }
 0x3a8   : > { %5283 = vmatmul.bf16.vlgmr.msrb.gmra.mxu2 %v12385_v60  ;;  %5406 = vmatpush.bf16.msra.mxu1 %v7583_v56  ;;  %v7987_v5 = vor.u32 %v9919_v47, %v7984_v61  ;;  %v8902_v56 = vld [vmem:[%s12250_s24 + $0xc38] sm:$0xf]  ;;  %v9056_v47 = vld [vmem:[%s12250_s24 + $0xd98] sm:$0xf0] }
 0x3a9   : > { %5327 = vmatpush.bf16.msra.mxu2 %v7939_v2  ;;  %v7383_v2 = vor.u32 %v9774_v57, %v7382_v55  ;;  %v8742_v55 = vld [vmem:[%s12250_s24 + $0xaf8] sm:$0xf]  ;;  %v7790_v57 = vld [vmem:[%s12250_s24 + $0x380] sm:$0xf] }
 0x3aa   : > { %5433 = vmatpush.bf16.msrb.mxu3 %v8183_v41  ;;  %v9979_v41 = vld [vmem:[%s12250_s24 + $0x6ec] sm:$0xf] }
 0x3ab   : > { %9293 = vmatmul.msk.bf16.vlgmr.msrb.gmra.mxu1 %vm1818_vm0, %v12372_v37 }
 0x3ac   : > { %5407 = vmatpush.bf16.msra.mxu1 %v7543_v14 }
 0x3ae   : > { %5434 = vmatpush.bf16.msrb.mxu3 %v8143_v3  ;;  %v8227_v3 = vor.u32 %v9979_v41, %v8224_v1  ;;  %v10239_v41 = vld [vmem:[%s12250_s24 + $0xf0c] sm:$0xf]  ;;  %v9264_v1 = vld [vmem:[%s12250_s24 + $0xf30] sm:$0xf0] }
 0x3af   : > { %v9267_v6 = vor.u32 %v10239_v41, %v9264_v1 }
 0x3b0   : > { %5408 = vmatpush.bf16.msra.mxu1 %v7503_v23  ;;  %v10218_v23 = vld [vmem:[%s12250_s24 + $0xe64] sm:$0xf] }
 0x3b2   : > { %5435 = vmatpush.bf16.msrb.mxu3 %v8103_v51  ;;  %v9898_v51 = vld [vmem:[%s12250_s24 + $0x464] sm:$0xf] }
 0x3b3   : > { %v7899_v45 = vor.u32 %v9898_v51, %v7896_v50  ;;  %v9764_v51 = vld [vmem:[%s12250_s24 + $0x2c] sm:$0xf0]  ;;  %v9838_v50 = vld [vmem:[%s12250_s24 + $0x284] sm:$0xf] }
 0x3b4   : > { %5409 = vmatpush.bf16.msra.mxu1 %v7463_v33  ;;  %v7343_v14 = vor.u32 %v9764_v51, %v7342_v4  ;;  %v9136_v33 = vld [vmem:[%s12250_s24 + $0xe38] sm:$0xf0]  ;;  %v7750_v4 = vld [vmem:[%s12250_s24 + $0x330] sm:$0xf]  ;;  %v10178_v51 = vld [vmem:[%s12250_s24 + $0xd24] sm:$0xf] }
 0x3b5   : > { %5328 = vmatpush.bf16.msra.mxu2 %v7899_v45  ;;  %v10154_v45 = vld [vmem:[%s12250_s24 + $0xc5c] sm:$0xf0] }
 0x3b6   : > { %5436 = vmatpush.bf16.msrb.mxu3 %v8063_v10  ;;  %v9888_v10 = vld [vmem:[%s12250_s24 + $0x414] sm:$0xf]  ;;  %v8903_v16 = vor.u32 %v10154_v45, %v8902_v56  ;;  %v8662_v45 = vld [vmem:[%s12250_s24 + $0xa58] sm:$0xf] }
 0x3b7   : > { %v7859_v15 = vor.u32 %v9888_v10, %v7856_v11  ;;  %v9915_v10 = vld [vmem:[%s12250_s24 + $0x4e4] sm:$0xf0]  ;;  %v10228_v11 = vld [vmem:[%s12250_s24 + $0xeb4] sm:$0xf] }
 0x3b8   : > { %v7951_v42 = vor.u32 %v9915_v10, %v7950_v7  ;;  %v10094_v7 = vld [vmem:[%s12250_s24 + $0xa7c] sm:$0xf0]  ;;  %v9855_v10 = vld [vmem:[%s12250_s24 + $0x304] sm:$0xf0] }
 0x3b9   : > { %5329 = vmatpush.bf16.msra.mxu2 %v7859_v15  ;;  %v7659_v15 = vor.u32 %v9838_v50, %v7656_v59  ;;  %v9016_v50 = vld [vmem:[%s12250_s24 + $0xd48] sm:$0xf0] }
 0x3ba   : > { %5437 = vmatpush.bf16.msrb.mxu3 %v8023_v19  ;;  %v9878_v19 = vld [vmem:[%s12250_s24 + $0x3c4] sm:$0xf]  ;;  %v9019_v56 = vor.u32 %v10178_v51, %v9016_v50  ;;  %v8462_v51 = vld [vmem:[%s12250_s24 + $0x8c8] sm:$0xf]  ;;  %v10044_v50 = vld [vmem:[%s12250_s24 + $0x8ec] sm:$0xf0] }
 0x3bb   : > { %v7819_v24 = vor.u32 %v9878_v19, %v7816_v20  ;;  %v10144_v19 = vld [vmem:[%s12250_s24 + $0xc0c] sm:$0xf0] }
 0x3bc   : > { %v7910_v20 = vld [vmem:[%s12250_s24 + $0x470] sm:$0xf]  ;;  %v8863_v25 = vor.u32 %v10144_v19, %v8862_v18  ;;  %v9845_v18 = vld [vmem:[%s12250_s24 + $0x2b4] sm:$0xf0]  ;;  %v10158_v19 = vld [vmem:[%s12250_s24 + $0xc84] sm:$0xf] }
 0x3bd   : > { %5330 = vmatpush.bf16.msra.mxu2 %v7819_v24  ;;  %v9176_v24 = vld [vmem:[%s12250_s24 + $0xe88] sm:$0xf0] }
 0x3be   : > { %5438 = vmatpush.bf16.msrb.mxu3 %v7983_v28  ;;  %v9868_v28 = vld [vmem:[%s12250_s24 + $0x374] sm:$0xf]  ;;  %v9179_v27 = vor.u32 %v10218_v23, %v9176_v24  ;;  %v7944_v23 = vld [vmem:[%s12250_s24 + $0x4e0] sm:$0xf0]  ;;  %v9230_v24 = vld [vmem:[%s12250_s24 + $0xec0] sm:$0xf] }
 0x3bf   : > { %v7779_v34 = vor.u32 %v9868_v28, %v7776_v29  ;;  %v8822_v28 = vld [vmem:[%s12250_s24 + $0xb98] sm:$0xf]  ;;  %v10134_v29 = vld [vmem:[%s12250_s24 + $0xbbc] sm:$0xf0] }
 0x3c1   : > { %5439 = vmatmul.bf16.vlgmr.msrb.gmra.mxu3 %v12339_v63  ;;  %5331 = vmatpush.bf16.msra.mxu2 %v7779_v34  ;;  %v8823_v34 = vor.u32 %v10134_v29, %v8822_v28  ;;  %v8582_v29 = vld [vmem:[%s12250_s24 + $0x9b8] sm:$0xf] }
 0x3c2   : > { %5490 = vmatpush.bf16.msra.mxu3 %v9263_v38  ;;  %v8067_v38 = vor.u32 %v9939_v30, %v8064_v31  ;;  %v7870_v30 = vld [vmem:[%s12250_s24 + $0x420] sm:$0xf]  ;;  %v9895_v31 = vld [vmem:[%s12250_s24 + $0x444] sm:$0xf0] }
 0x3c5   : > { %5332 = vmatpush.bf16.msra.mxu2 %v7739_v53 }
 0x3c6   : > { %5522 = vmatpush.bf16.msrb.mxu3 %v8267_v46  ;;  %v9929_v46 = vld [vmem:[%s12250_s24 + $0x55c] sm:$0xf] }
 0x3c7   : > { %v8027_v54 = vor.u32 %v9929_v46, %v8024_v48  ;;  %v10198_v46 = vld [vmem:[%s12250_s24 + $0xdc4] sm:$0xf]  ;;  %v9096_v48 = vld [vmem:[%s12250_s24 + $0xde8] sm:$0xf0] }
 0x3c8   : > { %v9099_v53 = vor.u32 %v10198_v46, %v9096_v48  ;;  %v8542_v46 = vld [vmem:[%s12250_s24 + $0x968] sm:$0xf]  ;;  %v10064_v48 = vld [vmem:[%s12250_s24 + $0x98c] sm:$0xf0] }
 0x3ca   : > { %5523 = vmatpush.bf16.msrb.mxu3 %v8227_v3  ;;  %v7699_v3 = vor.u32 %v9848_v58, %v7696_v62  ;;  %v9875_v58 = vld [vmem:[%s12250_s24 + $0x3a4] sm:$0xf0]  ;;  %v10188_v62 = vld [vmem:[%s12250_s24 + $0xd74] sm:$0xf] }
 0x3cb   : > { %v7791_v41 = vor.u32 %v9875_v58, %v7790_v57  ;;  %v9059_v1 = vor.u32 %v10188_v62, %v9056_v47  ;;  %v9150_v57 = vld [vmem:[%s12250_s24 + $0xe20] sm:$0xf]  ;;  %v10215_v58 = vld [vmem:[%s12250_s24 + $0xe44] sm:$0xf0]  ;;  %v8502_v62 = vld [vmem:[%s12250_s24 + $0x918] sm:$0xf] }
 0x3cc   : > { %5333 = vmatpush.bf16.msra.mxu2 %v7699_v3  ;;  %v10104_v3 = vld [vmem:[%s12250_s24 + $0xacc] sm:$0xf0]  ;;  %v10054_v47 = vld [vmem:[%s12250_s24 + $0x93c] sm:$0xf0] }
 0x3ce   : > { %5524 = vmatpush.bf16.msrb.mxu3 %v8187_v8 }
 0x3d0   : > { %5334 = vmatpush.bf16.msra.mxu2 %v7659_v15  ;;  %v7711_v15 = vor.u32 %v9855_v10, %v7710_v9  ;;  %v9070_v9 = vld [vmem:[%s12250_s24 + $0xd80] sm:$0xf]  ;;  %v10195_v10 = vld [vmem:[%s12250_s24 + $0xda4] sm:$0xf0] }
 0x3d1   : > { %9294 = vmatmul.msk.bf16.vlgmr.msra.gmra.mxu3 %vm1818_vm0, %v12372_v37 }
 0x3d2   : > { %5525 = vmatpush.bf16.msrb.mxu3 %v8147_v17  ;;  %v9219_v17 = vor.u32 %v10228_v11, %v9216_v12  ;;  %v10168_v11 = vld [vmem:[%s12250_s24 + $0xcd4] sm:$0xf]  ;;  %v8976_v12 = vld [vmem:[%s12250_s24 + $0xcf8] sm:$0xf0] }
 0x3d3   : > { %5335 = vmatmul.bf16.vlgmr.msra.gmra.mxu2 %v12494_v21 }
 0x3d4   : > { %5379 = vmatpush.bf16.msrb.mxu2 %v9219_v17  ;;  %v7670_v17 = vld [vmem:[%s12250_s24 + $0x290] sm:$0xf] }
 0x3d6   : > { %5526 = vmatpush.bf16.msrb.mxu3 %v8107_v26  ;;  %v7911_v26 = vor.u32 %v9905_v22, %v7910_v20  ;;  %v8936_v20 = vld [vmem:[%s12250_s24 + $0xca8] sm:$0xf0]  ;;  %v9909_v22 = vld [vmem:[%s12250_s24 + $0x4bc] sm:$0xf] }
 0x3d8   : > { %5380 = vmatpush.bf16.msrb.mxu2 %v9179_v27 }
 0x3da   : > { %5527 = vmatpush.bf16.msrb.mxu3 %v8067_v38  ;;  %v8782_v38 = vld [vmem:[%s12250_s24 + $0xb48] sm:$0xf] }
 0x3de   : > { %5528 = vmatpush.bf16.msrb.mxu3 %v8027_v54  ;;  %v10114_v54 = vld [vmem:[%s12250_s24 + $0xb1c] sm:$0xf0] }
 0x3df   : > { %v8743_v61 = vor.u32 %v10114_v54, %v8742_v55  ;;  %v8543_v55 = vor.u32 %v10064_v48, %v8542_v46  ;;  %v7864_v54 = vld [vmem:[%s12250_s24 + $0x440] sm:$0xf0]  ;;  %v10229_v46 = vld [vmem:[%s12250_s24 + $0xebc] sm:$0xf] }
 0x3e0   : > { %v9224_v48 = vld [vmem:[%s12250_s24 + $0xee0] sm:$0xf0] }
 0x3e2   : > { %5529 = vmatpush.bf16.msrb.mxu3 %v7987_v5  ;;  %v9865_v5 = vld [vmem:[%s12250_s24 + $0x354] sm:$0xf0] }
 0x3e5   : > { %5530 = vmatmul.bf16.vlgmr.msrb.gmra.mxu3 %v12339_v63 }
 0x3e6   : > { %5581 = vmatpush.bf16.msra.mxu3 %v9267_v6  ;;  %v7751_v6 = vor.u32 %v9865_v5, %v7750_v4  ;;  %v9110_v4 = vld [vmem:[%s12250_s24 + $0xdd0] sm:$0xf]  ;;  %v10205_v5 = vld [vmem:[%s12250_s24 + $0xdf4] sm:$0xf0] }
 0x3ea   : > { %5600 = vmatpush.bf16.msrb.mxu3 %v7951_v42  ;;  %v10084_v42 = vld [vmem:[%s12250_s24 + $0xa2c] sm:$0xf0] }
 0x3ee   : > { %5601 = vmatpush.bf16.msrb.mxu3 %v7911_v26  ;;  %v10381_v26 = vld [vmem:[%s13765_s0 + $0x10] sm:$0xff] }
 0x3ef   : > { %v2755_v27 = vunpack.c.h.b16 %v10381_v26  ;;  %v7704_v26 = vld [vmem:[%s12250_s24 + $0x300] sm:$0xf0] }
 0x3f0   : > { %v2183_v32 = vpop.xlane.xlu0 %2182 }
 0x3f1   : > { %v2184_v36 = vsub.f32 %v12277_v44, %v2183_v32  ;;  %v7423_v44 = vor.u32 %v9784_v39, %v7422_v35  ;;  %v10208_v32 = vld [vmem:[%s12250_s24 + $0xe14] sm:$0xf]  ;;  %v7871_v35 = vor.u32 %v9895_v31, %v7870_v30  ;;  %v10124_v39 = vld [vmem:[%s12250_s24 + $0xb6c] sm:$0xf0]  ;;  %v10074_v30 = vld [vmem:[%s12250_s24 + $0x9dc] sm:$0xf0]  ;;  %v7671_v31 = vor.u32 %v9845_v18, %v7670_v17 }
 0x3f2   : > { %v9030_v17 = vld [vmem:[%s12250_s24 + $0xd30] sm:$0xf]  ;;  %v10185_v18 = vld [vmem:[%s12250_s24 + $0xd54] sm:$0xf0] }
 0x3f3   : > { %v2185_v49 = vmul.f32 1.442695, %v2184_v36  ;;  %5410 = vmatpush.bf16.msra.mxu1 %v7423_v44  ;;  %v9139_v36 = vor.u32 %v10208_v32, %v9136_v33  ;;  %5602 = vmatpush.bf16.msrb.mxu3 %v7871_v35  ;;  %v7831_v44 = vor.u32 %v9885_v43, %v7830_v40  ;;  %v8939_v32 = vor.u32 %v10158_v19, %v8936_v20  ;;  %v9899_v35 = vld [vmem:[%s12250_s24 + $0x46c] sm:$0xf]  ;;  %v10225_v40 = vld [vmem:[%s12250_s24 + $0xe94] sm:$0xf0] }
 0x3f4   : > { %v7947_v33 = vor.u32 %v9909_v22, %v7944_v23  ;;  %v12553_v43 = vpack.c.b16 %v2755_v27, %v2755_v27  ;;  %v8382_v19 = vld [vmem:[%s12250_s24 + $0x828] sm:$0xf]  ;;  %v10024_v20 = vld [vmem:[%s12250_s24 + $0x84c] sm:$0xf0]  ;;  %v9031_v23 = vor.u32 %v10185_v18, %v9030_v17  ;;  %v8990_v27 = vld [vmem:[%s12250_s24 + $0xce0] sm:$0xf] }
 0x3f5   : > { %10375 = vpow2.f32 %v2185_v49  ;;  %v8783_v49 = vor.u32 %v10124_v39, %v8782_v38  ;;  %5381 = vmatpush.bf16.msrb.mxu2 %v9139_v36  ;;  %9295 = vmatmul.msk.bf16.vlgmr.msra.gmra.mxu3 %vm1818_vm0, %v12372_v37  ;;  %v8583_v36 = vor.u32 %v10074_v30, %v8582_v29  ;;  %v7904_v38 = vld [vmem:[%s12250_s24 + $0x490] sm:$0xf0]  ;;  %v9190_v39 = vld [vmem:[%s12250_s24 + $0xe70] sm:$0xf]  ;;  %v8342_v29 = vld [vmem:[%s12250_s24 + $0x7d8] sm:$0xf] }
 0x3f6   : > { %v10014_v30 = vld [vmem:[%s12250_s24 + $0x7fc] sm:$0xf0]  ;;  %v9799_v17 = vld [vmem:[%s12250_s24 + $0x14c] sm:$0xf]  ;;  %v7504_v18 = vld [vmem:[%s12250_s24 + $0x170] sm:$0xf0] }
 0x3f7   : > { %5411 = vmatpush.bf16.msra.mxu1 %v7383_v2  ;;  %5603 = vmatpush.bf16.msrb.mxu3 %v7831_v44  ;;  %v8702_v2 = vld [vmem:[%s12250_s24 + $0xaa8] sm:$0xf]  ;;  %v9191_v44 = vor.u32 %v10225_v40, %v9190_v39  ;;  %v10004_v40 = vld [vmem:[%s12250_s24 + $0x7ac] sm:$0xf0] }
 0x3f8   : > { %v8703_v59 = vor.u32 %v10104_v3, %v8702_v2  ;;  %v8503_v2 = vor.u32 %v10054_v47, %v8502_v62  ;;  %v7824_v3 = vld [vmem:[%s12250_s24 + $0x3f0] sm:$0xf0]  ;;  %v8302_v39 = vld [vmem:[%s12250_s24 + $0x788] sm:$0xf]  ;;  %v9227_v62 = vor.u32 %v10229_v46, %v9224_v48  ;;  %v10169_v48 = vld [vmem:[%s12250_s24 + $0xcdc] sm:$0xf] }
 0x3f9   : > { %5382 = vmatpush.bf16.msrb.mxu2 %v9099_v53  ;;  %v9889_v53 = vld [vmem:[%s12250_s24 + $0x41c] sm:$0xf] }
 0x3fb   : > { %v12483_v8 = vpop.eup %10375  ;;  %5412 = vmatpush.bf16.msra.mxu1 %v7343_v14  ;;  %5604 = vmatpush.bf16.msrb.mxu3 %v7791_v41  ;;  %v8622_v14 = vld [vmem:[%s12250_s24 + $0xa08] sm:$0xf]  ;;  %v9151_v41 = vor.u32 %v10215_v58, %v9150_v57  ;;  %v8303_v58 = vor.u32 %v10004_v40, %v8302_v39 }
 0x3fc   : > { %v2187_v13 = vsel %vm2180_vm1, %v12483_v8, 0.0  ;;  %v8623_v28 = vor.u32 %v10084_v42, %v8622_v14  ;;  %v9071_v14 = vor.u32 %v10195_v10, %v9070_v9  ;;  %v7744_v42 = vld [vmem:[%s12250_s24 + $0x350] sm:$0xf0]  ;;  %v9809_v9 = vld [vmem:[%s12250_s24 + $0x19c] sm:$0xf] }
 0x3fd   : > { %2188 = vadd.xlane.f32.xlu0 %v2187_v13  ;;  %5383 = vmatpush.bf16.msrb.mxu2 %v9059_v1  ;;  %v8663_v13 = vor.u32 %v10094_v7, %v8662_v45  ;;  %v9879_v1 = vld [vmem:[%s12250_s24 + $0x3cc] sm:$0xf]  ;;  %v8463_v45 = vor.u32 %v10044_v50, %v8462_v51  ;;  %v7784_v7 = vld [vmem:[%s12250_s24 + $0x3a0] sm:$0xf0] }
 0x3fe   : > { %5413 = vmatmul.bf16.vlgmr.msra.gmra.mxu1 %v12341_v0  ;;  %v7544_v10 = vld [vmem:[%s12250_s24 + $0x1c0] sm:$0xf0] }
 0x3ff   : > { %5457 = vmatpush.bf16.msrb.mxu1 %v8903_v16  ;;  %5605 = vmatpush.bf16.msrb.mxu3 %v7751_v6  ;;  %v8979_v16 = vor.u32 %v10168_v11, %v8976_v12  ;;  %v9111_v6 = vor.u32 %v10205_v5, %v9110_v4  ;;  %v8422_v11 = vld [vmem:[%s12250_s24 + $0x878] sm:$0xf]  ;;  %v10034_v12 = vld [vmem:[%s12250_s24 + $0x89c] sm:$0xf0]  ;;  %v9819_v4 = vld [vmem:[%s12250_s24 + $0x1ec] sm:$0xf] }
 0x400   : > { %v7584_v5 = vld [vmem:[%s12250_s24 + $0x210] sm:$0xf0] }
 0x401   : > { %5384 = vmatpush.bf16.msrb.mxu2 %v9019_v56  ;;  %v9869_v56 = vld [vmem:[%s12250_s24 + $0x37c] sm:$0xf] }
 0x403   : > { %5458 = vmatpush.bf16.msrb.mxu1 %v8863_v25  ;;  %v10235_v25 = vld [vmem:[%s12250_s24 + $0xee4] sm:$0xf0]  ;;  %5606 = vmatpush.bf16.msrb.mxu3 %v7711_v15  ;;  %v9859_v15 = vld [vmem:[%s12250_s24 + $0x32c] sm:$0xf] }
 0x404   : > { %v7747_v22 = vor.u32 %v9859_v15, %v7744_v42  ;;  %v9104_v15 = vld [vmem:[%s12250_s24 + $0xdf0] sm:$0xf0]  ;;  %v8472_v42 = vld [vmem:[%s12250_s24 + $0x8f8] sm:$0xf0] }
 0x405   : > { %5385 = vmatpush.bf16.msrb.mxu2 %v8979_v16  ;;  %v8423_v16 = vor.u32 %v10034_v12, %v8422_v11 }
 0x407   : > { %5459 = vmatpush.bf16.msrb.mxu1 %v8823_v34  ;;  %v9231_v34 = vor.u32 %v10235_v25, %v9230_v24  ;;  %5607 = vmatpush.bf16.msrb.mxu3 %v7671_v31  ;;  %v9849_v24 = vld [vmem:[%s12250_s24 + $0x2dc] sm:$0xf]  ;;  %v8383_v25 = vor.u32 %v10024_v20, %v8382_v19 }
 0x408   : > { %v7707_v31 = vor.u32 %v9849_v24, %v7704_v26  ;;  %v9064_v24 = vld [vmem:[%s12250_s24 + $0xda0] sm:$0xf0]  ;;  %v8432_v26 = vld [vmem:[%s12250_s24 + $0x8a8] sm:$0xf0] }
 0x409   : > { %5386 = vmatpush.bf16.msrb.mxu2 %v8939_v32 }
 0x40a   : > { %5608 = vmatmul.bf16.vlgmr.msrb.gmra.mxu3 %v12494_v21 }
 0x40b   : > { %5460 = vmatpush.bf16.msrb.mxu1 %v8783_v49  ;;  %5652 = vmatpush.bf16.msra.mxu3 %v9231_v34  ;;  %v7907_v49 = vor.u32 %v9899_v35, %v7904_v38  ;;  %v7664_v34 = vld [vmem:[%s12250_s24 + $0x2b0] sm:$0xf0]  ;;  %v8950_v35 = vld [vmem:[%s12250_s24 + $0xc90] sm:$0xf]  ;;  %v10165_v38 = vld [vmem:[%s12250_s24 + $0xcb4] sm:$0xf0] }
 0x40c   : > { %5387 = vmatmul.bf16.vlgmr.msrb.gmra.mxu2 %v12553_v43  ;;  %v8951_v57 = vor.u32 %v10165_v38, %v8950_v35  ;;  %v8392_v35 = vld [vmem:[%s12250_s24 + $0x858] sm:$0xf0]  ;;  %v7424_v38 = vld [vmem:[%s12250_s24 + $0xd0] sm:$0xf0] }
 0x40d   : > { %5444 = vmatpush.bf16.msra.mxu2 %v8583_v36  ;;  %v8343_v36 = vor.u32 %v10014_v30, %v8342_v29 }
 0x40f   : > { %5461 = vmatpush.bf16.msrb.mxu1 %v8743_v61  ;;  %5653 = vmatpush.bf16.msra.mxu3 %v9191_v44  ;;  %v7867_v61 = vor.u32 %v9889_v53, %v7864_v54  ;;  %v8592_v44 = vld [vmem:[%s12250_s24 + $0x9e8] sm:$0xf0]  ;;  %v9829_v53 = vld [vmem:[%s12250_s24 + $0x23c] sm:$0xf] }
 0x411   : > { %5445 = vmatpush.bf16.msra.mxu2 %v8543_v55  ;;  %v7624_v55 = vld [vmem:[%s12250_s24 + $0x260] sm:$0xf0] }
 0x413   : > { %5462 = vmatpush.bf16.msrb.mxu1 %v8703_v59  ;;  %5654 = vmatpush.bf16.msra.mxu3 %v9151_v41  ;;  %v7827_v59 = vor.u32 %v9879_v1, %v7824_v3  ;;  %v10219_v41 = vld [vmem:[%s12250_s24 + $0xe6c] sm:$0xf]  ;;  %v9184_v1 = vld [vmem:[%s12250_s24 + $0xe90] sm:$0xf0]  ;;  %v8552_v3 = vld [vmem:[%s12250_s24 + $0x998] sm:$0xf0] }
 0x414   : > { %v9187_v51 = vor.u32 %v10219_v41, %v9184_v1  ;;  %v10000_v41 = vld [vmem:[%s12250_s24 + $0x794] sm:$0xf] }
 0x415   : > { %5446 = vmatpush.bf16.msra.mxu2 %v8503_v2  ;;  %v10060_v2 = vld [vmem:[%s12250_s24 + $0x974] sm:$0xf] }
 0x416   : > { %v8555_v50 = vor.u32 %v10060_v2, %v8552_v3  ;;  %v8312_v2 = vld [vmem:[%s12250_s24 + $0x7b8] sm:$0xf0]  ;;  %v9759_v3 = vld [vmem:[%s12250_s24 + $0xc] sm:$0xf] }
 0x417   : > { %5463 = vmatpush.bf16.msrb.mxu1 %v8663_v13  ;;  %5655 = vmatpush.bf16.msra.mxu3 %v9111_v6  ;;  %v7787_v13 = vor.u32 %v9869_v56, %v7784_v7  ;;  %v10209_v6 = vld [vmem:[%s12250_s24 + $0xe1c] sm:$0xf]  ;;  %v9144_v56 = vld [vmem:[%s12250_s24 + $0xe40] sm:$0xf0]  ;;  %v8512_v7 = vld [vmem:[%s12250_s24 + $0x948] sm:$0xf0] }
 0x418   : > { %v9147_v11 = vor.u32 %v10209_v6, %v9144_v56  ;;  %v7638_v6 = vld [vmem:[%s12250_s24 + $0x248] sm:$0xf] }
 0x419   : > { %5447 = vmatpush.bf16.msra.mxu2 %v8463_v45  ;;  %v10050_v45 = vld [vmem:[%s12250_s24 + $0x924] sm:$0xf] }
 0x41a   : > { %v8515_v12 = vor.u32 %v10050_v45, %v8512_v7  ;;  %v9836_v45 = vld [vmem:[%s12250_s24 + $0x26c] sm:$0xf0]  ;;  %v10149_v7 = vld [vmem:[%s12250_s24 + $0xc3c] sm:$0xf] }
 0x41b   : > { %5464 = vmatpush.bf16.msrb.mxu1 %v8623_v28  ;;  %5656 = vmatpush.bf16.msra.mxu3 %v9071_v14  ;;  %v10175_v28 = vld [vmem:[%s12250_s24 + $0xd04] sm:$0xf0]  ;;  %v10199_v14 = vld [vmem:[%s12250_s24 + $0xdcc] sm:$0xf] }
 0x41c   : > { %v8991_v32 = vor.u32 %v10175_v28, %v8990_v27  ;;  %v9107_v19 = vor.u32 %v10199_v14, %v9104_v15  ;;  %v9789_v27 = vld [vmem:[%s12250_s24 + $0xfc] sm:$0xf]  ;;  %v7464_v28 = vld [vmem:[%s12250_s24 + $0x120] sm:$0xf0]  ;;  %v7598_v14 = vld [vmem:[%s12250_s24 + $0x1f8] sm:$0xf] }
 0x41d   : > { %5448 = vmatpush.bf16.msra.mxu2 %v8423_v16  ;;  %v10040_v16 = vld [vmem:[%s12250_s24 + $0x8d4] sm:$0xf]  ;;  %v9826_v15 = vld [vmem:[%s12250_s24 + $0x21c] sm:$0xf0] }
 0x41e   : > { %5465 = vmatmul.bf16.vlgmr.msrb.gmra.mxu1 %v12385_v60  ;;  %v8475_v20 = vor.u32 %v10040_v16, %v8472_v42  ;;  %v10139_v16 = vld [vmem:[%s12250_s24 + $0xbec] sm:$0xf]  ;;  %v8864_v42 = vld [vmem:[%s12250_s24 + $0xc10] sm:$0xf0] }
 0x41f   : > { %5509 = vmatpush.bf16.msra.mxu1 %v7947_v33  ;;  %5657 = vmatpush.bf16.msra.mxu3 %v9031_v23  ;;  %v9839_v33 = vld [vmem:[%s12250_s24 + $0x28c] sm:$0xf]  ;;  %v10189_v23 = vld [vmem:[%s12250_s24 + $0xd7c] sm:$0xf] }
 0x420   : > { %v7667_v54 = vor.u32 %v9839_v33, %v7664_v34  ;;  %v9067_v29 = vor.u32 %v10189_v23, %v9064_v24  ;;  %v9024_v33 = vld [vmem:[%s12250_s24 + $0xd50] sm:$0xf0]  ;;  %v7558_v23 = vld [vmem:[%s12250_s24 + $0x1a8] sm:$0xf]  ;;  %v9816_v24 = vld [vmem:[%s12250_s24 + $0x1cc] sm:$0xf0] }
 0x421   : > { %5449 = vmatpush.bf16.msra.mxu2 %v8383_v25  ;;  %v10030_v25 = vld [vmem:[%s12250_s24 + $0x884] sm:$0xf]  ;;  %v10020_v34 = vld [vmem:[%s12250_s24 + $0x834] sm:$0xf] }
 0x422   : > { %v8435_v30 = vor.u32 %v10030_v25, %v8432_v26  ;;  %v8395_v40 = vor.u32 %v10020_v34, %v8392_v35  ;;  %v10129_v25 = vld [vmem:[%s12250_s24 + $0xb9c] sm:$0xf]  ;;  %v8824_v26 = vld [vmem:[%s12250_s24 + $0xbc0] sm:$0xf0]  ;;  %v10119_v34 = vld [vmem:[%s12250_s24 + $0xb4c] sm:$0xf] }
 0x423   : > { %5510 = vmatpush.bf16.msra.mxu1 %v7907_v49  ;;  %v10070_v49 = vld [vmem:[%s12250_s24 + $0x9c4] sm:$0xf]  ;;  %5658 = vmatpush.bf16.msra.mxu3 %v8991_v32  ;;  %v10179_v32 = vld [vmem:[%s12250_s24 + $0xd2c] sm:$0xf]  ;;  %v8784_v35 = vld [vmem:[%s12250_s24 + $0xb70] sm:$0xf0] }
 0x424   : > { %v8595_v47 = vor.u32 %v10070_v49, %v8592_v44  ;;  %v9027_v39 = vor.u32 %v10179_v32, %v9024_v33  ;;  %v8984_v49 = vld [vmem:[%s12250_s24 + $0xd00] sm:$0xf0]  ;;  %v7518_v32 = vld [vmem:[%s12250_s24 + $0x158] sm:$0xf]  ;;  %v9806_v33 = vld [vmem:[%s12250_s24 + $0x17c] sm:$0xf0] }
 0x425   : > { %5450 = vmatpush.bf16.msra.mxu2 %v8343_v36  ;;  %v9779_v36 = vld [vmem:[%s12250_s24 + $0xac] sm:$0xf]  ;;  %v10010_v44 = vld [vmem:[%s12250_s24 + $0x7e4] sm:$0xf] }
 0x426   : > { %v7427_v46 = vor.u32 %v9779_v36, %v7424_v38  ;;  %v7519_v38 = vor.u32 %v9806_v33, %v7518_v32  ;;  %v10146_v32 = vld [vmem:[%s12250_s24 + $0xc1c] sm:$0xf0] }
 0x427   : > { %5511 = vmatpush.bf16.msra.mxu1 %v7867_v61  ;;  %v7627_v61 = vor.u32 %v9829_v53, %v7624_v55  ;;  %5659 = vmatpush.bf16.msra.mxu3 %v8951_v57  ;;  %v8987_v53 = vor.u32 %v10169_v48, %v8984_v49  ;;  %v8352_v55 = vld [vmem:[%s12250_s24 + $0x808] sm:$0xf0]  ;;  %v7384_v57 = vld [vmem:[%s12250_s24 + $0x80] sm:$0xf0]  ;;  %v7478_v48 = vld [vmem:[%s12250_s24 + $0x108] sm:$0xf] }
 0x428   : > { %v9796_v49 = vld [vmem:[%s12250_s24 + $0x12c] sm:$0xf0] }
 0x429   : > { %5451 = vmatpush.bf16.msra.mxu2 %v8303_v58  ;;  %v8355_v58 = vor.u32 %v10010_v44, %v8352_v55  ;;  %v10109_v44 = vld [vmem:[%s12250_s24 + $0xafc] sm:$0xf] }
 0x42a   : > { %5660 = vmatmul.bf16.vlgmr.msra.gmra.mxu3 %v12553_v43 }
 0x42b   : > { %5512 = vmatpush.bf16.msra.mxu1 %v7827_v59  ;;  %5717 = vmatpush.bf16.msrb.mxu3 %v8595_v47  ;;  %v7587_v59 = vor.u32 %v9819_v4, %v7584_v5  ;;  %v10159_v47 = vld [vmem:[%s12250_s24 + $0xc8c] sm:$0xf]  ;;  %v7344_v4 = vld [vmem:[%s12250_s24 + $0x30] sm:$0xf0]  ;;  %v8315_v5 = vor.u32 %v10000_v41, %v8312_v2 }
 0x42c   : > { %5452 = vmatmul.bf16.vlgmr.msra.gmra.mxu2 %v12282_v52  ;;  %v10099_v41 = vld [vmem:[%s12250_s24 + $0xaac] sm:$0xf] }
 0x42d   : > { %5496 = vmatpush.bf16.msrb.mxu2 %v7627_v61  ;;  %v8944_v61 = vld [vmem:[%s12250_s24 + $0xcb0] sm:$0xf0] }
 0x42e   : > { %v8947_v1 = vor.u32 %v10159_v47, %v8944_v61  ;;  %v7438_v47 = vld [vmem:[%s12250_s24 + $0xb8] sm:$0xf]  ;;  %v9786_v61 = vld [vmem:[%s12250_s24 + $0xdc] sm:$0xf0] }
 0x42f   : > { %5513 = vmatpush.bf16.msra.mxu1 %v7787_v13  ;;  %5718 = vmatpush.bf16.msrb.mxu3 %v8555_v50  ;;  %v7547_v13 = vor.u32 %v9809_v9, %v7544_v10  ;;  %v8590_v50 = vld [vmem:[%s12250_s24 + $0x9c0] sm:$0xf]  ;;  %v8904_v9 = vld [vmem:[%s12250_s24 + $0xc60] sm:$0xf0]  ;;  %v7639_v10 = vor.u32 %v9836_v45, %v7638_v6  ;;  %v10089_v6 = vld [vmem:[%s12250_s24 + $0xa5c] sm:$0xf] }
 0x431   : > { %5497 = vmatpush.bf16.msrb.mxu2 %v7587_v59  ;;  %v10075_v59 = vld [vmem:[%s12250_s24 + $0x9e4] sm:$0xf0] }
 0x432   : > { %v8591_v56 = vor.u32 %v10075_v59, %v8590_v50  ;;  %v7398_v50 = vld [vmem:[%s12250_s24 + $0x68] sm:$0xf]  ;;  %v9776_v59 = vld [vmem:[%s12250_s24 + $0x8c] sm:$0xf0] }
 0x433   : > { %5514 = vmatpush.bf16.msra.mxu1 %v7747_v22  ;;  %5719 = vmatpush.bf16.msrb.mxu3 %v8515_v12  ;;  %v7507_v22 = vor.u32 %v9799_v17, %v7504_v18  ;;  %v8550_v12 = vld [vmem:[%s12250_s24 + $0x970] sm:$0xf]  ;;  %v7599_v18 = vor.u32 %v9826_v15, %v7598_v14  ;;  %v9766_v14 = vld [vmem:[%s12250_s24 + $0x3c] sm:$0xf0] }
 0x435   : > { %5498 = vmatpush.bf16.msrb.mxu2 %v7547_v13  ;;  %v10065_v13 = vld [vmem:[%s12250_s24 + $0x994] sm:$0xf0] }
 0x436   : > { %v8551_v17 = vor.u32 %v10065_v13, %v8550_v12  ;;  %v10005_v12 = vld [vmem:[%s12250_s24 + $0x7b4] sm:$0xf0] }
 0x437   : > { %5515 = vmatpush.bf16.msra.mxu1 %v7707_v31  ;;  %5720 = vmatpush.bf16.msrb.mxu3 %v8475_v20  ;;  %v7467_v31 = vor.u32 %v9789_v27, %v7464_v28  ;;  %v8510_v20 = vld [vmem:[%s12250_s24 + $0x920] sm:$0xf]  ;;  %v7559_v28 = vor.u32 %v9816_v24, %v7558_v23  ;;  %v7358_v13 = vld [vmem:[%s12250_s24 + $0x18] sm:$0xf]  ;;  %v10156_v24 = vld [vmem:[%s12250_s24 + $0xc6c] sm:$0xf0] }
 0x439   : > { %5499 = vmatpush.bf16.msrb.mxu2 %v7507_v22  ;;  %v10055_v22 = vld [vmem:[%s12250_s24 + $0x944] sm:$0xf0] }
 0x43a   : > { %v8511_v27 = vor.u32 %v10055_v22, %v8510_v20  ;;  %v7632_v20 = vld [vmem:[%s12250_s24 + $0x268] sm:$0xf0]  ;;  %v8918_v22 = vld [vmem:[%s12250_s24 + $0xc48] sm:$0xf] }
 0x43b   : > { %5516 = vmatpush.bf16.msra.mxu1 %v7667_v54  ;;  %5721 = vmatpush.bf16.msrb.mxu3 %v8435_v30  ;;  %v9769_v54 = vld [vmem:[%s12250_s24 + $0x5c] sm:$0xf]  ;;  %v8470_v30 = vld [vmem:[%s12250_s24 + $0x8d0] sm:$0xf] }
 0x43d   : > { %5500 = vmatpush.bf16.msrb.mxu2 %v7467_v31  ;;  %v10045_v31 = vld [vmem:[%s12250_s24 + $0x8f4] sm:$0xf0] }
 0x43e   : > { %5517 = vmatmul.bf16.vlgmr.msra.gmra.mxu1 %v12494_v21  ;;  %v8471_v36 = vor.u32 %v10045_v31, %v8470_v30  ;;  %v7592_v30 = vld [vmem:[%s12250_s24 + $0x218] sm:$0xf0]  ;;  %v8878_v31 = vld [vmem:[%s12250_s24 + $0xbf8] sm:$0xf] }
 0x43f   : > { %5561 = vmatpush.bf16.msrb.mxu1 %v9227_v62  ;;  %5722 = vmatpush.bf16.msrb.mxu3 %v8395_v40  ;;  %v7387_v62 = vor.u32 %v9769_v54, %v7384_v57  ;;  %v8430_v40 = vld [vmem:[%s12250_s24 + $0x880] sm:$0xf]  ;;  %v7479_v54 = vor.u32 %v9796_v49, %v7478_v48  ;;  %v7552_v48 = vld [vmem:[%s12250_s24 + $0x1c8] sm:$0xf0] }
 0x441   : > { %5501 = vmatpush.bf16.msrb.mxu2 %v7427_v46  ;;  %v10035_v46 = vld [vmem:[%s12250_s24 + $0x8a4] sm:$0xf0] }
 0x442   : > { %v8431_v55 = vor.u32 %v10035_v46, %v8430_v40  ;;  %v9810_v46 = vld [vmem:[%s12250_s24 + $0x1a4] sm:$0xf] }
 0x443   : > { %5562 = vmatpush.bf16.msrb.mxu1 %v9187_v51  ;;  %5723 = vmatpush.bf16.msrb.mxu3 %v8355_v58  ;;  %v7347_v51 = vor.u32 %v9759_v3, %v7344_v4  ;;  %v8390_v58 = vld [vmem:[%s12250_s24 + $0x830] sm:$0xf]  ;;  %v7439_v3 = vor.u32 %v9786_v61, %v7438_v47  ;;  %v9975_v61 = vld [vmem:[%s12250_s24 + $0x6c4] sm:$0xf0] }
 0x445   : > { %5502 = vmatpush.bf16.msrb.mxu2 %v7387_v62  ;;  %v10025_v62 = vld [vmem:[%s12250_s24 + $0x854] sm:$0xf0] }
 0x446   : > { %v8391_v2 = vor.u32 %v10025_v62, %v8390_v58 }
 0x447   : > { %5563 = vmatpush.bf16.msrb.mxu1 %v9147_v11  ;;  %v8907_v11 = vor.u32 %v10149_v7, %v8904_v9  ;;  %5724 = vmatpush.bf16.msrb.mxu3 %v8315_v5  ;;  %v8350_v5 = vld [vmem:[%s12250_s24 + $0x7e0] sm:$0xf]  ;;  %v7399_v7 = vor.u32 %v9776_v59, %v7398_v50 }
 0x448   : > { %v10126_v50 = vld [vmem:[%s12250_s24 + $0xb7c] sm:$0xf0] }
 0x449   : > { %5503 = vmatpush.bf16.msrb.mxu2 %v7347_v51  ;;  %v10015_v51 = vld [vmem:[%s12250_s24 + $0x804] sm:$0xf0] }
 0x44a   : > { %5725 = vmatmul.bf16.vlgmr.msrb.gmra.mxu3 %v12282_v52  ;;  %v8351_v45 = vor.u32 %v10015_v51, %v8350_v5  ;;  %v7934_v5 = vld [vmem:[%s12250_s24 + $0x4b0] sm:$0xf]  ;;  %v9913_v51 = vld [vmem:[%s12250_s24 + $0x4d4] sm:$0xf0] }
 0x44b   : > { %5564 = vmatpush.bf16.msrb.mxu1 %v9107_v19  ;;  %5769 = vmatpush.bf16.msra.mxu3 %v7639_v10  ;;  %v8867_v19 = vor.u32 %v10139_v16, %v8864_v42  ;;  %v7359_v16 = vor.u32 %v9766_v14, %v7358_v13  ;;  %v10079_v42 = vld [vmem:[%s12250_s24 + $0xa0c] sm:$0xf]  ;;  %v7935_v13 = vor.u32 %v9913_v51, %v7934_v5  ;;  %v9925_v5 = vld [vmem:[%s12250_s24 + $0x534] sm:$0xf0] }
 0x44c   : > { %5504 = vmatmul.bf16.vlgmr.msrb.gmra.mxu2 %v12341_v0 }
 0x44d   : > { %5548 = vmatpush.bf16.msra.mxu2 %v8907_v11  ;;  %v8310_v11 = vld [vmem:[%s12250_s24 + $0x790] sm:$0xf] }
 0x44e   : > { %v8311_v15 = vor.u32 %v10005_v12, %v8310_v11 }
 0x44f   : > { %5565 = vmatpush.bf16.msrb.mxu1 %v9067_v29  ;;  %5770 = vmatpush.bf16.msra.mxu3 %v7599_v18  ;;  %v8827_v29 = vor.u32 %v10129_v25, %v8824_v26  ;;  %v9830_v18 = vld [vmem:[%s12250_s24 + $0x244] sm:$0xf]  ;;  %v8919_v25 = vor.u32 %v10156_v24, %v8918_v22  ;;  %v8270_v26 = vld [vmem:[%s12250_s24 + $0x740] sm:$0xf]  ;;  %v9893_v24 = vld [vmem:[%s12250_s24 + $0x434] sm:$0xf0] }
 0x450   : > { %v7635_v23 = vor.u32 %v9830_v18, %v7632_v20  ;;  %v10116_v18 = vld [vmem:[%s12250_s24 + $0xb2c] sm:$0xf0]  ;;  %v9955_v20 = vld [vmem:[%s12250_s24 + $0x624] sm:$0xf0] }
 0x451   : > { %5549 = vmatpush.bf16.msra.mxu2 %v8867_v19 }
 0x453   : > { %5566 = vmatpush.bf16.msrb.mxu1 %v9027_v39  ;;  %5771 = vmatpush.bf16.msra.mxu3 %v7559_v28  ;;  %v8787_v39 = vor.u32 %v10119_v34, %v8784_v35  ;;  %v9820_v28 = vld [vmem:[%s12250_s24 + $0x1f4] sm:$0xf]  ;;  %v8230_v35 = vld [vmem:[%s12250_s24 + $0x6f0] sm:$0xf] }
 0x454   : > { %v7595_v34 = vor.u32 %v9820_v28, %v7592_v30  ;;  %v9780_v28 = vld [vmem:[%s12250_s24 + $0xb4] sm:$0xf]  ;;  %v8718_v30 = vld [vmem:[%s12250_s24 + $0xab8] sm:$0xf] }
 0x455   : > { %5550 = vmatpush.bf16.msra.mxu2 %v8827_v29 }
 0x457   : > { %5567 = vmatpush.bf16.msrb.mxu1 %v8987_v53  ;;  %v8744_v53 = vld [vmem:[%s12250_s24 + $0xb20] sm:$0xf0]  ;;  %5772 = vmatpush.bf16.msra.mxu3 %v7519_v38  ;;  %v8879_v38 = vor.u32 %v10146_v32, %v8878_v31  ;;  %v10106_v31 = vld [vmem:[%s12250_s24 + $0xadc] sm:$0xf0]  ;;  %v8070_v32 = vld [vmem:[%s12250_s24 + $0x5b0] sm:$0xf] }
 0x458   : > { %v8747_v57 = vor.u32 %v10109_v44, %v8744_v53  ;;  %v8838_v44 = vld [vmem:[%s12250_s24 + $0xba8] sm:$0xf]  ;;  %v10136_v53 = vld [vmem:[%s12250_s24 + $0xbcc] sm:$0xf0] }
 0x459   : > { %5551 = vmatpush.bf16.msra.mxu2 %v8787_v39  ;;  %v9985_v39 = vld [vmem:[%s12250_s24 + $0x714] sm:$0xf0]  ;;  %v8839_v47 = vor.u32 %v10136_v53, %v8838_v44  ;;  %v10096_v44 = vld [vmem:[%s12250_s24 + $0xa8c] sm:$0xf0]  ;;  %v8030_v53 = vld [vmem:[%s12250_s24 + $0x560] sm:$0xf] }
 0x45a   : > { %v8231_v40 = vor.u32 %v9985_v39, %v8230_v35  ;;  %v7814_v35 = vld [vmem:[%s12250_s24 + $0x3c0] sm:$0xf] }
 0x45b   : > { %5568 = vmatpush.bf16.msrb.mxu1 %v8947_v1  ;;  %v8704_v1 = vld [vmem:[%s12250_s24 + $0xad0] sm:$0xf0]  ;;  %5773 = vmatpush.bf16.msra.mxu3 %v7479_v54  ;;  %v7555_v54 = vor.u32 %v9810_v46, %v7552_v48  ;;  %v9770_v46 = vld [vmem:[%s12250_s24 + $0x64] sm:$0xf]  ;;  %v7392_v48 = vld [vmem:[%s12250_s24 + $0x88] sm:$0xf0] }
 0x45c   : > { %v8707_v4 = vor.u32 %v10099_v41, %v8704_v1  ;;  %v9800_v1 = vld [vmem:[%s12250_s24 + $0x154] sm:$0xf] }
 0x45d   : > { %5552 = vmatpush.bf16.msra.mxu2 %v8747_v57  ;;  %v8190_v57 = vld [vmem:[%s12250_s24 + $0x6a0] sm:$0xf] }
 0x45e   : > { %5569 = vmatmul.bf16.vlgmr.msrb.gmra.mxu1 %v12553_v43  ;;  %v8191_v41 = vor.u32 %v9975_v61, %v8190_v57  ;;  %v7774_v57 = vld [vmem:[%s12250_s24 + $0x370] sm:$0xf] }
 0x45f   : > { %5626 = vmatpush.bf16.msra.mxu1 %v8591_v56  ;;  %v8664_v56 = vld [vmem:[%s12250_s24 + $0xa80] sm:$0xf0]  ;;  %5774 = vmatpush.bf16.msra.mxu3 %v7439_v3  ;;  %v8798_v3 = vld [vmem:[%s12250_s24 + $0xb58] sm:$0xf] }
 0x460   : > { %v8667_v9 = vor.u32 %v10089_v6, %v8664_v56  ;;  %v8150_v56 = vld [vmem:[%s12250_s24 + $0x650] sm:$0xf]  ;;  %v8799_v11 = vor.u32 %v10126_v50, %v8798_v3  ;;  %v10086_v3 = vld [vmem:[%s12250_s24 + $0xa3c] sm:$0xf0]  ;;  %v10150_v50 = vld [vmem:[%s12250_s24 + $0xc44] sm:$0xf] }
 0x461   : > { %5553 = vmatpush.bf16.msra.mxu2 %v8707_v4 }
 0x463   : > { %5627 = vmatpush.bf16.msra.mxu1 %v8551_v17  ;;  %5775 = vmatpush.bf16.msra.mxu3 %v7399_v7  ;;  %v8624_v17 = vld [vmem:[%s12250_s24 + $0xa30] sm:$0xf0] }
 0x464   : > { %v8627_v19 = vor.u32 %v10079_v42, %v8624_v17  ;;  %v8758_v42 = vld [vmem:[%s12250_s24 + $0xb08] sm:$0xf] }
 0x465   : > { %5554 = vmatpush.bf16.msra.mxu2 %v8667_v9  ;;  %v7894_v9 = vld [vmem:[%s12250_s24 + $0x460] sm:$0xf] }
 0x467   : > { %5628 = vmatpush.bf16.msra.mxu1 %v8511_v27  ;;  %v9995_v27 = vld [vmem:[%s12250_s24 + $0x764] sm:$0xf0]  ;;  %5776 = vmatpush.bf16.msra.mxu3 %v7359_v16  ;;  %v7472_v16 = vld [vmem:[%s12250_s24 + $0x128] sm:$0xf0] }
 0x468   : > { %v8271_v29 = vor.u32 %v9995_v27, %v8270_v26 }
 0x469   : > { %5555 = vmatpush.bf16.msra.mxu2 %v8627_v19  ;;  %v8110_v19 = vld [vmem:[%s12250_s24 + $0x600] sm:$0xf] }
 0x46a   : > { %5777 = vmatmul.bf16.vlgmr.msra.gmra.mxu3 %v12341_v0  ;;  %v8111_v27 = vor.u32 %v9955_v20, %v8110_v19  ;;  %v8872_v19 = vld [vmem:[%s12250_s24 + $0xc18] sm:$0xf0] }
 0x46b   : > { %5629 = vmatpush.bf16.msra.mxu1 %v8471_v36  ;;  %5821 = vmatpush.bf16.msrb.mxu3 %v8919_v25  ;;  %v2205_v25 = vld [vmem:[%s1591_s25] sm:$0xff]  ;;  %s1561_s25 = smul.u32 10, %s10499_s16 }
 0x46c   : > { %5556 = vmatmul.bf16.vlgmr.msra.gmra.mxu2 %v12385_v60  ;;  %v9981_v20 = vld [vmem:[%s12250_s24 + $0x6fc] sm:$0xf] }
 0x46d   : > { %5613 = vmatpush.bf16.msrb.mxu2 %v8271_v29  ;;  %v7432_v29 = vld [vmem:[%s12250_s24 + $0xd8] sm:$0xf0]  ;;  %p13139_p10 = scmp.lt.s32.totalorder %s1561_s25, 19 }
 0x46f   : > { %5630 = vmatpush.bf16.msra.mxu1 %v8431_v55  ;;  %5822 = vmatpush.bf16.msrb.mxu3 %v8879_v38  ;;  %v8719_v38 = vor.u32 %v10106_v31, %v8718_v30  ;;  %v10130_v30 = vld [vmem:[%s12250_s24 + $0xba4] sm:$0xf]  ;;  %v12799_v31 = vpop.f32.mrf.mxu3  ;;  %s13788_s25 = smov (!%p13139_p10, %s1561_s25), 19 }
 0x470   : > { %v12692_v10 = vpop.xlane.xlu0 %2188  ;;  %s13167_s28 = scalar_lea.vmem %s13767_s2, %s13788_s25 }
 0x471   : > { %10377 = vrcp.f32 %v12692_v10  ;;  %v2201_v55 = vand.u32 2147483648, %v12692_v10  ;;  %v2199_v62 = vand.u32 2147483647, %v12692_v10  ;;  %5614 = vmatpush.bf16.msrb.mxu2 %v8231_v40  ;;  %vm2195_vm3 = vweird.f32 %v12692_v10 }
 0x473   : > { %5631 = vmatpush.bf16.msra.mxu1 %v8391_v2  ;;  %v7512_v2 = vld [vmem:[%s12250_s24 + $0x178] sm:$0xf0]  ;;  %v2202_v59 = vor.u32 1.1754944e-38, %v2201_v55  ;;  %vm2200_vm5 = vcmp.eq.f32.partialorder %v2199_v62, 8.507059e+37  ;;  %5823 = vmatpush.bf16.msrb.mxu3 %v8839_v47  ;;  %v9935_v55 = vld [vmem:[%s12250_s24 + $0x584] sm:$0xf0] }
 0x474   : > { %v7515_v6 = vor.u32 %v9800_v1, %v7512_v2  ;;  %v8031_v61 = vor.u32 %v9935_v55, %v8030_v53  ;;  %v7352_v1 = vld [vmem:[%s12250_s24 + $0x38] sm:$0xf0]  ;;  %v8638_v2 = vld [vmem:[%s12250_s24 + $0xa18] sm:$0xf]  ;;  %v7872_v53 = vld [vmem:[%s12250_s24 + $0x448] sm:$0xf0] }
 0x475   : > { %5615 = vmatpush.bf16.msrb.mxu2 %v8191_v41  ;;  %v9760_v41 = vld [vmem:[%s12250_s24 + $0x14] sm:$0xf] }
 0x476   : > { %v7355_v51 = vor.u32 %v9760_v41, %v7352_v1  ;;  %v10120_v55 = vld [vmem:[%s12250_s24 + $0xb54] sm:$0xf]  ;;  %v10223_v41 = vld [vmem:[%s12250_s24 + $0xe84] sm:$0xf0] }
 0x477   : > { %5632 = vmatpush.bf16.msra.mxu1 %v8351_v45  ;;  %v10378_v33 = vpop.eup %10377  ;;  %v9965_v45 = vld [vmem:[%s12250_s24 + $0x674] sm:$0xf0]  ;;  %5824 = vmatpush.bf16.msrb.mxu3 %v8799_v11  ;;  %v9863_v11 = vld [vmem:[%s12250_s24 + $0x344] sm:$0xf0] }
 0x478   : > { %v2191_v36 = vmul.f32 %v10378_v33, %v12692_v10  ;;  %vm2196_vm2 = vweird.f32 %v10378_v33  ;;  %v9903_v10 = vld [vmem:[%s12250_s24 + $0x484] sm:$0xf0]  ;;  %v8151_v14 = vor.u32 %v9965_v45, %v8150_v56  ;;  %v7734_v56 = vld [vmem:[%s12250_s24 + $0x320] sm:$0xf]  ;;  %v8639_v45 = vor.u32 %v10086_v3, %v8638_v2 }
 0x479   : > { %vm2197_vm4 = vmor %vm2195_vm3, %vm2196_vm2  ;;  %v7895_v26 = vor.u32 %v9903_v10, %v7894_v9  ;;  %v8280_v9 = vld [vmem:[%s12250_s24 + $0x770] sm:$0xf0] }
 0x47a   : > { %v2192_v49 = vsub.f32 1.0, %v2191_v36  ;;  %5616 = vmatpush.bf16.msrb.mxu2 %v8151_v14  ;;  %v9883_v36 = vld [vmem:[%s12250_s24 + $0x3e4] sm:$0xf0]  ;;  %v10245_v14 = vld [vmem:[%s12250_s24 + $0xf34] sm:$0xf0] }
 0x47b   : > { %5633 = vmatpush.bf16.msra.mxu1 %v8311_v15  ;;  %v9790_v15 = vld [vmem:[%s12250_s24 + $0x104] sm:$0xf]  ;;  %v7815_v47 = vor.u32 %v9883_v36, %v7814_v35  ;;  %v7654_v35 = vld [vmem:[%s12250_s24 + $0x280] sm:$0xf] }
 0x47c   : > { %v2193_v58 = vmul.f32 %v10378_v33, %v2192_v49  ;;  %v7475_v22 = vor.u32 %v9790_v15, %v7472_v16  ;;  %v8678_v49 = vld [vmem:[%s12250_s24 + $0xa68] sm:$0xf] }
 0x47d   : > { %v8679_v62 = vor.u32 %v10096_v44, %v8678_v49  ;;  %v9890_v44 = vld [vmem:[%s12250_s24 + $0x424] sm:$0xf] }
 0x47e   : > { %5634 = vmatmul.bf16.vlgmr.msra.gmra.mxu1 %v12282_v52  ;;  %v2194_v4 = vadd.f32 %v10378_v33, %v2193_v58  ;;  %5617 = vmatpush.bf16.msrb.mxu2 %v8111_v27  ;;  %v9873_v58 = vld [vmem:[%s12250_s24 + $0x394] sm:$0xf0]  ;;  %v7875_v1 = vor.u32 %v9890_v44, %v7872_v53  ;;  %v8000_v44 = vld [vmem:[%s12250_s24 + $0x540] sm:$0xf0] }
 0x47f   : > { %5678 = vmatpush.bf16.msrb.mxu1 %v7635_v23  ;;  %v7854_v23 = vld [vmem:[%s12250_s24 + $0x410] sm:$0xf]  ;;  %v7775_v10 = vor.u32 %v9873_v58, %v7774_v57  ;;  %v9961_v57 = vld [vmem:[%s12250_s24 + $0x65c] sm:$0xf]  ;;  %v8160_v58 = vld [vmem:[%s12250_s24 + $0x680] sm:$0xf0] }
 0x480   : > { %v2198_v7 = vsel %vm2197_vm4, %v10378_v33, %v2194_v4  ;;  %v9945_v33 = vld [vmem:[%s12250_s24 + $0x5d4] sm:$0xf0]  ;;  %v7855_v39 = vor.u32 %v9893_v24, %v7854_v23  ;;  %v7990_v4 = vld [vmem:[%s12250_s24 + $0x510] sm:$0xf]  ;;  %v7735_v24 = vor.u32 %v9863_v11, %v7734_v56  ;;  %v8163_v3 = vor.u32 %v9961_v57, %v8160_v58  ;;  %v8120_v56 = vld [vmem:[%s12250_s24 + $0x630] sm:$0xf0] }
 0x481   : > { %v2203_v12 = vsel %vm2200_vm5, %v2202_v59, %v2198_v7  ;;  %v8071_v40 = vor.u32 %v9945_v33, %v8070_v32  ;;  %v8912_v59 = vld [vmem:[%s12250_s24 + $0xc68] sm:$0xf0]  ;;  %v9014_v57 = vld [vmem:[%s12250_s24 + $0xd20] sm:$0xf] }
 0x482   : > { %v2204_v17 = vmul.f32 %v12483_v8, %v2203_v12  ;;  %v8759_v8 = vor.u32 %v10116_v18, %v8758_v42  ;;  %v8915_v7 = vor.u32 %v10150_v50, %v8912_v59  ;;  %v7991_v12 = vor.u32 %v9925_v5, %v7990_v4  ;;  %v9910_v42 = vld [vmem:[%s12250_s24 + $0x4c4] sm:$0xf]  ;;  %v10140_v18 = vld [vmem:[%s12250_s24 + $0xbf4] sm:$0xf]  ;;  %v8832_v32 = vld [vmem:[%s12250_s24 + $0xbc8] sm:$0xf0]  ;;  %v5273_v50 = vpop.f32.mrf.mxu3 }
 0x483   : > { %5679 = vmatpush.bf16.msrb.mxu1 %v7595_v34  ;;  %v7435_v34 = vor.u32 %v9780_v28, %v7432_v29  ;;  %5618 = vmatpush.bf16.msrb.mxu2 %v8071_v40  ;;  %v8875_v23 = vor.u32 %v10140_v18, %v8872_v19  ;;  %v9900_v28 = vld [vmem:[%s12250_s24 + $0x474] sm:$0xf]  ;;  %v7912_v29 = vld [vmem:[%s12250_s24 + $0x498] sm:$0xf0]  ;;  %v9971_v33 = vld [vmem:[%s12250_s24 + $0x6ac] sm:$0xf]  ;;  %v8835_v36 = vor.u32 %v10130_v30, %v8832_v32 }
 0x484   : > { %7330 = vmatpush.xpose.msk.msra.mxu0 %vm2180_vm1, %v2204_v17  ;;  %5825 = vmatpush.bf16.msrb.mxu3 %v8759_v8  ;;  %v7952_v17 = vld [vmem:[%s12250_s24 + $0x4e8] sm:$0xf0]  ;;  %v9853_v8 = vld [vmem:[%s12250_s24 + $0x2f4] sm:$0xf0]  ;;  %v9214_v40 = vld [vmem:[%s12250_s24 + $0xeb0] sm:$0xf] }
 0x485   : > { %v9880_v4 = vld [vmem:[%s12250_s24 + $0x3d4] sm:$0xf]  ;;  %v7832_v5 = vld [vmem:[%s12250_s24 + $0x3f8] sm:$0xf0]  ;;  %v8752_v59 = vld [vmem:[%s12250_s24 + $0xb28] sm:$0xf0] }
 0x486   : > { %v9094_v19 = vld [vmem:[%s12250_s24 + $0xdc0] sm:$0xf]  ;;  %v9917_v50 = vld [vmem:[%s12250_s24 + $0x4f4] sm:$0xf0] }
 0x487   : > { %5680 = vmatpush.bf16.msrb.mxu1 %v7555_v54  ;;  %7331 = vmatmul.msk.f32.vlgmr.msra.gmra.mxu0 %vm2180_vm1, %v2205_v25  ;;  %v7395_v54 = vor.u32 %v9770_v46, %v7392_v48  ;;  %v7694_v25 = vld [vmem:[%s12250_s24 + $0x2d0] sm:$0xf]  ;;  %v10233_v46 = vld [vmem:[%s12250_s24 + $0xed4] sm:$0xf0]  ;;  %v7915_v48 = vor.u32 %v9900_v28, %v7912_v29  ;;  %v9931_v28 = vld [vmem:[%s12250_s24 + $0x56c] sm:$0xf] }
 0x488   : > { %5236 = vmatpush.bf16.msrb.mxu0 %v7935_v13  ;;  %5826 = vmatpush.bf16.msrb.mxu3 %v8719_v38  ;;  %v9270_v13 = vld [vmem:[%s12250_s24 + $0xf10] sm:$0xf]  ;;  %v7695_v38 = vor.u32 %v9853_v8, %v7694_v25  ;;  %v9215_v2 = vor.u32 %v10233_v46, %v9214_v40  ;;  %v9860_v25 = vld [vmem:[%s12250_s24 + $0x334] sm:$0xf]  ;;  %v7752_v8 = vld [vmem:[%s12250_s24 + $0x358] sm:$0xf0] }
 0x489   : > { %5619 = vmatpush.bf16.msrb.mxu2 %v8031_v61  ;;  %v9271_v16 = vor.u32 %v10245_v14, %v9270_v13  ;;  %v9174_v61 = vld [vmem:[%s12250_s24 + $0xe60] sm:$0xf]  ;;  %v9870_v13 = vld [vmem:[%s12250_s24 + $0x384] sm:$0xf]  ;;  %v7792_v14 = vld [vmem:[%s12250_s24 + $0x3a8] sm:$0xf0] }
 0x48a   : > { %v9175_v11 = vor.u32 %v10223_v41, %v9174_v61  ;;  %v8040_v29 = vld [vmem:[%s12250_s24 + $0x590] sm:$0xf0]  ;;  %v12842_v30 = vpop.f32.mrf.mxu3  ;;  %v7712_v40 = vld [vmem:[%s12250_s24 + $0x308] sm:$0xf0]  ;;  %v9280_v61 = vld [vmem:[%s12250_s24 + $0xf40] sm:$0xf0] }
 0x48b   : > { %5681 = vmatpush.bf16.msrb.mxu1 %v7515_v6  ;;  %v9991_v6 = vld [vmem:[%s12250_s24 + $0x74c] sm:$0xf]  ;;  %v10080_v46 = vld [vmem:[%s12250_s24 + $0xa14] sm:$0xf] }
 0x48c   : > { %5237 = vmatpush.bf16.msrb.mxu0 %v7895_v26  ;;  %5827 = vmatpush.bf16.msrb.mxu3 %v8679_v62  ;;  %v8283_v15 = vor.u32 %v9991_v6, %v8280_v9  ;;  %v7955_v26 = vor.u32 %v9910_v42, %v7952_v17  ;;  %v9951_v6 = vld [vmem:[%s12250_s24 + $0x60c] sm:$0xf]  ;;  %v10213_v9 = vld [vmem:[%s12250_s24 + $0xe34] sm:$0xf0]  ;;  %v9941_v42 = vld [vmem:[%s12250_s24 + $0x5bc] sm:$0xf] }
 0x48d   : > { %5620 = vmatpush.bf16.msrb.mxu2 %v7991_v12  ;;  %v8123_v12 = vor.u32 %v9951_v6, %v8120_v56  ;;  %v8080_v17 = vld [vmem:[%s12250_s24 + $0x5e0] sm:$0xf0]  ;;  %v9232_v56 = vld [vmem:[%s12250_s24 + $0xee8] sm:$0xf0] }
 0x48e   : > { %v10230_v6 = vld [vmem:[%s12250_s24 + $0xec4] sm:$0xf] }
 0x48f   : > { %5682 = vmatpush.bf16.msrb.mxu1 %v7475_v22  ;;  %v8240_v22 = vld [vmem:[%s12250_s24 + $0x720] sm:$0xf0] }
 0x490   : > { %5238 = vmatpush.bf16.msrb.mxu0 %v7855_v39  ;;  %5828 = vmatpush.bf16.msrb.mxu3 %v8639_v45  ;;  %v8243_v27 = vor.u32 %v9981_v20, %v8240_v22  ;;  %v9843_v39 = vld [vmem:[%s12250_s24 + $0x2a4] sm:$0xf0]  ;;  %v7795_v22 = vor.u32 %v9870_v13, %v7792_v14  ;;  %v9235_v14 = vor.u32 %v10230_v6, %v9232_v56  ;;  %v9072_v6 = vld [vmem:[%s12250_s24 + $0xda8] sm:$0xf0]  ;;  %v8078_v56 = vld [vmem:[%s12250_s24 + $0x5b8] sm:$0xf] }
 0x491   : > { %5672 = vmatpush.bf16.msra.mxu2 %v9271_v16  ;;  %v8712_v16 = vld [vmem:[%s12250_s24 + $0xad8] sm:$0xf0]  ;;  %v10203_v20 = vld [vmem:[%s12250_s24 + $0xde4] sm:$0xf0] }
 0x492   : > { %5621 = vmatmul.bf16.vlgmr.msrb.gmra.mxu2 %v12339_v63 }
 0x493   : > { %5683 = vmatpush.bf16.msrb.mxu1 %v7435_v34  ;;  %v8200_v34 = vld [vmem:[%s12250_s24 + $0x6d0] sm:$0xf0]  ;;  %5829 = vmatmul.bf16.vlgmr.msrb.gmra.mxu3 %v12385_v60 }
 0x494   : > { %5239 = vmatpush.bf16.msrb.mxu0 %v7815_v47  ;;  %5886 = vmatpush.bf16.msra.mxu3 %v8283_v15  ;;  %v8203_v49 = vor.u32 %v9971_v33, %v8200_v34  ;;  %v7655_v47 = vor.u32 %v9843_v39, %v7654_v35  ;;  %v10100_v15 = vld [vmem:[%s12250_s24 + $0xab4] sm:$0xf]  ;;  %v9054_v33 = vld [vmem:[%s12250_s24 + $0xd70] sm:$0xf]  ;;  %v10193_v34 = vld [vmem:[%s12250_s24 + $0xd94] sm:$0xf0]  ;;  %v7755_v35 = vor.u32 %v9860_v25, %v7752_v8 }
 0x495   : > { %5691 = vmatpush.bf16.msrb.mxu2 %v7955_v26  ;;  %v8715_v18 = vor.u32 %v10100_v15, %v8712_v16  ;;  %v10090_v26 = vld [vmem:[%s12250_s24 + $0xa64] sm:$0xf]  ;;  %v9055_v41 = vor.u32 %v10193_v34, %v9054_v33  ;;  %v7926_v16 = vld [vmem:[%s12250_s24 + $0x480] sm:$0xf]  ;;  %v9988_v8 = vld [vmem:[%s12250_s24 + $0x734] sm:$0xf] }
 0x496   : > { %v9850_v39 = vld [vmem:[%s12250_s24 + $0x2e4] sm:$0xf]  ;;  %v8256_v33 = vld [vmem:[%s12250_s24 + $0x758] sm:$0xf0] }
 0x497   : > { %5684 = vmatpush.bf16.msrb.mxu1 %v7395_v54  ;;  %v8792_v54 = vld [vmem:[%s12250_s24 + $0xb78] sm:$0xf0]  ;;  %v7715_v58 = vor.u32 %v9850_v39, %v7712_v40  ;;  %v10210_v34 = vld [vmem:[%s12250_s24 + $0xe24] sm:$0xf] }
 0x498   : > { %5240 = vmatpush.bf16.msrb.mxu0 %v7775_v10  ;;  %5887 = vmatpush.bf16.msra.mxu3 %v8243_v27  ;;  %v8795_v62 = vor.u32 %v10120_v55, %v8792_v54  ;;  %v7835_v10 = vor.u32 %v9880_v4, %v7832_v5  ;;  %v8672_v27 = vld [vmem:[%s12250_s24 + $0xa88] sm:$0xf0]  ;;  %v8278_v55 = vld [vmem:[%s12250_s24 + $0x748] sm:$0xf]  ;;  %v9996_v54 = vld [vmem:[%s12250_s24 + $0x76c] sm:$0xf0] }
 0x499   : > { %5692 = vmatpush.bf16.msrb.mxu2 %v7915_v48  ;;  %v8675_v32 = vor.u32 %v10090_v26, %v8672_v27  ;;  %v8632_v48 = vld [vmem:[%s12250_s24 + $0xa38] sm:$0xf0] }
 0x49a   : > { %v8635_v53 = vor.u32 %v10080_v46, %v8632_v48  ;;  %v7672_v4 = vld [vmem:[%s12250_s24 + $0x2b8] sm:$0xf0]  ;;  %v8259_v46 = vor.u32 %v9988_v8, %v8256_v33  ;;  %v9978_v48 = vld [vmem:[%s12250_s24 + $0x6e4] sm:$0xf]  ;;  %v7998_v33 = vld [vmem:[%s12250_s24 + $0x518] sm:$0xf] }
 0x49b   : > { %5685 = vmatpush.bf16.msrb.mxu1 %v7355_v51  ;;  %v10110_v51 = vld [vmem:[%s12250_s24 + $0xb04] sm:$0xf]  ;;  %v8096_v8 = vld [vmem:[%s12250_s24 + $0x618] sm:$0xf0] }
 0x49c   : > { %5241 = vmatpush.bf16.msrb.mxu0 %v7735_v24  ;;  %5888 = vmatpush.bf16.msra.mxu3 %v8203_v49  ;;  %v8755_v45 = vor.u32 %v10110_v51, %v8752_v59  ;;  %v8083_v24 = vor.u32 %v9941_v42, %v8080_v17  ;;  %v9921_v49 = vld [vmem:[%s12250_s24 + $0x51c] sm:$0xf]  ;;  %v7966_v51 = vld [vmem:[%s12250_s24 + $0x4d0] sm:$0xf]  ;;  %v5325_v59 = vpop.f32.mrf.mxu3  ;;  %v9907_v42 = vld [vmem:[%s12250_s24 + $0x4a4] sm:$0xf0] }
 0x49d   : > { %5693 = vmatpush.bf16.msrb.mxu2 %v7875_v1  ;;  %v10183_v1 = vld [vmem:[%s12250_s24 + $0xd44] sm:$0xf0]  ;;  %v7967_v13 = vor.u32 %v9917_v50, %v7966_v51  ;;  %v10220_v17 = vld [vmem:[%s12250_s24 + $0xe74] sm:$0xf]  ;;  %v7927_v25 = vor.u32 %v9907_v42, %v7926_v16  ;;  %v8176_v51 = vld [vmem:[%s12250_s24 + $0x6b8] sm:$0xf0] }
 0x49e   : > { %5686 = vmatmul.bf16.vlgmr.msrb.gmra.mxu1 %v12341_v0  ;;  %v10190_v59 = vld [vmem:[%s12250_s24 + $0xd84] sm:$0xf]  ;;  %v10180_v16 = vld [vmem:[%s12250_s24 + $0xd34] sm:$0xf]  ;;  %v9032_v42 = vld [vmem:[%s12250_s24 + $0xd58] sm:$0xf0] }
 0x49f   : > { %5730 = vmatpush.bf16.msra.mxu1 %v8915_v7  ;;  %v9134_v7 = vld [vmem:[%s12250_s24 + $0xe10] sm:$0xf] }
 0x4a0   : > { %5242 = vmatpush.bf16.msrb.mxu0 %v7695_v38  ;;  %5889 = vmatpush.bf16.msra.mxu3 %v8163_v3  ;;  %v8043_v38 = vor.u32 %v9931_v28, %v8040_v29  ;;  %v9840_v3 = vld [vmem:[%s12250_s24 + $0x294] sm:$0xf]  ;;  %v7886_v28 = vld [vmem:[%s12250_s24 + $0x430] sm:$0xf]  ;;  %v9897_v29 = vld [vmem:[%s12250_s24 + $0x454] sm:$0xf0] }
 0x4a1   : > { %5694 = vmatpush.bf16.msrb.mxu2 %v7835_v10  ;;  %v9015_v10 = vor.u32 %v10183_v1, %v9014_v57  ;;  %v7887_v40 = vor.u32 %v9897_v29, %v7886_v28  ;;  %v10200_v57 = vld [vmem:[%s12250_s24 + $0xdd4] sm:$0xf]  ;;  %v10170_v28 = vld [vmem:[%s12250_s24 + $0xce4] sm:$0xf]  ;;  %v8992_v29 = vld [vmem:[%s12250_s24 + $0xd08] sm:$0xf0] }
 0x4a2   : > { %9296 = vmatmul.msk.bf16.vlgmr.msra.gmra.mxu2 %vm1818_vm0, %v12372_v37  ;;  %v9968_v1 = vld [vmem:[%s12250_s24 + $0x694] sm:$0xf] }
 0x4a3   : > { %5731 = vmatpush.bf16.msra.mxu1 %v8875_v23  ;;  %v9135_v23 = vor.u32 %v10213_v9, %v9134_v7  ;;  %v9986_v7 = vld [vmem:[%s12250_s24 + $0x71c] sm:$0xf0]  ;;  %v7675_v9 = vor.u32 %v9840_v3, %v7672_v4  ;;  %v7806_v3 = vld [vmem:[%s12250_s24 + $0x390] sm:$0xf]  ;;  %v9877_v4 = vld [vmem:[%s12250_s24 + $0x3b4] sm:$0xf0] }
 0x4a4   : > { %5243 = vmatpush.bf16.msrb.mxu0 %v7655_v47  ;;  %5890 = vmatpush.bf16.msra.mxu3 %v8123_v12  ;;  %v10241_v47 = vld [vmem:[%s12250_s24 + $0xf1c] sm:$0xf]  ;;  %v10173_v12 = vld [vmem:[%s12250_s24 + $0xcf4] sm:$0xf0] }
 0x4a5   : > { %5695 = vmatpush.bf16.msrb.mxu2 %v7795_v22  ;;  %v9283_v5 = vor.u32 %v10241_v47, %v9280_v61  ;;  %v9956_v47 = vld [vmem:[%s12250_s24 + $0x62c] sm:$0xf0] }
 0x4a7   : > { %5732 = vmatpush.bf16.msra.mxu1 %v8835_v36  ;;  %5244 = vmatmul.bf16.vlgmr.msrb.gmra.mxu0 %v12494_v21  ;;  %v9095_v36 = vor.u32 %v10203_v20, %v9094_v19  ;;  %v8198_v19 = vld [vmem:[%s12250_s24 + $0x6a8] sm:$0xf]  ;;  %v9976_v20 = vld [vmem:[%s12250_s24 + $0x6cc] sm:$0xf0] }
 0x4a8   : > { %5288 = vmatpush.bf16.msra.mxu0 %v9215_v2  ;;  %5891 = vmatpush.bf16.msra.mxu3 %v8083_v24  ;;  %v8003_v2 = vor.u32 %v9921_v49, %v8000_v44  ;;  %v10163_v24 = vld [vmem:[%s12250_s24 + $0xca4] sm:$0xf0]  ;;  %v8199_v27 = vor.u32 %v9976_v20, %v8198_v19  ;;  %v7846_v44 = vld [vmem:[%s12250_s24 + $0x3e0] sm:$0xf] }
 0x4a9   : > { %5696 = vmatpush.bf16.msrb.mxu2 %v7755_v35  ;;  %v9152_v35 = vld [vmem:[%s12250_s24 + $0xe48] sm:$0xf0] }
 0x4aa   : > { %v9155_v49 = vor.u32 %v10210_v34, %v9152_v35  ;;  %v9926_v34 = vld [vmem:[%s12250_s24 + $0x53c] sm:$0xf0] }
 0x4ab   : > { %5733 = vmatpush.bf16.msra.mxu1 %v8795_v62  ;;  %v8279_v62 = vor.u32 %v9996_v54, %v8278_v55  ;;  %v8216_v55 = vld [vmem:[%s12250_s24 + $0x708] sm:$0xf0] }
 0x4ac   : > { %5289 = vmatpush.bf16.msra.mxu0 %v9175_v11  ;;  %5892 = vmatpush.bf16.msra.mxu3 %v8043_v38  ;;  %v8974_v11 = vld [vmem:[%s12250_s24 + $0xcd0] sm:$0xf]  ;;  %v9966_v38 = vld [vmem:[%s12250_s24 + $0x67c] sm:$0xf0] }
 0x4ad   : > { %5697 = vmatpush.bf16.msrb.mxu2 %v7715_v58  ;;  %v8975_v22 = vor.u32 %v10173_v12, %v8974_v11  ;;  %v9112_v58 = vld [vmem:[%s12250_s24 + $0xdf8] sm:$0xf0]  ;;  %v9075_v11 = vor.u32 %v10190_v59, %v9072_v6  ;;  %v7766_v12 = vld [vmem:[%s12250_s24 + $0x340] sm:$0xf] }
 0x4af   : > { %5734 = vmatpush.bf16.msra.mxu1 %v8755_v45  ;;  %v8238_v45 = vld [vmem:[%s12250_s24 + $0x6f8] sm:$0xf] }
 0x4b0   : > { %5290 = vmatpush.bf16.msra.mxu0 %v9135_v23  ;;  %5893 = vmatpush.bf16.msra.mxu3 %v8003_v2  ;;  %v8239_v15 = vor.u32 %v9986_v7, %v8238_v45  ;;  %v8934_v23 = vld [vmem:[%s12250_s24 + $0xc80] sm:$0xf]  ;;  %v9115_v2 = vor.u32 %v10200_v57, %v9112_v58  ;;  %v7807_v7 = vor.u32 %v9877_v4, %v7806_v3  ;;  %v9911_v58 = vld [vmem:[%s12250_s24 + $0x4cc] sm:$0xf] }
 0x4b1   : > { %5698 = vmatpush.bf16.msrb.mxu2 %v7675_v9  ;;  %v8935_v39 = vor.u32 %v10163_v24, %v8934_v23  ;;  %v9946_v45 = vld [vmem:[%s12250_s24 + $0x5dc] sm:$0xf0]  ;;  %v8179_v9 = vor.u32 %v9968_v1, %v8176_v51  ;;  %v9035_v23 = vor.u32 %v10180_v16, %v9032_v42  ;;  %v7726_v24 = vld [vmem:[%s12250_s24 + $0x2f0] sm:$0xf]  ;;  %v8598_v1 = vld [vmem:[%s12250_s24 + $0x9c8] sm:$0xf] }
 0x4b2   : > { %v8016_v51 = vld [vmem:[%s12250_s24 + $0x578] sm:$0xf0]  ;;  %v7942_v16 = vld [vmem:[%s12250_s24 + $0x4b8] sm:$0xf]  ;;  %v9914_v42 = vld [vmem:[%s12250_s24 + $0x4dc] sm:$0xf0] }
 0x4b3   : > { %5735 = vmatpush.bf16.msra.mxu1 %v8715_v18  ;;  %v9192_v18 = vld [vmem:[%s12250_s24 + $0xe98] sm:$0xf0]  ;;  %5894 = vmatmul.bf16.vlgmr.msra.gmra.mxu3 %v12339_v63 }
 0x4b4   : > { %5291 = vmatpush.bf16.msra.mxu0 %v9095_v36  ;;  %5945 = vmatpush.bf16.msrb.mxu3 %v9283_v5  ;;  %v9195_v26 = vor.u32 %v10220_v17, %v9192_v18  ;;  %v8158_v36 = vld [vmem:[%s12250_s24 + $0x658] sm:$0xf]  ;;  %v8038_v17 = vld [vmem:[%s12250_s24 + $0x568] sm:$0xf]  ;;  %v9936_v18 = vld [vmem:[%s12250_s24 + $0x58c] sm:$0xf0] }
 0x4b5   : > { %5743 = vmatpush.bf16.msra.mxu2 %v9235_v14  ;;  %v8159_v54 = vor.u32 %v9966_v38, %v8158_v36  ;;  %v8136_v14 = vld [vmem:[%s12250_s24 + $0x668] sm:$0xf0]  ;;  %v9278_v36 = vld [vmem:[%s12250_s24 + $0xf18] sm:$0xf]  ;;  %v10246_v38 = vld [vmem:[%s12250_s24 + $0xf3c] sm:$0xf0] }
 0x4b6   : > { %5699 = vmatmul.bf16.vlgmr.msrb.gmra.mxu2 %v12494_v21  ;;  %v9279_v57 = vor.u32 %v10246_v38, %v9278_v36 }
 0x4b7   : > { %5736 = vmatpush.bf16.msra.mxu1 %v8675_v32  ;;  %v12883_v32 = vpop.f32.mrf.mxu3 }
 0x4b8   : > { %5292 = vmatpush.bf16.msra.mxu0 %v9055_v41  ;;  %5964 = vmatpush.bf16.msra.mxu3 %v7967_v13  ;;  %v8219_v41 = vor.u32 %v9978_v48, %v8216_v55  ;;  %v9867_v13 = vld [vmem:[%s12250_s24 + $0x364] sm:$0xf0]  ;;  %v7686_v48 = vld [vmem:[%s12250_s24 + $0x2a0] sm:$0xf]  ;;  %v10160_v55 = vld [vmem:[%s12250_s24 + $0xc94] sm:$0xf] }
 0x4b9   : > { %5744 = vmatpush.bf16.msra.mxu2 %v9195_v26  ;;  %v7767_v19 = vor.u32 %v9867_v13, %v7766_v12  ;;  %v8039_v26 = vor.u32 %v9936_v18, %v8038_v17  ;;  %v10066_v12 = vld [vmem:[%s12250_s24 + $0x99c] sm:$0xf0] }
 0x4bb   : > { %5737 = vmatpush.bf16.msra.mxu1 %v8635_v53  ;;  %v9887_v53 = vld [vmem:[%s12250_s24 + $0x404] sm:$0xf0] }
 0x4bc   : > { %5293 = vmatpush.bf16.msra.mxu0 %v9015_v10  ;;  %5965 = vmatpush.bf16.msra.mxu3 %v7927_v25  ;;  %v7847_v61 = vor.u32 %v9887_v53, %v7846_v44  ;;  %v9958_v10 = vld [vmem:[%s12250_s24 + $0x644] sm:$0xf]  ;;  %v9857_v25 = vld [vmem:[%s12250_s24 + $0x314] sm:$0xf0]  ;;  %v8056_v44 = vld [vmem:[%s12250_s24 + $0x5c8] sm:$0xf0]  ;;  %v7999_v53 = vor.u32 %v9926_v34, %v7998_v33 }
 0x4bd   : > { %5745 = vmatpush.bf16.msra.mxu2 %v9155_v49  ;;  %v8139_v20 = vor.u32 %v9958_v10, %v8136_v14  ;;  %v7727_v35 = vor.u32 %v9857_v25, %v7726_v24  ;;  %v9847_v49 = vld [vmem:[%s12250_s24 + $0x2c4] sm:$0xf0]  ;;  %v7920_v10 = vld [vmem:[%s12250_s24 + $0x4a0] sm:$0xf0]  ;;  %v7880_v24 = vld [vmem:[%s12250_s24 + $0x450] sm:$0xf0] }
 0x4be   : > { %5738 = vmatmul.bf16.vlgmr.msra.gmra.mxu1 %v12385_v60  ;;  %v9918_v14 = vld [vmem:[%s12250_s24 + $0x504] sm:$0xf]  ;;  %v8518_v25 = vld [vmem:[%s12250_s24 + $0x928] sm:$0xf]  ;;  %v9904_v33 = vld [vmem:[%s12250_s24 + $0x48c] sm:$0xf0] }
 0x4bf   : > { %5795 = vmatpush.bf16.msrb.mxu1 %v8279_v62  ;;  %v8118_v62 = vld [vmem:[%s12250_s24 + $0x608] sm:$0xf]  ;;  %v5377_v5 = vpop.f32.mrf.mxu3 }
 0x4c0   : > { %5294 = vmatpush.bf16.msra.mxu0 %v8975_v22  ;;  %5966 = vmatpush.bf16.msra.mxu3 %v7887_v40  ;;  %v8119_v50 = vor.u32 %v9956_v47, %v8118_v62  ;;  %v9948_v22 = vld [vmem:[%s12250_s24 + $0x5f4] sm:$0xf]  ;;  %v9938_v40 = vld [vmem:[%s12250_s24 + $0x5a4] sm:$0xf]  ;;  %v9246_v62 = vld [vmem:[%s12250_s24 + $0xed0] sm:$0xf] }
 0x4c1   : > { %5746 = vmatpush.bf16.msra.mxu2 %v9115_v2  ;;  %v10237_v47 = vld [vmem:[%s12250_s24 + $0xef4] sm:$0xf0]  ;;  %v10076_v2 = vld [vmem:[%s12250_s24 + $0x9ec] sm:$0xf0]  ;;  %v8059_v3 = vor.u32 %v9938_v40, %v8056_v44  ;;  %v9928_v5 = vld [vmem:[%s12250_s24 + $0x554] sm:$0xf] }
 0x4c2   : > { %v8019_v13 = vor.u32 %v9928_v5, %v8016_v51  ;;  %v9126_v40 = vld [vmem:[%s12250_s24 + $0xde0] sm:$0xf]  ;;  %v8478_v44 = vld [vmem:[%s12250_s24 + $0x8d8] sm:$0xf]  ;;  %v7822_v51 = vld [vmem:[%s12250_s24 + $0x3c8] sm:$0xf] }
 0x4c3   : > { %5796 = vmatpush.bf16.msrb.mxu1 %v8239_v15  ;;  %v8079_v15 = vor.u32 %v9946_v45, %v8078_v56  ;;  %9299 = vmatmul.msk.bf16.vlgmr.msrb.gmra.mxu3 %vm1818_vm0, %v12372_v37  ;;  %v8599_v56 = vor.u32 %v10076_v2, %v8598_v1  ;;  %v9901_v45 = vld [vmem:[%s12250_s24 + $0x47c] sm:$0xf]  ;;  %v10197_v1 = vld [vmem:[%s12250_s24 + $0xdb4] sm:$0xf0]  ;;  %v7800_v2 = vld [vmem:[%s12250_s24 + $0x3b0] sm:$0xf0] }
 0x4c4   : > { %5295 = vmatpush.bf16.msra.mxu0 %v8935_v39  ;;  %5967 = vmatpush.bf16.msra.mxu3 %v7847_v61  ;;  %v8099_v39 = vor.u32 %v9948_v22, %v8096_v8  ;;  %v7687_v61 = vor.u32 %v9847_v49, %v7686_v48  ;;  %v7923_v18 = vor.u32 %v9901_v45, %v7920_v10  ;;  %v9166_v22 = vld [vmem:[%s12250_s24 + $0xe30] sm:$0xf]  ;;  %v12970_v48 = vpop.f32.mrf.mxu1  ;;  %v7840_v49 = vld [vmem:[%s12250_s24 + $0x400] sm:$0xf0]  ;;  %v10187_v10 = vld [vmem:[%s12250_s24 + $0xd64] sm:$0xf0] }
 0x4c5   : > { %5747 = vmatpush.bf16.msra.mxu2 %v9075_v11  ;;  %v8558_v11 = vld [vmem:[%s12250_s24 + $0x978] sm:$0xf]  ;;  %v10056_v8 = vld [vmem:[%s12250_s24 + $0x94c] sm:$0xf0] }
 0x4c6   : > { %v8519_v36 = vor.u32 %v10056_v8, %v8518_v25  ;;  %v8358_v25 = vld [vmem:[%s12250_s24 + $0x7e8] sm:$0xf]  ;;  %v10016_v8 = vld [vmem:[%s12250_s24 + $0x80c] sm:$0xf0] }
 0x4c7   : > { %5797 = vmatpush.bf16.msrb.mxu1 %v8199_v27  ;;  %5296 = vmatmul.bf16.vlgmr.msra.gmra.mxu0 %v12553_v43  ;;  %v12922_v27 = vpop.f32.mrf.mxu3 }
 0x4c8   : > { %5340 = vmatpush.bf16.msrb.mxu0 %v8259_v46  ;;  %5968 = vmatpush.bf16.msra.mxu3 %v7807_v7  ;;  %v8995_v46 = vor.u32 %v10170_v28, %v8992_v29  ;;  %v9206_v7 = vld [vmem:[%s12250_s24 + $0xe80] sm:$0xf]  ;;  %v7943_v28 = vor.u32 %v9914_v42, %v7942_v16  ;;  %v7902_v29 = vld [vmem:[%s12250_s24 + $0x468] sm:$0xf]  ;;  %v7782_v16 = vld [vmem:[%s12250_s24 + $0x378] sm:$0xf] }
 0x4c9   : > { %5748 = vmatpush.bf16.msra.mxu2 %v9035_v23  ;;  %v10217_v23 = vld [vmem:[%s12250_s24 + $0xe54] sm:$0xf0]  ;;  %v9874_v42 = vld [vmem:[%s12250_s24 + $0x39c] sm:$0xf0] }
 0x4ca   : > { %v9167_v34 = vor.u32 %v10217_v23, %v9166_v22  ;;  %v9006_v22 = vld [vmem:[%s12250_s24 + $0xcf0] sm:$0xf]  ;;  %v10177_v23 = vld [vmem:[%s12250_s24 + $0xd14] sm:$0xf0] }
 0x4cb   : > { %5798 = vmatpush.bf16.msrb.mxu1 %v8159_v54  ;;  %v8952_v54 = vld [vmem:[%s12250_s24 + $0xcb8] sm:$0xf0] }
 0x4cc   : > { %5341 = vmatpush.bf16.msrb.mxu0 %v8219_v41  ;;  %5969 = vmatpush.bf16.msra.mxu3 %v7767_v19  ;;  %v7960_v41 = vld [vmem:[%s12250_s24 + $0x4f0] sm:$0xf0]  ;;  %v8955_v4 = vor.u32 %v10160_v55, %v8952_v54  ;;  %v8559_v19 = vor.u32 %v10066_v12, %v8558_v11  ;;  %v7903_v55 = vor.u32 %v9904_v33, %v7902_v29  ;;  %v7862_v54 = vld [vmem:[%s12250_s24 + $0x418] sm:$0xf]  ;;  %v5260_v11 = vpop.f32.mrf.mxu1  ;;  %v7760_v12 = vld [vmem:[%s12250_s24 + $0x360] sm:$0xf0] }
 0x4cd   : > { %5749 = vmatpush.bf16.msra.mxu2 %v8995_v46  ;;  %v7963_v6 = vor.u32 %v9911_v58, %v7960_v41  ;;  %v10207_v46 = vld [vmem:[%s12250_s24 + $0xe04] sm:$0xf0]  ;;  %v9086_v41 = vld [vmem:[%s12250_s24 + $0xd90] sm:$0xf]  ;;  %v9007_v33 = vor.u32 %v10177_v23, %v9006_v22  ;;  %v7600_v11 = vld [vmem:[%s12250_s24 + $0x220] sm:$0xf0] }
 0x4ce   : > { %v9127_v58 = vor.u32 %v10207_v46, %v9126_v40  ;;  %v9864_v29 = vld [vmem:[%s12250_s24 + $0x34c] sm:$0xf0]  ;;  %v7680_v40 = vld [vmem:[%s12250_s24 + $0x2c0] sm:$0xf0]  ;;  %v8966_v46 = vld [vmem:[%s12250_s24 + $0xca0] sm:$0xf] }
 0x4cf   : > { %5799 = vmatpush.bf16.msrb.mxu1 %v8119_v50  ;;  %v9247_v50 = vor.u32 %v10237_v47, %v9246_v62  ;;  %v5442_v59 = vpop.f32.mrf.mxu3  ;;  %v9160_v22 = vld [vmem:[%s12250_s24 + $0xe50] sm:$0xf0] }
 0x4d0   : > { %5342 = vmatpush.bf16.msrb.mxu0 %v8179_v9  ;;  %5970 = vmatpush.bf16.msra.mxu3 %v7727_v35  ;;  %v10227_v9 = vld [vmem:[%s12250_s24 + $0xea4] sm:$0xf0]  ;;  %v9087_v59 = vor.u32 %v10197_v1, %v9086_v41  ;;  %v9831_v41 = vld [vmem:[%s12250_s24 + $0x24c] sm:$0xf]  ;;  %v7640_v1 = vld [vmem:[%s12250_s24 + $0x270] sm:$0xf0] }
 0x4d1   : > { %5750 = vmatpush.bf16.msra.mxu2 %v8955_v4  ;;  %v9207_v17 = vor.u32 %v10227_v9, %v9206_v7  ;;  %v10036_v4 = vld [vmem:[%s12250_s24 + $0x8ac] sm:$0xf0]  ;;  %v9861_v7 = vld [vmem:[%s12250_s24 + $0x33c] sm:$0xf]  ;;  %v9046_v9 = vld [vmem:[%s12250_s24 + $0xd40] sm:$0xf] }
 0x4d2   : > { %v10052_v23 = vld [vmem:[%s12250_s24 + $0x934] sm:$0xf] }
 0x4d3   : > { %5800 = vmatpush.bf16.msrb.mxu1 %v8079_v15  ;;  %v7976_v15 = vld [vmem:[%s12250_s24 + $0x528] sm:$0xf0] }
 0x4d4   : > { %5343 = vmatpush.bf16.msrb.mxu0 %v8139_v20  ;;  %5971 = vmatpush.bf16.msra.mxu3 %v7687_v61  ;;  %v9891_v20 = vld [vmem:[%s12250_s24 + $0x42c] sm:$0xf] }
 0x4d5   : > { %5808 = vmatpush.bf16.msrb.mxu2 %v8599_v56  ;;  %v7883_v35 = vor.u32 %v9891_v20, %v7880_v24  ;;  %v9871_v61 = vld [vmem:[%s12250_s24 + $0x38c] sm:$0xf]  ;;  %v7720_v24 = vld [vmem:[%s12250_s24 + $0x310] sm:$0xf0] }
 0x4d6   : > { %5751 = vmatmul.bf16.vlgmr.msra.gmra.mxu2 %v12553_v43  ;;  %v9851_v20 = vld [vmem:[%s12250_s24 + $0x2ec] sm:$0xf] }
 0x4d7   : > { %5801 = vmatpush.bf16.msrb.mxu1 %v8039_v26  ;;  %5972 = vmatmul.bf16.vlgmr.msra.gmra.mxu3 %v12494_v21  ;;  %v7979_v26 = vor.u32 %v9918_v14, %v7976_v15  ;;  %v12965_v38 = vpop.f32.mrf.mxu3  ;;  %v10026_v14 = vld [vmem:[%s12250_s24 + $0x85c] sm:$0xf0] }
 0x4d8   : > { %5344 = vmatpush.bf16.msrb.mxu0 %v8099_v39  ;;  %6016 = vmatpush.bf16.msrb.mxu3 %v9247_v50  ;;  %v9881_v39 = vld [vmem:[%s12250_s24 + $0x3dc] sm:$0xf]  ;;  %v9884_v50 = vld [vmem:[%s12250_s24 + $0x3ec] sm:$0xf0] }
 0x4d9   : > { %5809 = vmatpush.bf16.msrb.mxu2 %v8559_v19  ;;  %v7843_v62 = vor.u32 %v9881_v39, %v7840_v49  ;;  %v7823_v15 = vor.u32 %v9884_v50, %v7822_v51  ;;  %v10167_v49 = vld [vmem:[%s12250_s24 + $0xcc4] sm:$0xf0] }
 0x4db   : > { %5802 = vmatpush.bf16.msrb.mxu1 %v7999_v53  ;;  %v10046_v53 = vld [vmem:[%s12250_s24 + $0x8fc] sm:$0xf0] }
 0x4dc   : > { %5345 = vmatpush.bf16.msrb.mxu0 %v8059_v3  ;;  %6017 = vmatpush.bf16.msrb.mxu3 %v9207_v17  ;;  %v8479_v47 = vor.u32 %v10046_v53, %v8478_v44  ;;  %v8438_v3 = vld [vmem:[%s12250_s24 + $0x888] sm:$0xf]  ;;  %v9047_v17 = vor.u32 %v10187_v10, %v9046_v9  ;;  %v13010_v44 = vpop.f32.mrf.mxu1  ;;  %v8318_v53 = vld [vmem:[%s12250_s24 + $0x798] sm:$0xf]  ;;  %v9821_v10 = vld [vmem:[%s12250_s24 + $0x1fc] sm:$0xf] }
 0x4dd   : > { %5810 = vmatpush.bf16.msrb.mxu2 %v8519_v36  ;;  %v8439_v56 = vor.u32 %v10036_v4, %v8438_v3  ;;  %v8359_v36 = vor.u32 %v10016_v8, %v8358_v25  ;;  %v9854_v3 = vld [vmem:[%s12250_s24 + $0x2fc] sm:$0xf0]  ;;  %v9811_v8 = vld [vmem:[%s12250_s24 + $0x1ac] sm:$0xf] }
 0x4de   : > { %5803 = vmatmul.bf16.vlgmr.msrb.gmra.mxu1 %v12339_v63 }
 0x4df   : > { %5854 = vmatpush.bf16.msra.mxu1 %v9279_v57  ;;  %v9894_v57 = vld [vmem:[%s12250_s24 + $0x43c] sm:$0xf0]  ;;  %v5494_v45 = vpop.f32.mrf.mxu3 }
 0x4e0   : > { %5346 = vmatpush.bf16.msrb.mxu0 %v8019_v13  ;;  %6018 = vmatpush.bf16.msrb.mxu3 %v9167_v34  ;;  %v7863_v5 = vor.u32 %v9894_v57, %v7862_v54  ;;  %v8398_v13 = vld [vmem:[%s12250_s24 + $0x838] sm:$0xf]  ;;  %v9841_v34 = vld [vmem:[%s12250_s24 + $0x29c] sm:$0xf]  ;;  %v10231_v54 = vld [vmem:[%s12250_s24 + $0xecc] sm:$0xf] }
 0x4e1   : > { %5811 = vmatpush.bf16.msrb.mxu2 %v8479_v47  ;;  %v8399_v19 = vor.u32 %v10026_v14, %v8398_v13  ;;  %v9240_v57 = vld [vmem:[%s12250_s24 + $0xef0] sm:$0xf0]  ;;  %v7683_v4 = vor.u32 %v9841_v34, %v7680_v40  ;;  %v10062_v45 = vld [vmem:[%s12250_s24 + $0x984] sm:$0xf]  ;;  %v9844_v13 = vld [vmem:[%s12250_s24 + $0x2ac] sm:$0xf0] }
 0x4e2   : > { %v9243_v51 = vor.u32 %v10231_v54, %v9240_v57  ;;  %v7520_v54 = vld [vmem:[%s12250_s24 + $0x180] sm:$0xf0] }
 0x4e3   : > { %5873 = vmatpush.bf16.msrb.mxu1 %v7963_v6  ;;  %v7803_v6 = vor.u32 %v9871_v61, %v7800_v2  ;;  %v8967_v61 = vor.u32 %v10167_v49, %v8966_v46  ;;  %v7702_v2 = vld [vmem:[%s12250_s24 + $0x2d8] sm:$0xf]  ;;  %v9120_v46 = vld [vmem:[%s12250_s24 + $0xe00] sm:$0xf0] }
 0x4e4   : > { %5347 = vmatpush.bf16.msrb.mxu0 %v7979_v26  ;;  %6019 = vmatpush.bf16.msrb.mxu3 %v9127_v58  ;;  %v7783_v26 = vor.u32 %v9874_v42, %v7782_v16  ;;  %v10072_v58 = vld [vmem:[%s12250_s24 + $0x9d4] sm:$0xf]  ;;  %v7703_v9 = vor.u32 %v9854_v3, %v7702_v2  ;;  %v9222_v16 = vld [vmem:[%s12250_s24 + $0xeb8] sm:$0xf]  ;;  %v10234_v42 = vld [vmem:[%s12250_s24 + $0xedc] sm:$0xf0] }
 0x4e5   : > { %5812 = vmatpush.bf16.msrb.mxu2 %v8439_v56  ;;  %v9200_v56 = vld [vmem:[%s12250_s24 + $0xea0] sm:$0xf0]  ;;  %v10191_v2 = vld [vmem:[%s12250_s24 + $0xd8c] sm:$0xf] }
 0x4e6   : > { %v10042_v49 = vld [vmem:[%s12250_s24 + $0x8e4] sm:$0xf] }
 0x4e7   : > { %5874 = vmatpush.bf16.msrb.mxu1 %v7923_v18  ;;  %5348 = vmatmul.bf16.vlgmr.msrb.gmra.mxu0 %v12339_v63  ;;  %v7763_v18 = vor.u32 %v9861_v7, %v7760_v12  ;;  %v13005_v39 = vpop.f32.mrf.mxu3  ;;  %v8568_v7 = vld [vmem:[%s12250_s24 + $0x9a8] sm:$0xf0]  ;;  %v7662_v12 = vld [vmem:[%s12250_s24 + $0x288] sm:$0xf] }
 0x4e8   : > { %5418 = vmatpush.bf16.msra.mxu0 %v7943_v28  ;;  %6020 = vmatpush.bf16.msrb.mxu3 %v9087_v59  ;;  %v7742_v28 = vld [vmem:[%s12250_s24 + $0x328] sm:$0xf]  ;;  %v10221_v59 = vld [vmem:[%s12250_s24 + $0xe7c] sm:$0xf]  ;;  %v7663_v25 = vor.u32 %v9844_v13, %v7662_v12  ;;  %v9040_v13 = vld [vmem:[%s12250_s24 + $0xd60] sm:$0xf0] }
 0x4e9   : > { %5813 = vmatpush.bf16.msrb.mxu2 %v8399_v19  ;;  %v7743_v47 = vor.u32 %v9864_v29, %v7742_v28  ;;  %v10211_v19 = vld [vmem:[%s12250_s24 + $0xe2c] sm:$0xf]  ;;  %v9223_v28 = vor.u32 %v10234_v42, %v9222_v16  ;;  %v9182_v29 = vld [vmem:[%s12250_s24 + $0xe68] sm:$0xf]  ;;  %v9781_v16 = vld [vmem:[%s12250_s24 + $0xbc] sm:$0xf] }
 0x4ea   : > { %v9163_v34 = vor.u32 %v10211_v19, %v9160_v22  ;;  %v7440_v42 = vld [vmem:[%s12250_s24 + $0xe0] sm:$0xf0]  ;;  %v10194_v19 = vld [vmem:[%s12250_s24 + $0xd9c] sm:$0xf0] }
 0x4eb   : > { %5875 = vmatpush.bf16.msrb.mxu1 %v7883_v35  ;;  %v7723_v35 = vor.u32 %v9851_v20, %v7720_v24  ;;  %v7603_v20 = vor.u32 %v9821_v10, %v7600_v11  ;;  %v8528_v24 = vld [vmem:[%s12250_s24 + $0x958] sm:$0xf0] }
 0x4ec   : > { %5419 = vmatpush.bf16.msra.mxu0 %v7903_v55  ;;  %6021 = vmatpush.bf16.msrb.mxu3 %v9047_v17  ;;  %v10006_v55 = vld [vmem:[%s12250_s24 + $0x7bc] sm:$0xf0]  ;;  %v9203_v17 = vor.u32 %v10221_v59, %v9200_v56  ;;  %v9791_v59 = vld [vmem:[%s12250_s24 + $0x10c] sm:$0xf]  ;;  %v10181_v11 = vld [vmem:[%s12250_s24 + $0xd3c] sm:$0xf] }
 0x4ed   : > { %5814 = vmatpush.bf16.msrb.mxu2 %v8359_v36  ;;  %v10201_v36 = vld [vmem:[%s12250_s24 + $0xddc] sm:$0xf] }
 0x4ee   : > { %9298 = vmatmul.msk.bf16.vlgmr.msra.gmra.mxu1 %vm1818_vm0, %v12372_v37 }
 0x4ef   : > { %5876 = vmatpush.bf16.msrb.mxu1 %v7843_v62  ;;  %v8608_v62 = vld [vmem:[%s12250_s24 + $0x9f8] sm:$0xf0]  ;;  %v5533_v14 = vpop.f32.mrf.mxu3 }
 0x4f0   : > { %5420 = vmatpush.bf16.msra.mxu0 %v7863_v5  ;;  %6022 = vmatpush.bf16.msrb.mxu3 %v9007_v33  ;;  %v8319_v5 = vor.u32 %v10006_v55, %v8318_v53  ;;  %v8611_v50 = vor.u32 %v10072_v58, %v8608_v62  ;;  %v10224_v33 = vld [vmem:[%s12250_s24 + $0xe8c] sm:$0xf0]  ;;  %v8488_v53 = vld [vmem:[%s12250_s24 + $0x908] sm:$0xf0]  ;;  %v9801_v55 = vld [vmem:[%s12250_s24 + $0x15c] sm:$0xf] }
 0x4f1   : > { %v9183_v57 = vor.u32 %v10224_v33, %v9182_v29  ;;  %v9142_v58 = vld [vmem:[%s12250_s24 + $0xe18] sm:$0xf]  ;;  %v10214_v62 = vld [vmem:[%s12250_s24 + $0xe3c] sm:$0xf0]  ;;  %v7523_v3 = vor.u32 %v9801_v55, %v7520_v54  ;;  %v10022_v14 = vld [vmem:[%s12250_s24 + $0x844] sm:$0xf] }
 0x4f2   : > { %5815 = vmatpush.bf16.msrb.mxu2 %v8319_v5  ;;  %v10032_v5 = vld [vmem:[%s12250_s24 + $0x894] sm:$0xf]  ;;  %v9143_v56 = vor.u32 %v10214_v62, %v9142_v58  ;;  %v8368_v29 = vld [vmem:[%s12250_s24 + $0x818] sm:$0xf0]  ;;  %v10002_v62 = vld [vmem:[%s12250_s24 + $0x7a4] sm:$0xf] }
 0x4f3   : > { %5877 = vmatpush.bf16.msrb.mxu1 %v7803_v6  ;;  %v7643_v6 = vor.u32 %v9831_v41, %v7640_v1  ;;  %v10161_v54 = vld [vmem:[%s12250_s24 + $0xc9c] sm:$0xf] }
 0x4f4   : > { %5421 = vmatpush.bf16.msra.mxu0 %v7823_v15  ;;  %6023 = vmatpush.bf16.msrb.mxu3 %v8967_v61  ;;  %v5312_v15 = vpop.f32.mrf.mxu1  ;;  %v8491_v61 = vor.u32 %v10042_v49, %v8488_v53  ;;  %v10184_v49 = vld [vmem:[%s12250_s24 + $0xd4c] sm:$0xf0] }
 0x4f5   : > { %5816 = vmatmul.bf16.vlgmr.msrb.gmra.mxu2 %v12282_v52  ;;  %v8408_v15 = vld [vmem:[%s12250_s24 + $0x868] sm:$0xf0] }
 0x4f6   : > { %5860 = vmatpush.bf16.msra.mxu2 %v7643_v6  ;;  %v7480_v6 = vld [vmem:[%s12250_s24 + $0x130] sm:$0xf0]  ;;  %v8411_v22 = vor.u32 %v10022_v14, %v8408_v15 }
 0x4f7   : > { %5878 = vmatpush.bf16.msrb.mxu1 %v7763_v18  ;;  %v8571_v18 = vor.u32 %v10062_v45, %v8568_v7  ;;  %6024 = vmatmul.bf16.vlgmr.msrb.gmra.mxu3 %v12553_v43  ;;  %v13052_v41 = vpop.f32.mrf.mxu3  ;;  %v9102_v45 = vld [vmem:[%s12250_s24 + $0xdc8] sm:$0xf]  ;;  %v10204_v7 = vld [vmem:[%s12250_s24 + $0xdec] sm:$0xf0]  ;;  %v7483_v12 = vor.u32 %v9791_v59, %v7480_v6  ;;  %v8920_v59 = vld [vmem:[%s12250_s24 + $0xc70] sm:$0xf0] }
 0x4f8   : > { %5422 = vmatpush.bf16.msra.mxu0 %v7783_v26  ;;  %6081 = vmatpush.bf16.msra.mxu3 %v8611_v50  ;;  %v7560_v26 = vld [vmem:[%s12250_s24 + $0x1d0] sm:$0xf0]  ;;  %v13061_v50 = vpop.f32.mrf.mxu2  ;;  %v8982_v6 = vld [vmem:[%s12250_s24 + $0xcd8] sm:$0xf] }
 0x4f9   : > { %v7563_v40 = vor.u32 %v9811_v8, %v7560_v26  ;;  %v7443_v8 = vor.u32 %v9781_v16, %v7440_v42  ;;  %v9000_v26 = vld [vmem:[%s12250_s24 + $0xd10] sm:$0xf0]  ;;  %v8566_v16 = vld [vmem:[%s12250_s24 + $0x980] sm:$0xf]  ;;  %v10067_v42 = vld [vmem:[%s12250_s24 + $0x9a4] sm:$0xf0] }
 0x4fa   : > { %5861 = vmatpush.bf16.msra.mxu2 %v7603_v20  ;;  %v9043_v20 = vor.u32 %v10181_v11, %v9040_v13  ;;  %v10255_v14 = vld [vmem:[%s13115_s29 + $0x38] sm:$0xff] }
 0x4fb   : > { %5879 = vmatpush.bf16.msrb.mxu1 %v7723_v35  ;;  %v8531_v35 = vor.u32 %v10052_v23, %v8528_v24 }
 0x4fc   : > { %5423 = vmatpush.bf16.msra.mxu0 %v7743_v47  ;;  %6082 = vmatpush.bf16.msra.mxu3 %v8571_v18  ;;  %v9123_v47 = vor.u32 %v10201_v36, %v9120_v46  ;;  %v13054_v1 = vpop.f32.mrf.mxu1  ;;  %v9062_v18 = vld [vmem:[%s12250_s24 + $0xd78] sm:$0xf]  ;;  %v7400_v36 = vld [vmem:[%s12250_s24 + $0x90] sm:$0xf0]  ;;  %v9022_v46 = vld [vmem:[%s12250_s24 + $0xd28] sm:$0xf] }
 0x4fe   : > { %5862 = vmatpush.bf16.msra.mxu2 %v7563_v40  ;;  %v9063_v40 = vor.u32 %v10194_v19, %v9062_v18  ;;  %v10141_v18 = vld [vmem:[%s12250_s24 + $0xbfc] sm:$0xf]  ;;  %v8880_v19 = vld [vmem:[%s12250_s24 + $0xc20] sm:$0xf0] }
 0x4ff   : > { %5880 = vmatpush.bf16.msrb.mxu1 %v7683_v4  ;;  %v9080_v4 = vld [vmem:[%s12250_s24 + $0xdb0] sm:$0xf0]  ;;  %v5585_v23 = vpop.f32.mrf.mxu3 }
 0x500   : > { %5424 = vmatpush.bf16.msra.mxu0 %v7703_v9  ;;  %6083 = vmatpush.bf16.msra.mxu3 %v8531_v35  ;;  %v9083_v9 = vor.u32 %v10191_v2, %v9080_v4  ;;  %v5234_v33 = vpop.f32.mrf.mxu2  ;;  %v9771_v35 = vld [vmem:[%s12250_s24 + $0x6c] sm:$0xf]  ;;  %v7360_v2 = vld [vmem:[%s12250_s24 + $0x40] sm:$0xf0]  ;;  %v10077_v4 = vld [vmem:[%s12250_s24 + $0x9f4] sm:$0xf0] }
 0x501   : > { %v7403_v58 = vor.u32 %v9771_v35, %v7400_v36  ;;  %v10069_v23 = vld [vmem:[%s12250_s24 + $0x9bc] sm:$0xf]  ;;  %v10131_v36 = vld [vmem:[%s12250_s24 + $0xbac] sm:$0xf] }
 0x502   : > { %5881 = vmatmul.bf16.vlgmr.msrb.gmra.mxu1 %v12494_v21  ;;  %5863 = vmatpush.bf16.msra.mxu2 %v7523_v3  ;;  %v8606_v3 = vld [vmem:[%s12250_s24 + $0x9d0] sm:$0xf] }
 0x503   : > { %5925 = vmatpush.bf16.msra.mxu1 %v9243_v51  ;;  %v8448_v51 = vld [vmem:[%s12250_s24 + $0x8b8] sm:$0xf0] }
 0x504   : > { %5425 = vmatpush.bf16.msra.mxu0 %v7663_v25  ;;  %6084 = vmatpush.bf16.msra.mxu3 %v8491_v61  ;;  %v8451_v10 = vor.u32 %v10032_v5, %v8448_v51  ;;  %v5364_v24 = vpop.f32.mrf.mxu1  ;;  %v10171_v25 = vld [vmem:[%s12250_s24 + $0xcec] sm:$0xf]  ;;  %v9761_v61 = vld [vmem:[%s12250_s24 + $0x1c] sm:$0xf]  ;;  %v9023_v5 = vor.u32 %v10184_v49, %v9022_v46 }
 0x505   : > { %v9003_v53 = vor.u32 %v10171_v25, %v9000_v26  ;;  %v10151_v51 = vld [vmem:[%s12250_s24 + $0xc4c] sm:$0xf]  ;;  %v7363_v11 = vor.u32 %v9761_v61, %v7360_v2  ;;  %v8584_v24 = vld [vmem:[%s12250_s24 + $0x9e0] sm:$0xf0]  ;;  %v8567_v25 = vor.u32 %v10067_v42, %v8566_v16  ;;  %v8883_v26 = vor.u32 %v10141_v18, %v8880_v19  ;;  %v8464_v18 = vld [vmem:[%s12250_s24 + $0x8f0] sm:$0xf0] }
 0x506   : > { %5864 = vmatpush.bf16.msra.mxu2 %v7483_v12  ;;  %v8607_v12 = vor.u32 %v10077_v4, %v8606_v3  ;;  %v8923_v15 = vor.u32 %v10151_v51, %v8920_v59  ;;  %v8587_v35 = vor.u32 %v10069_v23, %v8584_v24  ;;  %v10121_v3 = vld [vmem:[%s12250_s24 + $0xb5c] sm:$0xf]  ;;  %v8800_v4 = vld [vmem:[%s12250_s24 + $0xb80] sm:$0xf0]  ;;  %v10027_v23 = vld [vmem:[%s12250_s24 + $0x864] sm:$0xf0] }
 0x507   : > { %5926 = vmatpush.bf16.msra.mxu1 %v9203_v17  ;;  %5426 = vmatmul.bf16.vlgmr.msra.gmra.mxu0 %v12494_v21  ;;  %v9103_v17 = vor.u32 %v10204_v7, %v9102_v45  ;;  %v8504_v51 = vld [vmem:[%s12250_s24 + $0x940] sm:$0xf0]  ;;  %v13180_v42 = vld [vmem:[%s13167_s28] sm:$0xff] }
 0x508   : > { %5470 = vmatpush.bf16.msrb.mxu0 %v9223_v28  ;;  %6085 = vmatpush.bf16.msra.mxu3 %v8451_v10  ;;  %v10012_v28 = vld [vmem:[%s12250_s24 + $0x7f4] sm:$0xf]  ;;  %v13125_v13 = vpop.f32.mrf.mxu2  ;;  %v2727_v24 = vperm.slane %v13180_v42, 1 }
 0x509   : > { %v8371_v55 = vor.u32 %v10012_v28, %v8368_v29  ;;  %v8526_v28 = vld [vmem:[%s12250_s24 + $0x930] sm:$0xf]  ;;  %v10057_v29 = vld [vmem:[%s12250_s24 + $0x954] sm:$0xf0] }
 0x50a   : > { %5865 = vmatpush.bf16.msra.mxu2 %v7443_v8  ;;  %v10254_v8 = vld [vmem:[%s13115_s29 + $0x30] sm:$0xff] }
 0x50b   : > { %5927 = vmatpush.bf16.msra.mxu1 %v9163_v34  ;;  %v13095_v34 = vpop.f32.mrf.mxu0 }
 0x50c   : > { %5471 = vmatpush.bf16.msrb.mxu0 %v9183_v57  ;;  %7132 = vst.msk [vmem:[%s1599_s18] sm:$0xff] %vm7130_vm6, %v13095_v34  ;;  %6086 = vmatpush.bf16.msra.mxu3 %v8411_v22  ;;  %v8960_v57 = vld [vmem:[%s12250_s24 + $0xcc0] sm:$0xf0]  ;;  %v13123_v10 = vpop.f32.mrf.mxu1  ;;  %v10164_v22 = vld [vmem:[%s12250_s24 + $0xcac] sm:$0xf0]  ;;  %s13526_s18 = scalar_lea.vmem %s13770_s5, %s13786_s15 }
 0x50d   : > { %v8963_v45 = vor.u32 %v10161_v54, %v8960_v57  ;;  %v8527_v54 = vor.u32 %v10057_v29, %v8526_v28  ;;  %v8720_v28 = vld [vmem:[%s12250_s24 + $0xae0] sm:$0xf0]  ;;  %v10029_v29 = vld [vmem:[%s12250_s24 + $0x87c] sm:$0xf] }
 0x50e   : > { %5866 = vmatpush.bf16.msra.mxu2 %v7403_v58  ;;  %v10253_v58 = vld [vmem:[%s13115_s29 + $0x28] sm:$0xff] }
 0x50f   : > { %5928 = vmatpush.bf16.msra.mxu1 %v9123_v47  ;;  %v8328_v47 = vld [vmem:[%s12250_s24 + $0x7c8] sm:$0xf0] }
 0x510   : > { %5472 = vmatpush.bf16.msrb.mxu0 %v9143_v56  ;;  %v10174_v56 = vld [vmem:[%s12250_s24 + $0xcfc] sm:$0xf0]  ;;  %6087 = vmatpush.bf16.msra.mxu3 %v8371_v55  ;;  %v8331_v7 = vor.u32 %v10002_v62, %v8328_v47  ;;  %v8544_v55 = vld [vmem:[%s12250_s24 + $0x990] sm:$0xf0]  ;;  %v5286_v57 = vpop.f32.mrf.mxu2  ;;  %v10047_v47 = vld [vmem:[%s12250_s24 + $0x904] sm:$0xf0] }
 0x511   : > { %v8486_v62 = vld [vmem:[%s12250_s24 + $0x8e0] sm:$0xf]  ;;  %v10091_v57 = vld [vmem:[%s12250_s24 + $0xa6c] sm:$0xf] }
 0x512   : > { %5867 = vmatpush.bf16.msra.mxu2 %v7363_v11  ;;  %v8487_v59 = vor.u32 %v10047_v47, %v8486_v62 }
 0x513   : > { %5929 = vmatpush.bf16.msra.mxu1 %v9083_v9  ;;  %v13121_v9 = vpop.f32.mrf.mxu3 }
 0x514   : > { %5473 = vmatpush.bf16.msrb.mxu0 %v9103_v17  ;;  %v8983_v17 = vor.u32 %v10174_v56, %v8982_v6  ;;  %6088 = vmatpush.bf16.msra.mxu3 %v8331_v7  ;;  %v5403_v49 = vpop.f32.mrf.mxu1  ;;  %v10252_v6 = vld [vmem:[%s13115_s29 + $0x20] sm:$0xff]  ;;  %v8446_v56 = vld [vmem:[%s12250_s24 + $0x890] sm:$0xf]  ;;  %v8803_v7 = vor.u32 %v10121_v3, %v8800_v4 }
 0x515   : > { %5868 = vmatmul.bf16.vlgmr.msra.gmra.mxu2 %v12341_v0  ;;  %v5324_v49 = vadd.f32 %v12842_v30, %v2727_v24  ;;  %v10249_v4 = vld [vmem:[%s13115_s29 + $0x8] sm:$0xff]  ;;  %v2726_v24 = vperm.slane %v13180_v42, 0 }
 0x516   : > { %5912 = vmatpush.bf16.msrb.mxu2 %v8923_v15 }
 0x517   : > { %5930 = vmatpush.bf16.msra.mxu1 %v9043_v20  ;;  %v8942_v20 = vld [vmem:[%s12250_s24 + $0xc88] sm:$0xf]  ;;  %6089 = vmatmul.bf16.vlgmr.msra.gmra.mxu3 %v12282_v52 }
 0x518   : > { %5474 = vmatpush.bf16.msrb.mxu0 %v9063_v40  ;;  %6277 = vmatpush.bf16.msrb.mxu3 %v10255_v14  ;;  %v8943_v33 = vor.u32 %v10164_v22, %v8942_v20  ;;  %v8840_v40 = vld [vmem:[%s12250_s24 + $0xbd0] sm:$0xf0]  ;;  %v8406_v22 = vld [vmem:[%s12250_s24 + $0x840] sm:$0xf]  ;;  %v5336_v62 = vpop.f32.mrf.mxu2 }
 0x519   : > { %v8843_v61 = vor.u32 %v10131_v36, %v8840_v40  ;;  %v8760_v14 = vld [vmem:[%s12250_s24 + $0xb30] sm:$0xf0]  ;;  %v10250_v36 = vld [vmem:[%s13115_s29 + $0x10] sm:$0xff]  ;;  %v8366_v40 = vld [vmem:[%s12250_s24 + $0x7f0] sm:$0xf] }
 0x51a   : > { %5913 = vmatpush.bf16.msrb.mxu2 %v8883_v26  ;;  %v10251_v20 = vld [vmem:[%s13115_s29 + $0x18] sm:$0xff]  ;;  %v10101_v26 = vld [vmem:[%s12250_s24 + $0xabc] sm:$0xf] }
 0x51b   : > { %5931 = vmatpush.bf16.msra.mxu1 %v9003_v53  ;;  %v5611_v46 = vpop.f32.mrf.mxu3  ;;  %v10059_v53 = vld [vmem:[%s12250_s24 + $0x96c] sm:$0xf] }
 0x51c   : > { %5475 = vmatpush.bf16.msrb.mxu0 %v9023_v5  ;;  %6278 = vmatpush.bf16.msrb.mxu3 %v10254_v8  ;;  %v8547_v2 = vor.u32 %v10059_v53, %v8544_v55  ;;  %v10049_v5 = vld [vmem:[%s12250_s24 + $0x91c] sm:$0xf]  ;;  %v13177_v16 = vpop.f32.mrf.mxu1  ;;  %v10017_v46 = vld [vmem:[%s12250_s24 + $0x814] sm:$0xf0]  ;;  %v8723_v55 = vor.u32 %v10101_v26, %v8720_v28  ;;  %v9822_v26 = vld [vmem:[%s12250_s24 + $0x204] sm:$0xf] }
 0x51d   : > { %v8507_v11 = vor.u32 %v10049_v5, %v8504_v51  ;;  %v8367_v30 = vor.u32 %v10017_v46, %v8366_v40  ;;  %v8326_v5 = vld [vmem:[%s12250_s24 + $0x7a0] sm:$0xf]  ;;  %v10007_v51 = vld [vmem:[%s12250_s24 + $0x7c4] sm:$0xf0]  ;;  %v7608_v28 = vld [vmem:[%s12250_s24 + $0x228] sm:$0xf0] }
 0x51e   : > { %5914 = vmatpush.bf16.msrb.mxu2 %v8843_v61  ;;  %v10019_v61 = vld [vmem:[%s12250_s24 + $0x82c] sm:$0xf]  ;;  %v8304_v46 = vld [vmem:[%s12250_s24 + $0x7b0] sm:$0xf0] }
 0x51f   : > { %5932 = vmatpush.bf16.msra.mxu1 %v8963_v45  ;;  %v10037_v45 = vld [vmem:[%s12250_s24 + $0x8b4] sm:$0xf0] }
 0x520   : > { %5476 = vmatpush.bf16.msrb.mxu0 %v8983_v17  ;;  %6279 = vmatpush.bf16.msrb.mxu3 %v10253_v58  ;;  %v10039_v17 = vld [vmem:[%s12250_s24 + $0x8cc] sm:$0xf]  ;;  %v8447_v19 = vor.u32 %v10037_v45, %v8446_v56  ;;  %v8680_v58 = vld [vmem:[%s12250_s24 + $0xa90] sm:$0xf0]  ;;  %v7648_v45 = vld [vmem:[%s12250_s24 + $0x278] sm:$0xf0] }
 0x521   : > { %v8467_v8 = vor.u32 %v10039_v17, %v8464_v18  ;;  %v9832_v56 = vld [vmem:[%s12250_s24 + $0x254] sm:$0xf]  ;;  %v8344_v17 = vld [vmem:[%s12250_s24 + $0x800] sm:$0xf0]  ;;  %v8327_v18 = vor.u32 %v10007_v51, %v8326_v5  ;;  %v8206_v5 = vld [vmem:[%s12250_s24 + $0x6b0] sm:$0xf] }
 0x522   : > { %5933 = vmatmul.bf16.vlgmr.msra.gmra.mxu1 %v12553_v43  ;;  %5915 = vmatpush.bf16.msrb.mxu2 %v8803_v7  ;;  %v9977_v51 = vld [vmem:[%s12250_s24 + $0x6d4] sm:$0xf0] }
 0x523   : > { %5990 = vmatpush.bf16.msrb.mxu1 %v8607_v12  ;;  %v10111_v12 = vld [vmem:[%s12250_s24 + $0xb0c] sm:$0xf]  ;;  %v13175_v15 = vpop.f32.mrf.mxu3 }
 0x524   : > { %5477 = vmatpush.bf16.msrb.mxu0 %v8943_v33  ;;  %6280 = vmatpush.bf16.msrb.mxu3 %v10252_v6  ;;  %v8424_v33 = vld [vmem:[%s12250_s24 + $0x8a0] sm:$0xf0]  ;;  %v13196_v53 = vpop.f32.mrf.mxu0  ;;  %v5416_v3 = vpop.f32.mrf.mxu1  ;;  %v13205_v6 = vadd.f32 %v5336_v62, %v5324_v49  ;;  %v8246_v49 = vld [vmem:[%s12250_s24 + $0x700] sm:$0xf]  ;;  %v7611_v62 = vor.u32 %v9822_v26, %v7608_v28  ;;  %v7488_v26 = vld [vmem:[%s12250_s24 + $0x138] sm:$0xf0] }
 0x527   : > { %5991 = vmatpush.bf16.msrb.mxu1 %v8567_v25  ;;  %5478 = vmatmul.bf16.vlgmr.msrb.gmra.mxu0 %v12553_v43  ;;  %v8763_v25 = vor.u32 %v10111_v12, %v8760_v14  ;;  %v10081_v12 = vld [vmem:[%s12250_s24 + $0xa1c] sm:$0xf]  ;;  %v8640_v14 = vld [vmem:[%s12250_s24 + $0xa40] sm:$0xf0] }
 0x528   : > { %5535 = vmatpush.bf16.msra.mxu0 %v8587_v35  ;;  %v8407_v35 = vor.u32 %v10027_v23, %v8406_v22  ;;  %6281 = vmatpush.bf16.msrb.mxu3 %v10251_v20  ;;  %v9997_v20 = vld [vmem:[%s12250_s24 + $0x774] sm:$0xf0]  ;;  %v7651_v23 = vor.u32 %v9832_v56, %v7648_v45 }
 0x529   : > { %5916 = vmatpush.bf16.msrb.mxu2 %v8763_v25  ;;  %v10248_v22 = vld [vmem:[%s13115_s29] sm:$0xff] }
 0x52a   : > { %v9825_v56 = vld [vmem:[%s12250_s24 + $0x214] sm:$0xf0] }
 0x52b   : > { %5992 = vmatpush.bf16.msrb.mxu1 %v8527_v54  ;;  %v8427_v54 = vor.u32 %v10029_v29, %v8424_v33  ;;  %v5663_v47 = vpop.f32.mrf.mxu3  ;;  %v9999_v33 = vld [vmem:[%s12250_s24 + $0x78c] sm:$0xf] }
 0x52c   : > { %5536 = vmatpush.bf16.msra.mxu0 %v8547_v2  ;;  %v8384_v2 = vld [vmem:[%s12250_s24 + $0x850] sm:$0xf0]  ;;  %6282 = vmatpush.bf16.msrb.mxu3 %v10250_v36  ;;  %v5247_v25 = vpop.f32.mrf.mxu0  ;;  %v5338_v36 = vpop.f32.mrf.mxu2  ;;  %v5233_v47 = vadd.f32 %v13061_v50, %v2726_v24 }
 0x52d   : > { %5917 = vmatpush.bf16.msrb.mxu2 %v8723_v55  ;;  %v8387_v7 = vor.u32 %v10019_v61, %v8384_v2  ;;  %v9987_v55 = vld [vmem:[%s12250_s24 + $0x724] sm:$0xf0]  ;;  %v9812_v61 = vld [vmem:[%s12250_s24 + $0x1b4] sm:$0xf]  ;;  %v7568_v2 = vld [vmem:[%s12250_s24 + $0x1d8] sm:$0xf0] }
 0x52e   : > { %v8247_v3 = vor.u32 %v9987_v55, %v8246_v49  ;;  %v7571_v50 = vor.u32 %v9812_v61, %v7568_v2  ;;  %v5246_v45 = vadd.f32 %v13196_v53, %v5233_v47  ;;  %v7550_v53 = vld [vmem:[%s12250_s24 + $0x1a0] sm:$0xf]  ;;  %v7510_v36 = vld [vmem:[%s12250_s24 + $0x150] sm:$0xf]  ;;  %v9782_v55 = vld [vmem:[%s12250_s24 + $0xc4] sm:$0xf] }
 0x52f   : > { %5993 = vmatpush.bf16.msrb.mxu1 %v8487_v59  ;;  %v8683_v59 = vor.u32 %v10091_v57, %v8680_v58  ;;  %v7630_v57 = vld [vmem:[%s12250_s24 + $0x240] sm:$0xf]  ;;  %v9835_v58 = vld [vmem:[%s12250_s24 + $0x264] sm:$0xf0] }
 0x530   : > { %5537 = vmatpush.bf16.msra.mxu0 %v8507_v11  ;;  %v10009_v11 = vld [vmem:[%s12250_s24 + $0x7dc] sm:$0xf]  ;;  %6283 = vmatpush.bf16.msrb.mxu3 %v10249_v4  ;;  %v7631_v4 = vor.u32 %v9835_v58, %v7630_v57  ;;  %v5259_v25 = vadd.f32 %v12970_v48, %v5246_v45  ;;  %v7448_v57 = vld [vmem:[%s12250_s24 + $0xe8] sm:$0xf0]  ;;  %v8086_v2 = vld [vmem:[%s12250_s24 + $0x5c0] sm:$0xf] }
 0x531   : > { %5918 = vmatpush.bf16.msrb.mxu2 %v8683_v59  ;;  %v8347_v29 = vor.u32 %v10009_v11, %v8344_v17  ;;  %v7590_v59 = vld [vmem:[%s12250_s24 + $0x1f0] sm:$0xf]  ;;  %v7528_v11 = vld [vmem:[%s12250_s24 + $0x188] sm:$0xf0] }
 0x532   : > { %v5272_v48 = vadd.f32 %v12799_v31, %v5259_v25  ;;  %v9795_v31 = vld [vmem:[%s12250_s24 + $0x124] sm:$0xf0] }
 0x533   : > { %5994 = vmatpush.bf16.msrb.mxu1 %v8447_v19  ;;  %v8286_v19 = vld [vmem:[%s12250_s24 + $0x750] sm:$0xf]  ;;  %v13220_v40 = vpop.f32.mrf.mxu3 }
 0x534   : > { %5538 = vmatpush.bf16.msra.mxu0 %v8467_v8  ;;  %v8643_v8 = vor.u32 %v10081_v12, %v8640_v14  ;;  %6284 = vmatpush.bf16.msrb.mxu3 %v10248_v22  ;;  %v8207_v12 = vor.u32 %v9977_v51, %v8206_v5  ;;  %v13241_v14 = vpop.f32.mrf.mxu2  ;;  %v7451_v5 = vor.u32 %v9782_v55, %v7448_v57  ;;  %v10247_v55 = vld [vmem:[%s12250_s24 + $0xf44] sm:$0xf0] }
 0x535   : > { %v5285_v51 = vadd.f32 %v13125_v13, %v5272_v48  ;;  %v9286_v48 = vld [vmem:[%s12250_s24 + $0xf20] sm:$0xf] }
 0x536   : > { %5919 = vmatpush.bf16.msrb.mxu2 %v8643_v8  ;;  %v9792_v8 = vld [vmem:[%s12250_s24 + $0x114] sm:$0xf] }
 0x537   : > { %5995 = vmatpush.bf16.msrb.mxu1 %v8407_v35  ;;  %v8287_v35 = vor.u32 %v9997_v20, %v8286_v19  ;;  %v8166_v19 = vld [vmem:[%s12250_s24 + $0x660] sm:$0xf]  ;;  %v9967_v20 = vld [vmem:[%s12250_s24 + $0x684] sm:$0xf0]  ;;  %v7491_v49 = vor.u32 %v9792_v8, %v7488_v26  ;;  %v10152_v26 = vld [vmem:[%s12250_s24 + $0xc54] sm:$0xf] }
 0x538   : > { %5539 = vmatpush.bf16.msra.mxu0 %v8427_v54  ;;  %v13225_v54 = vpop.f32.mrf.mxu1  ;;  %v8167_v28 = vor.u32 %v9967_v20, %v8166_v19  ;;  %v9785_v19 = vld [vmem:[%s12250_s24 + $0xd4] sm:$0xf0] }
 0x539   : > { %5920 = vmatmul.bf16.vlgmr.msrb.gmra.mxu2 %v12385_v60 }
 0x53a   : > { %5977 = vmatpush.bf16.msra.mxu2 %v8287_v35  ;;  %v9957_v35 = vld [vmem:[%s12250_s24 + $0x634] sm:$0xf0] }
 0x53b   : > { %5996 = vmatpush.bf16.msrb.mxu1 %v8367_v30  ;;  %v8307_v30 = vor.u32 %v9999_v33, %v8304_v46  ;;  %v5728_v17 = vpop.f32.mrf.mxu3  ;;  %v8126_v33 = vld [vmem:[%s12250_s24 + $0x610] sm:$0xf]  ;;  %v9805_v46 = vld [vmem:[%s12250_s24 + $0x174] sm:$0xf0] }
 0x53c   : > { %5540 = vmatpush.bf16.msra.mxu0 %v8387_v7  ;;  %v9802_v7 = vld [vmem:[%s12250_s24 + $0x164] sm:$0xf]  ;;  %v8127_v58 = vor.u32 %v9957_v35, %v8126_v33  ;;  %v7511_v61 = vor.u32 %v9805_v46, %v7510_v36  ;;  %v9937_v17 = vld [vmem:[%s12250_s24 + $0x594] sm:$0xf0]  ;;  %v8006_v35 = vld [vmem:[%s12250_s24 + $0x520] sm:$0xf] }
 0x53d   : > { %v7531_v24 = vor.u32 %v9802_v7, %v7528_v11  ;;  %v9775_v46 = vld [vmem:[%s12250_s24 + $0x84] sm:$0xf0] }
 0x53e   : > { %5978 = vmatpush.bf16.msra.mxu2 %v8247_v3 }
 0x53f   : > { %5997 = vmatpush.bf16.msrb.mxu1 %v8327_v18  ;;  %v7591_v18 = vor.u32 %v9825_v56, %v7590_v59  ;;  %v9772_v59 = vld [vmem:[%s12250_s24 + $0x74] sm:$0xf]  ;;  %v7408_v56 = vld [vmem:[%s12250_s24 + $0x98] sm:$0xf0] }
 0x540   : > { %5541 = vmatpush.bf16.msra.mxu0 %v8347_v29  ;;  %v5468_v22 = vpop.f32.mrf.mxu1  ;;  %v7411_v13 = vor.u32 %v9772_v59, %v7408_v56  ;;  %v7968_v59 = vld [vmem:[%s12250_s24 + $0x4f8] sm:$0xf0]  ;;  %v9765_v56 = vld [vmem:[%s12250_s24 + $0x34] sm:$0xf0] }
 0x541   : > { %v9762_v22 = vld [vmem:[%s12250_s24 + $0x24] sm:$0xf] }
 0x542   : > { %5998 = vmatmul.bf16.vlgmr.msrb.gmra.mxu1 %v12282_v52  ;;  %5979 = vmatpush.bf16.msra.mxu2 %v8207_v12  ;;  %v8046_v12 = vld [vmem:[%s12250_s24 + $0x570] sm:$0xf] }
 0x543   : > { %6042 = vmatpush.bf16.msra.mxu1 %v7651_v23  ;;  %v9815_v23 = vld [vmem:[%s12250_s24 + $0x1c4] sm:$0xf0]  ;;  %v13258_v47 = vpop.f32.mrf.mxu3 }
 0x544   : > { %5542 = vmatpush.bf16.msra.mxu0 %v8307_v30  ;;  %v7551_v29 = vor.u32 %v9815_v23, %v7550_v53  ;;  %v9947_v30 = vld [vmem:[%s12250_s24 + $0x5e4] sm:$0xf0]  ;;  %v7368_v53 = vld [vmem:[%s12250_s24 + $0x48] sm:$0xf0]  ;;  %v7390_v23 = vld [vmem:[%s12250_s24 + $0x60] sm:$0xf] }
 0x545   : > { %v8087_v45 = vor.u32 %v9947_v30, %v8086_v2  ;;  %v10142_v2 = vld [vmem:[%s12250_s24 + $0xc04] sm:$0xf]  ;;  %v8888_v30 = vld [vmem:[%s12250_s24 + $0xc28] sm:$0xf0] }
 0x546   : > { %5980 = vmatpush.bf16.msra.mxu2 %v8167_v28  ;;  %v8928_v28 = vld [vmem:[%s12250_s24 + $0xc78] sm:$0xf0] }
 0x547   : > { %6043 = vmatpush.bf16.msra.mxu1 %v7611_v62  ;;  %5543 = vmatmul.bf16.vlgmr.msra.gmra.mxu0 %v12282_v52  ;;  %v5390_v62 = vpop.f32.mrf.mxu2 }
 0x548   : > { %5587 = vmatpush.bf16.msrb.mxu0 %v7631_v4  ;;  %v13262_v3 = vpop.f32.mrf.mxu1  ;;  %v7470_v4 = vld [vmem:[%s12250_s24 + $0x100] sm:$0xf] }
 0x549   : > { %v7471_v11 = vor.u32 %v9795_v31, %v7470_v4  ;;  %v7391_v4 = vor.u32 %v9775_v46, %v7390_v23  ;;  %v7350_v31 = vld [vmem:[%s12250_s24 + $0x10] sm:$0xf]  ;;  %v8830_v46 = vld [vmem:[%s12250_s24 + $0xba0] sm:$0xf] }
 0x54a   : > { %5981 = vmatpush.bf16.msra.mxu2 %v8127_v58  ;;  %v8931_v58 = vor.u32 %v10152_v26, %v8928_v28 }
 0x54b   : > { %6044 = vmatpush.bf16.msra.mxu1 %v7571_v50  ;;  %v5297_v50 = vpop.f32.mrf.mxu0  ;;  %v5780_v8 = vpop.f32.mrf.mxu3 }
 0x54c   : > { %5588 = vmatpush.bf16.msrb.mxu0 %v7591_v18  ;;  %v5298_v7 = vadd.f32 %v5297_v50, %v5285_v51  ;;  %v7430_v18 = vld [vmem:[%s12250_s24 + $0xb0] sm:$0xf]  ;;  %v9912_v51 = vld [vmem:[%s12250_s24 + $0x4d4] sm:$0xf]  ;;  %v8910_v50 = vld [vmem:[%s12250_s24 + $0xc40] sm:$0xf] }
 0x54d   : > { %v7431_v33 = vor.u32 %v9785_v19, %v7430_v18  ;;  %v10132_v18 = vld [vmem:[%s12250_s24 + $0xbb4] sm:$0xf]  ;;  %v8848_v19 = vld [vmem:[%s12250_s24 + $0xbd8] sm:$0xf0]  ;;  %v10145_v8 = vld [vmem:[%s12250_s24 + $0xc14] sm:$0xf0] }
 0x54e   : > { %v5311_v20 = vadd.f32 %v13010_v44, %v5298_v7  ;;  %5982 = vmatpush.bf16.msra.mxu2 %v8087_v45  ;;  %v9927_v44 = vld [vmem:[%s12250_s24 + $0x544] sm:$0xf0]  ;;  %v8891_v7 = vor.u32 %v10142_v2, %v8888_v30  ;;  %v8851_v26 = vor.u32 %v10132_v18, %v8848_v19  ;;  %v8768_v2 = vld [vmem:[%s12250_s24 + $0xb38] sm:$0xf0]  ;;  %v9872_v18 = vld [vmem:[%s12250_s24 + $0x394] sm:$0xf] }
 0x54f   : > { %6045 = vmatpush.bf16.msra.mxu1 %v7531_v24  ;;  %v8047_v24 = vor.u32 %v9937_v17, %v8046_v12  ;;  %v13277_v25 = vpop.f32.mrf.mxu2  ;;  %v10155_v45 = vld [vmem:[%s12250_s24 + $0xc64] sm:$0xf0]  ;;  %v7808_v19 = vld [vmem:[%s12250_s24 + $0x3b8] sm:$0xf0] }
 0x550   : > { %5589 = vmatpush.bf16.msrb.mxu0 %v7551_v29  ;;  %v6133_v29 = vmax.f32 %v5311_v20, 0.0  ;;  %v5520_v36 = vpop.f32.mrf.mxu1  ;;  %v9902_v20 = vld [vmem:[%s12250_s24 + $0x484] sm:$0xf]  ;;  %v8911_v23 = vor.u32 %v10155_v45, %v8910_v50 }
 0x552   : > { %v6143_v57 = vpack.c.bf16 %v6133_v29, %v6133_v29  ;;  %5983 = vmatpush.bf16.msra.mxu2 %v8047_v24  ;;  %v8870_v24 = vld [vmem:[%s12250_s24 + $0xbf0] sm:$0xf]  ;;  %v10122_v29 = vld [vmem:[%s12250_s24 + $0xb64] sm:$0xf] }
 0x553   : > { %6046 = vmatpush.bf16.msra.mxu1 %v7491_v49  ;;  %v7371_v49 = vor.u32 %v9762_v22, %v7368_v53  ;;  %v5299_v62 = vpop.f32.mrf.mxu0  ;;  %v13300_v17 = vpop.f32.mrf.mxu3  ;;  %v7928_v22 = vld [vmem:[%s12250_s24 + $0x4a8] sm:$0xf0]  ;;  %v8871_v36 = vor.u32 %v10145_v8, %v8870_v24 }
 0x554   : > { %5590 = vmatpush.bf16.msrb.mxu0 %v7511_v61  ;;  %v8007_v61 = vor.u32 %v9927_v44, %v8006_v35  ;;  %6285 = vmatmul.bf16.vlgmr.msrb.gmra.mxu3 %v6143_v57  ;;  %v7931_v28 = vor.u32 %v9902_v20, %v7928_v22  ;;  %v9892_v35 = vld [vmem:[%s12250_s24 + $0x434] sm:$0xf]  ;;  %v7888_v44 = vld [vmem:[%s12250_s24 + $0x458] sm:$0xf0]  ;;  %v8750_v20 = vld [vmem:[%s12250_s24 + $0xb00] sm:$0xf] }
 0x555   : > { %v7891_v57 = vor.u32 %v9892_v35, %v7888_v44  ;;  %v10115_v22 = vld [vmem:[%s12250_s24 + $0xb24] sm:$0xf0]  ;;  %v7768_v35 = vld [vmem:[%s12250_s24 + $0x368] sm:$0xf0] }
 0x556   : > { %5984 = vmatpush.bf16.msra.mxu2 %v8007_v61  ;;  %v10112_v61 = vld [vmem:[%s12250_s24 + $0xb14] sm:$0xf] }
 0x557   : > { %6047 = vmatpush.bf16.msra.mxu1 %v7451_v5  ;;  %v9287_v5 = vor.u32 %v10247_v55, %v9286_v48  ;;  %v5455_v12 = vpop.f32.mrf.mxu2  ;;  %v2729_v55 = vperm.slane %v13180_v42, 3  ;;  %v8771_v45 = vor.u32 %v10112_v61, %v8768_v2  ;;  %v8648_v61 = vld [vmem:[%s12250_s24 + $0xa48] sm:$0xf0]  ;;  %v9852_v2 = vld [vmem:[%s12250_s24 + $0x2f4] sm:$0xf] }
 0x558   : > { %5591 = vmatpush.bf16.msrb.mxu0 %v7471_v11  ;;  %v7971_v11 = vor.u32 %v9912_v51, %v7968_v59  ;;  %v13306_v53 = vpop.f32.mrf.mxu1  ;;  %v8790_v59 = vld [vmem:[%s12250_s24 + $0xb50] sm:$0xf]  ;;  %v8728_v12 = vld [vmem:[%s12250_s24 + $0xae8] sm:$0xf0] }
 0x559   : > { %5985 = vmatmul.bf16.vlgmr.msra.gmra.mxu2 %v12339_v63 }
 0x55a   : > { %6036 = vmatpush.bf16.msrb.mxu2 %v9287_v5 }
 0x55b   : > { %6048 = vmatpush.bf16.msra.mxu1 %v7411_v13  ;;  %v7351_v13 = vor.u32 %v9765_v56, %v7350_v31  ;;  %v5832_v62 = vpop.f32.mrf.mxu3  ;;  %v7848_v31 = vld [vmem:[%s12250_s24 + $0x408] sm:$0xf0]  ;;  %v10125_v56 = vld [vmem:[%s12250_s24 + $0xb74] sm:$0xf0] }
 0x55c   : > { %5592 = vmatpush.bf16.msrb.mxu0 %v7431_v33  ;;  %v8808_v33 = vld [vmem:[%s12250_s24 + $0xb88] sm:$0xf0]  ;;  %v10082_v62 = vld [vmem:[%s12250_s24 + $0xa24] sm:$0xf] }
 0x55d   : > { %v8811_v48 = vor.u32 %v10122_v29, %v8808_v33  ;;  %v9862_v33 = vld [vmem:[%s12250_s24 + $0x344] sm:$0xf] }
 0x55e   : > { %6055 = vmatpush.bf16.msra.mxu2 %v7971_v11  ;;  %v10102_v11 = vld [vmem:[%s12250_s24 + $0xac4] sm:$0xf] }
 0x55f   : > { %6049 = vmatpush.bf16.msra.mxu1 %v7371_v49  ;;  %v10135_v49 = vld [vmem:[%s12250_s24 + $0xbc4] sm:$0xf0] }
 0x560   : > { %5593 = vmatpush.bf16.msrb.mxu0 %v7391_v4  ;;  %v9882_v4 = vld [vmem:[%s12250_s24 + $0x3e4] sm:$0xf]  ;;  %v5572_v5 = vpop.f32.mrf.mxu1  ;;  %v8831_v51 = vor.u32 %v10135_v49, %v8830_v46  ;;  %v8751_v46 = vor.u32 %v10115_v22, %v8750_v20  ;;  %v8710_v49 = vld [vmem:[%s12250_s24 + $0xab0] sm:$0xf]  ;;  %v10085_v22 = vld [vmem:[%s12250_s24 + $0xa34] sm:$0xf0] }
 0x561   : > { %v10095_v5 = vld [vmem:[%s12250_s24 + $0xa84] sm:$0xf0]  ;;  %v8630_v20 = vld [vmem:[%s12250_s24 + $0xa10] sm:$0xf] }
 0x562   : > { %6050 = vmatmul.bf16.vlgmr.msra.gmra.mxu1 %v12341_v0  ;;  %6056 = vmatpush.bf16.msra.mxu2 %v7931_v28  ;;  %v8688_v28 = vld [vmem:[%s12250_s24 + $0xa98] sm:$0xf0] }
 0x563   : > { %6094 = vmatpush.bf16.msrb.mxu1 %v8931_v58  ;;  %v5505_v58 = vpop.f32.mrf.mxu2  ;;  %v13335_v8 = vpop.f32.mrf.mxu3 }
 0x564   : > { %5594 = vmatpush.bf16.msrb.mxu0 %v7351_v13  ;;  %v5506_v30 = vadd.f32 %v5505_v58, %v2729_v55  ;;  %v8791_v13 = vor.u32 %v10125_v56, %v8790_v59  ;;  %v5349_v29 = vpop.f32.mrf.mxu0  ;;  %v7771_v58 = vor.u32 %v9862_v33, %v7768_v35  ;;  %v10271_v56 = vld [vmem:[%s13115_s29 + $0xb8] sm:$0xff]  ;;  %v9208_v35 = vld [vmem:[%s12250_s24 + $0xea8] sm:$0xf0] }
 0x565   : > { %v10222_v33 = vld [vmem:[%s12250_s24 + $0xe84] sm:$0xf] }
 0x566   : > { %v13327_v50 = vadd.f32 %v13262_v3, %v5506_v30  ;;  %6057 = vmatpush.bf16.msra.mxu2 %v7891_v57  ;;  %v8731_v3 = vor.u32 %v10102_v11, %v8728_v12  ;;  %v9842_v11 = vld [vmem:[%s12250_s24 + $0x2a4] sm:$0xf]  ;;  %v7688_v12 = vld [vmem:[%s12250_s24 + $0x2c8] sm:$0xf0] }
 0x567   : > { %6095 = vmatpush.bf16.msrb.mxu1 %v8891_v7  ;;  %5595 = vmatmul.bf16.vlgmr.msrb.gmra.mxu0 %v12341_v0  ;;  %v7851_v7 = vor.u32 %v9882_v4, %v7848_v31  ;;  %v8670_v31 = vld [vmem:[%s12250_s24 + $0xa60] sm:$0xf] }
 0x568   : > { %5639 = vmatpush.bf16.msra.mxu0 %v8911_v23  ;;  %v7811_v23 = vor.u32 %v9872_v18, %v7808_v19  ;;  %v13341_v44 = vpop.f32.mrf.mxu1  ;;  %v8671_v19 = vor.u32 %v10095_v5, %v8670_v31  ;;  %v10268_v31 = vld [vmem:[%s13115_s29 + $0xa0] sm:$0xff]  ;;  %v10407_v5 = vmov 0  }
 0x569   : > { %9300 = vmatmul.msk.bf16.vlgmr.msrb.gmra.mxu2 %vm1818_vm0, %v12372_v37  ;;  %10355 = vset.pattern.permute.xlu1 %v10407_v5 }
 0x56a   : > { %6058 = vmatpush.bf16.msra.mxu2 %v7851_v7  ;;  %10357 = vset.pattern.permute.xlu0 %v10407_v5 }
 0x56b   : > { %6096 = vmatpush.bf16.msrb.mxu1 %v8851_v26  ;;  %v5507_v24 = vpop.f32.mrf.mxu2  ;;  %v10092_v26 = vld [vmem:[%s12250_s24 + $0xa74] sm:$0xf]  ;;  %10356 = vset.pattern.permute.xlu2 %v10407_v5 }
 0x56c   : > { %5640 = vmatpush.bf16.msra.mxu0 %v8871_v36  ;;  %v5350_v36 = vadd.f32 %v5349_v29, %v13205_v6  ;;  %v8691_v55 = vor.u32 %v10092_v26, %v8688_v28  ;;  %v7728_v6 = vld [vmem:[%s12250_s24 + $0x318] sm:$0xf0]  ;;  %v5351_v7 = vpop.f32.mrf.mxu0  ;;  %v7691_v24 = vor.u32 %v9842_v11, %v7688_v12  ;;  %v8631_v29 = vor.u32 %v10085_v22, %v8630_v20  ;;  %v6997_v11 = vld [vmem:[%s13392_s26] sm:$0x1]  ;;  %v9960_v12 = vld [vmem:[%s12250_s24 + $0x654] sm:$0xf] }
 0x56d   : > { %v7731_v59 = vor.u32 %v9852_v2, %v7728_v6  ;;  %v10270_v26 = vld [vmem:[%s13115_s29 + $0xb0] sm:$0xff]  ;;  %7004 = vperm.xlu1 %10355, %v6997_v11  }
 0x56e   : > { %v5363_v57 = vadd.f32 %v13054_v1, %v5350_v36  ;;  %6059 = vmatpush.bf16.msra.mxu2 %v7811_v23  ;;  %v8651_v1 = vor.u32 %v10082_v62, %v8648_v61  ;;  %v8272_v23 = vld [vmem:[%s12250_s24 + $0x768] sm:$0xf0]  ;;  %v10212_v61 = vld [vmem:[%s12250_s24 + $0xe34] sm:$0xf]  ;;  %v9168_v2 = vld [vmem:[%s12250_s24 + $0xe58] sm:$0xf0] }
 0x56f   : > { %6097 = vmatpush.bf16.msrb.mxu1 %v8811_v48  ;;  %v10105_v48 = vld [vmem:[%s12250_s24 + $0xad4] sm:$0xf0] }
 0x570   : > { %5641 = vmatpush.bf16.msra.mxu0 %v8831_v51  ;;  %v5376_v30 = vadd.f32 %v12883_v32, %v5363_v57  ;;  %v8711_v4 = vor.u32 %v10105_v48, %v8710_v49  ;;  %v5897_v32 = vpop.f32.mrf.mxu3  ;;  %v5637_v18 = vpop.f32.mrf.mxu1  ;;  %v8232_v49 = vld [vmem:[%s12250_s24 + $0x718] sm:$0xf0]  ;;  %v10269_v48 = vld [vmem:[%s13115_s29 + $0xa8] sm:$0xff] }
 0x571   : > { %v2728_v32 = vperm.slane %v13180_v42, 2  ;;  %v8152_v18 = vld [vmem:[%s12250_s24 + $0x678] sm:$0xf0] }
 0x572   : > { %v13357_v51 = vadd.f32 %v13241_v14, %v5376_v30  ;;  %6060 = vmatpush.bf16.msra.mxu2 %v7771_v58  ;;  %v9248_v14 = vld [vmem:[%s12250_s24 + $0xef8] sm:$0xf0]  ;;  %v9211_v58 = vor.u32 %v10222_v33, %v9208_v35  ;;  %v9970_v30 = vld [vmem:[%s12250_s24 + $0x6a4] sm:$0xf] }
 0x573   : > { %6098 = vmatpush.bf16.msrb.mxu1 %v8771_v45  ;;  %v13360_v45 = vpop.f32.mrf.mxu2  ;;  %v10266_v33 = vld [vmem:[%s13115_s29 + $0x90] sm:$0xff] }
 0x574   : > { %5642 = vmatpush.bf16.msra.mxu0 %v8791_v13  ;;  %v10232_v13 = vld [vmem:[%s12250_s24 + $0xed4] sm:$0xf] }
 0x575   : > { %v9251_v28 = vor.u32 %v10232_v13, %v9248_v14 }
 0x576   : > { %6061 = vmatpush.bf16.msra.mxu2 %v7731_v59  ;;  %v10202_v59 = vld [vmem:[%s12250_s24 + $0xde4] sm:$0xf] }
 0x577   : > { %6099 = vmatpush.bf16.msrb.mxu1 %v8731_v3  ;;  %v9990_v3 = vld [vmem:[%s12250_s24 + $0x744] sm:$0xf] }
 0x578   : > { %5643 = vmatpush.bf16.msra.mxu0 %v8751_v46  ;;  %v8275_v36 = vor.u32 %v9990_v3, %v8272_v23  ;;  %v9980_v46 = vld [vmem:[%s12250_s24 + $0x6f4] sm:$0xf]  ;;  %v13377_v57 = vpop.f32.mrf.mxu3  ;;  %v13379_v62 = vpop.f32.mrf.mxu1  ;;  %v9088_v23 = vld [vmem:[%s12250_s24 + $0xdb8] sm:$0xf0] }
 0x579   : > { %v8235_v6 = vor.u32 %v9980_v46, %v8232_v49  ;;  %v10192_v3 = vld [vmem:[%s12250_s24 + $0xd94] sm:$0xf]  ;;  %v10182_v46 = vld [vmem:[%s12250_s24 + $0xd44] sm:$0xf]  ;;  %v9048_v49 = vld [vmem:[%s12250_s24 + $0xd68] sm:$0xf0] }
 0x57a   : > { %6062 = vmatpush.bf16.msra.mxu2 %v7691_v24  ;;  %v5415_v24 = vadd.f32 %v13177_v16, %v2728_v32  ;;  %v9091_v35 = vor.u32 %v10192_v3, %v9088_v23  ;;  %v7001_v16 = vld [vmem:[%s13392_s26 + $0x4] sm:$0x1]  ;;  %v9920_v23 = vld [vmem:[%s12250_s24 + $0x514] sm:$0xf] }
 0x57b   : > { %6100 = vmatpush.bf16.msrb.mxu1 %v8691_v55  ;;  %v5559_v55 = vpop.f32.mrf.mxu2  ;;  %7028 = vperm.xlu0 %10357, %v7001_v16   ;;  %v9008_v32 = vld [vmem:[%s12250_s24 + $0xd18] sm:$0xf0] }
 0x57c   : > { %5644 = vmatpush.bf16.msra.mxu0 %v8711_v4  ;;  %v8192_v4 = vld [vmem:[%s12250_s24 + $0x6c8] sm:$0xf0] }
 0x57d   : > { %6063 = vmatmul.bf16.vlgmr.msra.gmra.mxu2 %v12494_v21  ;;  %v8195_v7 = vor.u32 %v9970_v30, %v8192_v4  ;;  %v10278_v16 = vld [vmem:[%s13115_s29 + $0xf0] sm:$0xff] }
 0x57e   : > { %6107 = vmatpush.bf16.msrb.mxu2 %v9251_v28  ;;  %v9950_v28 = vld [vmem:[%s12250_s24 + $0x604] sm:$0xf] }
 0x57f   : > { %6101 = vmatpush.bf16.msrb.mxu1 %v8651_v1  ;;  %v9171_v1 = vor.u32 %v10212_v61, %v9168_v2  ;;  %v9940_v61 = vld [vmem:[%s12250_s24 + $0x5b4] sm:$0xf]  ;;  %v8072_v2 = vld [vmem:[%s12250_s24 + $0x5d8] sm:$0xf0] }
 0x580   : > { %5645 = vmatpush.bf16.msra.mxu0 %v8671_v19  ;;  %v10267_v19 = vld [vmem:[%s13115_s29 + $0x98] sm:$0xff]  ;;  %v5949_v14 = vpop.f32.mrf.mxu3  ;;  %v5689_v22 = vpop.f32.mrf.mxu1 }
 0x581   : > { %v8968_v22 = vld [vmem:[%s12250_s24 + $0xcc8] sm:$0xf0] }
 0x582   : > { %6102 = vmatmul.bf16.vlgmr.msrb.gmra.mxu1 %v12385_v60  ;;  %6108 = vmatpush.bf16.msrb.mxu2 %v9211_v58  ;;  %v6998_v58 = vld [vmem:[%s13392_s26 + $0x1] sm:$0x1] }
 0x583   : > { %6440 = vmatpush.bf16.msra.mxu1 %v10271_v56  ;;  %v9128_v56 = vld [vmem:[%s12250_s24 + $0xe08] sm:$0xf0]  ;;  %v13404_v13 = vpop.f32.mrf.mxu2  ;;  %7010 = vperm.xlu1 %10355, %v6998_v58  }
 0x584   : > { %5646 = vmatpush.bf16.msra.mxu0 %v8631_v29  ;;  %v9131_v20 = vor.u32 %v10202_v59, %v9128_v56  ;;  %v8112_v29 = vld [vmem:[%s12250_s24 + $0x628] sm:$0xf0]  ;;  %v10172_v56 = vld [vmem:[%s12250_s24 + $0xcf4] sm:$0xf] }
 0x586   : > { %6109 = vmatpush.bf16.msrb.mxu2 %v9171_v1  ;;  %v9051_v1 = vor.u32 %v10182_v46, %v9048_v49 }
 0x587   : > { %6441 = vmatpush.bf16.msra.mxu1 %v10270_v26  ;;  %5647 = vmatmul.bf16.vlgmr.msra.gmra.mxu0 %v12385_v60  ;;  %v8155_v26 = vor.u32 %v9960_v12, %v8152_v18  ;;  %v9930_v12 = vld [vmem:[%s12250_s24 + $0x564] sm:$0xf]  ;;  %v8032_v18 = vld [vmem:[%s12250_s24 + $0x588] sm:$0xf0] }
 0x588   : > { %5704 = vmatpush.bf16.msrb.mxu0 %v8275_v36  ;;  %v5427_v36 = vpop.f32.mrf.mxu0  ;;  %v13419_v4 = vpop.f32.mrf.mxu3  ;;  %v8035_v3 = vor.u32 %v9930_v12, %v8032_v18  ;;  %v9896_v12 = vld [vmem:[%s12250_s24 + $0x44c] sm:$0xf0]  ;;  %v7000_v18 = vld [vmem:[%s13392_s26 + $0x3] sm:$0x1] }
 0x589   : > { %v5428_v55 = vadd.f32 %v5427_v36, %v5415_v24  ;;  %v13422_v59 = vpop.f32.mrf.mxu1  ;;  %v7992_v24 = vld [vmem:[%s12250_s24 + $0x538] sm:$0xf0]  ;;  %v10279_v36 = vld [vmem:[%s13115_s29 + $0xf8] sm:$0xff] }
 0x58a   : > { %6110 = vmatpush.bf16.msrb.mxu2 %v9131_v20  ;;  %v10162_v20 = vld [vmem:[%s12250_s24 + $0xca4] sm:$0xf]  ;;  %v7995_v46 = vor.u32 %v9920_v23, %v7992_v24 }
 0x58b   : > { %6442 = vmatpush.bf16.msra.mxu1 %v10269_v48  ;;  %v8115_v48 = vor.u32 %v9950_v28, %v8112_v29  ;;  %v5624_v30 = vpop.f32.mrf.mxu2  ;;  %v10240_v28 = vld [vmem:[%s12250_s24 + $0xf14] sm:$0xf]  ;;  %v9272_v29 = vld [vmem:[%s12250_s24 + $0xf38] sm:$0xf0] }
 0x58c   : > { %5705 = vmatpush.bf16.msrb.mxu0 %v8235_v6  ;;  %v10265_v6 = vld [vmem:[%s13115_s29 + $0x88] sm:$0xff]  ;;  %v9275_v49 = vor.u32 %v10240_v28, %v9272_v29  ;;  %v2731_v28 = vperm.slane %v13180_v42, 5 }
 0x58d   : > { %v9866_v42 = vld [vmem:[%s12250_s24 + $0x35c] sm:$0xf0] }
 0x58e   : > { %6111 = vmatpush.bf16.msrb.mxu2 %v9091_v35 }
 0x58f   : > { %6443 = vmatpush.bf16.msra.mxu1 %v10268_v31  ;;  %v5441_v31 = vadd.f32 %v12922_v27, %v5428_v55  ;;  %v10264_v27 = vld [vmem:[%s13115_s29 + $0x80] sm:$0xff]  ;;  %v9916_v55 = vld [vmem:[%s12250_s24 + $0x4ec] sm:$0xf0] }
 0x590   : > { %5706 = vmatpush.bf16.msrb.mxu0 %v8195_v7  ;;  %v8075_v7 = vor.u32 %v9940_v61, %v8072_v2  ;;  %v5429_v14 = vpop.f32.mrf.mxu0  ;;  %v6999_v61 = vld [vmem:[%s13392_s26 + $0x2] sm:$0x1] }
 0x591   : > { %v5454_v11 = vadd.f32 %v13277_v25, %v5441_v31  ;;  %v5741_v35 = vpop.f32.mrf.mxu1  ;;  %v7918_v2 = vld [vmem:[%s12250_s24 + $0x478] sm:$0xf]  ;;  %7016 = vperm.xlu2 %10356, %v6999_v61  }
 0x592   : > { %6112 = vmatpush.bf16.msrb.mxu2 %v9051_v1  ;;  %v7838_v14 = vld [vmem:[%s12250_s24 + $0x3d8] sm:$0xf] }
 0x593   : > { %6444 = vmatpush.bf16.msra.mxu1 %v10267_v19  ;;  %v9011_v19 = vor.u32 %v10172_v56, %v9008_v32  ;;  %v13434_v25 = vpop.f32.mrf.mxu2  ;;  %v10277_v56 = vld [vmem:[%s13115_s29 + $0xe8] sm:$0xff]  ;;  %v5467_v24 = vadd.f32 %v13225_v54, %v5454_v11 }
 0x594   : > { %5707 = vmatpush.bf16.msrb.mxu0 %v8155_v26  ;;  %v5975_v26 = vpop.f32.mrf.mxu3 }
 0x595   : > { %v10275_v26 = vld [vmem:[%s13115_s29 + $0xd8] sm:$0xff] }
 0x596   : > { %6113 = vmatpush.bf16.msrb.mxu2 %v9011_v19 }
 0x597   : > { %6445 = vmatpush.bf16.msra.mxu1 %v10266_v33  ;;  %v8971_v33 = vor.u32 %v10162_v20, %v8968_v22  ;;  %v9886_v20 = vld [vmem:[%s12250_s24 + $0x3fc] sm:$0xf0] }
 0x598   : > { %5708 = vmatpush.bf16.msrb.mxu0 %v8115_v48  ;;  %v7958_v48 = vld [vmem:[%s12250_s24 + $0x4c8] sm:$0xf] }
 0x599   : > { %v7959_v58 = vor.u32 %v9916_v55, %v7958_v48  ;;  %v13447_v1 = vpop.f32.mrf.mxu1  ;;  %7022 = vperm.xlu2 %10356, %v7000_v18   ;;  %v10274_v48 = vld [vmem:[%s13115_s29 + $0xd0] sm:$0xff]  ;;  %v5688_v55 = vadd.f32 %v13379_v62, %v2731_v28 }
 0x59a   : > { %6114 = vmatpush.bf16.msrb.mxu2 %v8971_v33  ;;  %v7839_v33 = vor.u32 %v9886_v20, %v7838_v14  ;;  %v9198_v28 = vld [vmem:[%s12250_s24 + $0xe78] sm:$0xf] }
 0x59b   : > { %6446 = vmatpush.bf16.msra.mxu1 %v10265_v6  ;;  %v9906_v6 = vld [vmem:[%s12250_s24 + $0x49c] sm:$0xf0]  ;;  %v5676_v30 = vpop.f32.mrf.mxu2 }
 0x59c   : > { %5709 = vmatpush.bf16.msrb.mxu0 %v8075_v7  ;;  %v13445_v31 = vpop.f32.mrf.mxu3  ;;  %v7919_v32 = vor.u32 %v9906_v6, %v7918_v2  ;;  %v7878_v7 = vld [vmem:[%s12250_s24 + $0x428] sm:$0xf] }
 0x59d   : > { %6115 = vmatmul.bf16.vlgmr.msrb.gmra.mxu2 %v12553_v43  ;;  %v7879_v19 = vor.u32 %v9896_v12, %v7878_v7  ;;  %v9856_v7 = vld [vmem:[%s12250_s24 + $0x30c] sm:$0xf0]  ;;  %v10272_v12 = vld [vmem:[%s13115_s29 + $0xc0] sm:$0xff] }
 0x59e   : > { %6453 = vmatpush.bf16.msra.mxu2 %v10279_v36  ;;  %v7798_v36 = vld [vmem:[%s12250_s24 + $0x388] sm:$0xf] }
 0x59f   : > { %6447 = vmatpush.bf16.msra.mxu1 %v10264_v27  ;;  %v10276_v27 = vld [vmem:[%s13115_s29 + $0xe0] sm:$0xff] }
 0x5a0   : > { %5710 = vmatpush.bf16.msrb.mxu0 %v8035_v3 }
 0x5a1   : > { %v5806_v23 = vpop.f32.mrf.mxu1 }
 0x5a2   : > { %6454 = vmatpush.bf16.msra.mxu2 %v10278_v16  ;;  %v7758_v16 = vld [vmem:[%s12250_s24 + $0x338] sm:$0xf]  ;;  %v10236_v23 = vld [vmem:[%s12250_s24 + $0xeec] sm:$0xf0] }
 0x5a3   : > { %v5700_v22 = vpop.f32.mrf.mxu2  ;;  %v7759_v62 = vor.u32 %v9866_v42, %v7758_v16 }
 0x5a4   : > { %5711 = vmatpush.bf16.msrb.mxu0 %v7995_v46  ;;  %v6027_v3 = vpop.f32.mrf.mxu3  ;;  %v5479_v29 = vpop.f32.mrf.mxu0  ;;  %v9876_v46 = vld [vmem:[%s12250_s24 + $0x3ac] sm:$0xf0] }
 0x5a5   : > { %v5480_v35 = vadd.f32 %v5479_v29, %v5467_v24  ;;  %v7799_v54 = vor.u32 %v9876_v46, %v7798_v36  ;;  %v9238_v3 = vld [vmem:[%s12250_s24 + $0xec8] sm:$0xf]  ;;  %v10226_v29 = vld [vmem:[%s12250_s24 + $0xe9c] sm:$0xf0]  ;;  %v10216_v46 = vld [vmem:[%s12250_s24 + $0xe4c] sm:$0xf0] }
 0x5a6   : > { %6455 = vmatpush.bf16.msra.mxu2 %v10277_v56  ;;  %v13475_v56 = vadd.f32 %v5700_v22, %v5688_v55  ;;  %v9158_v36 = vld [vmem:[%s12250_s24 + $0xe28] sm:$0xf]  ;;  %v5532_v55 = vadd.f32 %v13005_v39, %v13327_v50  ;;  %v10287_v50 = vld [vmem:[%s13115_s29 + $0x138] sm:$0xff] }
 0x5a7   : > { %5712 = vmatmul.bf16.vlgmr.msrb.gmra.mxu0 %v12339_v63  ;;  %6603 = vmatpush.bf16.msra.mxu3 %v10287_v50  ;;  %v8520_v50 = vld [vmem:[%s12250_s24 + $0x950] sm:$0xf0] }
 0x5a8   : > { %5763 = vmatpush.bf16.msra.mxu0 %v9275_v49  ;;  %v5493_v49 = vadd.f32 %v12965_v38, %v5480_v35  ;;  %v10273_v38 = vld [vmem:[%s13115_s29 + $0xc8] sm:$0xff] }
 0x5a9   : > { %v13470_v2 = vpop.f32.mrf.mxu1 }
 0x5aa   : > { %6456 = vmatpush.bf16.msra.mxu2 %v10276_v27  ;;  %v6135_v11 = vmax.f32 %v5493_v49, 0.0  ;;  %v7678_v27 = vld [vmem:[%s12250_s24 + $0x298] sm:$0xf] }
 0x5ac   : > { %5782 = vmatpush.bf16.msrb.mxu0 %v7959_v58  ;;  %v5702_v58 = vpop.f32.mrf.mxu2  ;;  %v13468_v61 = vpop.f32.mrf.mxu3  ;;  %v6304_v6 = vpack.c.bf16 %v6135_v11, %v6135_v11  ;;  %v10206_v11 = vld [vmem:[%s12250_s24 + $0xdfc] sm:$0xf0] }
 0x5ad   : > { %v5481_v30 = vpop.f32.mrf.mxu0 }
 0x5ae   : > { %6457 = vmatpush.bf16.msra.mxu2 %v10275_v26  ;;  %6448 = vmatmul.bf16.vlgmr.msra.gmra.mxu1 %v6304_v6  ;;  %v9239_v26 = vor.u32 %v10236_v23, %v9238_v3  ;;  %v8998_v23 = vld [vmem:[%s12250_s24 + $0xce8] sm:$0xf] }
 0x5b0   : > { %5783 = vmatpush.bf16.msrb.mxu0 %v7919_v32  ;;  %v7718_v32 = vld [vmem:[%s12250_s24 + $0x2e8] sm:$0xf] }
 0x5b1   : > { %v7719_v18 = vor.u32 %v9856_v7, %v7718_v32  ;;  %v5858_v22 = vpop.f32.mrf.mxu1  ;;  %v9038_v7 = vld [vmem:[%s12250_s24 + $0xd38] sm:$0xf] }
 0x5b2   : > { %6458 = vmatpush.bf16.msra.mxu2 %v10274_v48  ;;  %v9159_v48 = vor.u32 %v10216_v46, %v9158_v36  ;;  %v10176_v22 = vld [vmem:[%s12250_s24 + $0xd0c] sm:$0xf0]  ;;  %v10071_v36 = vld [vmem:[%s12250_s24 + $0x9cc] sm:$0xf]  ;;  %v8600_v46 = vld [vmem:[%s12250_s24 + $0x9f0] sm:$0xf0] }
 0x5b4   : > { %5784 = vmatpush.bf16.msrb.mxu0 %v7879_v19  ;;  %v9846_v19 = vld [vmem:[%s12250_s24 + $0x2bc] sm:$0xf0]  ;;  %v13482_v14 = vpop.f32.mrf.mxu2  ;;  %v6092_v20 = vpop.f32.mrf.mxu3 }
 0x5b5   : > { %v7679_v24 = vor.u32 %v9846_v19, %v7678_v27 }
 0x5b6   : > { %6459 = vmatpush.bf16.msra.mxu2 %v10273_v38  ;;  %v9078_v38 = vld [vmem:[%s12250_s24 + $0xd88] sm:$0xf] }
 0x5b7   : > { %9297 = vmatmul.msk.bf16.vlgmr.msra.gmra.mxu0 %vm1818_vm0, %v12372_v37 }
 0x5b8   : > { %5785 = vmatpush.bf16.msrb.mxu0 %v7839_v33  ;;  %v9199_v33 = vor.u32 %v10226_v29, %v9198_v28  ;;  %v8958_v28 = vld [vmem:[%s12250_s24 + $0xc98] sm:$0xf]  ;;  %v10166_v29 = vld [vmem:[%s12250_s24 + $0xcbc] sm:$0xf0] }
 0x5b9   : > { %v5882_v49 = vpop.f32.mrf.mxu1 }
 0x5ba   : > { %6460 = vmatpush.bf16.msra.mxu2 %v10272_v12  ;;  %v10186_v12 = vld [vmem:[%s12250_s24 + $0xd5c] sm:$0xf0] }
 0x5bb   : > { %v9039_v27 = vor.u32 %v10186_v12, %v9038_v7  ;;  %v10282_v12 = vld [vmem:[%s13115_s29 + $0x110] sm:$0xff] }
 0x5bc   : > { %5786 = vmatpush.bf16.msrb.mxu0 %v7799_v54  ;;  %v5754_v35 = vpop.f32.mrf.mxu2  ;;  %v9118_v54 = vld [vmem:[%s12250_s24 + $0xdd8] sm:$0xf] }
 0x5bd   : > { %v9119_v42 = vor.u32 %v10206_v11, %v9118_v54  ;;  %v10284_v54 = vld [vmem:[%s13115_s29 + $0x120] sm:$0xff]  ;;  %v8603_v11 = vor.u32 %v10071_v36, %v8600_v46 }
 0x5c0   : > { %5787 = vmatpush.bf16.msrb.mxu0 %v7759_v62  ;;  %v10196_v62 = vld [vmem:[%s12250_s24 + $0xdac] sm:$0xf0] }
 0x5c1   : > { %v9079_v39 = vor.u32 %v10196_v62, %v9078_v38  ;;  %v8560_v38 = vld [vmem:[%s12250_s24 + $0x9a0] sm:$0xf0] }
 0x5c4   : > { %5788 = vmatpush.bf16.msrb.mxu0 %v7719_v18  ;;  %v5544_v16 = vpop.f32.mrf.mxu0  ;;  %v13495_v58 = vpop.f32.mrf.mxu2 }
 0x5c5   : > { %v5545_v6 = vadd.f32 %v5544_v16, %v5532_v55 }
 0x5c7   : > { %v5558_v30 = vadd.f32 %v13360_v45, %v5545_v6  ;;  %v10286_v45 = vld [vmem:[%s13115_s29 + $0x130] sm:$0xff] }
 0x5c8   : > { %5789 = vmatpush.bf16.msrb.mxu0 %v7679_v24  ;;  %6604 = vmatpush.bf16.msra.mxu3 %v10286_v45  ;;  %v10061_v6 = vld [vmem:[%s12250_s24 + $0x97c] sm:$0xf] }
 0x5c9   : > { %v5571_v32 = vadd.f32 %v13306_v53, %v5558_v30  ;;  %v8563_v30 = vor.u32 %v10061_v6, %v8560_v38  ;;  %v10001_v6 = vld [vmem:[%s12250_s24 + $0x79c] sm:$0xf]  ;;  %v8320_v38 = vld [vmem:[%s12250_s24 + $0x7c0] sm:$0xf0] }
 0x5cb   : > { %5790 = vmatmul.bf16.vlgmr.msrb.gmra.mxu0 %v12494_v21  ;;  %v5884_v21 = vpop.f32.mrf.mxu1  ;;  %v5584_v18 = vadd.f32 %v13052_v41, %v5571_v32  ;;  %v8999_v41 = vor.u32 %v10176_v22, %v8998_v23  ;;  %v8440_v23 = vld [vmem:[%s12250_s24 + $0x8b0] sm:$0xf0] }
 0x5cc   : > { %5834 = vmatpush.bf16.msra.mxu0 %v9239_v26  ;;  %v5546_v19 = vpop.f32.mrf.mxu0  ;;  %v5819_v20 = vpop.f32.mrf.mxu2  ;;  %v10285_v26 = vld [vmem:[%s13115_s29 + $0x128] sm:$0xff]  ;;  %v10283_v21 = vld [vmem:[%s13115_s29 + $0x118] sm:$0xff] }
 0x5cd   : > { %v6136_v3 = vmax.f32 %v5584_v18, 0.0  ;;  %6605 = vmatpush.bf16.msra.mxu3 %v10285_v26  ;;  %v8480_v19 = vld [vmem:[%s12250_s24 + $0x900] sm:$0xf0] }
 0x5ce   : > { %v10281_v20 = vld [vmem:[%s13115_s29 + $0x108] sm:$0xff] }
 0x5cf   : > { %v6305_v24 = vpack.c.bf16 %v6136_v3, %v6136_v3 }
 0x5d0   : > { %5835 = vmatpush.bf16.msra.mxu0 %v9199_v33  ;;  %v13514_v33 = vld [vmem:[%s13167_s28] sm:$0xff] }
 0x5d1   : > { %6461 = vmatmul.bf16.vlgmr.msra.gmra.mxu2 %v6305_v24  ;;  %v2733_v35 = vperm.slane %v13514_v33, 7  ;;  %6606 = vmatpush.bf16.msra.mxu3 %v10284_v54 }
 0x5d3   : > { %v13508_v53 = vpop.f32.mrf.mxu1 }
 0x5d4   : > { %5836 = vmatpush.bf16.msra.mxu0 %v9159_v48  ;;  %v8959_v48 = vor.u32 %v10166_v29, %v8958_v28  ;;  %v5869_v55 = vpop.f32.mrf.mxu2  ;;  %v10021_v29 = vld [vmem:[%s12250_s24 + $0x83c] sm:$0xf] }
 0x5d5   : > { %v5870_v16 = vadd.f32 %v5869_v55, %v2733_v35  ;;  %6607 = vmatpush.bf16.msra.mxu3 %v10283_v21  ;;  %v8400_v35 = vld [vmem:[%s12250_s24 + $0x860] sm:$0xf0]  ;;  %v8360_v55 = vld [vmem:[%s12250_s24 + $0x810] sm:$0xf0]  ;;  %v7646_v21 = vld [vmem:[%s12250_s24 + $0x250] sm:$0xf] }
 0x5d6   : > { %v8403_v36 = vor.u32 %v10021_v29, %v8400_v35  ;;  %v7526_v29 = vld [vmem:[%s12250_s24 + $0x160] sm:$0xf]  ;;  %v9807_v35 = vld [vmem:[%s12250_s24 + $0x184] sm:$0xf0] }
 0x5d7   : > { %v13528_v62 = vadd.f32 %v5882_v49, %v5870_v16  ;;  %v13534_v32 = vpop.f32.mrf.mxu3 }
 0x5d8   : > { %5837 = vmatpush.bf16.msra.mxu0 %v9119_v42 }
 0x5d9   : > { %6608 = vmatpush.bf16.msra.mxu3 %v10282_v12  ;;  %v7606_v12 = vld [vmem:[%s12250_s24 + $0x200] sm:$0xf] }
 0x5db   : > { %v5936_v42 = vpop.f32.mrf.mxu1 }
 0x5dc   : > { %5838 = vmatpush.bf16.msra.mxu0 %v9079_v39  ;;  %v10051_v39 = vld [vmem:[%s12250_s24 + $0x92c] sm:$0xf]  ;;  %v5871_v7 = vpop.f32.mrf.mxu2 }
 0x5dd   : > { %v8523_v49 = vor.u32 %v10051_v39, %v8520_v50  ;;  %6609 = vmatpush.bf16.msra.mxu3 %v10281_v20  ;;  %v8323_v50 = vor.u32 %v10001_v6, %v8320_v38 }
 0x5df   : > { %v6288_v22 = vpop.f32.mrf.mxu3 }
 0x5e0   : > { %5839 = vmatpush.bf16.msra.mxu0 %v9039_v27  ;;  %v10041_v27 = vld [vmem:[%s12250_s24 + $0x8dc] sm:$0xf]  ;;  %v7566_v22 = vld [vmem:[%s12250_s24 + $0x1b0] sm:$0xf] }
 0x5e1   : > { %v8483_v45 = vor.u32 %v10041_v27, %v8480_v19 }
 0x5e3   : > { %v13537_v18 = vpop.f32.mrf.mxu1 }
 0x5e4   : > { %5840 = vmatpush.bf16.msra.mxu0 %v8999_v41  ;;  %v5596_v3 = vpop.f32.mrf.mxu0  ;;  %v13544_v24 = vpop.f32.mrf.mxu2  ;;  %v10280_v41 = vld [vmem:[%s13115_s29 + $0x100] sm:$0xff] }
 0x5e5   : > { %6610 = vmatpush.bf16.msra.mxu3 %v10280_v41  ;;  %v9817_v41 = vld [vmem:[%s12250_s24 + $0x1d4] sm:$0xf0] }
 0x5e8   : > { %5841 = vmatpush.bf16.msra.mxu0 %v8959_v48  ;;  %v10011_v48 = vld [vmem:[%s12250_s24 + $0x7ec] sm:$0xf] }
 0x5e9   : > { %v8363_v16 = vor.u32 %v10011_v48, %v8360_v55 }
 0x5eb   : > { %5842 = vmatmul.bf16.vlgmr.msra.gmra.mxu0 %v12553_v43  ;;  %v10031_v43 = vld [vmem:[%s12250_s24 + $0x88c] sm:$0xf]  ;;  %v6001_v28 = vpop.f32.mrf.mxu1 }
 0x5ec   : > { %5899 = vmatpush.bf16.msrb.mxu0 %v8603_v11  ;;  %v8443_v26 = vor.u32 %v10031_v43, %v8440_v23  ;;  %v5598_v46 = vpop.f32.mrf.mxu0  ;;  %v5923_v54 = vpop.f32.mrf.mxu2  ;;  %v2730_v11 = vperm.slane %v13514_v33, 4 }
 0x5ed   : > { %v7017_v43 = vpop.permute.xlu2 %7016  ;;  %v7005_v23 = vpop.permute.xlu1 %7004  ;;  %v7527_v54 = vor.u32 %v9807_v35, %v7526_v29  ;;  %v9767_v29 = vld [vmem:[%s12250_s24 + $0x44] sm:$0xf0] }
 0x5ee   : > { %v5597_v39 = vadd.f32 %v5596_v3, %v2730_v11  ;;  %v7019_v3 = vperm.slane %v7017_v43, 0  ;;  %v7029_v11 = vpop.permute.xlu0 %7028 }
 0x5ef   : > { %v7031_v6 = vperm.slane %v7029_v11, 0 }
 0x5f0   : > { %5900 = vmatpush.bf16.msrb.mxu0 %v8563_v30  ;;  %v9837_v30 = vld [vmem:[%s12250_s24 + $0x274] sm:$0xf0]  ;;  %v5610_v19 = vadd.f32 %v13121_v9, %v5597_v39  ;;  %7041 = vst [vmem:[#allocation1 + $0x2] ss:$9 sm:$0xff] %v7019_v3  ;;  %v7567_v9 = vor.u32 %v9817_v41, %v7566_v22 }
 0x5f1   : > { %v7647_v7 = vor.u32 %v9837_v30, %v7646_v21  ;;  %v7048_v30 = vlaneseq  ;;  %7045 = vst [vmem:[#allocation1 + $0x4] ss:$9 sm:$0xff] %v7031_v6  ;;  %v9777_v3 = vld [vmem:[%s12250_s24 + $0x94] sm:$0xf0]  ;;  %v10147_v6 = vld [vmem:[%s12250_s24 + $0xc24] sm:$0xf0] }
 0x5f2   : > { %v5623_v28 = vadd.f32 %v13404_v13, %v5610_v19  ;;  %v9797_v13 = vld [vmem:[%s12250_s24 + $0x134] sm:$0xf0]  ;;  %v7446_v19 = vld [vmem:[%s12250_s24 + $0xc0] sm:$0xf] }
 0x5f3   : > { %v13552_v42 = vpop.f32.mrf.mxu1 }
 0x5f4   : > { %5901 = vmatpush.bf16.msrb.mxu0 %v8523_v49  ;;  %v9827_v49 = vld [vmem:[%s12250_s24 + $0x224] sm:$0xf0]  ;;  %v13560_v27 = vpop.f32.mrf.mxu2  ;;  %v5636_v46 = vadd.f32 %v13341_v44, %v5623_v28  ;;  %v7049_v44 = vshrl.u32 %v7048_v30, 7 }
 0x5f5   : > { %v7023_v38 = vpop.permute.xlu2 %7022  ;;  %v7011_v21 = vpop.permute.xlu1 %7010 }
 0x5f6   : > { %v7025_v39 = vperm.slane %v7023_v38, 0  ;;  %10358 = vset.pattern.permute.xlu2 %v7049_v44  ;;  %10359 = vset.pattern.permute.xlu1 %v7049_v44 }
 0x5f7   : > { %10360 = vset.pattern.permute.xlu0 %v7049_v44 }
 0x5f8   : > { %5902 = vmatpush.bf16.msrb.mxu0 %v8483_v45  ;;  %v7607_v45 = vor.u32 %v9827_v49, %v7606_v12  ;;  %7043 = vst [vmem:[#allocation1 + $0x3] ss:$9 sm:$0xff] %v7025_v39 }
 0x5fb   : > { %v6053_v20 = vpop.f32.mrf.mxu1 }
 0x5fc   : > { %5903 = vmatpush.bf16.msrb.mxu0 %v8443_v26  ;;  %v7007_v26 = vperm.slane %v7005_v23, 0  ;;  %v9787_v20 = vld [vmem:[%s12250_s24 + $0xe4] sm:$0xf0] }
 0x5fd   : > { %v7447_v23 = vor.u32 %v9787_v20, %v7446_v19  ;;  %v10127_v19 = vld [vmem:[%s12250_s24 + $0xb84] sm:$0xf0] }
 0x5fe   : > { %7037 = vst [vmem:[#allocation1] ss:$9 sm:$0xff] %v7007_v26 }
 0x600   : > { %5904 = vmatpush.bf16.msrb.mxu0 %v8403_v36  ;;  %v5988_v36 = vpop.f32.mrf.mxu2 }
 0x601   : > { %v13589_v36 = vld [vmem:[%s13167_s28 + $0x8] sm:$0x3] }
 0x602   : > { %v2735_v11 = vperm.slane %v13589_v36, 1 }
 0x603   : > { %v13570_v48 = vpop.f32.mrf.mxu1 }
 0x604   : > { %5905 = vmatpush.bf16.msrb.mxu0 %v8363_v16  ;;  %v5648_v55 = vpop.f32.mrf.mxu0  ;;  %v7486_v16 = vld [vmem:[%s12250_s24 + $0x110] sm:$0xf]  ;;  %v6052_v38 = vadd.f32 %v13552_v42, %v2735_v11 }
 0x605   : > { %v7487_v12 = vor.u32 %v9797_v13, %v7486_v16  ;;  %v8886_v13 = vld [vmem:[%s12250_s24 + $0xc00] sm:$0xf] }
 0x606   : > { %v8887_v39 = vor.u32 %v10147_v6, %v8886_v13  ;;  %v10301_v13 = vld [vmem:[%s13115_s29 + $0x1a8] sm:$0xff] }
 0x607   : > { %v9992_v6 = vld [vmem:[%s12250_s24 + $0x754] sm:$0xf] }
 0x608   : > { %5906 = vmatpush.bf16.msrb.mxu0 %v8323_v50  ;;  %v7013_v50 = vperm.slane %v7011_v21, 0 }
 0x60a   : > { %7039 = vst [vmem:[#allocation1 + $0x1] ss:$9 sm:$0xff] %v7013_v50  ;;  %v8846_v50 = vld [vmem:[%s12250_s24 + $0xbb0] sm:$0xf] }
 0x60b   : > { %5907 = vmatmul.bf16.vlgmr.msrb.gmra.mxu0 %v12282_v52  ;;  %v5649_v52 = vadd.f32 %v5648_v55, %v5636_v46  ;;  %v6105_v43 = vpop.f32.mrf.mxu1  ;;  %v8926_v46 = vld [vmem:[%s12250_s24 + $0xc50] sm:$0xf]  ;;  %v10157_v55 = vld [vmem:[%s12250_s24 + $0xc74] sm:$0xf0] }
 0x60c   : > { %5951 = vmatpush.bf16.msra.mxu0 %v7647_v7  ;;  %v5650_v22 = vpop.f32.mrf.mxu0  ;;  %v8927_v16 = vor.u32 %v10157_v55, %v8926_v46  ;;  %v10097_v46 = vld [vmem:[%s12250_s24 + $0xa94] sm:$0xf0] }
 0x60d   : > { %v5662_v7 = vadd.f32 %v13175_v15, %v5649_v52  ;;  %v10117_v22 = vld [vmem:[%s12250_s24 + $0xb34] sm:$0xf0] }
 0x60f   : > { %v5675_v49 = vadd.f32 %v13434_v25, %v5662_v7  ;;  %v7406_v25 = vld [vmem:[%s12250_s24 + $0x70] sm:$0xf]  ;;  %v10137_v7 = vld [vmem:[%s12250_s24 + $0xbd4] sm:$0xf0] }
 0x610   : > { %5952 = vmatpush.bf16.msra.mxu0 %v7607_v45  ;;  %v13579_v45 = vpop.f32.mrf.mxu2  ;;  %v7407_v26 = vor.u32 %v9777_v3, %v7406_v25  ;;  %v8847_v42 = vor.u32 %v10137_v7, %v8846_v50  ;;  %v8726_v25 = vld [vmem:[%s12250_s24 + $0xac0] sm:$0xf]  ;;  %v10107_v3 = vld [vmem:[%s12250_s24 + $0xae4] sm:$0xf0] }
 0x611   : > { %v6137_v15 = vmax.f32 %v5675_v49, 0.0  ;;  %v13583_v28 = vld [vmem:[#allocation1] sm:$0xff]  ;;  %v8806_v49 = vld [vmem:[%s12250_s24 + $0xb60] sm:$0xf] }
 0x612   : > { %v7047_v35 = vperm.slane %v13583_v28, 0  ;;  %v7075_v21 = vperm.slane %v13583_v28, 4 }
 0x613   : > { %v6467_v41 = vpack.c.bf16 %v6137_v15, %v6137_v15  ;;  %v8807_v15 = vor.u32 %v10127_v19, %v8806_v49  ;;  %v9982_v19 = vld [vmem:[%s12250_s24 + $0x704] sm:$0xf] }
 0x614   : > { %5953 = vmatpush.bf16.msra.mxu0 %v7567_v9  ;;  %v7366_v9 = vld [vmem:[%s12250_s24 + $0x20] sm:$0xf]  ;;  %7052 = vperm.xlu2 %10358, %v7047_v35   ;;  %v8686_v35 = vld [vmem:[%s12250_s24 + $0xa70] sm:$0xf] }
 0x615   : > { %6611 = vmatmul.bf16.vlgmr.msra.gmra.mxu3 %v6467_v41  ;;  %v7367_v52 = vor.u32 %v9767_v29, %v7366_v9  ;;  %v8727_v29 = vor.u32 %v10107_v3, %v8726_v25  ;;  %v9962_v3 = vld [vmem:[%s12250_s24 + $0x664] sm:$0xf] }
 0x618   : > { %5954 = vmatpush.bf16.msra.mxu0 %v7527_v54  ;;  %v6040_v54 = vpop.f32.mrf.mxu2 }
 0x619   : > { %v10302_v54 = vld [vmem:[%s13115_s29 + $0x1b0] sm:$0xff] }
 0x61c   : > { %5955 = vmatpush.bf16.msra.mxu0 %v7487_v12  ;;  %7080 = vperm.xlu2 %10358, %v7075_v21  }
 0x620   : > { %5956 = vmatpush.bf16.msra.mxu0 %v7447_v23  ;;  %v6064_v44 = vpop.f32.mrf.mxu2  ;;  %v8766_v23 = vld [vmem:[%s12250_s24 + $0xb10] sm:$0xf] }
 0x621   : > { %v13601_v12 = vadd.f32 %v6064_v44, %v6052_v38  ;;  %v8767_v41 = vor.u32 %v10117_v22, %v8766_v23  ;;  %v8288_v38 = vld [vmem:[%s12250_s24 + $0x778] sm:$0xf0] }
 0x622   : > { %v8291_v7 = vor.u32 %v9992_v6, %v8288_v38  ;;  %v8208_v23 = vld [vmem:[%s12250_s24 + $0x6d8] sm:$0xf0]  ;;  %v10311_v38 = vld [vmem:[%s13115_s29 + $0x1f8] sm:$0xff] }
 0x623   : > { %v8048_v6 = vld [vmem:[%s12250_s24 + $0x598] sm:$0xf0]  ;;  %6779 = vmatpush.bf16.msrb.mxu2 %v10311_v38 }
 0x624   : > { %5957 = vmatpush.bf16.msra.mxu0 %v7407_v26  ;;  %v5713_v20 = vpop.f32.mrf.mxu0  ;;  %10363 = vset.pattern.permute.xlu2 %v10407_v5  ;;  %v10303_v26 = vld [vmem:[%s13115_s29 + $0x1b8] sm:$0xff]  ;;  %v10304_v38 = vld [vmem:[%s13115_s29 + $0x1c0] sm:$0xff] }
 0x625   : > { %v5714_v43 = vadd.f32 %v5713_v20, %v13475_v56  ;;  %6766 = vmatpush.bf16.msrb.mxu1 %v10303_v26  ;;  %v8248_v20 = vld [vmem:[%s12250_s24 + $0x728] sm:$0xf0] }
 0x626   : > { %v8168_v26 = vld [vmem:[%s12250_s24 + $0x688] sm:$0xf0] }
 0x627   : > { %v5727_v9 = vadd.f32 %v13220_v40, %v5714_v43  ;;  %v10087_v40 = vld [vmem:[%s12250_s24 + $0xa44] sm:$0xf0]  ;;  %v9972_v43 = vld [vmem:[%s12250_s24 + $0x6b4] sm:$0xf] }
 0x628   : > { %5958 = vmatpush.bf16.msra.mxu0 %v7367_v52  ;;  %v8687_v52 = vor.u32 %v10097_v46, %v8686_v35  ;;  %v7054_v46 = vperm.slane %v13583_v28, 1 }
 0x629   : > { %v5740_v11 = vadd.f32 %v13422_v59, %v5727_v9  ;;  %6767 = vmatpush.bf16.msrb.mxu1 %v10302_v54  ;;  %v8171_v9 = vor.u32 %v9962_v3, %v8168_v26  ;;  %v10307_v3 = vld [vmem:[%s13115_s29 + $0x1d8] sm:$0xff] }
 0x62a   : > { %7059 = vperm.xlu1 %10359, %v7054_v46   ;;  %v10306_v46 = vld [vmem:[%s13115_s29 + $0x1d0] sm:$0xff] }
 0x62b   : > { %5959 = vmatmul.bf16.vlgmr.msra.gmra.mxu0 %v12341_v0  ;;  %v6066_v0 = vpop.f32.mrf.mxu2  ;;  %v5753_v21 = vadd.f32 %v13482_v14, %v5740_v11  ;;  %v13628_v49 = vpop.f32.mrf.mxu1  ;;  %v8251_v14 = vor.u32 %v9982_v19, %v8248_v20  ;;  %v10296_v11 = vld [vmem:[%s13115_s29 + $0x180] sm:$0xff]  ;;  %v10242_v19 = vld [vmem:[%s12250_s24 + $0xf24] sm:$0xf] }
 0x62c   : > { %6003 = vmatpush.bf16.msrb.mxu0 %v8927_v16  ;;  %v5715_v56 = vpop.f32.mrf.mxu0  ;;  %v8646_v16 = vld [vmem:[%s12250_s24 + $0xa20] sm:$0xf]  ;;  %v8211_v0 = vor.u32 %v9972_v43, %v8208_v23  ;;  %v9288_v20 = vld [vmem:[%s12250_s24 + $0xf48] sm:$0xf0] }
 0x62d   : > { %6768 = vmatpush.bf16.msrb.mxu1 %v10301_v13  ;;  %v8647_v59 = vor.u32 %v10087_v40, %v8646_v16  ;;  %v10297_v56 = vld [vmem:[%s13115_s29 + $0x188] sm:$0xff]  ;;  %v8088_v16 = vld [vmem:[%s12250_s24 + $0x5e8] sm:$0xf0]  ;;  %v9291_v43 = vor.u32 %v10242_v19, %v9288_v20  ;;  %v10295_v19 = vld [vmem:[%s13115_s29 + $0x178] sm:$0xff] }
 0x62e   : > { %v9932_v13 = vld [vmem:[%s12250_s24 + $0x574] sm:$0xf]  ;;  %v10294_v20 = vld [vmem:[%s13115_s29 + $0x170] sm:$0xff] }
 0x630   : > { %6004 = vmatpush.bf16.msrb.mxu0 %v8887_v39 }
 0x633   : > { %v13615_v55 = vpop.f32.mrf.mxu2  ;;  %v6451_v25 = vpop.f32.mrf.mxu1 }
 0x634   : > { %6005 = vmatpush.bf16.msrb.mxu0 %v8847_v42  ;;  %v5765_v39 = vpop.f32.mrf.mxu0  ;;  %v10300_v42 = vld [vmem:[%s13115_s29 + $0x1a0] sm:$0xff] }
 0x635   : > { %v13625_v50 = vadd.f32 %v5765_v39, %v5753_v21  ;;  %6769 = vmatpush.bf16.msrb.mxu1 %v10300_v42  ;;  %v2732_v21 = vperm.slane %v13514_v33, 6  ;;  %v8008_v42 = vld [vmem:[%s12250_s24 + $0x548] sm:$0xf0]  ;;  %v10309_v33 = vld [vmem:[%s13115_s29 + $0x1e8] sm:$0xff] }
 0x638   : > { %6006 = vmatpush.bf16.msrb.mxu0 %v8807_v15  ;;  %v10299_v15 = vld [vmem:[%s13115_s29 + $0x198] sm:$0xff] }
 0x639   : > { %6770 = vmatpush.bf16.msrb.mxu1 %v10299_v15 }
 0x63b   : > { %v6118_v44 = vpop.f32.mrf.mxu2 }
 0x63c   : > { %6007 = vmatpush.bf16.msrb.mxu0 %v8767_v41  ;;  %v5767_v22 = vpop.f32.mrf.mxu0  ;;  %v10298_v41 = vld [vmem:[%s13115_s29 + $0x190] sm:$0xff]  ;;  %v9922_v44 = vld [vmem:[%s12250_s24 + $0x524] sm:$0xf] }
 0x63d   : > { %6771 = vmatpush.bf16.msrb.mxu1 %v10298_v41  ;;  %v8011_v15 = vor.u32 %v9922_v44, %v8008_v42  ;;  %v10263_v22 = vld [vmem:[%s13115_s29 + $0x78] sm:$0xff]  ;;  %v10366_v41 = vld [vmem:[%s13298_s21 + $0x1] ss:$0 sm:$0xff] }
 0x63e   : > { %v6450_v26 = vadd.f32 %v10366_v41, %v13628_v49  ;;  %v10256_v44 = vld [vmem:[%s13115_s29 + $0x40] sm:$0xff] }
 0x640   : > { %6008 = vmatpush.bf16.msrb.mxu0 %v8727_v29  ;;  %v9952_v29 = vld [vmem:[%s12250_s24 + $0x614] sm:$0xf] }
 0x641   : > { %6772 = vmatpush.bf16.msrb.mxu1 %v10297_v56 }
 0x644   : > { %6009 = vmatpush.bf16.msrb.mxu0 %v8687_v52  ;;  %v9942_v52 = vld [vmem:[%s12250_s24 + $0x5c4] sm:$0xf] }
 0x645   : > { %6773 = vmatpush.bf16.msrb.mxu1 %v10296_v11  ;;  %v8091_v40 = vor.u32 %v9942_v52, %v8088_v16  ;;  %v10260_v11 = vld [vmem:[%s13115_s29 + $0x60] sm:$0xff]  ;;  %v10305_v52 = vld [vmem:[%s13115_s29 + $0x1c8] sm:$0xff] }
 0x648   : > { %6010 = vmatpush.bf16.msrb.mxu0 %v8647_v59  ;;  %v5791_v35 = vpop.f32.mrf.mxu0  ;;  %v8051_v59 = vor.u32 %v9932_v13, %v8048_v6  ;;  %v10259_v13 = vld [vmem:[%s13115_s29 + $0x58] sm:$0xff] }
 0x64b   : > { %6011 = vmatmul.bf16.vlgmr.msrb.gmra.mxu0 %v12385_v60  ;;  %v8128_v60 = vld [vmem:[%s12250_s24 + $0x638] sm:$0xf0] }
 0x64c   : > { %6068 = vmatpush.bf16.msra.mxu0 %v8291_v7  ;;  %v8131_v54 = vor.u32 %v9952_v29, %v8128_v60  ;;  %v10310_v7 = vld [vmem:[%s13115_s29 + $0x1f0] sm:$0xff]  ;;  %v10261_v29 = vld [vmem:[%s13115_s29 + $0x68] sm:$0xff] }
 0x64d   : > { %6780 = vmatpush.bf16.msrb.mxu2 %v10310_v7  ;;  %v5402_v7 = vadd.f32 %v13123_v10, %v13357_v51  ;;  %v10292_v51 = vld [vmem:[%s13115_s29 + $0x160] sm:$0xff] }
 0x64f   : > { %v6134_v42 = vmax.f32 %v5402_v7, 0.0  ;;  %v10322_v7 = vld [vmem:[%s13115_s29 + $0x250] sm:$0xff] }
 0x650   : > { %6069 = vmatpush.bf16.msra.mxu0 %v8251_v14  ;;  %v5793_v39 = vpop.f32.mrf.mxu0  ;;  %v5779_v14 = vadd.f32 %v13258_v47, %v2732_v21  ;;  %v10262_v47 = vld [vmem:[%s13115_s29 + $0x70] sm:$0xff] }
 0x651   : > { %6781 = vmatpush.bf16.msrb.mxu2 %v10309_v33  ;;  %v10319_v33 = vld [vmem:[%s13115_s29 + $0x238] sm:$0xff] }
 0x652   : > { %v5792_v23 = vadd.f32 %v5791_v35, %v5779_v14  ;;  %v10367_v35 = vld [vmem:[%s13526_s18 + $0x1] ss:$0 sm:$0xff]  ;;  %v10293_v14 = vld [vmem:[%s13115_s29 + $0x168] sm:$0xff]  ;;  %6929 = vmatpush.bf16.msrb.mxu3 %v10319_v33 }
 0x654   : > { %6070 = vmatpush.bf16.msra.mxu0 %v8211_v0  ;;  %v10308_v0 = vld [vmem:[%s13115_s29 + $0x1e0] sm:$0xff]  ;;  %v5805_v25 = vadd.f32 %v13447_v1, %v5792_v23  ;;  %v6462_v56 = vpop.f32.mrf.mxu2  ;;  %v10318_v23 = vld [vmem:[%s13115_s29 + $0x230] sm:$0xff] }
 0x655   : > { %6782 = vmatpush.bf16.msrb.mxu2 %v10308_v0  ;;  %v6463_v60 = vadd.f32 %v6462_v56, %v6450_v26  ;;  %v10291_v0 = vld [vmem:[%s13115_s29 + $0x158] sm:$0xff]  ;;  %v10316_v26 = vld [vmem:[%s13115_s29 + $0x220] sm:$0xff] }
 0x656   : > { %6930 = vmatpush.bf16.msrb.mxu3 %v10318_v23  ;;  %v10288_v56 = vld [vmem:[%s13115_s29 + $0x140] sm:$0xff] }
 0x657   : > { %v6466_v1 = vmax.f32 %v6463_v60, 0.0 }
 0x658   : > { %6071 = vmatpush.bf16.msra.mxu0 %v8171_v9  ;;  %v5818_v9 = vadd.f32 %v13495_v58, %v5805_v25  ;;  %v10290_v25 = vld [vmem:[%s13115_s29 + $0x150] sm:$0xff] }
 0x659   : > { %6783 = vmatpush.bf16.msrb.mxu2 %v10307_v3  ;;  %v6977_v58 = vmul.f32 %v10367_v35, %v6466_v1  ;;  %v10314_v35 = vld [vmem:[%s13115_s29 + $0x210] sm:$0xff] }
 0x65c   : > { %6072 = vmatpush.bf16.msra.mxu0 %v8131_v54 }
 0x65d   : > { %6784 = vmatpush.bf16.msrb.mxu2 %v10306_v46  ;;  %v10313_v46 = vld [vmem:[%s13115_s29 + $0x208] sm:$0xff] }
 0x660   : > { %6073 = vmatpush.bf16.msra.mxu0 %v8091_v40  ;;  %v6985_v40 = vsel %vm6981_vm7, %v6977_v58, 0.0  ;;  %v10326_v58 = vld [vmem:[%s13115_s29 + $0x270] sm:$0xff] }
 0x661   : > { %6785 = vmatpush.bf16.msrb.mxu2 %v10305_v52  ;;  %6986 = vadd.xlane.f32.xlu2 %v6985_v40  ;;  %v2734_v52 = vperm.slane %v13589_v36, 0 }
 0x664   : > { %6074 = vmatpush.bf16.msra.mxu0 %v8051_v59  ;;  %v10257_v59 = vld [vmem:[%s13115_s29 + $0x48] sm:$0xff] }
 0x665   : > { %6786 = vmatpush.bf16.msrb.mxu2 %v10304_v38  ;;  %v10324_v38 = vld [vmem:[%s13115_s29 + $0x260] sm:$0xff] }
 0x668   : > { %6075 = vmatpush.bf16.msra.mxu0 %v8011_v15  ;;  %v5843_v54 = vpop.f32.mrf.mxu0  ;;  %v5896_v15 = vadd.f32 %v13335_v8, %v13528_v62  ;;  %v10317_v8 = vld [vmem:[%s13115_s29 + $0x228] sm:$0xff] }
 0x669   : > { %6931 = vmatpush.bf16.msrb.mxu3 %v10317_v8 }
 0x66b   : > { %6076 = vmatmul.bf16.vlgmr.msra.gmra.mxu0 %v12339_v63  ;;  %v5831_v63 = vadd.f32 %v13300_v17, %v5818_v9  ;;  %v6464_v17 = vpop.f32.mrf.mxu2 }
 0x66c   : > { %6127 = vmatpush.bf16.msrb.mxu0 %v9291_v43 }
 0x66d   : > { %v5844_v49 = vadd.f32 %v5843_v54, %v5831_v63  ;;  %6932 = vmatpush.bf16.msrb.mxu3 %v10316_v26  ;;  %v10312_v54 = vld [vmem:[%s13115_s29 + $0x200] sm:$0xff] }
 0x66f   : > { %v5857_v16 = vadd.f32 %v13470_v2, %v5844_v49  ;;  %v10258_v2 = vld [vmem:[%s13115_s29 + $0x50] sm:$0xff]  ;;  %v10327_v49 = vld [vmem:[%s13115_s29 + $0x278] sm:$0xff] }
 0x670   : > { %6290 = vmatpush.bf16.msra.mxu0 %v10263_v22  ;;  %v5845_v39 = vpop.f32.mrf.mxu0 }
 0x671   : > { %v6139_v6 = vmax.f32 %v5857_v16, 0.0  ;;  %v10323_v39 = vld [vmem:[%s13115_s29 + $0x258] sm:$0xff] }
 0x673   : > { %v6630_v21 = vpack.c.bf16 %v6139_v6, %v6139_v6 }
 0x674   : > { %6291 = vmatpush.bf16.msra.mxu0 %v10262_v47 }
 0x675   : > { %6774 = vmatmul.bf16.vlgmr.msrb.gmra.mxu1 %v6630_v21 }
 0x678   : > { %6292 = vmatpush.bf16.msra.mxu0 %v10261_v29 }
 0x67b   : > { %9301 = vmatmul.msk.bf16.vlgmr.msrb.gmra.mxu0 %vm1818_vm0, %v12372_v37  ;;  %v6144_v37 = vpack.c.bf16 %v6134_v42, %v6134_v42  ;;  %v10321_v42 = vld [vmem:[%s13115_s29 + $0x248] sm:$0xff] }
 0x67c   : > { %6293 = vmatpush.bf16.msra.mxu0 %v10260_v11 }
 0x680   : > { %6294 = vmatpush.bf16.msra.mxu0 %v10259_v13  ;;  %v10325_v13 = vld [vmem:[%s13115_s29 + $0x268] sm:$0xff] }
 0x684   : > { %6295 = vmatpush.bf16.msra.mxu0 %v10258_v2 }
 0x688   : > { %6296 = vmatpush.bf16.msra.mxu0 %v10257_v59  ;;  %v5908_v10 = vpop.f32.mrf.mxu0 }
 0x689   : > { %v5909_v43 = vadd.f32 %v5908_v10, %v5896_v15 }
 0x68b   : > { %v5922_v22 = vadd.f32 %v13544_v24, %v5909_v43  ;;  %v10289_v24 = vld [vmem:[%s13115_s29 + $0x148] sm:$0xff] }
 0x68c   : > { %6297 = vmatpush.bf16.msra.mxu0 %v10256_v44 }
 0x68d   : > { %v5935_v41 = vadd.f32 %v13508_v53, %v5922_v22  ;;  %v10315_v53 = vld [vmem:[%s13115_s29 + $0x218] sm:$0xff] }
 0x68e   : > { %6933 = vmatpush.bf16.msrb.mxu3 %v10315_v53 }
 0x68f   : > { %6298 = vmatmul.bf16.vlgmr.msra.gmra.mxu0 %v6144_v37  ;;  %v5948_v62 = vadd.f32 %v13377_v57, %v5935_v41  ;;  %v6138_v57 = vmax.f32 %v13625_v50, 0.0  ;;  %v7061_v50 = vperm.slane %v13583_v28, 2  ;;  %v10370_v41 = vld [vmem:[%s13526_s18] ss:$0 sm:$0xff] }
 0x690   : > { %6616 = vmatpush.bf16.msrb.mxu0 %v10295_v19  ;;  %v5910_v47 = vpop.f32.mrf.mxu0  ;;  %v7068_v19 = vperm.slane %v13583_v28, 3 }
 0x691   : > { %v6140_v3 = vmax.f32 %v5948_v62, 0.0  ;;  %v6468_v29 = vpack.c.bf16 %v6138_v57, %v6138_v57  ;;  %7066 = vperm.xlu1 %10359, %v7061_v50   ;;  %v10368_v47 = vld [vmem:[%s13298_s21 + $0x2] ss:$0 sm:$0xff] }
 0x692   : > { %6934 = vmatpush.bf16.msrb.mxu3 %v10314_v35  ;;  %7073 = vperm.xlu0 %10360, %v7068_v19   ;;  %v10372_v35 = vld [vmem:[%s13526_s18 + $0x2] ss:$0 sm:$0xff] }
 0x693   : > { %v6631_v9 = vpack.c.bf16 %v6140_v3, %v6140_v3 }
 0x694   : > { %6617 = vmatpush.bf16.msrb.mxu0 %v10294_v20 }
 0x695   : > { %6787 = vmatmul.bf16.vlgmr.msrb.gmra.mxu2 %v6631_v9 }
 0x696   : > { %6935 = vmatpush.bf16.msrb.mxu3 %v10313_v46  ;;  %v7053_v46 = vpop.permute.xlu2 %7052 }
 0x698   : > { %6618 = vmatpush.bf16.msrb.mxu0 %v10293_v14  ;;  %v13702_v60 = vpop.f32.mrf.mxu3 }
 0x699   : > { %10361 = vset.pattern.permute.xlu1 %v10407_v5  ;;  %v6613_v53 = vadd.f32 %v10368_v47, %v13702_v60 }
 0x69a   : > { %6936 = vmatpush.bf16.msrb.mxu3 %v10312_v54  ;;  %10362 = vset.pattern.permute.xlu0 %v10407_v5  ;;  %v10365_v5 = vld [vmem:[%s13298_s21] ss:$0 sm:$0xff] }
 0x69c   : > { %6619 = vmatpush.bf16.msrb.mxu0 %v10292_v51  ;;  %v7060_v60 = vpop.permute.xlu1 %7059 }
 0x6a0   : > { %6620 = vmatpush.bf16.msrb.mxu0 %v10291_v0  ;;  %v6614_v63 = vpop.f32.mrf.mxu3 }
 0x6a4   : > { %6621 = vmatpush.bf16.msrb.mxu0 %v10290_v25  ;;  %v10369_v25 = vld [vmem:[%s13298_s21 + $0x3] ss:$0 sm:$0xff] }
 0x6a8   : > { %6622 = vmatpush.bf16.msrb.mxu0 %v10289_v24  ;;  %v5960_v1 = vpop.f32.mrf.mxu0  ;;  %v10371_v24 = vld [vmem:[%s13526_s18 + $0x3] ss:$0 sm:$0xff] }
 0x6a9   : > { %v5961_v16 = vadd.f32 %v5960_v1, %v2734_v52 }
 0x6ab   : > { %v5974_v40 = vadd.f32 %v13419_v4, %v5961_v16 }
 0x6ac   : > { %6623 = vmatpush.bf16.msrb.mxu0 %v10288_v56 }
 0x6ad   : > { %v5987_v17 = vadd.f32 %v13560_v27, %v5974_v40 }
 0x6af   : > { %6624 = vmatmul.bf16.vlgmr.msrb.gmra.mxu0 %v6468_v29  ;;  %v6000_v6 = vadd.f32 %v13537_v18, %v5987_v17  ;;  %v10320_v18 = vld [vmem:[%s13115_s29 + $0x240] sm:$0xff]  ;;  %s1603_s29 = scalar_lea.vmem %s13779_s14, %s12729_s22 }
 0x6b0   : > { %v5962_v11 = vpop.f32.mrf.mxu0  ;;  %6942 = vmatpush.bf16.msra.mxu0 %v10327_v49 }
 0x6b4   : > { %6943 = vmatpush.bf16.msra.mxu0 %v10326_v58  ;;  %v7081_v58 = vpop.permute.xlu2 %7080 }
 0x6b8   : > { %6944 = vmatpush.bf16.msra.mxu0 %v10325_v13  ;;  %v10373_v13 = vld [vmem:[%s13298_s21 + $0x4] ss:$0 sm:$0xff]  ;;  %s1595_s21 = scalar_lea.vmem %s13777_s12, %s12729_s22 }
 0x6bc   : > { %6945 = vmatpush.bf16.msra.mxu0 %v10324_v38 }
 0x6c0   : > { %6946 = vmatpush.bf16.msra.mxu0 %v10323_v39 }
 0x6c4   : > { %6947 = vmatpush.bf16.msra.mxu0 %v10322_v7 }
 0x6c8   : > { %v6012_v21 = vpop.f32.mrf.mxu0  ;;  %6948 = vmatpush.bf16.msra.mxu0 %v10321_v42 }
 0x6c9   : > { %v6013_v2 = vadd.f32 %v6012_v21, %v6000_v6 }
 0x6cb   : > { %v6026_v36 = vadd.f32 %v13445_v31, %v6013_v2  ;;  %v10374_v2 = vld [vmem:[%s13526_s18 + $0x4] ss:$0 sm:$0xff] }
 0x6cc   : > { %6949 = vmatpush.bf16.msra.mxu0 %v10320_v18 }
 0x6cd   : > { %v6039_v59 = vadd.f32 %v13579_v45, %v6026_v36 }
 0x6cf   : > { %v6141_v4 = vmax.f32 %v6039_v59, 0.0 }
 0x6d0   : > { %v6014_v44 = vpop.f32.mrf.mxu0 }
 0x6d1   : > { %v6793_v27 = vpack.c.bf16 %v6141_v4, %v6141_v4 }
 0x6d3   : > { %6937 = vmatmul.bf16.vlgmr.msrb.gmra.mxu3 %v6793_v27 }
 0x6d4   : > { %v6987_v52 = vpop.xlane.xlu2 %6986 }
 0x6d5   : > { %v7088_v16 = vadd.f32 %v7060_v60, %v6987_v52 }
 0x6e8   : > { %v6077_v37 = vpop.f32.mrf.mxu0 }
 0x6e9   : > { %v6078_v31 = vadd.f32 %v6077_v37, %v13601_v12 }
 0x6eb   : > { %v6091_v45 = vadd.f32 %v13468_v61, %v6078_v31  ;;  %v6287_v61 = vadd.f32 %v10365_v5, %v13534_v32 }
 0x6ed   : > { %v6104_v14 = vadd.f32 %v13570_v48, %v6091_v45 }
 0x6ef   : > { %v6117_v15 = vadd.f32 %v13615_v55, %v6104_v14 }
 0x6f0   : > { %v6079_v20 = vpop.f32.mrf.mxu0 }
 0x6f2   : > { %v6775_v33 = vpop.f32.mrf.mxu1 }
 0x6f3   : > { %v6776_v3 = vadd.f32 %v10369_v25, %v6775_v33 }
 0x6f8   : > { %v6129_v10 = vpop.f32.mrf.mxu0 }
 0x6f9   : > { %v6130_v51 = vadd.f32 %v6129_v10, %v6117_v15  ;;  %v7113_v10 = vand.u32 127, %v7048_v30 }
 0x6fa   : > { %v6777_v12 = vpop.f32.mrf.mxu1 }
 0x6fb   : > { %v6142_v28 = vmax.f32 %v6130_v51, 0.0 }
 0x6fd   : > { %v6794_v43 = vpack.c.bf16 %v6142_v28, %v6142_v28 }
 0x6ff   : > { %6950 = vmatmul.bf16.vlgmr.msra.gmra.mxu0 %v6794_v43 }
 0x700   : > { %v6131_v23 = vpop.f32.mrf.mxu0 }
 0x703   : > { %v7067_v4 = vpop.permute.xlu1 %7066 }
 0x704   : > { %v7074_v44 = vpop.permute.xlu0 %7073 }
 0x70c   : > { %v6299_v22 = vpop.f32.mrf.mxu0 }
 0x70d   : > { %v6300_v0 = vadd.f32 %v6299_v22, %v6287_v61 }
 0x70f   : > { %v6303_v48 = vmax.f32 %v6300_v0, 0.0 }
 0x711   : > { %v6976_v55 = vmul.f32 %v10370_v41, %v6303_v48 }
 0x713   : > { %v6982_v8 = vsel %vm6981_vm7, %v6976_v55, 0.0 }
 0x714   : > { %v6301_v62 = vpop.f32.mrf.mxu0  ;;  %6983 = vadd.xlane.f32.xlu1 %v6982_v8 }
 0x718   : > { %v6788_v26 = vpop.f32.mrf.mxu2 }
 0x719   : > { %v6789_v9 = vadd.f32 %v6788_v26, %v6776_v3 }
 0x71b   : > { %v6792_v56 = vmax.f32 %v6789_v9, 0.0 }
 0x71d   : > { %v6979_v29 = vmul.f32 %v10371_v24, %v6792_v56 }
 0x71f   : > { %v6991_v63 = vsel %vm6981_vm7, %v6979_v29, 0.0 }
 0x720   : > { %6992 = vadd.xlane.f32.xlu2 %v6991_v63  ;;  %v6790_v54 = vpop.f32.mrf.mxu2 }
 0x72c   : > { %v6625_v32 = vpop.f32.mrf.mxu0 }
 0x72d   : > { %v6626_v57 = vadd.f32 %v6625_v32, %v6613_v53 }
 0x72f   : > { %v6629_v1 = vmax.f32 %v6626_v57, 0.0 }
 0x731   : > { %v6978_v11 = vmul.f32 %v10372_v35, %v6629_v1 }
 0x733   : > { %v6988_v49 = vsel %vm6981_vm7, %v6978_v11, 0.0 }
 0x734   : > { %v6627_v50 = vpop.f32.mrf.mxu0  ;;  %6989 = vadd.xlane.f32.xlu0 %v6988_v49 }
 0x748   : > { %7101 = vperm.xlu0 %10362, %v7088_v16  }
 0x756   : > { %v6938_v40 = vpop.f32.mrf.mxu3 }
 0x757   : > { %v6939_v6 = vadd.f32 %v10373_v13, %v6938_v40 }
 0x75e   : > { %v6940_v17 = vpop.f32.mrf.mxu3 }
 0x77c   : > { %v6951_v38 = vpop.f32.mrf.mxu0 }
 0x77d   : > { %v6952_v21 = vadd.f32 %v6951_v38, %v6939_v6 }
 0x77f   : > { %v6955_v36 = vmax.f32 %v6952_v21, 0.0 }
 0x781   : > { %v6980_v39 = vmul.f32 %v10374_v2, %v6955_v36 }
 0x783   : > { %v6994_v59 = vsel %vm6981_vm7, %v6980_v39, 0.0 }
 0x784   : > { %v6953_v7 = vpop.f32.mrf.mxu0  ;;  %6995 = vadd.xlane.f32.xlu1 %v6994_v59 }
 0x787   : > { %v6984_v27 = vpop.xlane.xlu1 %6983 }
 0x788   : > { %v7087_v42 = vadd.f32 %v7053_v46, %v6984_v27 }
 0x793   : > { %v6993_v18 = vpop.xlane.xlu2 %6992 }
 0x794   : > { %v7090_v19 = vadd.f32 %v7074_v44, %v6993_v18 }
 0x796   : > { %7107 = vperm.xlu0 %10362, %v7090_v19  }
 0x79d   : > { %7098 = vperm.xlu1 %10361, %v7087_v42  }
 0x7a7   : > { %v6990_v37 = vpop.xlane.xlu0 %6989 }
 0x7a8   : > { %v7089_v31 = vadd.f32 %v7067_v4, %v6990_v37 }
 0x7aa   : > { %7104 = vperm.xlu2 %10363, %v7089_v31  }
 0x7ba   : > { %v7102_v14 = vpop.permute.xlu0 %7101 }
 0x7bb   : > { %v7115_v28 = vperm.slane %v7102_v14, %v7113_v10 }
 0x7f7   : > { %v6996_v45 = vpop.xlane.xlu1 %6995 }
 0x7f8   : > { %v7091_v20 = vadd.f32 %v7081_v58, %v6996_v45 }
 0x7fa   : > { %7110 = vperm.xlu2 %10363, %v7091_v20  }
 0x804   : > { %v7105_v51 = vpop.permute.xlu2 %7104 }
 0x805   : > { %v7116_v12 = vperm.slane %v7105_v51, %v7113_v10 }
 0x808   : > { %v7108_v43 = vpop.permute.xlu0 %7107 }
 0x809   : > { %v7117_v5 = vperm.slane %v7108_v43, %v7113_v10 }
 0x80f   : > { %v7099_v15 = vpop.permute.xlu1 %7098 }
 0x810   : > { %v7114_v33 = vperm.slane %v7099_v15, %v7113_v10 }
 0x812   : > { %v7120_v23 = vsel %vm7119_vm8, %v7115_v28, %v7114_v33 }
 0x813   : > { %v7122_v61 = vsel %vm7121_vm9, %v7116_v12, %v7120_v23 }
 0x814   : > { %v7124_v41 = vsel %vm7123_vm10, %v7117_v5, %v7122_v61 }
 0x854   : > { %v7111_v22 = vpop.permute.xlu2 %7110 }
 0x855   : > { %v7118_v0 = vperm.slane %v7111_v22, %v7113_v10 }
 0x857   : > { %v7126_v30 = vsel %vm7125_vm11, %v7118_v0, %v7124_v41 }
 0x858   : > { %v7129_v48 = vsel %vm7128_vm12, %v7126_v30, 0.0 }
 0x859   : > { %7131 = vst.msk [vmem:[%s1603_s29] sm:$0xff] %vm7130_vm6, %v7129_v48  ;;  %v7133_v55 = vmul.f32 %v7129_v48, %v13095_v34 }
 0x85b   : > { %7134 = vst.msk [vmem:[%s1595_s21] sm:$0xff] %vm7130_vm6, %v7133_v55 }
 0x85c PF: > { %p22_p11 = scmp.ge.s32.totalorder %s10502_s17, 4   ;;  %s13782_s29 = smov %s10401_s30 }
 0x85d   : > { %s13783_s30 = smov %s10511_s20  ;;  %s13784_s15 = smov %s10502_s17 }
 0x85e   :  { %24 = sbr.rel (!%p22_p11) target bundleno = 2 (0x2), region = 180 }

</bundles_post_ra>
